<compile_context>
chip_gen: v7x
topology: tpu7x:2x2x1
jax: 0.10.0
libtpu: 0.0.40
codegen_flags: <defaults>
</compile_context>

<pallas_src>
import functools
import math

import numpy as np
import jax
import jax.numpy as jnp
from jax.experimental import pallas as pl


# --------------------------------------------------------------------------
# Operator construction (host-side, done once outside jit)
# --------------------------------------------------------------------------
def _scatter_matrix(in_size, k=3, stride=2):
    """S[kk, o, i] = 1  iff  o == stride*i + kk  (ConvTranspose scatter pattern)."""
    out_size = (in_size - 1) * stride + k
    S = np.zeros((k, out_size, in_size), np.float32)
    for kk in range(k):
        for i in range(in_size):
            S[kk, stride * i + kk, i] = 1.0
    return S


def _interp_matrix(in_size, out_size):
    """PyTorch bilinear (align_corners=False) interpolation matrix, (out_size, in_size)."""
    scale = in_size / out_size
    o = np.arange(out_size, dtype=np.float64)
    src = np.maximum((o + 0.5) * scale - 0.5, 0.0)
    i0 = np.minimum(np.floor(src).astype(np.int64), in_size - 1)
    i1 = np.minimum(i0 + 1, in_size - 1)
    w1 = (src - i0).astype(np.float32)
    w0 = (1.0 - w1).astype(np.float32)
    R = np.zeros((out_size, in_size), np.float32)
    R[np.arange(out_size), i0] += w0
    R[np.arange(out_size), i1] += w1
    return R


def build_operators(params, x_shape, out_size=224, cj=256):
    """Precompute per-layer / resize operator matrices for the fused kernel."""
    N, cin0, H, W = x_shape
    ops = []
    counts = []
    h, w, cin = H, W, cin0
    for (Wt, b, gamma, beta) in params:
        assert Wt.shape[0] == cin
        cout = Wt.shape[1]
        oh, ow = 2 * h + 1, 2 * w + 1
        scol = _scatter_matrix(w)                       # (3, ow, w)
        srow = _scatter_matrix(h)                       # (3, oh, h)
        # Op1[kh][(w,ci),(ow,co)] = sum_kw scol[kw,ow,w] * Wt[ci,co,kh,kw]
        op1 = jnp.einsum('kow,ichk->hwioc', jnp.asarray(scol), Wt)
        op1 = op1.reshape(3, w * cin, ow * cout).astype(jnp.float32)
        # L[kh] = I_N (x) srow[kh]  : (N*oh, N*h)
        L = np.stack([np.kron(np.eye(N, dtype=np.float32), srow[kh]) for kh in range(3)])
        kf = np.tile(np.eye(cout, dtype=np.float32), (ow, 1))   # (ow*cout, cout)  fold
        ke = np.ascontiguousarray(kf.T)                          # (cout, ow*cout)  expand
        bias_e = jnp.tile(b, ow)[None, :].astype(jnp.float32)    # (1, ow*cout)
        gamma_e = jnp.tile(gamma, ow)[None, :].astype(jnp.float32)
        beta_e = jnp.tile(beta, ow)[None, :].astype(jnp.float32)
        ops += [op1, jnp.asarray(L), bias_e, gamma_e, beta_e,
                jnp.asarray(kf), jnp.asarray(ke)]
        counts.append(N * oh * ow)
        h, w, cin = oh, ow, cout
    # bilinear-resize operators applied to the final (n*h, w*c) layout
    c_last = cin
    rh = _interp_matrix(h, out_size)                    # (224, 39)
    rw = _interp_matrix(w, out_size)                    # (224, 39)
    opw = np.zeros((w * c_last, c_last * cj), np.float32)
    for c in range(c_last):
        for o in range(w):
            opw[o * c_last + c, c * cj:c * cj + out_size] = rw[:, o]
    lr = np.kron(np.eye(N, dtype=np.float32), rh)       # (N*224, N*39)
    ops += [jnp.asarray(opw), jnp.asarray(lr)]
    static = dict(counts=tuple(counts), n_batch=N, out_size=out_size, cj=cj, c_out=c_last)
    return tuple(ops), static


# --------------------------------------------------------------------------
# Fused Pallas kernel
# --------------------------------------------------------------------------
def _deconv_bn_layer(a, op1_ref, l_ref, bias_ref, gamma_ref, beta_ref, kf_ref, ke_ref,
                     *, count, relu, eps=1e-5):
    """ConvTranspose2d(k=3, s=2) + BatchNorm2d(+ReLU) on the (n*h, w*c) layout."""
    acc = None
    for kh in range(3):
        u = jnp.dot(a, op1_ref[kh], preferred_element_type=jnp.float32)   # (N*H, OW*Cout)
        t = jnp.dot(l_ref[kh], u, preferred_element_type=jnp.float32)     # (N*OH, OW*Cout)
        acc = t if acc is None else acc + t
    y = acc + bias_ref[...]
    # BatchNorm2d, training-mode batch statistics over (n, oh, ow) per channel.
    s1 = jnp.sum(y, axis=0, keepdims=True)                                # (1, OW*Cout)
    s2 = jnp.sum(y * y, axis=0, keepdims=True)
    mean_c = jnp.dot(s1, kf_ref[...], preferred_element_type=jnp.float32) / count
    ex2_c = jnp.dot(s2, kf_ref[...], preferred_element_type=jnp.float32) / count
    var_c = jnp.maximum(ex2_c - mean_c * mean_c, 0.0)
    rstd_c = jax.lax.rsqrt(var_c + eps)
    mean_e = jnp.dot(mean_c, ke_ref[...], preferred_element_type=jnp.float32)
    rstd_e = jnp.dot(rstd_c, ke_ref[...], preferred_element_type=jnp.float32)
    y = (y - mean_e) * rstd_e * gamma_ref[...] + beta_ref[...]
    if relu:
        y = jnp.maximum(y, 0.0)
    return y


def _resnet_deconv_kernel(*refs, counts, relus, n_batch, out_size, cj, c_out):
    x_ref = refs[0]
    opw_ref, lr_ref, out_ref = refs[-3], refs[-2], refs[-1]
    a = x_ref[...]                                         # (N*H, W*Cin)
    for l in range(3):
        base = 1 + 7 * l
        a = _deconv_bn_layer(a, refs[base], refs[base + 1], refs[base + 2],
                             refs[base + 3], refs[base + 4], refs[base + 5],
                             refs[base + 6], count=counts[l], relu=relus[l])
    # bilinear resize: cols (w,c)->(c,j) then rows (n,h)->(n,i), two dense matmuls
    c1 = jnp.dot(a, opw_ref[...], preferred_element_type=jnp.float32)     # (N*39, c_out*cj)
    o2 = jnp.dot(lr_ref[...], c1, preferred_element_type=jnp.float32)     # (N*224, c_out*cj)
    # write NCHW directly; channel blocks are 128-lane aligned (cj = 256)
    for n in range(n_batch):
        for c in range(c_out):
            out_ref[n, c, :, :] = o2[n * out_size:(n + 1) * out_size,
                                     c * cj:c * cj + out_size]


def resnet_deconv_forward(x, operators, static):
    N, cin, H, W = x.shape
    a0 = jnp.transpose(x, (0, 2, 3, 1)).reshape(N * H, W * cin)  # rows=(n,h), cols=(w,c)
    kernel = functools.partial(
        _resnet_deconv_kernel,
        counts=static['counts'], relus=(True, True, False),
        n_batch=static['n_batch'], out_size=static['out_size'],
        cj=static['cj'], c_out=static['c_out'])
    return pl.pallas_call(
        kernel,
        out_shape=jax.ShapeDtypeStruct(
            (N, static['c_out'], static['out_size'], static['out_size']), jnp.float32),
    )(a0, *operators)


# --------------------------------------------------------------------------
# Parameters (deterministic, matching the module's __init__ shapes)
# --------------------------------------------------------------------------
def init_params(key):
    layer_dims = [(64, 32), (32, 8), (8, 3)]
    params = []
    for (cin, cout) in layer_dims:
        key, kw, kb = jax.random.split(key, 3)
        n = 3 * 3 * cout                       # m.weight.data.normal_(0, sqrt(2/n))
        Wt = jax.random.normal(kw, (cin, cout, 3, 3), jnp.float32) * math.sqrt(2.0 / n)
        b = jax.random.uniform(kb, (cout,), jnp.float32, -0.1, 0.1)
        gamma = jnp.ones((cout,), jnp.float32)     # BN weight = 1
        beta = jnp.zeros((cout,), jnp.float32)     # BN bias = 0
        params.append((Wt, b, gamma, beta))
    return params


if __name__ == "__main__":
    key = jax.random.PRNGKey(0)
    kx, kp = jax.random.split(key)
    x = jax.random.normal(kx, (2, 64, 4, 4), jnp.float32)       # (N, 64, H, W)
    params = init_params(kp)
    operators, static = build_operators(params, x.shape)        # once, outside jit
    fwd = jax.jit(lambda xx, ops: resnet_deconv_forward(xx, ops, static))
    out = fwd(x, operators)
    jax.block_until_ready(out)
    assert out.shape == (2, 3, 224, 224), out.shape
    assert out.dtype == jnp.float32
    print("KERNEL_OK")
</pallas_src>

<mosaic_0001>
module attributes {stable_mosaic.version = 11 : i64} {
  func.func @_resnet_deconv_kernel(%arg0: memref<8x256xf32, #tpu.memory_space<vmem>>, %arg1: memref<3x256x288xf32, #tpu.memory_space<vmem>>, %arg2: memref<3x18x8xf32, #tpu.memory_space<vmem>>, %arg3: memref<1x288xf32, #tpu.memory_space<vmem>>, %arg4: memref<1x288xf32, #tpu.memory_space<vmem>>, %arg5: memref<1x288xf32, #tpu.memory_space<vmem>>, %arg6: memref<288x32xf32, #tpu.memory_space<vmem>>, %arg7: memref<32x288xf32, #tpu.memory_space<vmem>>, %arg8: memref<3x288x152xf32, #tpu.memory_space<vmem>>, %arg9: memref<3x38x18xf32, #tpu.memory_space<vmem>>, %arg10: memref<1x152xf32, #tpu.memory_space<vmem>>, %arg11: memref<1x152xf32, #tpu.memory_space<vmem>>, %arg12: memref<1x152xf32, #tpu.memory_space<vmem>>, %arg13: memref<152x8xf32, #tpu.memory_space<vmem>>, %arg14: memref<8x152xf32, #tpu.memory_space<vmem>>, %arg15: memref<3x152x117xf32, #tpu.memory_space<vmem>>, %arg16: memref<3x78x38xf32, #tpu.memory_space<vmem>>, %arg17: memref<1x117xf32, #tpu.memory_space<vmem>>, %arg18: memref<1x117xf32, #tpu.memory_space<vmem>>, %arg19: memref<1x117xf32, #tpu.memory_space<vmem>>, %arg20: memref<117x3xf32, #tpu.memory_space<vmem>>, %arg21: memref<3x117xf32, #tpu.memory_space<vmem>>, %arg22: memref<117x768xf32, #tpu.memory_space<vmem>>, %arg23: memref<448x78xf32, #tpu.memory_space<vmem>>, %arg24: memref<2x3x224x224xf32, #tpu.memory_space<vmem>>) attributes {dimension_semantics = [], scalar_prefetch = 0 : i64, scratch_operands = 0 : i64, tpu.core_type = #tpu.core_type<tc>} {
    %c0 = arith.constant 0 : index
    %c0_0 = arith.constant 0 : index
    %0 = vector.load %arg0[%c0, %c0_0] : memref<8x256xf32, #tpu.memory_space<vmem>>, vector<8x256xf32>
    %c0_1 = arith.constant 0 : index
    %c0_2 = arith.constant 0 : index
    %c0_3 = arith.constant 0 : index
    %1 = vector.load %arg1[%c0_1, %c0_2, %c0_3] : memref<3x256x288xf32, #tpu.memory_space<vmem>>, vector<1x256x288xf32>
    %2 = vector.shape_cast %1 : vector<1x256x288xf32> to vector<256x288xf32>
    %cst = arith.constant dense<0.000000e+00> : vector<8x288xf32>
    %3 = tpu.matmul %0, %2, %cst {dimension_numbers = #tpu.dot_dimension_numbers<[1], [0], [0], [1], [0, 0, 1, 1], [], []>} : vector<8x256xf32>, vector<256x288xf32>, vector<8x288xf32> -> vector<8x288xf32>
    %c0_4 = arith.constant 0 : index
    %c0_5 = arith.constant 0 : index
    %c0_6 = arith.constant 0 : index
    %4 = vector.load %arg2[%c0_4, %c0_5, %c0_6] : memref<3x18x8xf32, #tpu.memory_space<vmem>>, vector<1x18x8xf32>
    %5 = vector.shape_cast %4 : vector<1x18x8xf32> to vector<18x8xf32>
    %cst_7 = arith.constant dense<0.000000e+00> : vector<18x288xf32>
    %6 = tpu.matmul %5, %3, %cst_7 {dimension_numbers = #tpu.dot_dimension_numbers<[1], [0], [0], [1], [0, 0, 1, 1], [], []>} : vector<18x8xf32>, vector<8x288xf32>, vector<18x288xf32> -> vector<18x288xf32>
    %c1 = arith.constant 1 : index
    %c0_8 = arith.constant 0 : index
    %c0_9 = arith.constant 0 : index
    %7 = vector.load %arg1[%c1, %c0_8, %c0_9] : memref<3x256x288xf32, #tpu.memory_space<vmem>>, vector<1x256x288xf32>
    %8 = vector.shape_cast %7 : vector<1x256x288xf32> to vector<256x288xf32>
    %cst_10 = arith.constant dense<0.000000e+00> : vector<8x288xf32>
    %9 = tpu.matmul %0, %8, %cst_10 {dimension_numbers = #tpu.dot_dimension_numbers<[1], [0], [0], [1], [0, 0, 1, 1], [], []>} : vector<8x256xf32>, vector<256x288xf32>, vector<8x288xf32> -> vector<8x288xf32>
    %c1_11 = arith.constant 1 : index
    %c0_12 = arith.constant 0 : index
    %c0_13 = arith.constant 0 : index
    %10 = vector.load %arg2[%c1_11, %c0_12, %c0_13] : memref<3x18x8xf32, #tpu.memory_space<vmem>>, vector<1x18x8xf32>
    %11 = vector.shape_cast %10 : vector<1x18x8xf32> to vector<18x8xf32>
    %cst_14 = arith.constant dense<0.000000e+00> : vector<18x288xf32>
    %12 = tpu.matmul %11, %9, %cst_14 {dimension_numbers = #tpu.dot_dimension_numbers<[1], [0], [0], [1], [0, 0, 1, 1], [], []>} : vector<18x8xf32>, vector<8x288xf32>, vector<18x288xf32> -> vector<18x288xf32>
    %13 = arith.addf %6, %12 : vector<18x288xf32>
    %c2 = arith.constant 2 : index
    %c0_15 = arith.constant 0 : index
    %c0_16 = arith.constant 0 : index
    %14 = vector.load %arg1[%c2, %c0_15, %c0_16] : memref<3x256x288xf32, #tpu.memory_space<vmem>>, vector<1x256x288xf32>
    %15 = vector.shape_cast %14 : vector<1x256x288xf32> to vector<256x288xf32>
    %cst_17 = arith.constant dense<0.000000e+00> : vector<8x288xf32>
    %16 = tpu.matmul %0, %15, %cst_17 {dimension_numbers = #tpu.dot_dimension_numbers<[1], [0], [0], [1], [0, 0, 1, 1], [], []>} : vector<8x256xf32>, vector<256x288xf32>, vector<8x288xf32> -> vector<8x288xf32>
    %c2_18 = arith.constant 2 : index
    %c0_19 = arith.constant 0 : index
    %c0_20 = arith.constant 0 : index
    %17 = vector.load %arg2[%c2_18, %c0_19, %c0_20] : memref<3x18x8xf32, #tpu.memory_space<vmem>>, vector<1x18x8xf32>
    %18 = vector.shape_cast %17 : vector<1x18x8xf32> to vector<18x8xf32>
    %cst_21 = arith.constant dense<0.000000e+00> : vector<18x288xf32>
    %19 = tpu.matmul %18, %16, %cst_21 {dimension_numbers = #tpu.dot_dimension_numbers<[1], [0], [0], [1], [0, 0, 1, 1], [], []>} : vector<18x8xf32>, vector<8x288xf32>, vector<18x288xf32> -> vector<18x288xf32>
    %20 = arith.addf %13, %19 : vector<18x288xf32>
    %c0_22 = arith.constant 0 : index
    %c0_23 = arith.constant 0 : index
    %21 = vector.load %arg3[%c0_22, %c0_23] : memref<1x288xf32, #tpu.memory_space<vmem>>, vector<1x288xf32>
    %22 = vector.broadcast %21 : vector<1x288xf32> to vector<18x288xf32>
    %23 = arith.addf %20, %22 : vector<18x288xf32>
    %cst_24 = arith.constant dense<0.000000e+00> : vector<288xf32>
    %24 = vector.multi_reduction <add>, %23, %cst_24 [0] : vector<18x288xf32> to vector<288xf32>
    %25 = vector.shape_cast %24 : vector<288xf32> to vector<1x288xf32>
    %26 = arith.mulf %23, %23 : vector<18x288xf32>
    %cst_25 = arith.constant dense<0.000000e+00> : vector<288xf32>
    %27 = vector.multi_reduction <add>, %26, %cst_25 [0] : vector<18x288xf32> to vector<288xf32>
    %28 = vector.shape_cast %27 : vector<288xf32> to vector<1x288xf32>
    %c0_26 = arith.constant 0 : index
    %c0_27 = arith.constant 0 : index
    %29 = vector.load %arg6[%c0_26, %c0_27] : memref<288x32xf32, #tpu.memory_space<vmem>>, vector<288x32xf32>
    %cst_28 = arith.constant dense<0.000000e+00> : vector<1x32xf32>
    %30 = tpu.matmul %25, %29, %cst_28 {dimension_numbers = #tpu.dot_dimension_numbers<[1], [0], [0], [1], [0, 0, 1, 1], [], []>} : vector<1x288xf32>, vector<288x32xf32>, vector<1x32xf32> -> vector<1x32xf32>
    %cst_29 = arith.constant 1.620000e+02 : f32
    %31 = vector.broadcast %cst_29 : f32 to vector<1x32xf32>
    %32 = arith.divf %30, %31 : vector<1x32xf32>
    %c0_30 = arith.constant 0 : index
    %c0_31 = arith.constant 0 : index
    %33 = vector.load %arg6[%c0_30, %c0_31] : memref<288x32xf32, #tpu.memory_space<vmem>>, vector<288x32xf32>
    %cst_32 = arith.constant dense<0.000000e+00> : vector<1x32xf32>
    %34 = tpu.matmul %28, %33, %cst_32 {dimension_numbers = #tpu.dot_dimension_numbers<[1], [0], [0], [1], [0, 0, 1, 1], [], []>} : vector<1x288xf32>, vector<288x32xf32>, vector<1x32xf32> -> vector<1x32xf32>
    %cst_33 = arith.constant 1.620000e+02 : f32
    %35 = vector.broadcast %cst_33 : f32 to vector<1x32xf32>
    %36 = arith.divf %34, %35 : vector<1x32xf32>
    %37 = arith.mulf %32, %32 : vector<1x32xf32>
    %38 = arith.subf %36, %37 : vector<1x32xf32>
    %cst_34 = arith.constant 0.000000e+00 : f32
    %39 = vector.broadcast %cst_34 : f32 to vector<1x32xf32>
    %40 = arith.maximumf %38, %39 : vector<1x32xf32>
    %cst_35 = arith.constant 9.99999974E-6 : f32
    %41 = vector.broadcast %cst_35 : f32 to vector<1x32xf32>
    %42 = arith.addf %40, %41 : vector<1x32xf32>
    %43 = math.rsqrt %42 : vector<1x32xf32>
    %c0_36 = arith.constant 0 : index
    %c0_37 = arith.constant 0 : index
    %44 = vector.load %arg7[%c0_36, %c0_37] : memref<32x288xf32, #tpu.memory_space<vmem>>, vector<32x288xf32>
    %cst_38 = arith.constant dense<0.000000e+00> : vector<1x288xf32>
    %45 = tpu.matmul %32, %44, %cst_38 {dimension_numbers = #tpu.dot_dimension_numbers<[1], [0], [0], [1], [0, 0, 1, 1], [], []>} : vector<1x32xf32>, vector<32x288xf32>, vector<1x288xf32> -> vector<1x288xf32>
    %c0_39 = arith.constant 0 : index
    %c0_40 = arith.constant 0 : index
    %46 = vector.load %arg7[%c0_39, %c0_40] : memref<32x288xf32, #tpu.memory_space<vmem>>, vector<32x288xf32>
    %cst_41 = arith.constant dense<0.000000e+00> : vector<1x288xf32>
    %47 = tpu.matmul %43, %46, %cst_41 {dimension_numbers = #tpu.dot_dimension_numbers<[1], [0], [0], [1], [0, 0, 1, 1], [], []>} : vector<1x32xf32>, vector<32x288xf32>, vector<1x288xf32> -> vector<1x288xf32>
    %48 = vector.broadcast %45 : vector<1x288xf32> to vector<18x288xf32>
    %49 = arith.subf %23, %48 : vector<18x288xf32>
    %50 = vector.broadcast %47 : vector<1x288xf32> to vector<18x288xf32>
    %51 = arith.mulf %49, %50 : vector<18x288xf32>
    %c0_42 = arith.constant 0 : index
    %c0_43 = arith.constant 0 : index
    %52 = vector.load %arg4[%c0_42, %c0_43] : memref<1x288xf32, #tpu.memory_space<vmem>>, vector<1x288xf32>
    %53 = vector.broadcast %52 : vector<1x288xf32> to vector<18x288xf32>
    %54 = arith.mulf %51, %53 : vector<18x288xf32>
    %c0_44 = arith.constant 0 : index
    %c0_45 = arith.constant 0 : index
    %55 = vector.load %arg5[%c0_44, %c0_45] : memref<1x288xf32, #tpu.memory_space<vmem>>, vector<1x288xf32>
    %56 = vector.broadcast %55 : vector<1x288xf32> to vector<18x288xf32>
    %57 = arith.addf %54, %56 : vector<18x288xf32>
    %cst_46 = arith.constant 0.000000e+00 : f32
    %58 = vector.broadcast %cst_46 : f32 to vector<18x288xf32>
    %59 = arith.maximumf %57, %58 : vector<18x288xf32>
    %c0_47 = arith.constant 0 : index
    %c0_48 = arith.constant 0 : index
    %c0_49 = arith.constant 0 : index
    %60 = vector.load %arg8[%c0_47, %c0_48, %c0_49] : memref<3x288x152xf32, #tpu.memory_space<vmem>>, vector<1x288x152xf32>
    %61 = vector.shape_cast %60 : vector<1x288x152xf32> to vector<288x152xf32>
    %cst_50 = arith.constant dense<0.000000e+00> : vector<18x152xf32>
    %62 = tpu.matmul %59, %61, %cst_50 {dimension_numbers = #tpu.dot_dimension_numbers<[1], [0], [0], [1], [0, 0, 1, 1], [], []>} : vector<18x288xf32>, vector<288x152xf32>, vector<18x152xf32> -> vector<18x152xf32>
    %c0_51 = arith.constant 0 : index
    %c0_52 = arith.constant 0 : index
    %c0_53 = arith.constant 0 : index
    %63 = vector.load %arg9[%c0_51, %c0_52, %c0_53] : memref<3x38x18xf32, #tpu.memory_space<vmem>>, vector<1x38x18xf32>
    %64 = vector.shape_cast %63 : vector<1x38x18xf32> to vector<38x18xf32>
    %cst_54 = arith.constant dense<0.000000e+00> : vector<38x152xf32>
    %65 = tpu.matmul %64, %62, %cst_54 {dimension_numbers = #tpu.dot_dimension_numbers<[1], [0], [0], [1], [0, 0, 1, 1], [], []>} : vector<38x18xf32>, vector<18x152xf32>, vector<38x152xf32> -> vector<38x152xf32>
    %c1_55 = arith.constant 1 : index
    %c0_56 = arith.constant 0 : index
    %c0_57 = arith.constant 0 : index
    %66 = vector.load %arg8[%c1_55, %c0_56, %c0_57] : memref<3x288x152xf32, #tpu.memory_space<vmem>>, vector<1x288x152xf32>
    %67 = vector.shape_cast %66 : vector<1x288x152xf32> to vector<288x152xf32>
    %cst_58 = arith.constant dense<0.000000e+00> : vector<18x152xf32>
    %68 = tpu.matmul %59, %67, %cst_58 {dimension_numbers = #tpu.dot_dimension_numbers<[1], [0], [0], [1], [0, 0, 1, 1], [], []>} : vector<18x288xf32>, vector<288x152xf32>, vector<18x152xf32> -> vector<18x152xf32>
    %c1_59 = arith.constant 1 : index
    %c0_60 = arith.constant 0 : index
    %c0_61 = arith.constant 0 : index
    %69 = vector.load %arg9[%c1_59, %c0_60, %c0_61] : memref<3x38x18xf32, #tpu.memory_space<vmem>>, vector<1x38x18xf32>
    %70 = vector.shape_cast %69 : vector<1x38x18xf32> to vector<38x18xf32>
    %cst_62 = arith.constant dense<0.000000e+00> : vector<38x152xf32>
    %71 = tpu.matmul %70, %68, %cst_62 {dimension_numbers = #tpu.dot_dimension_numbers<[1], [0], [0], [1], [0, 0, 1, 1], [], []>} : vector<38x18xf32>, vector<18x152xf32>, vector<38x152xf32> -> vector<38x152xf32>
    %72 = arith.addf %65, %71 : vector<38x152xf32>
    %c2_63 = arith.constant 2 : index
    %c0_64 = arith.constant 0 : index
    %c0_65 = arith.constant 0 : index
    %73 = vector.load %arg8[%c2_63, %c0_64, %c0_65] : memref<3x288x152xf32, #tpu.memory_space<vmem>>, vector<1x288x152xf32>
    %74 = vector.shape_cast %73 : vector<1x288x152xf32> to vector<288x152xf32>
    %cst_66 = arith.constant dense<0.000000e+00> : vector<18x152xf32>
    %75 = tpu.matmul %59, %74, %cst_66 {dimension_numbers = #tpu.dot_dimension_numbers<[1], [0], [0], [1], [0, 0, 1, 1], [], []>} : vector<18x288xf32>, vector<288x152xf32>, vector<18x152xf32> -> vector<18x152xf32>
    %c2_67 = arith.constant 2 : index
    %c0_68 = arith.constant 0 : index
    %c0_69 = arith.constant 0 : index
    %76 = vector.load %arg9[%c2_67, %c0_68, %c0_69] : memref<3x38x18xf32, #tpu.memory_space<vmem>>, vector<1x38x18xf32>
    %77 = vector.shape_cast %76 : vector<1x38x18xf32> to vector<38x18xf32>
    %cst_70 = arith.constant dense<0.000000e+00> : vector<38x152xf32>
    %78 = tpu.matmul %77, %75, %cst_70 {dimension_numbers = #tpu.dot_dimension_numbers<[1], [0], [0], [1], [0, 0, 1, 1], [], []>} : vector<38x18xf32>, vector<18x152xf32>, vector<38x152xf32> -> vector<38x152xf32>
    %79 = arith.addf %72, %78 : vector<38x152xf32>
    %c0_71 = arith.constant 0 : index
    %c0_72 = arith.constant 0 : index
    %80 = vector.load %arg10[%c0_71, %c0_72] : memref<1x152xf32, #tpu.memory_space<vmem>>, vector<1x152xf32>
    %81 = vector.broadcast %80 : vector<1x152xf32> to vector<38x152xf32>
    %82 = arith.addf %79, %81 : vector<38x152xf32>
    %cst_73 = arith.constant dense<0.000000e+00> : vector<152xf32>
    %83 = vector.multi_reduction <add>, %82, %cst_73 [0] : vector<38x152xf32> to vector<152xf32>
    %84 = vector.shape_cast %83 : vector<152xf32> to vector<1x152xf32>
    %85 = arith.mulf %82, %82 : vector<38x152xf32>
    %cst_74 = arith.constant dense<0.000000e+00> : vector<152xf32>
    %86 = vector.multi_reduction <add>, %85, %cst_74 [0] : vector<38x152xf32> to vector<152xf32>
    %87 = vector.shape_cast %86 : vector<152xf32> to vector<1x152xf32>
    %c0_75 = arith.constant 0 : index
    %c0_76 = arith.constant 0 : index
    %88 = vector.load %arg13[%c0_75, %c0_76] : memref<152x8xf32, #tpu.memory_space<vmem>>, vector<152x8xf32>
    %cst_77 = arith.constant dense<0.000000e+00> : vector<1x8xf32>
    %89 = tpu.matmul %84, %88, %cst_77 {dimension_numbers = #tpu.dot_dimension_numbers<[1], [0], [0], [1], [0, 0, 1, 1], [], []>} : vector<1x152xf32>, vector<152x8xf32>, vector<1x8xf32> -> vector<1x8xf32>
    %cst_78 = arith.constant 7.220000e+02 : f32
    %90 = vector.broadcast %cst_78 : f32 to vector<1x8xf32>
    %91 = arith.divf %89, %90 : vector<1x8xf32>
    %c0_79 = arith.constant 0 : index
    %c0_80 = arith.constant 0 : index
    %92 = vector.load %arg13[%c0_79, %c0_80] : memref<152x8xf32, #tpu.memory_space<vmem>>, vector<152x8xf32>
    %cst_81 = arith.constant dense<0.000000e+00> : vector<1x8xf32>
    %93 = tpu.matmul %87, %92, %cst_81 {dimension_numbers = #tpu.dot_dimension_numbers<[1], [0], [0], [1], [0, 0, 1, 1], [], []>} : vector<1x152xf32>, vector<152x8xf32>, vector<1x8xf32> -> vector<1x8xf32>
    %cst_82 = arith.constant 7.220000e+02 : f32
    %94 = vector.broadcast %cst_82 : f32 to vector<1x8xf32>
    %95 = arith.divf %93, %94 : vector<1x8xf32>
    %96 = arith.mulf %91, %91 : vector<1x8xf32>
    %97 = arith.subf %95, %96 : vector<1x8xf32>
    %cst_83 = arith.constant 0.000000e+00 : f32
    %98 = vector.broadcast %cst_83 : f32 to vector<1x8xf32>
    %99 = arith.maximumf %97, %98 : vector<1x8xf32>
    %cst_84 = arith.constant 9.99999974E-6 : f32
    %100 = vector.broadcast %cst_84 : f32 to vector<1x8xf32>
    %101 = arith.addf %99, %100 : vector<1x8xf32>
    %102 = math.rsqrt %101 : vector<1x8xf32>
    %c0_85 = arith.constant 0 : index
    %c0_86 = arith.constant 0 : index
    %103 = vector.load %arg14[%c0_85, %c0_86] : memref<8x152xf32, #tpu.memory_space<vmem>>, vector<8x152xf32>
    %cst_87 = arith.constant dense<0.000000e+00> : vector<1x152xf32>
    %104 = tpu.matmul %91, %103, %cst_87 {dimension_numbers = #tpu.dot_dimension_numbers<[1], [0], [0], [1], [0, 0, 1, 1], [], []>} : vector<1x8xf32>, vector<8x152xf32>, vector<1x152xf32> -> vector<1x152xf32>
    %c0_88 = arith.constant 0 : index
    %c0_89 = arith.constant 0 : index
    %105 = vector.load %arg14[%c0_88, %c0_89] : memref<8x152xf32, #tpu.memory_space<vmem>>, vector<8x152xf32>
    %cst_90 = arith.constant dense<0.000000e+00> : vector<1x152xf32>
    %106 = tpu.matmul %102, %105, %cst_90 {dimension_numbers = #tpu.dot_dimension_numbers<[1], [0], [0], [1], [0, 0, 1, 1], [], []>} : vector<1x8xf32>, vector<8x152xf32>, vector<1x152xf32> -> vector<1x152xf32>
    %107 = vector.broadcast %104 : vector<1x152xf32> to vector<38x152xf32>
    %108 = arith.subf %82, %107 : vector<38x152xf32>
    %109 = vector.broadcast %106 : vector<1x152xf32> to vector<38x152xf32>
    %110 = arith.mulf %108, %109 : vector<38x152xf32>
    %c0_91 = arith.constant 0 : index
    %c0_92 = arith.constant 0 : index
    %111 = vector.load %arg11[%c0_91, %c0_92] : memref<1x152xf32, #tpu.memory_space<vmem>>, vector<1x152xf32>
    %112 = vector.broadcast %111 : vector<1x152xf32> to vector<38x152xf32>
    %113 = arith.mulf %110, %112 : vector<38x152xf32>
    %c0_93 = arith.constant 0 : index
    %c0_94 = arith.constant 0 : index
    %114 = vector.load %arg12[%c0_93, %c0_94] : memref<1x152xf32, #tpu.memory_space<vmem>>, vector<1x152xf32>
    %115 = vector.broadcast %114 : vector<1x152xf32> to vector<38x152xf32>
    %116 = arith.addf %113, %115 : vector<38x152xf32>
    %cst_95 = arith.constant 0.000000e+00 : f32
    %117 = vector.broadcast %cst_95 : f32 to vector<38x152xf32>
    %118 = arith.maximumf %116, %117 : vector<38x152xf32>
    %c0_96 = arith.constant 0 : index
    %c0_97 = arith.constant 0 : index
    %c0_98 = arith.constant 0 : index
    %119 = vector.load %arg15[%c0_96, %c0_97, %c0_98] : memref<3x152x117xf32, #tpu.memory_space<vmem>>, vector<1x152x117xf32>
    %120 = vector.shape_cast %119 : vector<1x152x117xf32> to vector<152x117xf32>
    %cst_99 = arith.constant dense<0.000000e+00> : vector<38x117xf32>
    %121 = tpu.matmul %118, %120, %cst_99 {dimension_numbers = #tpu.dot_dimension_numbers<[1], [0], [0], [1], [0, 0, 1, 1], [], []>} : vector<38x152xf32>, vector<152x117xf32>, vector<38x117xf32> -> vector<38x117xf32>
    %c0_100 = arith.constant 0 : index
    %c0_101 = arith.constant 0 : index
    %c0_102 = arith.constant 0 : index
    %122 = vector.load %arg16[%c0_100, %c0_101, %c0_102] : memref<3x78x38xf32, #tpu.memory_space<vmem>>, vector<1x78x38xf32>
    %123 = vector.shape_cast %122 : vector<1x78x38xf32> to vector<78x38xf32>
    %cst_103 = arith.constant dense<0.000000e+00> : vector<78x117xf32>
    %124 = tpu.matmul %123, %121, %cst_103 {dimension_numbers = #tpu.dot_dimension_numbers<[1], [0], [0], [1], [0, 0, 1, 1], [], []>} : vector<78x38xf32>, vector<38x117xf32>, vector<78x117xf32> -> vector<78x117xf32>
    %c1_104 = arith.constant 1 : index
    %c0_105 = arith.constant 0 : index
    %c0_106 = arith.constant 0 : index
    %125 = vector.load %arg15[%c1_104, %c0_105, %c0_106] : memref<3x152x117xf32, #tpu.memory_space<vmem>>, vector<1x152x117xf32>
    %126 = vector.shape_cast %125 : vector<1x152x117xf32> to vector<152x117xf32>
    %cst_107 = arith.constant dense<0.000000e+00> : vector<38x117xf32>
    %127 = tpu.matmul %118, %126, %cst_107 {dimension_numbers = #tpu.dot_dimension_numbers<[1], [0], [0], [1], [0, 0, 1, 1], [], []>} : vector<38x152xf32>, vector<152x117xf32>, vector<38x117xf32> -> vector<38x117xf32>
    %c1_108 = arith.constant 1 : index
    %c0_109 = arith.constant 0 : index
    %c0_110 = arith.constant 0 : index
    %128 = vector.load %arg16[%c1_108, %c0_109, %c0_110] : memref<3x78x38xf32, #tpu.memory_space<vmem>>, vector<1x78x38xf32>
    %129 = vector.shape_cast %128 : vector<1x78x38xf32> to vector<78x38xf32>
    %cst_111 = arith.constant dense<0.000000e+00> : vector<78x117xf32>
    %130 = tpu.matmul %129, %127, %cst_111 {dimension_numbers = #tpu.dot_dimension_numbers<[1], [0], [0], [1], [0, 0, 1, 1], [], []>} : vector<78x38xf32>, vector<38x117xf32>, vector<78x117xf32> -> vector<78x117xf32>
    %131 = arith.addf %124, %130 : vector<78x117xf32>
    %c2_112 = arith.constant 2 : index
    %c0_113 = arith.constant 0 : index
    %c0_114 = arith.constant 0 : index
    %132 = vector.load %arg15[%c2_112, %c0_113, %c0_114] : memref<3x152x117xf32, #tpu.memory_space<vmem>>, vector<1x152x117xf32>
    %133 = vector.shape_cast %132 : vector<1x152x117xf32> to vector<152x117xf32>
    %cst_115 = arith.constant dense<0.000000e+00> : vector<38x117xf32>
    %134 = tpu.matmul %118, %133, %cst_115 {dimension_numbers = #tpu.dot_dimension_numbers<[1], [0], [0], [1], [0, 0, 1, 1], [], []>} : vector<38x152xf32>, vector<152x117xf32>, vector<38x117xf32> -> vector<38x117xf32>
    %c2_116 = arith.constant 2 : index
    %c0_117 = arith.constant 0 : index
    %c0_118 = arith.constant 0 : index
    %135 = vector.load %arg16[%c2_116, %c0_117, %c0_118] : memref<3x78x38xf32, #tpu.memory_space<vmem>>, vector<1x78x38xf32>
    %136 = vector.shape_cast %135 : vector<1x78x38xf32> to vector<78x38xf32>
    %cst_119 = arith.constant dense<0.000000e+00> : vector<78x117xf32>
    %137 = tpu.matmul %136, %134, %cst_119 {dimension_numbers = #tpu.dot_dimension_numbers<[1], [0], [0], [1], [0, 0, 1, 1], [], []>} : vector<78x38xf32>, vector<38x117xf32>, vector<78x117xf32> -> vector<78x117xf32>
    %138 = arith.addf %131, %137 : vector<78x117xf32>
    %c0_120 = arith.constant 0 : index
    %c0_121 = arith.constant 0 : index
    %139 = vector.load %arg17[%c0_120, %c0_121] : memref<1x117xf32, #tpu.memory_space<vmem>>, vector<1x117xf32>
    %140 = vector.broadcast %139 : vector<1x117xf32> to vector<78x117xf32>
    %141 = arith.addf %138, %140 : vector<78x117xf32>
    %cst_122 = arith.constant dense<0.000000e+00> : vector<117xf32>
    %142 = vector.multi_reduction <add>, %141, %cst_122 [0] : vector<78x117xf32> to vector<117xf32>
    %143 = vector.shape_cast %142 : vector<117xf32> to vector<1x117xf32>
    %144 = arith.mulf %141, %141 : vector<78x117xf32>
    %cst_123 = arith.constant dense<0.000000e+00> : vector<117xf32>
    %145 = vector.multi_reduction <add>, %144, %cst_123 [0] : vector<78x117xf32> to vector<117xf32>
    %146 = vector.shape_cast %145 : vector<117xf32> to vector<1x117xf32>
    %c0_124 = arith.constant 0 : index
    %c0_125 = arith.constant 0 : index
    %147 = vector.load %arg20[%c0_124, %c0_125] : memref<117x3xf32, #tpu.memory_space<vmem>>, vector<117x3xf32>
    %cst_126 = arith.constant dense<0.000000e+00> : vector<1x3xf32>
    %148 = tpu.matmul %143, %147, %cst_126 {dimension_numbers = #tpu.dot_dimension_numbers<[1], [0], [0], [1], [0, 0, 1, 1], [], []>} : vector<1x117xf32>, vector<117x3xf32>, vector<1x3xf32> -> vector<1x3xf32>
    %cst_127 = arith.constant 3.042000e+03 : f32
    %149 = vector.broadcast %cst_127 : f32 to vector<1x3xf32>
    %150 = arith.divf %148, %149 : vector<1x3xf32>
    %c0_128 = arith.constant 0 : index
    %c0_129 = arith.constant 0 : index
    %151 = vector.load %arg20[%c0_128, %c0_129] : memref<117x3xf32, #tpu.memory_space<vmem>>, vector<117x3xf32>
    %cst_130 = arith.constant dense<0.000000e+00> : vector<1x3xf32>
    %152 = tpu.matmul %146, %151, %cst_130 {dimension_numbers = #tpu.dot_dimension_numbers<[1], [0], [0], [1], [0, 0, 1, 1], [], []>} : vector<1x117xf32>, vector<117x3xf32>, vector<1x3xf32> -> vector<1x3xf32>
    %cst_131 = arith.constant 3.042000e+03 : f32
    %153 = vector.broadcast %cst_131 : f32 to vector<1x3xf32>
    %154 = arith.divf %152, %153 : vector<1x3xf32>
    %155 = arith.mulf %150, %150 : vector<1x3xf32>
    %156 = arith.subf %154, %155 : vector<1x3xf32>
    %cst_132 = arith.constant 0.000000e+00 : f32
    %157 = vector.broadcast %cst_132 : f32 to vector<1x3xf32>
    %158 = arith.maximumf %156, %157 : vector<1x3xf32>
    %cst_133 = arith.constant 9.99999974E-6 : f32
    %159 = vector.broadcast %cst_133 : f32 to vector<1x3xf32>
    %160 = arith.addf %158, %159 : vector<1x3xf32>
    %161 = math.rsqrt %160 : vector<1x3xf32>
    %c0_134 = arith.constant 0 : index
    %c0_135 = arith.constant 0 : index
    %162 = vector.load %arg21[%c0_134, %c0_135] : memref<3x117xf32, #tpu.memory_space<vmem>>, vector<3x117xf32>
    %cst_136 = arith.constant dense<0.000000e+00> : vector<1x117xf32>
    %163 = tpu.matmul %150, %162, %cst_136 {dimension_numbers = #tpu.dot_dimension_numbers<[1], [0], [0], [1], [0, 0, 1, 1], [], []>} : vector<1x3xf32>, vector<3x117xf32>, vector<1x117xf32> -> vector<1x117xf32>
    %c0_137 = arith.constant 0 : index
    %c0_138 = arith.constant 0 : index
    %164 = vector.load %arg21[%c0_137, %c0_138] : memref<3x117xf32, #tpu.memory_space<vmem>>, vector<3x117xf32>
    %cst_139 = arith.constant dense<0.000000e+00> : vector<1x117xf32>
    %165 = tpu.matmul %161, %164, %cst_139 {dimension_numbers = #tpu.dot_dimension_numbers<[1], [0], [0], [1], [0, 0, 1, 1], [], []>} : vector<1x3xf32>, vector<3x117xf32>, vector<1x117xf32> -> vector<1x117xf32>
    %166 = vector.broadcast %163 : vector<1x117xf32> to vector<78x117xf32>
    %167 = arith.subf %141, %166 : vector<78x117xf32>
    %168 = vector.broadcast %165 : vector<1x117xf32> to vector<78x117xf32>
    %169 = arith.mulf %167, %168 : vector<78x117xf32>
    %c0_140 = arith.constant 0 : index
    %c0_141 = arith.constant 0 : index
    %170 = vector.load %arg18[%c0_140, %c0_141] : memref<1x117xf32, #tpu.memory_space<vmem>>, vector<1x117xf32>
    %171 = vector.broadcast %170 : vector<1x117xf32> to vector<78x117xf32>
    %172 = arith.mulf %169, %171 : vector<78x117xf32>
    %c0_142 = arith.constant 0 : index
    %c0_143 = arith.constant 0 : index
    %173 = vector.load %arg19[%c0_142, %c0_143] : memref<1x117xf32, #tpu.memory_space<vmem>>, vector<1x117xf32>
    %174 = vector.broadcast %173 : vector<1x117xf32> to vector<78x117xf32>
    %175 = arith.addf %172, %174 : vector<78x117xf32>
    %c0_144 = arith.constant 0 : index
    %c0_145 = arith.constant 0 : index
    %176 = vector.load %arg22[%c0_144, %c0_145] : memref<117x768xf32, #tpu.memory_space<vmem>>, vector<117x768xf32>
    %cst_146 = arith.constant dense<0.000000e+00> : vector<78x768xf32>
    %177 = tpu.matmul %175, %176, %cst_146 {dimension_numbers = #tpu.dot_dimension_numbers<[1], [0], [0], [1], [0, 0, 1, 1], [], []>} : vector<78x117xf32>, vector<117x768xf32>, vector<78x768xf32> -> vector<78x768xf32>
    %c0_147 = arith.constant 0 : index
    %c0_148 = arith.constant 0 : index
    %178 = vector.load %arg23[%c0_147, %c0_148] : memref<448x78xf32, #tpu.memory_space<vmem>>, vector<448x78xf32>
    %cst_149 = arith.constant dense<0.000000e+00> : vector<448x768xf32>
    %179 = tpu.matmul %178, %177, %cst_149 {dimension_numbers = #tpu.dot_dimension_numbers<[1], [0], [0], [1], [0, 0, 1, 1], [], []>} : vector<448x78xf32>, vector<78x768xf32>, vector<448x768xf32> -> vector<448x768xf32>
    %180 = vector.extract_strided_slice %179 {offsets = [0, 0], sizes = [224, 224], strides = [1, 1]} : vector<448x768xf32> to vector<224x224xf32>
    %c0_150 = arith.constant 0 : index
    %c0_151 = arith.constant 0 : index
    %c0_152 = arith.constant 0 : index
    %c0_153 = arith.constant 0 : index
    %181 = vector.load %arg24[%c0_150, %c0_151, %c0_152, %c0_153] : memref<2x3x224x224xf32, #tpu.memory_space<vmem>>, vector<1x1x224x224xf32>
    %182 = vector.shape_cast %181 : vector<1x1x224x224xf32> to vector<224x224xf32>
    %183 = vector.shape_cast %180 : vector<224x224xf32> to vector<1x1x224x224xf32>
    tpu.vector_store %arg24[%c0_150, %c0_151, %c0_152, %c0_153], %183 {strides = array<i32>} : memref<2x3x224x224xf32, #tpu.memory_space<vmem>>, vector<1x1x224x224xf32>,
    %184 = vector.extract_strided_slice %179 {offsets = [0, 256], sizes = [224, 224], strides = [1, 1]} : vector<448x768xf32> to vector<224x224xf32>
    %c0_154 = arith.constant 0 : index
    %c1_155 = arith.constant 1 : index
    %c0_156 = arith.constant 0 : index
    %c0_157 = arith.constant 0 : index
    %185 = vector.load %arg24[%c0_154, %c1_155, %c0_156, %c0_157] : memref<2x3x224x224xf32, #tpu.memory_space<vmem>>, vector<1x1x224x224xf32>
    %186 = vector.shape_cast %185 : vector<1x1x224x224xf32> to vector<224x224xf32>
    %187 = vector.shape_cast %184 : vector<224x224xf32> to vector<1x1x224x224xf32>
    tpu.vector_store %arg24[%c0_154, %c1_155, %c0_156, %c0_157], %187 {strides = array<i32>} : memref<2x3x224x224xf32, #tpu.memory_space<vmem>>, vector<1x1x224x224xf32>,
    %188 = vector.extract_strided_slice %179 {offsets = [0, 512], sizes = [224, 224], strides = [1, 1]} : vector<448x768xf32> to vector<224x224xf32>
    %c0_158 = arith.constant 0 : index
    %c2_159 = arith.constant 2 : index
    %c0_160 = arith.constant 0 : index
    %c0_161 = arith.constant 0 : index
    %189 = vector.load %arg24[%c0_158, %c2_159, %c0_160, %c0_161] : memref<2x3x224x224xf32, #tpu.memory_space<vmem>>, vector<1x1x224x224xf32>
    %190 = vector.shape_cast %189 : vector<1x1x224x224xf32> to vector<224x224xf32>
    %191 = vector.shape_cast %188 : vector<224x224xf32> to vector<1x1x224x224xf32>
    tpu.vector_store %arg24[%c0_158, %c2_159, %c0_160, %c0_161], %191 {strides = array<i32>} : memref<2x3x224x224xf32, #tpu.memory_space<vmem>>, vector<1x1x224x224xf32>,
    %192 = vector.extract_strided_slice %179 {offsets = [224, 0], sizes = [224, 224], strides = [1, 1]} : vector<448x768xf32> to vector<224x224xf32>
    %c1_162 = arith.constant 1 : index
    %c0_163 = arith.constant 0 : index
    %c0_164 = arith.constant 0 : index
    %c0_165 = arith.constant 0 : index
    %193 = vector.load %arg24[%c1_162, %c0_163, %c0_164, %c0_165] : memref<2x3x224x224xf32, #tpu.memory_space<vmem>>, vector<1x1x224x224xf32>
    %194 = vector.shape_cast %193 : vector<1x1x224x224xf32> to vector<224x224xf32>
    %195 = vector.shape_cast %192 : vector<224x224xf32> to vector<1x1x224x224xf32>
    tpu.vector_store %arg24[%c1_162, %c0_163, %c0_164, %c0_165], %195 {strides = array<i32>} : memref<2x3x224x224xf32, #tpu.memory_space<vmem>>, vector<1x1x224x224xf32>,
    %196 = vector.extract_strided_slice %179 {offsets = [224, 256], sizes = [224, 224], strides = [1, 1]} : vector<448x768xf32> to vector<224x224xf32>
    %c1_166 = arith.constant 1 : index
    %c1_167 = arith.constant 1 : index
    %c0_168 = arith.constant 0 : index
    %c0_169 = arith.constant 0 : index
    %197 = vector.load %arg24[%c1_166, %c1_167, %c0_168, %c0_169] : memref<2x3x224x224xf32, #tpu.memory_space<vmem>>, vector<1x1x224x224xf32>
    %198 = vector.shape_cast %197 : vector<1x1x224x224xf32> to vector<224x224xf32>
    %199 = vector.shape_cast %196 : vector<224x224xf32> to vector<1x1x224x224xf32>
    tpu.vector_store %arg24[%c1_166, %c1_167, %c0_168, %c0_169], %199 {strides = array<i32>} : memref<2x3x224x224xf32, #tpu.memory_space<vmem>>, vector<1x1x224x224xf32>,
    %200 = vector.extract_strided_slice %179 {offsets = [224, 512], sizes = [224, 224], strides = [1, 1]} : vector<448x768xf32> to vector<224x224xf32>
    %c1_170 = arith.constant 1 : index
    %c2_171 = arith.constant 2 : index
    %c0_172 = arith.constant 0 : index
    %c0_173 = arith.constant 0 : index
    %201 = vector.load %arg24[%c1_170, %c2_171, %c0_172, %c0_173] : memref<2x3x224x224xf32, #tpu.memory_space<vmem>>, vector<1x1x224x224xf32>
    %202 = vector.shape_cast %201 : vector<1x1x224x224xf32> to vector<224x224xf32>
    %203 = vector.shape_cast %200 : vector<224x224xf32> to vector<1x1x224x224xf32>
    tpu.vector_store %arg24[%c1_170, %c2_171, %c0_172, %c0_173], %203 {strides = array<i32>} : memref<2x3x224x224xf32, #tpu.memory_space<vmem>>, vector<1x1x224x224xf32>,
    return
  }
}

</mosaic_0001>

<bundles_post_ra>
// kernel: _lambda_.1
= control target key start
LH: loop header
LB: loop body
LE: loop exit
PB: predicated region body
PF: predicated region fallthrough
CT: control target
= control target key end

     0   :  { %s14100_s0 = inlined_call_operand.vmem [shape: f32[8,256], index: 0, kind: input, shape index: {}]   ;;  %s14101_s1 = inlined_call_operand.vmem [shape: f32[3,256,288], index: 1, kind: input, shape index: {}]   ;;  %s14102_s2 = inlined_call_operand.vmem [shape: f32[3,18,8], index: 2, kind: input, shape index: {}]   ;;  %s14103_s3 = inlined_call_operand.vmem [shape: f32[1,288], index: 3, kind: input, shape index: {}]   ;;  %s14104_s4 = inlined_call_operand.vmem [shape: f32[1,288], index: 4, kind: input, shape index: {}]   ;;  %s14105_s5 = inlined_call_operand.vmem [shape: f32[1,288], index: 5, kind: input, shape index: {}]   ;;  %s14106_s6 = inlined_call_operand.vmem [shape: f32[288,32], index: 6, kind: input, shape index: {}]   ;;  %s14107_s7 = inlined_call_operand.vmem [shape: f32[32,288], index: 7, kind: input, shape index: {}]   ;;  %s14108_s8 = inlined_call_operand.vmem [shape: f32[3,288,152], index: 8, kind: input, shape index: {}]   ;;  %s14109_s9 = inlined_call_operand.vmem [shape: f32[3,38,18], index: 9, kind: input, shape index: {}]   ;;  %s14110_s10 = inlined_call_operand.vmem [shape: f32[1,152], index: 10, kind: input, shape index: {}]   ;;  %s14111_s11 = inlined_call_operand.vmem [shape: f32[1,152], index: 11, kind: input, shape index: {}]   ;;  %s14112_s12 = inlined_call_operand.vmem [shape: f32[1,152], index: 12, kind: input, shape index: {}]   ;;  %s14113_s13 = inlined_call_operand.vmem [shape: f32[152,8], index: 13, kind: input, shape index: {}]   ;;  %s14114_s14 = inlined_call_operand.vmem [shape: f32[8,152], index: 14, kind: input, shape index: {}]   ;;  %s14115_s15 = inlined_call_operand.vmem [shape: f32[3,152,117], index: 15, kind: input, shape index: {}]   ;;  %s14116_s16 = inlined_call_operand.vmem [shape: f32[3,78,38], index: 16, kind: input, shape index: {}]   ;;  %s14117_s17 = inlined_call_operand.vmem [shape: f32[1,117], index: 17, kind: input, shape index: {}]   ;;  %s14118_s18 = inlined_call_operand.vmem [shape: f32[1,117], index: 18, kind: input, shape index: {}]   ;;  %s14119_s19 = inlined_call_operand.vmem [shape: f32[1,117], index: 19, kind: input, shape index: {}]   ;;  %s14120_s20 = inlined_call_operand.vmem [shape: f32[117,3], index: 20, kind: input, shape index: {}]   ;;  %s14121_s21 = inlined_call_operand.vmem [shape: f32[3,117], index: 21, kind: input, shape index: {}]   ;;  %s14122_s22 = inlined_call_operand.vmem [shape: f32[117,768], index: 22, kind: input, shape index: {}]   ;;  %s14123_s23 = inlined_call_operand.vmem [shape: f32[448,78], index: 23, kind: input, shape index: {}]   ;;  %s14124_s24 = inlined_call_operand.hbm [shape: f32[2,3,224,224], index: 24, kind: output, shape index: {}]  }
   0x1   :  { %14131 = sst [smem:[#allocation5_spill]] %s14100_s0 }
   0x2   :  { %14132 = sst [smem:[#allocation6_spill]] %s14101_s1 }
   0x3   :  { %14133 = sst [smem:[#allocation7_spill]] %s14102_s2 }
   0x4   :  { %14134 = sst [smem:[#allocation8_spill]] %s14103_s3 }
   0x5   :  { %14135 = sst [smem:[#allocation9_spill]] %s14104_s4 }
   0x6   :  { %14136 = sst [smem:[#allocation10_spill]] %s14105_s5 }
   0x7   :  { %14137 = sst [smem:[#allocation11_spill]] %s14106_s6 }
   0x8   :  { %14138 = sst [smem:[#allocation12_spill]] %s14107_s7 }
   0x9   :  { %14139 = sst [smem:[#allocation13_spill]] %s14108_s8 }
   0xa   :  { %s14140_s27 = sld [smem:[#allocation6_spill]]  ;;  %s14141_s5 = sld [smem:[#allocation5_spill]] }
  0x10   :  { %v81_v0 = vld [vmem:[%s14140_s27 + $0x8] sm:$0xff]  ;;  %v84_v1 = vld [vmem:[%s14140_s27 + $0x20] sm:$0xff]  ;;  %v130_v2 = vld [vmem:[%s14140_s27 + $0x190] sm:$0xff] }
  0x11   :  { %v8627_v3 = vpack.c.bf16 %v84_v1, %v81_v0  ;;  %v133_v4 = vld [vmem:[%s14140_s27 + $0x1a8] sm:$0xff]  ;;  %v80_v5 = vld [vmem:[%s14140_s27] sm:$0xff]  ;;  %v83_v6 = vld [vmem:[%s14140_s27 + $0x18] sm:$0xff] }
  0x12   :  { %v8691_v7 = vpack.c.bf16 %v133_v4, %v130_v2  ;;  %v8629_v8 = vpack.c.bf16 %v83_v6, %v80_v5  ;;  %v82_v9 = vld [vmem:[%s14140_s27 + $0x10] sm:$0xff]  ;;  %v85_v10 = vld [vmem:[%s14140_s27 + $0x28] sm:$0xff]  ;;  %v87_v11 = vld [vmem:[%s14140_s27 + $0x38] sm:$0xff] }
  0x13   :  { %8628 = vmatprep.subr.bf16.mxu0 %v8627_v3  ;;  %v8693_v12 = vpack.c.bf16 %v85_v10, %v82_v9  ;;  %v90_v13 = vld [vmem:[%s14140_s27 + $0x50] sm:$0xff]  ;;  %v136_v14 = vld [vmem:[%s14140_s27 + $0x1c0] sm:$0xff]  ;;  %v139_v15 = vld [vmem:[%s14140_s27 + $0x1d8] sm:$0xff] }
  0x14   :  { %8692 = vmatprep.subr.bf16.mxu1 %v8691_v7  ;;  %8630 = vmatpush1.bf16.msra.mxu0 %v8629_v8  ;;  %v8631_v16 = vpack.c.bf16 %v90_v13, %v87_v11  ;;  %v8695_v17 = vpack.c.bf16 %v139_v15, %v136_v14  ;;  %v86_v18 = vld [vmem:[%s14140_s27 + $0x30] sm:$0xff]  ;;  %v89_v19 = vld [vmem:[%s14140_s27 + $0x48] sm:$0xff]  ;;  %v88_v20 = vld [vmem:[%s14140_s27 + $0x40] sm:$0xff] }
  0x15   :  { %8694 = vmatpush3.bf16.msra.mxu1 %v8693_v12  ;;  %v8633_v21 = vpack.c.bf16 %v89_v19, %v86_v18  ;;  %v91_v22 = vld [vmem:[%s14140_s27 + $0x58] sm:$0xff]  ;;  %v93_v23 = vld [vmem:[%s14140_s27 + $0x68] sm:$0xff]  ;;  %v96_v24 = vld [vmem:[%s14140_s27 + $0x80] sm:$0xff] }
  0x16   :  { %8632 = vmatprep.subr.bf16.mxu0 %v8631_v16  ;;  %8696 = vmatprep.subr.bf16.mxu1 %v8695_v17  ;;  %v8697_v25 = vpack.c.bf16 %v91_v22, %v88_v20  ;;  %v8635_v26 = vpack.c.bf16 %v96_v24, %v93_v23  ;;  %v142_v27 = vld [vmem:[%s14140_s27 + $0x1f0] sm:$0xff]  ;;  %v145_v28 = vld [vmem:[%s14140_s27 + $0x208] sm:$0xff]  ;;  %v92_v29 = vld [vmem:[%s14140_s27 + $0x60] sm:$0xff] }
  0x17   :  { %v8699_v30 = vpack.c.bf16 %v145_v28, %v142_v27  ;;  %v95_v31 = vld [vmem:[%s14140_s27 + $0x78] sm:$0xff]  ;;  %v94_v32 = vld [vmem:[%s14140_s27 + $0x70] sm:$0xff]  ;;  %v97_v33 = vld [vmem:[%s14140_s27 + $0x88] sm:$0xff] }
  0x18   :  { %8634 = vmatpush1.bf16.msra.mxu0 %v8633_v21  ;;  %v8637_v34 = vpack.c.bf16 %v95_v31, %v92_v29  ;;  %v99_v35 = vld [vmem:[%s14140_s27 + $0x98] sm:$0xff]  ;;  %v102_v36 = vld [vmem:[%s14140_s27 + $0xb0] sm:$0xff]  ;;  %v148_v37 = vld [vmem:[%s14140_s27 + $0x220] sm:$0xff]  ;;  %v8701_v38 = vpack.c.bf16 %v97_v33, %v94_v32 }
  0x19   :  { %8698 = vmatpush3.bf16.msra.mxu1 %v8697_v25  ;;  %8636 = vmatprep.subr.bf16.mxu0 %v8635_v26  ;;  %v8639_v39 = vpack.c.bf16 %v102_v36, %v99_v35  ;;  %v151_v40 = vld [vmem:[%s14140_s27 + $0x238] sm:$0xff]  ;;  %v98_v41 = vld [vmem:[%s14140_s27 + $0x90] sm:$0xff]  ;;  %v101_v42 = vld [vmem:[%s14140_s27 + $0xa8] sm:$0xff] }
  0x1a   :  { %8700 = vmatprep.subr.bf16.mxu1 %v8699_v30  ;;  %v8703_v43 = vpack.c.bf16 %v151_v40, %v148_v37  ;;  %v100_v44 = vld [vmem:[%s14140_s27 + $0xa0] sm:$0xff]  ;;  %v103_v45 = vld [vmem:[%s14140_s27 + $0xb8] sm:$0xff]  ;;  %v105_v46 = vld [vmem:[%s14140_s27 + $0xc8] sm:$0xff]  ;;  %v8641_v50 = vpack.c.bf16 %v101_v42, %v98_v41 }
  0x1b   :  { %v108_v47 = vld [vmem:[%s14140_s27 + $0xe0] sm:$0xff]  ;;  %v154_v48 = vld [vmem:[%s14140_s27 + $0x250] sm:$0xff]  ;;  %v157_v49 = vld [vmem:[%s14140_s27 + $0x268] sm:$0xff]  ;;  %v8705_v51 = vpack.c.bf16 %v103_v45, %v100_v44 }
  0x1c   :  { %8638 = vmatpush1.bf16.msra.mxu0 %v8637_v34  ;;  %v8643_v52 = vpack.c.bf16 %v108_v47, %v105_v46  ;;  %v104_v53 = vld [vmem:[%s14140_s27 + $0xc0] sm:$0xff]  ;;  %v107_v54 = vld [vmem:[%s14140_s27 + $0xd8] sm:$0xff]  ;;  %v106_v55 = vld [vmem:[%s14140_s27 + $0xd0] sm:$0xff]  ;;  %v8707_v56 = vpack.c.bf16 %v157_v49, %v154_v48 }
  0x1d   :  { %8702 = vmatpush3.bf16.msra.mxu1 %v8701_v38  ;;  %8640 = vmatprep.subr.bf16.mxu0 %v8639_v39  ;;  %v109_v57 = vld [vmem:[%s14140_s27 + $0xe8] sm:$0xff]  ;;  %v111_v58 = vld [vmem:[%s14140_s27 + $0xf8] sm:$0xff]  ;;  %v114_v59 = vld [vmem:[%s14140_s27 + $0x110] sm:$0xff]  ;;  %v8645_v62 = vpack.c.bf16 %v107_v54, %v104_v53 }
  0x1e   :  { %8704 = vmatprep.subr.bf16.mxu1 %v8703_v43  ;;  %v160_v60 = vld [vmem:[%s14140_s27 + $0x280] sm:$0xff]  ;;  %v163_v61 = vld [vmem:[%s14140_s27 + $0x298] sm:$0xff]  ;;  %v8709_v63 = vpack.c.bf16 %v109_v57, %v106_v55  ;;  %v8647_v0 = vpack.c.bf16 %v114_v59, %v111_v58  ;;  %v110_v1 = vld [vmem:[%s14140_s27 + $0xf0] sm:$0xff] }
  0x1f   :  { %v113_v2 = vld [vmem:[%s14140_s27 + $0x108] sm:$0xff]  ;;  %v112_v3 = vld [vmem:[%s14140_s27 + $0x100] sm:$0xff]  ;;  %v8711_v4 = vpack.c.bf16 %v163_v61, %v160_v60  ;;  %v115_v5 = vld [vmem:[%s14140_s27 + $0x118] sm:$0xff] }
  0x20   :  { %8642 = vmatpush1.bf16.msra.mxu0 %v8641_v50  ;;  %v117_v6 = vld [vmem:[%s14140_s27 + $0x128] sm:$0xff]  ;;  %v120_v7 = vld [vmem:[%s14140_s27 + $0x140] sm:$0xff]  ;;  %v166_v8 = vld [vmem:[%s14140_s27 + $0x2b0] sm:$0xff]  ;;  %v8649_v10 = vpack.c.bf16 %v113_v2, %v110_v1  ;;  %v8713_v12 = vpack.c.bf16 %v115_v5, %v112_v3 }
  0x21   :  { %8706 = vmatpush3.bf16.msra.mxu1 %v8705_v51  ;;  %8644 = vmatprep.subr.bf16.mxu0 %v8643_v52  ;;  %v169_v9 = vld [vmem:[%s14140_s27 + $0x2c8] sm:$0xff]  ;;  %v116_v11 = vld [vmem:[%s14140_s27 + $0x120] sm:$0xff]  ;;  %v8651_v13 = vpack.c.bf16 %v120_v7, %v117_v6  ;;  %v119_v14 = vld [vmem:[%s14140_s27 + $0x138] sm:$0xff] }
  0x22   :  { %8708 = vmatprep.subr.bf16.mxu1 %v8707_v56  ;;  %v118_v15 = vld [vmem:[%s14140_s27 + $0x130] sm:$0xff]  ;;  %v10015_v16 = vld [vmem:[%s14141_s5 + $0x8] sm:$0xff]  ;;  %v8715_v17 = vpack.c.bf16 %v169_v9, %v166_v8  ;;  %v123_v19 = vld [vmem:[%s14140_s27 + $0x158] sm:$0xff]  ;;  %v8653_v23 = vpack.c.bf16 %v119_v14, %v116_v11 }
  0x23   :  { %v121_v18 = vld [vmem:[%s14140_s27 + $0x148] sm:$0xff]  ;;  %v126_v20 = vld [vmem:[%s14140_s27 + $0x170] sm:$0xff]  ;;  %311 = vmatprep.mubr.f32.mxu1 %v10015_v16  ;;  %v172_v21 = vld [vmem:[%s14140_s27 + $0x2e0] sm:$0xff]  ;;  %240 = vmatprep.mubr.f32.mxu0 %v10015_v16 }
  0x24   :  { %8646 = vmatpush1.bf16.msra.mxu0 %v8645_v62  ;;  %v175_v22 = vld [vmem:[%s14140_s27 + $0x2f8] sm:$0xff]  ;;  %v8717_v24 = vpack.c.bf16 %v121_v18, %v118_v15  ;;  %v8655_v25 = vpack.c.bf16 %v126_v20, %v123_v19  ;;  %v122_v26 = vld [vmem:[%s14140_s27 + $0x150] sm:$0xff]  ;;  %v125_v27 = vld [vmem:[%s14140_s27 + $0x168] sm:$0xff] }
  0x25   :  { %8710 = vmatpush3.bf16.msra.mxu1 %v8709_v63  ;;  %8648 = vmatprep.subr.bf16.mxu0 %v8647_v0  ;;  %v124_v28 = vld [vmem:[%s14140_s27 + $0x160] sm:$0xff]  ;;  %v8719_v29 = vpack.c.bf16 %v175_v22, %v172_v21  ;;  %v127_v30 = vld [vmem:[%s14140_s27 + $0x178] sm:$0xff]  ;;  %v129_v31 = vld [vmem:[%s14140_s27 + $0x188] sm:$0xff]  ;;  %v8657_v35 = vpack.c.bf16 %v125_v27, %v122_v26 }
  0x26   :  { %8712 = vmatprep.subr.bf16.mxu1 %v8711_v4  ;;  %v132_v32 = vld [vmem:[%s14140_s27 + $0x1a0] sm:$0xff]  ;;  %v7375_v33 = vld [vmem:[%s14140_s27 + $0x308] sm:$0xff]  ;;  %v8721_v36 = vpack.c.bf16 %v127_v30, %v124_v28  ;;  %v131_v39 = vld [vmem:[%s14140_s27 + $0x198] sm:$0xff] }
  0x27   :  { %v7378_v34 = vld [vmem:[%s14140_s27 + $0x320] sm:$0xff]  ;;  %v8659_v37 = vpack.c.bf16 %v132_v32, %v129_v31  ;;  %v7377_v42 = vld [vmem:[%s14140_s27 + $0x318] sm:$0xff]  ;;  %v138_v44 = vld [vmem:[%s14140_s27 + $0x1d0] sm:$0xff] }
  0x28   :  { %8650 = vmatpush1.bf16.msra.mxu0 %v8649_v10  ;;  %v128_v38 = vld [vmem:[%s14140_s27 + $0x180] sm:$0xff]  ;;  %v8723_v41 = vpack.c.bf16 %v7378_v34, %v7375_v33  ;;  %v135_v43 = vld [vmem:[%s14140_s27 + $0x1b8] sm:$0xff]  ;;  %v7384_v46 = vld [vmem:[%s14140_s27 + $0x350] sm:$0xff] }
  0x29   :  { %8714 = vmatpush3.bf16.msra.mxu1 %v8713_v12  ;;  %8652 = vmatprep.subr.bf16.mxu0 %v8651_v13  ;;  %v7374_v40 = vld [vmem:[%s14140_s27 + $0x300] sm:$0xff]  ;;  %v7381_v45 = vld [vmem:[%s14140_s27 + $0x338] sm:$0xff]  ;;  %v8661_v48 = vpack.c.bf16 %v131_v39, %v128_v38  ;;  %v8663_v50 = vpack.c.bf16 %v138_v44, %v135_v43  ;;  %v134_v51 = vld [vmem:[%s14140_s27 + $0x1b0] sm:$0xff] }
  0x2a   :  { %8716 = vmatprep.subr.bf16.mxu1 %v8715_v17  ;;  %v10085_v47 = vld [vmem:[%s14141_s5] sm:$0xff]  ;;  %v8725_v49 = vpack.c.bf16 %v7377_v42, %v7374_v40  ;;  %v137_v52 = vld [vmem:[%s14140_s27 + $0x1c8] sm:$0xff]  ;;  %v7380_v53 = vld [vmem:[%s14140_s27 + $0x330] sm:$0xff]  ;;  %v8727_v54 = vpack.c.bf16 %v7384_v46, %v7381_v45 }
  0x2b   :  { %v7383_v55 = vld [vmem:[%s14140_s27 + $0x348] sm:$0xff]  ;;  %v144_v57 = vld [vmem:[%s14140_s27 + $0x200] sm:$0xff]  ;;  %v8665_v60 = vpack.c.bf16 %v137_v52, %v134_v51  ;;  %v143_v0 = vld [vmem:[%s14140_s27 + $0x1f8] sm:$0xff] }
  0x2c   :  { %8654 = vmatpush1.bf16.msra.mxu0 %v8653_v23  ;;  %v141_v56 = vld [vmem:[%s14140_s27 + $0x1e8] sm:$0xff]  ;;  %v7390_v59 = vld [vmem:[%s14140_s27 + $0x380] sm:$0xff]  ;;  %v8729_v61 = vpack.c.bf16 %v7383_v55, %v7380_v53  ;;  %v7389_v3 = vld [vmem:[%s14140_s27 + $0x378] sm:$0xff] }
  0x2d   :  { %8718 = vmatpush3.bf16.msra.mxu1 %v8717_v24  ;;  %8656 = vmatprep.subr.bf16.mxu0 %v8655_v25  ;;  %v7387_v58 = vld [vmem:[%s14140_s27 + $0x368] sm:$0xff]  ;;  %v8667_v62 = vpack.c.bf16 %v144_v57, %v141_v56  ;;  %v140_v63 = vld [vmem:[%s14140_s27 + $0x1e0] sm:$0xff]  ;;  %v147_v4 = vld [vmem:[%s14140_s27 + $0x218] sm:$0xff] }
  0x2e   :  { %8720 = vmatprep.subr.bf16.mxu1 %v8719_v29  ;;  %v7386_v1 = vld [vmem:[%s14140_s27 + $0x360] sm:$0xff]  ;;  %v8731_v2 = vpack.c.bf16 %v7390_v59, %v7387_v58  ;;  %v150_v5 = vld [vmem:[%s14140_s27 + $0x230] sm:$0xff]  ;;  %v7393_v6 = vld [vmem:[%s14140_s27 + $0x398] sm:$0xff]  ;;  %v8669_v8 = vpack.c.bf16 %v143_v0, %v140_v63 }
  0x2f   :  { %v7396_v7 = vld [vmem:[%s14140_s27 + $0x3b0] sm:$0xff]  ;;  %v8733_v9 = vpack.c.bf16 %v7389_v3, %v7386_v1  ;;  %v8671_v10 = vpack.c.bf16 %v150_v5, %v147_v4  ;;  %v149_v12 = vld [vmem:[%s14140_s27 + $0x228] sm:$0xff]  ;;  %v156_v18 = vld [vmem:[%s14140_s27 + $0x260] sm:$0xff] }
  0x30   :  { %8658 = vmatpush1.bf16.msra.mxu0 %v8657_v35  ;;  %v146_v11 = vld [vmem:[%s14140_s27 + $0x210] sm:$0xff]  ;;  %v8735_v14 = vpack.c.bf16 %v7396_v7, %v7393_v6  ;;  %v7395_v15 = vld [vmem:[%s14140_s27 + $0x3a8] sm:$0xff]  ;;  %v7402_v20 = vld [vmem:[%s14140_s27 + $0x3e0] sm:$0xff] }
  0x31   :  { %8722 = vmatpush3.bf16.msra.mxu1 %v8721_v36  ;;  %8660 = vmatprep.subr.bf16.mxu0 %v8659_v37  ;;  %v7392_v13 = vld [vmem:[%s14140_s27 + $0x390] sm:$0xff]  ;;  %v153_v17 = vld [vmem:[%s14140_s27 + $0x248] sm:$0xff]  ;;  %v8673_v21 = vpack.c.bf16 %v149_v12, %v146_v11  ;;  %v152_v24 = vld [vmem:[%s14140_s27 + $0x240] sm:$0xff] }
  0x32   :  { %8724 = vmatprep.subr.bf16.mxu1 %v8723_v41  ;;  %v7399_v19 = vld [vmem:[%s14140_s27 + $0x3c8] sm:$0xff]  ;;  %v8737_v22 = vpack.c.bf16 %v7395_v15, %v7392_v13  ;;  %v8675_v23 = vpack.c.bf16 %v156_v18, %v153_v17  ;;  %v155_v25 = vld [vmem:[%s14140_s27 + $0x258] sm:$0xff]  ;;  %v7398_v26 = vld [vmem:[%s14140_s27 + $0x3c0] sm:$0xff] }
  0x33   :  { %v8739_v27 = vpack.c.bf16 %v7402_v20, %v7399_v19  ;;  %v7401_v28 = vld [vmem:[%s14140_s27 + $0x3d8] sm:$0xff]  ;;  %v162_v30 = vld [vmem:[%s14140_s27 + $0x290] sm:$0xff]  ;;  %v8677_v33 = vpack.c.bf16 %v155_v25, %v152_v24  ;;  %v161_v37 = vld [vmem:[%s14140_s27 + $0x288] sm:$0xff] }
  0x34   :  { %312 = vmatmul.mubr.f32.vlgmr.msra.gmra.mrb[0].mxu1 %v10085_v47  ;;  %8662 = vmatpush1.bf16.msra.mxu0 %v8661_v48  ;;  %v159_v29 = vld [vmem:[%s14140_s27 + $0x278] sm:$0xff]  ;;  %v7408_v32 = vld [vmem:[%s14140_s27 + $0x410] sm:$0xff]  ;;  %v8741_v34 = vpack.c.bf16 %v7401_v28, %v7398_v26  ;;  %v7407_v40 = vld [vmem:[%s14140_s27 + $0x408] sm:$0xff] }
  0x35   :  { %8726 = vmatpush1.bf16.msra.mxu1 %v8725_v49  ;;  %8664 = vmatprep.subr.bf16.mxu0 %v8663_v50  ;;  %v7405_v31 = vld [vmem:[%s14140_s27 + $0x3f8] sm:$0xff]  ;;  %v8679_v35 = vpack.c.bf16 %v162_v30, %v159_v29  ;;  %v158_v36 = vld [vmem:[%s14140_s27 + $0x270] sm:$0xff]  ;;  %v165_v41 = vld [vmem:[%s14140_s27 + $0x2a8] sm:$0xff] }
  0x36   :  { %8728 = vmatprep.subr.bf16.mxu1 %v8727_v54  ;;  %481 = vmatprep.mubr.f32.mxu1 %v10015_v16  ;;  %v7404_v38 = vld [vmem:[%s14140_s27 + $0x3f0] sm:$0xff]  ;;  %v8743_v39 = vpack.c.bf16 %v7408_v32, %v7405_v31  ;;  %v168_v42 = vld [vmem:[%s14140_s27 + $0x2c0] sm:$0xff]  ;;  %v7411_v43 = vld [vmem:[%s14140_s27 + $0x428] sm:$0xff]  ;;  %v8681_v45 = vpack.c.bf16 %v161_v37, %v158_v36 }
  0x37   :  { %v7414_v44 = vld [vmem:[%s14140_s27 + $0x440] sm:$0xff]  ;;  %v8745_v46 = vpack.c.bf16 %v7407_v40, %v7404_v38  ;;  %v8683_v48 = vpack.c.bf16 %v168_v42, %v165_v41  ;;  %v167_v50 = vld [vmem:[%s14140_s27 + $0x2b8] sm:$0xff]  ;;  %v174_v55 = vld [vmem:[%s14140_s27 + $0x2f0] sm:$0xff] }
  0x38   :  { %8666 = vmatpush1.bf16.msra.mxu0 %v8665_v60  ;;  %v164_v49 = vld [vmem:[%s14140_s27 + $0x2a0] sm:$0xff]  ;;  %v8747_v52 = vpack.c.bf16 %v7414_v44, %v7411_v43  ;;  %v7413_v53 = vld [vmem:[%s14140_s27 + $0x438] sm:$0xff]  ;;  %v7420_v57 = vld [vmem:[%s14140_s27 + $0x470] sm:$0xff] }
  0x39   :  { %8730 = vmatpush1.bf16.msra.mxu1 %v8729_v61  ;;  %8668 = vmatprep.subr.bf16.mxu0 %v8667_v62  ;;  %v7410_v51 = vld [vmem:[%s14140_s27 + $0x420] sm:$0xff]  ;;  %v171_v54 = vld [vmem:[%s14140_s27 + $0x2d8] sm:$0xff]  ;;  %v8685_v58 = vpack.c.bf16 %v167_v50, %v164_v49  ;;  %v170_v61 = vld [vmem:[%s14140_s27 + $0x2d0] sm:$0xff] }
  0x3a   :  { %8732 = vmatprep.subr.bf16.mxu1 %v8731_v2  ;;  %v7417_v56 = vld [vmem:[%s14140_s27 + $0x458] sm:$0xff]  ;;  %v8749_v59 = vpack.c.bf16 %v7413_v53, %v7410_v51  ;;  %v8687_v60 = vpack.c.bf16 %v174_v55, %v171_v54  ;;  %v173_v62 = vld [vmem:[%s14140_s27 + $0x2e8] sm:$0xff]  ;;  %v7416_v63 = vld [vmem:[%s14140_s27 + $0x450] sm:$0xff] }
  0x3b   :  { %v8751_v0 = vpack.c.bf16 %v7420_v57, %v7417_v56  ;;  %v7419_v1 = vld [vmem:[%s14140_s27 + $0x468] sm:$0xff]  ;;  %v7424_v2 = vld [vmem:[%s14140_s27 + $0x490] sm:$0xff]  ;;  %v7426_v5 = vld [vmem:[%s14140_s27 + $0x4a0] sm:$0xff]  ;;  %v8689_v6 = vpack.c.bf16 %v173_v62, %v170_v61 }
  0x3c   :  { %8670 = vmatpush1.bf16.msra.mxu0 %v8669_v8  ;;  %v7427_v3 = vld [vmem:[%s14140_s27 + $0x4a8] sm:$0xff]  ;;  %v8753_v7 = vpack.c.bf16 %v7419_v1, %v7416_v63  ;;  %v7425_v13 = vld [vmem:[%s14140_s27 + $0x498] sm:$0xff]  ;;  %v7432_v18 = vld [vmem:[%s14140_s27 + $0x4d0] sm:$0xff] }
  0x3d   :  { %8734 = vmatpush1.bf16.msra.mxu1 %v8733_v9  ;;  %8672 = vmatprep.subr.bf16.mxu0 %v8671_v10  ;;  %v7423_v4 = vld [vmem:[%s14140_s27 + $0x488] sm:$0xff]  ;;  %v8787_v8 = vpack.c.bf16 %v7427_v3, %v7424_v2  ;;  %v7422_v9 = vld [vmem:[%s14140_s27 + $0x480] sm:$0xff]  ;;  %v7376_v10 = vld [vmem:[%s14140_s27 + $0x310] sm:$0xff] }
  0x3e   :  { %8736 = vmatprep.subr.bf16.mxu1 %v8735_v14  ;;  %v7379_v11 = vld [vmem:[%s14140_s27 + $0x328] sm:$0xff]  ;;  %v8755_v12 = vpack.c.bf16 %v7426_v5, %v7423_v4  ;;  %v7430_v14 = vld [vmem:[%s14140_s27 + $0x4c0] sm:$0xff]  ;;  %v7433_v15 = vld [vmem:[%s14140_s27 + $0x4d8] sm:$0xff] }
  0x3f   :  { %v7429_v17 = vld [vmem:[%s14140_s27 + $0x4b8] sm:$0xff]  ;;  %v8789_v19 = vpack.c.bf16 %v7379_v11, %v7376_v10 }
  0x40   :  { %8674 = vmatpush1.bf16.msra.mxu0 %v8673_v21 }
  0x41   :  { %8738 = vmatpush1.bf16.msra.mxu1 %v8737_v22  ;;  %8676 = vmatprep.subr.bf16.mxu0 %v8675_v23 }
  0x42   :  { %8740 = vmatprep.subr.bf16.mxu1 %v8739_v27 }
  0x44   :  { %8678 = vmatpush1.bf16.msra.mxu0 %v8677_v33 }
  0x45   :  { %8742 = vmatpush1.bf16.msra.mxu1 %v8741_v34  ;;  %8680 = vmatprep.subr.bf16.mxu0 %v8679_v35 }
  0x46   :  { %8744 = vmatprep.subr.bf16.mxu1 %v8743_v39 }
  0x48   :  { %8682 = vmatpush1.bf16.msra.mxu0 %v8681_v45 }
  0x49   :  { %8746 = vmatpush1.bf16.msra.mxu1 %v8745_v46  ;;  %8684 = vmatprep.subr.bf16.mxu0 %v8683_v48 }
  0x4a   :  { %8748 = vmatprep.subr.bf16.mxu1 %v8747_v52 }
  0x4c   :  { %8686 = vmatpush1.bf16.msra.mxu0 %v8685_v58 }
  0x4d   :  { %8750 = vmatpush1.bf16.msra.mxu1 %v8749_v59  ;;  %8688 = vmatprep.subr.bf16.mxu0 %v8687_v60 }
  0x4e   :  { %8752 = vmatprep.subr.bf16.mxu1 %v8751_v0 }
  0x50   :  { %8690 = vmatpush1.bf16.msra.mxu0 %v8689_v6 }
  0x51   :  { %29 = vsyncpa [#allocation3], 0  ;;  %8754 = vmatpush1.bf16.msra.mxu1 %v8753_v7  ;;  %8788 = vmatprep.subr.bf16.mxu0 %v8787_v8  ;;  %v8757_v20 = vpack.c.bf16 %v7425_v13, %v7422_v9  ;;  %v8791_v21 = vpack.c.bf16 %v7433_v15, %v7430_v14  ;;  %v7428_v22 = vld [vmem:[%s14140_s27 + $0x4b0] sm:$0xff]  ;;  %v7382_v23 = vld [vmem:[%s14140_s27 + $0x340] sm:$0xff]  ;;  %v8759_v25 = vpack.c.bf16 %v7432_v18, %v7429_v17  ;;  %vm9716_vm0 = vmmov 0   ;;  %s14142_s28 = sld [smem:[#allocation7_spill]] }
  0x52   :  { %v7385_v24 = vld [vmem:[%s14140_s27 + $0x358] sm:$0xff]  ;;  %8756 = vmatprep.subr.bf16.mxu1 %v8755_v12  ;;  %v7431_v26 = vld [vmem:[%s14140_s27 + $0x4c8] sm:$0xff]  ;;  %v7436_v27 = vld [vmem:[%s14140_s27 + $0x4f0] sm:$0xff]  ;;  %vm562_vm1 = vcmask 64512   ;;  %s14143_s2 = sld [smem:[#allocation11_spill]]  ;;  %s14144_s8 = sld [smem:[#allocation8_spill]] }
  0x53   :  { %v7439_v28 = vld [vmem:[%s14140_s27 + $0x508] sm:$0xff]  ;;  %241 = vmatmul.mubr.f32.vlgmr.msra.gmra.mrb[0].mxu0 %v10085_v47  ;;  %v7438_v30 = vld [vmem:[%s14140_s27 + $0x500] sm:$0xff]  ;;  %v8793_v31 = vpack.c.bf16 %v7385_v24, %v7382_v23  ;;  %v8761_v32 = vpack.c.bf16 %v7431_v26, %v7428_v22  ;;  %v7388_v35 = vld [vmem:[%s14140_s27 + $0x370] sm:$0xff]  ;;  %vm1375_vm2 = vcmask 261120   ;;  %vm1379_vm3 = vcmask 254976   ;;  %s14145_s30 = sld [smem:[#allocation12_spill]] }
  0x54   :  { %v7435_v29 = vld [vmem:[%s14140_s27 + $0x4e8] sm:$0xff]  ;;  %8790 = vmatpush3.bf16.msra.mxu0 %v8789_v19  ;;  %552 = vmatprep.mubr.f32.mxu0 %v10015_v16  ;;  %v8795_v33 = vpack.c.bf16 %v7439_v28, %v7436_v27  ;;  %v7434_v34 = vld [vmem:[%s14140_s27 + $0x4e0] sm:$0xff]  ;;  %v7437_v38 = vld [vmem:[%s14140_s27 + $0x4f8] sm:$0xff]  ;;  %vm1357_vm4 = vcmask 1041408   ;;  %s14146_s25 = sld [smem:[#allocation13_spill]]  ;;  %vm2656_vm5 = vcmask 146432  }
  0x55   :  { %8758 = vmatpush1.bf16.msra.mxu1 %v8757_v20  ;;  %8792 = vmatprep.subr.bf16.mxu0 %v8791_v21  ;;  %v7391_v36 = vld [vmem:[%s14140_s27 + $0x388] sm:$0xff]  ;;  %v8763_v37 = vpack.c.bf16 %v7438_v30, %v7435_v29  ;;  %v7442_v39 = vld [vmem:[%s14140_s27 + $0x520] sm:$0xff]  ;;  %v7445_v40 = vld [vmem:[%s14140_s27 + $0x538] sm:$0xff]  ;;  %v8765_v44 = vpack.c.bf16 %v7437_v38, %v7434_v34  ;;  %vm3294_vm6 = vcmask 195584   ;;  %vm3285_vm7 = vcmask 1045504  }
  0x56   :  { %8760 = vmatprep.subr.bf16.mxu1 %v8759_v25  ;;  %v7441_v41 = vld [vmem:[%s14140_s27 + $0x518] sm:$0xff]  ;;  %v7444_v42 = vld [vmem:[%s14140_s27 + $0x530] sm:$0xff]  ;;  %v8797_v43 = vpack.c.bf16 %v7391_v36, %v7388_v35  ;;  %v8799_v45 = vpack.c.bf16 %v7445_v40, %v7442_v39  ;;  %v7394_v48 = vld [vmem:[%s14140_s27 + $0x3a0] sm:$0xff]  ;;  %v9715_v39 = vmov 0.0   ;;  %vm3302_vm8 = vcmask 193536  }
  0x57   :  { %v7440_v46 = vld [vmem:[%s14140_s27 + $0x510] sm:$0xff]  ;;  %v7397_v49 = vld [vmem:[%s14140_s27 + $0x3b8] sm:$0xff]  ;;  %v8767_v50 = vpack.c.bf16 %v7444_v42, %v7441_v41  ;;  %v7443_v51 = vld [vmem:[%s14140_s27 + $0x528] sm:$0xff]  ;;  %vm4015_vm9 = vcmask 310272   ;;  %vm4688_vm10 = vcmask 1044480   ;;  %vm4608_vm11 = vcmask 957440  }
  0x58   :  { %8794 = vmatpush3.bf16.msra.mxu0 %v8793_v31  ;;  %v7448_v52 = vld [vmem:[%s14140_s27 + $0x550] sm:$0xff]  ;;  %v7451_v53 = vld [vmem:[%s14140_s27 + $0x568] sm:$0xff]  ;;  %v7450_v55 = vld [vmem:[%s14140_s27 + $0x560] sm:$0xff]  ;;  %v8801_v56 = vpack.c.bf16 %v7397_v49, %v7394_v48  ;;  %v8769_v57 = vpack.c.bf16 %v7443_v51, %v7440_v46  ;;  %vm4626_vm12 = vcmask 955392   ;;  %vm4848_vm13 = vcmask 1042432  }
  0x59   :  { %8762 = vmatpush1.bf16.msra.mxu1 %v8761_v32  ;;  %8796 = vmatprep.subr.bf16.mxu0 %v8795_v33  ;;  %v7447_v54 = vld [vmem:[%s14140_s27 + $0x548] sm:$0xff]  ;;  %v8803_v58 = vpack.c.bf16 %v7451_v53, %v7448_v52  ;;  %v7446_v59 = vld [vmem:[%s14140_s27 + $0x540] sm:$0xff]  ;;  %v7400_v60 = vld [vmem:[%s14140_s27 + $0x3d0] sm:$0xff]  ;;  %vm4844_vm14 = vcmask 23552   ;;  %vm9718_vm15 = vmmov 1  }
  0x5a   :  { %8764 = vmatprep.subr.bf16.mxu1 %v8763_v37  ;;  %v7403_v61 = vld [vmem:[%s14140_s27 + $0x3e8] sm:$0xff]  ;;  %v8771_v62 = vpack.c.bf16 %v7450_v55, %v7447_v54  ;;  %v7449_v63 = vld [vmem:[%s14140_s27 + $0x558] sm:$0xff]  ;;  %v7454_v0 = vld [vmem:[%s14140_s27 + $0x580] sm:$0xff] }
  0x5b   :  { %v7457_v1 = vld [vmem:[%s14140_s27 + $0x598] sm:$0xff]  ;;  %v7456_v3 = vld [vmem:[%s14140_s27 + $0x590] sm:$0xff]  ;;  %v8805_v4 = vpack.c.bf16 %v7403_v61, %v7400_v60  ;;  %v8773_v5 = vpack.c.bf16 %v7449_v63, %v7446_v59  ;;  %v7406_v8 = vld [vmem:[%s14140_s27 + $0x400] sm:$0xff] }
  0x5c   :  { %8798 = vmatpush3.bf16.msra.mxu0 %v8797_v43  ;;  %v7453_v2 = vld [vmem:[%s14140_s27 + $0x578] sm:$0xff]  ;;  %v8807_v6 = vpack.c.bf16 %v7457_v1, %v7454_v0  ;;  %v7452_v7 = vld [vmem:[%s14140_s27 + $0x570] sm:$0xff]  ;;  %v7455_v11 = vld [vmem:[%s14140_s27 + $0x588] sm:$0xff] }
  0x5d   :  { %8766 = vmatpush1.bf16.msra.mxu1 %v8765_v44  ;;  %8800 = vmatprep.subr.bf16.mxu0 %v8799_v45  ;;  %v7409_v9 = vld [vmem:[%s14140_s27 + $0x418] sm:$0xff]  ;;  %v8775_v10 = vpack.c.bf16 %v7456_v3, %v7453_v2  ;;  %v7460_v12 = vld [vmem:[%s14140_s27 + $0x5b0] sm:$0xff]  ;;  %v7463_v13 = vld [vmem:[%s14140_s27 + $0x5c8] sm:$0xff]  ;;  %v8777_v18 = vpack.c.bf16 %v7455_v11, %v7452_v7 }
  0x5e   :  { %8768 = vmatprep.subr.bf16.mxu1 %v8767_v50  ;;  %v7459_v14 = vld [vmem:[%s14140_s27 + $0x5a8] sm:$0xff]  ;;  %v7462_v15 = vld [vmem:[%s14140_s27 + $0x5c0] sm:$0xff]  ;;  %v8809_v17 = vpack.c.bf16 %v7409_v9, %v7406_v8  ;;  %v8811_v19 = vpack.c.bf16 %v7463_v13, %v7460_v12  ;;  %v7412_v21 = vld [vmem:[%s14140_s27 + $0x430] sm:$0xff] }
  0x5f   :  { %v7458_v20 = vld [vmem:[%s14140_s27 + $0x5a0] sm:$0xff]  ;;  %v7415_v22 = vld [vmem:[%s14140_s27 + $0x448] sm:$0xff]  ;;  %v8779_v23 = vpack.c.bf16 %v7462_v15, %v7459_v14  ;;  %v7461_v24 = vld [vmem:[%s14140_s27 + $0x5b8] sm:$0xff] }
  0x60   :  { %8802 = vmatpush3.bf16.msra.mxu0 %v8801_v56  ;;  %v7466_v25 = vld [vmem:[%s14140_s27 + $0x5e0] sm:$0xff]  ;;  %v7469_v26 = vld [vmem:[%s14140_s27 + $0x5f8] sm:$0xff]  ;;  %v7468_v28 = vld [vmem:[%s14140_s27 + $0x5f0] sm:$0xff]  ;;  %v8813_v29 = vpack.c.bf16 %v7415_v22, %v7412_v21  ;;  %v8781_v30 = vpack.c.bf16 %v7461_v24, %v7458_v20 }
  0x61   :  { %8770 = vmatpush1.bf16.msra.mxu1 %v8769_v57  ;;  %8804 = vmatprep.subr.bf16.mxu0 %v8803_v58  ;;  %v7465_v27 = vld [vmem:[%s14140_s27 + $0x5d8] sm:$0xff]  ;;  %v8815_v31 = vpack.c.bf16 %v7469_v26, %v7466_v25  ;;  %v7418_v32 = vld [vmem:[%s14140_s27 + $0x460] sm:$0xff]  ;;  %v7464_v35 = vld [vmem:[%s14140_s27 + $0x5d0] sm:$0xff] }
  0x62   :  { %8772 = vmatprep.subr.bf16.mxu1 %v8771_v62  ;;  %v7421_v33 = vld [vmem:[%s14140_s27 + $0x478] sm:$0xff]  ;;  %v8783_v34 = vpack.c.bf16 %v7468_v28, %v7465_v27  ;;  %v7467_v36 = vld [vmem:[%s14140_s27 + $0x5e8] sm:$0xff]  ;;  %v7489_v53 = vld [vmem:[%s14140_s27 + $0x620] sm:$0xff] }
  0x63   :  { %v8817_v37 = vpack.c.bf16 %v7421_v33, %v7418_v32  ;;  %v8785_v38 = vpack.c.bf16 %v7467_v36, %v7464_v35  ;;  %v7470_v51 = vld [vmem:[%s14142_s28 + $0x18] sm:$0xff]  ;;  %v7486_v52 = vld [vmem:[%s14140_s27 + $0x608] sm:$0xff]  ;;  %v7535_v54 = vld [vmem:[%s14140_s27 + $0x790] sm:$0xff] }
  0x64   :  { %8806 = vmatpush3.bf16.msra.mxu0 %v8805_v4  ;;  %v7538_v55 = vld [vmem:[%s14140_s27 + $0x7a8] sm:$0xff]  ;;  %v7471_v56 = vld [vmem:[%s14142_s28 + $0x20] sm:$0xff]  ;;  %v8819_v57 = vpack.c.bf16 %v7489_v53, %v7486_v52  ;;  %v7488_v61 = vld [vmem:[%s14140_s27 + $0x618] sm:$0xff] }
  0x65   :  { %8774 = vmatpush1.bf16.msra.mxu1 %v8773_v5  ;;  %8808 = vmatprep.subr.bf16.mxu0 %v8807_v6  ;;  %v8883_v58 = vpack.c.bf16 %v7538_v55, %v7535_v54  ;;  %v7472_v59 = vld [vmem:[%s14142_s28 + $0x28] sm:$0x3]  ;;  %v7485_v60 = vld [vmem:[%s14140_s27 + $0x600] sm:$0xff]  ;;  %v7487_v62 = vld [vmem:[%s14140_s27 + $0x610] sm:$0xff] }
  0x66   :  { %8776 = vmatprep.subr.bf16.mxu1 %v8775_v10  ;;  %v7490_v63 = vld [vmem:[%s14140_s27 + $0x628] sm:$0xff]  ;;  %v7492_v0 = vld [vmem:[%s14140_s27 + $0x638] sm:$0xff]  ;;  %v7495_v1 = vld [vmem:[%s14140_s27 + $0x650] sm:$0xff]  ;;  %v8821_v5 = vpack.c.bf16 %v7488_v61, %v7485_v60 }
  0x67   :  { %v7541_v2 = vld [vmem:[%s14140_s27 + $0x7c0] sm:$0xff]  ;;  %v7544_v3 = vld [vmem:[%s14140_s27 + $0x7d8] sm:$0xff]  ;;  %v8885_v6 = vpack.c.bf16 %v7490_v63, %v7487_v62  ;;  %v7491_v7 = vld [vmem:[%s14140_s27 + $0x630] sm:$0xff]  ;;  %v8823_v9 = vpack.c.bf16 %v7495_v1, %v7492_v0 }
  0x68   :  { %8810 = vmatpush3.bf16.msra.mxu0 %v8809_v17  ;;  %v317_v4 = vld [vmem:[%s14142_s28] sm:$0xff]  ;;  %v7494_v8 = vld [vmem:[%s14140_s27 + $0x648] sm:$0xff]  ;;  %v8887_v10 = vpack.c.bf16 %v7544_v3, %v7541_v2  ;;  %v7496_v12 = vld [vmem:[%s14140_s27 + $0x658] sm:$0xff] }
  0x69   :  { %8778 = vmatpush1.bf16.msra.mxu1 %v8777_v18  ;;  %8812 = vmatprep.subr.bf16.mxu0 %v8811_v19  ;;  %v7493_v11 = vld [vmem:[%s14140_s27 + $0x640] sm:$0xff]  ;;  %v7498_v13 = vld [vmem:[%s14140_s27 + $0x668] sm:$0xff]  ;;  %v7547_v15 = vld [vmem:[%s14140_s27 + $0x7f0] sm:$0xff]  ;;  %v8825_v18 = vpack.c.bf16 %v7494_v8, %v7491_v7 }
  0x6a   :  { %8780 = vmatprep.subr.bf16.mxu1 %v8779_v23  ;;  %v7501_v14 = vld [vmem:[%s14140_s27 + $0x680] sm:$0xff]  ;;  %v7550_v17 = vld [vmem:[%s14140_s27 + $0x808] sm:$0xff]  ;;  %v8889_v19 = vpack.c.bf16 %v7496_v12, %v7493_v11  ;;  %v7500_v21 = vld [vmem:[%s14140_s27 + $0x678] sm:$0xff] }
  0x6b   :  { %v7497_v20 = vld [vmem:[%s14140_s27 + $0x660] sm:$0xff]  ;;  %v318_v22 = vld [vmem:[%s14142_s28 + $0x8] sm:$0xff]  ;;  %v8827_v23 = vpack.c.bf16 %v7501_v14, %v7498_v13  ;;  %v8891_v24 = vpack.c.bf16 %v7550_v17, %v7547_v15  ;;  %v7499_v25 = vld [vmem:[%s14140_s27 + $0x670] sm:$0xff] }
  0x6c   :  { %8814 = vmatpush3.bf16.msra.mxu0 %v8813_v29  ;;  %v7502_v26 = vld [vmem:[%s14140_s27 + $0x688] sm:$0xff]  ;;  %v7504_v27 = vld [vmem:[%s14140_s27 + $0x698] sm:$0xff]  ;;  %v7507_v28 = vld [vmem:[%s14140_s27 + $0x6b0] sm:$0xff] }
  0x6d   :  { %8782 = vmatpush1.bf16.msra.mxu1 %v8781_v30  ;;  %8816 = vmatprep.subr.bf16.mxu0 %v8815_v31  ;;  %v7553_v29 = vld [vmem:[%s14140_s27 + $0x820] sm:$0xff]  ;;  %v7556_v30 = vld [vmem:[%s14140_s27 + $0x838] sm:$0xff]  ;;  %v8829_v31 = vpack.c.bf16 %v7500_v21, %v7497_v20  ;;  %v8893_v32 = vpack.c.bf16 %v7502_v26, %v7499_v25  ;;  %v7503_v33 = vld [vmem:[%s14140_s27 + $0x690] sm:$0xff]  ;;  %v8831_v36 = vpack.c.bf16 %v7507_v28, %v7504_v27 }
  0x6e   :  { %8784 = vmatprep.subr.bf16.mxu1 %v8783_v34  ;;  %v7506_v34 = vld [vmem:[%s14140_s27 + $0x6a8] sm:$0xff]  ;;  %v319_v35 = vld [vmem:[%s14142_s28 + $0x10] sm:$0x3]  ;;  %v7516_v54 = vld [vmem:[%s14140_s27 + $0x6f8] sm:$0xff] }
  0x6f   :  { %v7511_v52 = vld [vmem:[%s14140_s27 + $0x6d0] sm:$0xff]  ;;  %v7514_v53 = vld [vmem:[%s14140_s27 + $0x6e8] sm:$0xff]  ;;  %v7520_v0 = vld [vmem:[%s14140_s27 + $0x718] sm:$0xff] }
  0x70   :  { %8818 = vmatpush3.bf16.msra.mxu0 %v8817_v37  ;;  %v8895_v37 = vpack.c.bf16 %v7556_v30, %v7553_v29  ;;  %v7519_v55 = vld [vmem:[%s14140_s27 + $0x710] sm:$0xff]  ;;  %v7518_v61 = vld [vmem:[%s14140_s27 + $0x708] sm:$0xff]  ;;  %v7525_v2 = vld [vmem:[%s14140_s27 + $0x740] sm:$0xff] }
  0x71   :  { %8786 = vmatpush1.bf16.msra.mxu1 %v8785_v38  ;;  %v7505_v38 = vld [vmem:[%s14140_s27 + $0x6a0] sm:$0xff]  ;;  %v7515_v60 = vld [vmem:[%s14140_s27 + $0x6f0] sm:$0xff]  ;;  %v8839_v62 = vpack.c.bf16 %v7519_v55, %v7516_v54  ;;  %v7522_v1 = vld [vmem:[%s14140_s27 + $0x728] sm:$0xff] }
  0x72   :  { %8399 = vmatprep.subr.mxu1 %v9715_v39  ;;  %v7571_v3 = vld [vmem:[%s14140_s27 + $0x8b0] sm:$0xff]  ;;  %v7521_v7 = vld [vmem:[%s14140_s27 + $0x720] sm:$0xff]  ;;  %v7524_v8 = vld [vmem:[%s14140_s27 + $0x738] sm:$0xff] }
  0x73   :  { %553 = vmatmul.mubr.f32.vlgmr.msra.gmra.mrb[2].mxu0 %v10085_v47  ;;  %v7523_v11 = vld [vmem:[%s14140_s27 + $0x730] sm:$0xff]  ;;  %v7526_v12 = vld [vmem:[%s14140_s27 + $0x748] sm:$0xff]  ;;  %v7528_v13 = vld [vmem:[%s14140_s27 + $0x758] sm:$0xff] }
  0x74   :  { %482 = vmatmul.mubr.f32.vlgmr.msra.gmra.mrb[2].mxu1 %v10085_v47  ;;  %636 = vmatprep.mubr.f32.mxu0 %v9715_v39  ;;  %v7531_v14 = vld [vmem:[%s14140_s27 + $0x770] sm:$0xff]  ;;  %v7577_v15 = vld [vmem:[%s14140_s27 + $0x8e0] sm:$0xff]  ;;  %v7580_v17 = vld [vmem:[%s14140_s27 + $0x8f8] sm:$0xff] }
  0x75   :  { %8401 = vmatprep.mubr.msk.f32.mxu1 %vm9716_vm0, %v9715_v39  ;;  %v7527_v20 = vld [vmem:[%s14140_s27 + $0x750] sm:$0xff]  ;;  %v8847_v21 = vpack.c.bf16 %v7531_v14, %v7528_v13  ;;  %v7532_v25 = vld [vmem:[%s14140_s27 + $0x778] sm:$0xff]  ;;  %v7534_v26 = vld [vmem:[%s14140_s27 + $0x788] sm:$0xff] }
  0x76   :  { %v7537_v27 = vld [vmem:[%s14140_s27 + $0x7a0] sm:$0xff] }
  0x77   :  { %v8851_v30 = vpack.c.bf16 %v7537_v27, %v7534_v26  ;;  %v7561_v54 = vld [vmem:[%s14140_s27 + $0x860] sm:$0xff] }
 0x107   :  { %v8143_v40 = vpop.f32.mrb[0].mxu1 }
 0x108   :  { %v8144_v41 = vpop.f32.mrb[1].mxu1 }
 0x109   :  { %v8145_v42 = vadd.f32 %v8144_v41, %v8143_v40  ;;  %v7508_v40 = vld [vmem:[%s14140_s27 + $0x6b8] sm:$0xff]  ;;  %v7510_v41 = vld [vmem:[%s14140_s27 + $0x6c8] sm:$0xff] }
 0x126   :  { %v242_v43 = vpop.f32.mrb[0].mxu0 }
 0x127   :  { %v244_v44 = vpop.f32.mrb[1].mxu0 }
 0x146   :  { %v8178_v45 = vpop.f32.mrb[2].mxu0 }
 0x147   :  { %v483_v46 = vpop.f32.mrb[2].mxu1  ;;  %v8179_v48 = vpop.f32.mrb[3].mxu0 }
 0x148   :  { %v485_v49 = vpop.f32.mrb[3].mxu1  ;;  %v8180_v50 = vadd.f32 %v8179_v48, %v8178_v45  ;;  %v8833_v45 = vpack.c.bf16 %v7506_v34, %v7503_v33  ;;  %v7509_v48 = vld [vmem:[%s14140_s27 + $0x6c0] sm:$0xff]  ;;  %v7540_v33 = vld [vmem:[%s14140_s27 + $0x7b8] sm:$0xff]  ;;  %v7543_v34 = vld [vmem:[%s14140_s27 + $0x7d0] sm:$0xff] }
 0x149   :  { %572 = vmatprep.subr.mxu0 %v485_v49  ;;  %v7512_v49 = vld [vmem:[%s14140_s27 + $0x6d8] sm:$0xff] }
 0x14a   :  { %573 = vmatpush1.msra.mxu0 %v483_v46  ;;  %8400 = vmatpush3.msra.mxu1 %v8180_v50  ;;  %v8897_v46 = vpack.c.bf16 %v7508_v40, %v7505_v38  ;;  %v7542_v38 = vld [vmem:[%s14140_s27 + $0x7c8] sm:$0xff] }
 0x14b   :  { %7473 = vmatmul.mubr.msk.f32.vlgmr.msra.gmra.mrb[4].mxu0 %vm562_vm1, %v7470_v51  ;;  %8402 = vmatmul.mubr.msk.f32.vlgmr.msra.gmra.mrb[4].mxu1 %vm562_vm1, %v7470_v51  ;;  %v7546_v40 = vld [vmem:[%s14140_s27 + $0x7e8] sm:$0xff] }
 0x14c   :  { %8410 = vmatprep.subr.mxu1 %v9715_v39  ;;  %642 = vmatprep.mubr.f32.mxu0 %v9715_v39 }
 0x14d   :  { %8411 = vmatpush3.msra.mxu1 %v8145_v42  ;;  %744 = vmatprep.subr.mxu0 %v244_v44  ;;  %v7513_v42 = vld [vmem:[%s14140_s27 + $0x6e0] sm:$0xff]  ;;  %v7562_v44 = vld [vmem:[%s14140_s27 + $0x868] sm:$0xff] }
 0x14e   :  { %8404 = vmatprep.mubr.msk.f32.mxu1 %vm9716_vm0, %v9715_v39  ;;  %745 = vmatpush1.msra.mxu0 %v242_v43  ;;  %v7559_v43 = vld [vmem:[%s14140_s27 + $0x850] sm:$0xff]  ;;  %v8835_v50 = vpack.c.bf16 %v7513_v42, %v7510_v41  ;;  %v7549_v41 = vld [vmem:[%s14140_s27 + $0x800] sm:$0xff] }
 0x14f   :  { %7474 = vmatmul.mubr.msk.f32.gmra.mrb[6].mxu0 %vm562_vm1, %v7471_v56  ;;  %8405 = vmatmul.mubr.msk.f32.gmra.mrb[6].mxu1 %vm562_vm1, %v7471_v56  ;;  %v8899_v51 = vpack.c.bf16 %v7562_v44, %v7559_v43  ;;  %v7565_v56 = vld [vmem:[%s14140_s27 + $0x880] sm:$0xff]  ;;  %v8859_v43 = vpack.c.bf16 %v7549_v41, %v7546_v40  ;;  %v1427_v41 = vld [vmem:[%s14143_s2 + $0x8] sm:$0xff] }
 0x150   :  { %648 = vmatprep.mubr.f32.mxu0 %v9715_v39  ;;  %8407 = vmatprep.mubr.msk.f32.mxu1 %vm9716_vm0, %v9715_v39  ;;  %v7545_v44 = vld [vmem:[%s14140_s27 + $0x7e0] sm:$0xff] }
 0x151   :  { %8820 = vmatprep.subr.bf16.mxu0 %v8819_v57  ;;  %8884 = vmatprep.subr.bf16.mxu1 %v8883_v58  ;;  %v7568_v57 = vld [vmem:[%s14140_s27 + $0x898] sm:$0xff]  ;;  %v8837_v58 = vpack.c.bf16 %v7512_v49, %v7509_v48  ;;  %v7555_v48 = vld [vmem:[%s14140_s27 + $0x830] sm:$0xff] }
 0x152   :  { %v8903_v63 = vpack.c.bf16 %v7568_v57, %v7565_v56  ;;  %v7557_v57 = vld [vmem:[%s14140_s27 + $0x840] sm:$0xff] }
 0x153   :  { %7475 = vmatmul.mubr.msk.f32.gmra.mrb[8].mxu0 %vm562_vm1, %v7472_v59  ;;  %8408 = vmatmul.mubr.msk.f32.gmra.mrb[8].mxu1 %vm562_vm1, %v7472_v59  ;;  %v8901_v59 = vpack.c.bf16 %v7514_v53, %v7511_v52  ;;  %v7554_v52 = vld [vmem:[%s14140_s27 + $0x828] sm:$0xff] }
 0x154   :  { %808 = vmatprep.mubr.f32.mxu0 %v9715_v39  ;;  %8412 = vmatprep.mubr.msk.f32.mxu1 %vm9716_vm0, %v9715_v39  ;;  %v7558_v53 = vld [vmem:[%s14140_s27 + $0x848] sm:$0xff] }
 0x155   :  { %v8867_v56 = vpack.c.bf16 %v7561_v54, %v7558_v53  ;;  %v1430_v53 = vld [vmem:[%s14143_s2 + $0x20] sm:$0xff]  ;;  %v1431_v54 = vld [vmem:[%s14143_s2 + $0x28] sm:$0xff] }
 0x157   :  { %7479 = vmatmul.mubr.msk.f32.vlgmr.msra.gmra.mrb[4].mxu0 %vm562_vm1, %v317_v4  ;;  %8413 = vmatmul.mubr.msk.f32.vlgmr.msra.gmra.mrb[10].mxu1 %vm562_vm1, %v317_v4  ;;  %v7574_v4 = vld [vmem:[%s14140_s27 + $0x8c8] sm:$0xff] }
 0x158   :  { %8822 = vmatpush1.bf16.msra.mxu0 %v8821_v5  ;;  %8886 = vmatpush3.bf16.msra.mxu1 %v8885_v6  ;;  %v8841_v5 = vpack.c.bf16 %v7518_v61, %v7515_v60  ;;  %v7567_v60 = vld [vmem:[%s14140_s27 + $0x890] sm:$0xff] }
 0x159   :  { %8824 = vmatprep.subr.bf16.mxu0 %v8823_v9  ;;  %8888 = vmatprep.subr.bf16.mxu1 %v8887_v10  ;;  %v8843_v9 = vpack.c.bf16 %v7525_v2, %v7522_v1  ;;  %v8907_v10 = vpack.c.bf16 %v7574_v4, %v7571_v3  ;;  %v7573_v1 = vld [vmem:[%s14140_s27 + $0x8c0] sm:$0xff] }
 0x15a   :  { %8415 = vmatprep.mubr.msk.f32.mxu1 %vm9716_vm0, %v9715_v39  ;;  %814 = vmatprep.mubr.f32.mxu0 %v9715_v39  ;;  %v7569_v4 = vld [vmem:[%s14140_s27 + $0x8a0] sm:$0xff] }
 0x15b   :  { %8416 = vmatmul.mubr.msk.f32.gmra.mrb[12].mxu1 %vm562_vm1, %v318_v22  ;;  %7480 = vmatmul.mubr.msk.f32.gmra.mrb[6].mxu0 %vm562_vm1, %v318_v22  ;;  %v7530_v22 = vld [vmem:[%s14140_s27 + $0x768] sm:$0xff] }
 0x15c   :  { %8826 = vmatpush1.bf16.msra.mxu0 %v8825_v18  ;;  %8890 = vmatpush3.bf16.msra.mxu1 %v8889_v19  ;;  %v8845_v18 = vpack.c.bf16 %v7524_v8, %v7521_v7  ;;  %v8909_v19 = vpack.c.bf16 %v7526_v12, %v7523_v11  ;;  %v8849_v28 = vpack.c.bf16 %v7530_v22, %v7527_v20  ;;  %v7579_v7 = vld [vmem:[%s14140_s27 + $0x8f0] sm:$0xff]  ;;  %v7578_v11 = vld [vmem:[%s14140_s27 + $0x8e8] sm:$0xff] }
 0x15d   :  { %8828 = vmatprep.subr.bf16.mxu0 %v8827_v23  ;;  %8892 = vmatprep.subr.bf16.mxu1 %v8891_v24  ;;  %v8911_v23 = vpack.c.bf16 %v7580_v17, %v7577_v15  ;;  %v7529_v24 = vld [vmem:[%s14140_s27 + $0x760] sm:$0xff] }
 0x15e   :  { %8418 = vmatprep.mubr.msk.f32.mxu1 %vm9716_vm0, %v9715_v39  ;;  %820 = vmatprep.mubr.f32.mxu0 %v9715_v39  ;;  %v8913_v29 = vpack.c.bf16 %v7532_v25, %v7529_v24 }
 0x15f   :  { %8419 = vmatmul.mubr.msk.f32.gmra.mrb[14].mxu1 %vm562_vm1, %v319_v35  ;;  %7481 = vmatmul.mubr.msk.f32.gmra.mrb[8].mxu0 %vm562_vm1, %v319_v35 }
 0x160   :  { %8830 = vmatpush1.bf16.msra.mxu0 %v8829_v31  ;;  %8894 = vmatpush3.bf16.msra.mxu1 %v8893_v32  ;;  %v7533_v31 = vld [vmem:[%s14140_s27 + $0x780] sm:$0xff]  ;;  %v7536_v32 = vld [vmem:[%s14140_s27 + $0x798] sm:$0xff] }
 0x161   :  { %8832 = vmatprep.subr.bf16.mxu0 %v8831_v36  ;;  %8896 = vmatprep.subr.bf16.mxu1 %v8895_v37  ;;  %v8853_v35 = vpack.c.bf16 %v7536_v32, %v7533_v31  ;;  %v8855_v36 = vpack.c.bf16 %v7543_v34, %v7540_v33  ;;  %v7539_v37 = vld [vmem:[%s14140_s27 + $0x7b0] sm:$0xff]  ;;  %v7582_v32 = vld [vmem:[%s14142_s28 + $0x38] sm:$0xff]  ;;  %v7583_v33 = vld [vmem:[%s14142_s28 + $0x40] sm:$0x3] }
 0x162   :  { %1139 = vmatprep.mubr.f32.mxu1 %v10015_v16  ;;  %1068 = vmatprep.mubr.f32.mxu0 %v10015_v16  ;;  %v7517_v16 = vld [vmem:[%s14140_s27 + $0x700] sm:$0xff]  ;;  %v8857_v42 = vpack.c.bf16 %v7542_v38, %v7539_v37  ;;  %v7581_v31 = vld [vmem:[%s14142_s28 + $0x30] sm:$0xff]  ;;  %v1443_v37 = vld [vmem:[%s14143_s2 + $0x88] sm:$0xff]  ;;  %s14147_s28 = sld [smem:[#allocation9_spill]] }
 0x163   :  { %v8905_v6 = vpack.c.bf16 %v7520_v0, %v7517_v16  ;;  %v7566_v16 = vld [vmem:[%s14140_s27 + $0x888] sm:$0xff]  ;;  %v1426_v38 = vld [vmem:[%s14143_s2] sm:$0xff] }
 0x164   :  { %8834 = vmatpush1.bf16.msra.mxu0 %v8833_v45  ;;  %8898 = vmatpush3.bf16.msra.mxu1 %v8897_v46  ;;  %v7548_v45 = vld [vmem:[%s14140_s27 + $0x7f8] sm:$0xff]  ;;  %v7570_v0 = vld [vmem:[%s14140_s27 + $0x8a8] sm:$0xff] }
 0x165   :  { %8836 = vmatprep.subr.bf16.mxu0 %v8835_v50  ;;  %8900 = vmatprep.subr.bf16.mxu1 %v8899_v51  ;;  %v7552_v46 = vld [vmem:[%s14140_s27 + $0x818] sm:$0xff]  ;;  %v8861_v49 = vpack.c.bf16 %v7548_v45, %v7545_v44  ;;  %v7551_v51 = vld [vmem:[%s14140_s27 + $0x810] sm:$0xff]  ;;  %v8875_v3 = vpack.c.bf16 %v7573_v1, %v7570_v0  ;;  %v8917_v44 = vpack.c.bf16 %v1427_v41, %v1426_v38  ;;  %v1434_v0 = vld [vmem:[%s14143_s2 + $0x40] sm:$0xff] }
 0x166   :  { %v8863_v50 = vpack.c.bf16 %v7555_v48, %v7552_v46  ;;  %v8865_v55 = vpack.c.bf16 %v7554_v52, %v7551_v51  ;;  %v1428_v46 = vld [vmem:[%s14143_s2 + $0x10] sm:$0xff]  ;;  %v1429_v48 = vld [vmem:[%s14143_s2 + $0x18] sm:$0xff]  ;;  %v1447_v51 = vld [vmem:[%s14143_s2 + $0xa8] sm:$0xff] }
 0x167   :  { %v1435_v1 = vld [vmem:[%s14143_s2 + $0x48] sm:$0xff] }
 0x168   :  { %8838 = vmatpush1.bf16.msra.mxu0 %v8837_v58  ;;  %8902 = vmatpush3.bf16.msra.mxu1 %v8901_v59  ;;  %v7560_v58 = vld [vmem:[%s14140_s27 + $0x858] sm:$0xff] }
 0x169   :  { %8840 = vmatprep.subr.bf16.mxu0 %v8839_v62  ;;  %8904 = vmatprep.subr.bf16.mxu1 %v8903_v63  ;;  %v7564_v59 = vld [vmem:[%s14140_s27 + $0x878] sm:$0xff]  ;;  %v8869_v61 = vpack.c.bf16 %v7560_v58, %v7557_v57  ;;  %v7563_v63 = vld [vmem:[%s14140_s27 + $0x870] sm:$0xff] }
 0x16a   :  { %v8871_v62 = vpack.c.bf16 %v7567_v60, %v7564_v59  ;;  %v8873_v2 = vpack.c.bf16 %v7566_v16, %v7563_v63  ;;  %v1449_v57 = vld [vmem:[%s14143_s2 + $0xb8] sm:$0xff]  ;;  %v1432_v59 = vld [vmem:[%s14143_s2 + $0x30] sm:$0xff]  ;;  %v1451_v63 = vld [vmem:[%s14143_s2 + $0xc8] sm:$0xff] }
 0x16b   :  { %v1433_v60 = vld [vmem:[%s14143_s2 + $0x38] sm:$0xff] }
 0x16c   :  { %8842 = vmatpush1.bf16.msra.mxu0 %v8841_v5  ;;  %8906 = vmatpush3.bf16.msra.mxu1 %v8905_v6  ;;  %v7572_v5 = vld [vmem:[%s14140_s27 + $0x8b8] sm:$0xff] }
 0x16d   :  { %8844 = vmatprep.subr.bf16.mxu0 %v8843_v9  ;;  %8908 = vmatprep.subr.bf16.mxu1 %v8907_v10  ;;  %v7576_v6 = vld [vmem:[%s14140_s27 + $0x8d8] sm:$0xff]  ;;  %v8877_v8 = vpack.c.bf16 %v7572_v5, %v7569_v4  ;;  %v7575_v10 = vld [vmem:[%s14140_s27 + $0x8d0] sm:$0xff] }
 0x16e   :  { %v8879_v9 = vpack.c.bf16 %v7579_v7, %v7576_v6  ;;  %v8881_v12 = vpack.c.bf16 %v7578_v11, %v7575_v10  ;;  %v1453_v4 = vld [vmem:[%s14143_s2 + $0xd8] sm:$0xff]  ;;  %v1436_v6 = vld [vmem:[%s14143_s2 + $0x50] sm:$0xff]  ;;  %v1455_v10 = vld [vmem:[%s14143_s2 + $0xe8] sm:$0xff] }
 0x16f   :  { %v1437_v7 = vld [vmem:[%s14143_s2 + $0x58] sm:$0xff] }
 0x170   :  { %8846 = vmatpush1.bf16.msra.mxu0 %v8845_v18  ;;  %8910 = vmatpush3.bf16.msra.mxu1 %v8909_v19 }
 0x171   :  { %8848 = vmatprep.subr.bf16.mxu0 %v8847_v21  ;;  %8912 = vmatprep.subr.bf16.mxu1 %v8911_v23 }
 0x174   :  { %8850 = vmatpush1.bf16.msra.mxu0 %v8849_v28  ;;  %8914 = vmatpush3.bf16.msra.mxu1 %v8913_v29 }
 0x175   :  { %8852 = vmatprep.subr.bf16.mxu0 %v8851_v30  ;;  %8421 = vmatprep.subr.mxu1 %v9715_v39 }
 0x177   :  { %1140 = vmatmul.mubr.f32.vlgmr.msra.gmra.mrb[16].mxu1 %v10085_v47 }
 0x178   :  { %8854 = vmatpush1.bf16.msra.mxu0 %v8853_v35  ;;  %8423 = vmatprep.mubr.msk.f32.mxu1 %vm9716_vm0, %v9715_v39 }
 0x179   :  { %8856 = vmatprep.subr.bf16.mxu0 %v8855_v36  ;;  %v1442_v36 = vld [vmem:[%s14143_s2 + $0x80] sm:$0xff] }
 0x17a   :  { %v8915_v40 = vpack.c.bf16 %v1443_v37, %v1442_v36  ;;  %v1330_v37 = vld [vmem:[%s14144_s8] sm:$0x7] }
 0x17c   :  { %8858 = vmatpush1.bf16.msra.mxu0 %v8857_v42  ;;  %v1444_v42 = vld [vmem:[%s14143_s2 + $0x90] sm:$0xff] }
 0x17d   :  { %8860 = vmatprep.subr.bf16.mxu0 %v8859_v43  ;;  %v1445_v43 = vld [vmem:[%s14143_s2 + $0x98] sm:$0xff] }
 0x17e   :  { %v8919_v45 = vpack.c.bf16 %v1445_v43, %v1444_v42 }
 0x180   :  { %8862 = vmatpush1.bf16.msra.mxu0 %v8861_v49  ;;  %v8921_v49 = vpack.c.bf16 %v1429_v48, %v1428_v46 }
 0x181   :  { %8864 = vmatprep.subr.bf16.mxu0 %v8863_v50  ;;  %v1446_v50 = vld [vmem:[%s14143_s2 + $0xa0] sm:$0xff] }
 0x182   :  { %v8923_v52 = vpack.c.bf16 %v1447_v51, %v1446_v50 }
 0x184   :  { %8866 = vmatpush1.bf16.msra.mxu0 %v8865_v55  ;;  %v8925_v55 = vpack.c.bf16 %v1431_v54, %v1430_v53 }
 0x185   :  { %8868 = vmatprep.subr.bf16.mxu0 %v8867_v56  ;;  %v1448_v56 = vld [vmem:[%s14143_s2 + $0xb0] sm:$0xff] }
 0x186   :  { %v8927_v58 = vpack.c.bf16 %v1449_v57, %v1448_v56 }
 0x188   :  { %8870 = vmatpush1.bf16.msra.mxu0 %v8869_v61  ;;  %v8929_v61 = vpack.c.bf16 %v1433_v60, %v1432_v59 }
 0x189   :  { %8872 = vmatprep.subr.bf16.mxu0 %v8871_v62  ;;  %v1450_v62 = vld [vmem:[%s14143_s2 + $0xc0] sm:$0xff] }
 0x18a   :  { %v8931_v16 = vpack.c.bf16 %v1451_v63, %v1450_v62 }
 0x18c   :  { %8874 = vmatpush1.bf16.msra.mxu0 %v8873_v2  ;;  %v8933_v2 = vpack.c.bf16 %v1435_v1, %v1434_v0 }
 0x18d   :  { %8876 = vmatprep.subr.bf16.mxu0 %v8875_v3  ;;  %v1452_v3 = vld [vmem:[%s14143_s2 + $0xd0] sm:$0xff] }
 0x18e   :  { %v8935_v5 = vpack.c.bf16 %v1453_v4, %v1452_v3 }
 0x190   :  { %8878 = vmatpush1.bf16.msra.mxu0 %v8877_v8  ;;  %v8937_v8 = vpack.c.bf16 %v1437_v7, %v1436_v6 }
 0x191   :  { %8880 = vmatprep.subr.bf16.mxu0 %v8879_v9  ;;  %v1454_v9 = vld [vmem:[%s14143_s2 + $0xe0] sm:$0xff] }
 0x192   :  { %v8939_v11 = vpack.c.bf16 %v1455_v10, %v1454_v9 }
 0x194   :  { %8882 = vmatpush1.bf16.msra.mxu0 %v8881_v12  ;;  %v1438_v12 = vld [vmem:[%s14143_s2 + $0x60] sm:$0xff] }
 0x197   :  { %1069 = vmatmul.mubr.f32.vlgmr.msra.gmra.mrb[10].mxu0 %v10085_v47 }
 0x198   :  { %1222 = vmatprep.mubr.f32.mxu0 %v9715_v39 }
 0x21e   :  { %v721_v13 = vpop.f32.mrb[4].mxu1 }
 0x21f   :  { %v8403_v14 = vpop.f32.mrb[5].mxu1 }
 0x222   :  { %v726_v15 = vpop.f32.mrb[6].mxu1 }
 0x223   :  { %v8406_v17 = vpop.f32.mrb[7].mxu1 }
 0x224   :  { %v1457_v17 = vld [vmem:[%s14143_s2 + $0xf8] sm:$0xff] }
 0x226   :  { %v731_v18 = vpop.f32.mrb[8].mxu1 }
 0x227   :  { %v8409_v19 = vpop.f32.mrb[9].mxu1 }
 0x228   :  { %v1440_v19 = vld [vmem:[%s14143_s2 + $0x70] sm:$0xff] }
 0x22a   :  { %v893_v20 = vpop.f32.mrb[10].mxu1 }
 0x22b   :  { %v8414_v21 = vpop.f32.mrb[11].mxu1  ;;  %v10787_v22 = vadd.f32 %v893_v20, %v721_v13  ;;  %v1439_v13 = vld [vmem:[%s14143_s2 + $0x68] sm:$0xff]  ;;  %v1441_v20 = vld [vmem:[%s14143_s2 + $0x78] sm:$0xff] }
 0x22c   :  { %v8941_v14 = vpack.c.bf16 %v1439_v13, %v1438_v12  ;;  %v8945_v21 = vpack.c.bf16 %v1441_v20, %v1440_v19 }
 0x22e   :  { %v898_v23 = vpop.f32.mrb[12].mxu1 }
 0x22f   :  { %v8417_v24 = vpop.f32.mrb[13].mxu1  ;;  %v10789_v25 = vadd.f32 %v898_v23, %v726_v15  ;;  %v1456_v15 = vld [vmem:[%s14143_s2 + $0xf0] sm:$0xff]  ;;  %v9717_v23 = vmov 0.0|0.0  }
 0x232   :  { %v903_v26 = vpop.f32.mrb[14].mxu1 }
 0x233   :  { %v8420_v27 = vpop.f32.mrb[15].mxu1  ;;  %v10791_v28 = vadd.f32 %v903_v26, %v731_v18  ;;  %v8943_v18 = vpack.c.bf16 %v1457_v17, %v1456_v15 }
 0x24a   :  { %v8221_v47 = vpop.f32.mrb[16].mxu1 }
 0x24b   :  { %v8222_v29 = vpop.f32.mrb[17].mxu1 }
 0x24c   :  { %v8223_v30 = vadd.f32 %v8222_v29, %v8221_v47 }
 0x24e   :  { %8422 = vmatpush3.msra.mxu1 %v8223_v30 }
 0x24f   :  { %8424 = vmatmul.mubr.msk.f32.vlgmr.msra.gmra.mrb[18].mxu1 %vm562_vm1, %v7581_v31  ;;  %8916 = vmatprep.subr.bf16.mxu1 %v8915_v40 }
 0x250   :  { %8426 = vmatprep.mubr.msk.f32.mxu1 %vm9716_vm0, %v9715_v39  ;;  %8918 = vmatpush3.bf16.msra.mxu1 %v8917_v44 }
 0x251   :  { %8920 = vmatprep.subr.bf16.mxu1 %v8919_v45 }
 0x253   :  { %8427 = vmatmul.mubr.msk.f32.gmra.mrb[20].mxu1 %vm562_vm1, %v7582_v32 }
 0x254   :  { %8429 = vmatprep.mubr.msk.f32.mxu1 %vm9716_vm0, %v9715_v39  ;;  %8922 = vmatpush3.bf16.msra.mxu1 %v8921_v49 }
 0x255   :  { %8924 = vmatprep.subr.bf16.mxu1 %v8923_v52 }
 0x257   :  { %8430 = vmatmul.mubr.msk.f32.gmra.mrb[22].mxu1 %vm562_vm1, %v7583_v33 }
 0x258   :  { %8926 = vmatpush3.bf16.msra.mxu1 %v8925_v55 }
 0x259   :  { %8928 = vmatprep.subr.bf16.mxu1 %v8927_v58 }
 0x25c   :  { %8930 = vmatpush3.bf16.msra.mxu1 %v8929_v61 }
 0x25d   :  { %8932 = vmatprep.subr.bf16.mxu1 %v8931_v16 }
 0x260   :  { %8934 = vmatpush3.bf16.msra.mxu1 %v8933_v2 }
 0x261   :  { %8936 = vmatprep.subr.bf16.mxu1 %v8935_v5 }
 0x264   :  { %8938 = vmatpush3.bf16.msra.mxu1 %v8937_v8 }
 0x265   :  { %8940 = vmatprep.subr.bf16.mxu1 %v8939_v11 }
 0x268   :  { %8942 = vmatpush3.bf16.msra.mxu1 %v8941_v14 }
 0x269   :  { %8944 = vmatprep.subr.bf16.mxu1 %v8943_v18 }
 0x26a   :  { %v1070_v34 = vpop.f32.mrb[10].mxu0 }
 0x26b   :  { %v1072_v35 = vpop.f32.mrb[11].mxu0 }
 0x26c   :  { %1158 = vmatprep.subr.mxu0 %v1072_v35  ;;  %8946 = vmatpush3.bf16.msra.mxu1 %v8945_v21 }
 0x26d   :  { %1159 = vmatpush1.msra.mxu0 %v1070_v34  ;;  %8947 = vmatprep.subr.bf16.mxu1 %v9717_v23  ;;  %v1332_v34 = vlaneseq }
 0x26e   :  { %7584 = vmatmul.mubr.msk.f32.vlgmr.msra.gmra.mrb[4].mxu0 %vm562_vm1, %v7581_v31  ;;  %8954 = vmatprep.subr.bf16.mxu0 %v8915_v40 }
 0x26f   :  { %1228 = vmatprep.mubr.f32.mxu0 %v9715_v39  ;;  %8956 = vmatpush3.bf16.msra.mxu0 %v8917_v44  ;;  %v1333_v35 = vshrl.u32 %v1332_v34, 7 }
 0x270   :  { %8958 = vmatprep.subr.bf16.mxu0 %v8919_v45 }
 0x271   :  { %v10914_v36 = vsub.s32 2, %v1333_v35  ;;  %v10919_v38 = vsub.s32 0, %v1333_v35 }
 0x272   :  { %7585 = vmatmul.mubr.msk.f32.gmra.mrb[6].mxu0 %vm562_vm1, %v7582_v32 }
 0x273   :  { %1234 = vmatprep.mubr.f32.mxu0 %v9715_v39  ;;  %8960 = vmatpush3.bf16.msra.mxu0 %v8921_v49  ;;  %v1343_v40 = vrot.slane %v1330_v37, %v10914_v36 }
 0x274   :  { %8962 = vmatprep.subr.bf16.mxu0 %v8923_v52 }
 0x276   :  { %7586 = vmatmul.mubr.msk.f32.gmra.mrb[8].mxu0 %vm562_vm1, %v7583_v33 }
 0x277   :  { %8964 = vmatpush3.bf16.msra.mxu0 %v8925_v55 }
 0x278   :  { %8966 = vmatprep.subr.bf16.mxu0 %v8927_v58 }
 0x27b   :  { %8968 = vmatpush3.bf16.msra.mxu0 %v8929_v61 }
 0x27c   :  { %8970 = vmatprep.subr.bf16.mxu0 %v8931_v16 }
 0x27f   :  { %8972 = vmatpush3.bf16.msra.mxu0 %v8933_v2 }
 0x280   :  { %8974 = vmatprep.subr.bf16.mxu0 %v8935_v5 }
 0x283   :  { %8976 = vmatpush3.bf16.msra.mxu0 %v8937_v8 }
 0x284   :  { %8978 = vmatprep.subr.bf16.mxu0 %v8939_v11 }
 0x287   :  { %8980 = vmatpush3.bf16.msra.mxu0 %v8941_v14 }
 0x288   :  { %8982 = vmatprep.subr.bf16.mxu0 %v8943_v18 }
 0x28b   :  { %8984 = vmatpush3.bf16.msra.mxu0 %v8945_v21 }
 0x322   :  { %v1307_v24 = vpop.f32.mrb[18].mxu1 }
 0x323   :  { %v1323_v26 = vadd.f32 %v1307_v24, %v10787_v22  ;;  %v8425_v27 = vpop.f32.mrb[19].mxu1  ;;  %v10921_v22 = vsub.s32 1, %v1333_v35 }
 0x325   :  { %v10927_v43 = vadd.f32 %v1343_v40, %v1323_v26  ;;  %v1339_v45 = vrot.slane %v1330_v37, %v10921_v22 }
 0x326   :  { %v1312_v47 = vpop.f32.mrb[20].mxu1 }
 0x327   :  { %v1326_v29 = vadd.f32 %v1312_v47, %v10789_v25  ;;  %v8428_v30 = vpop.f32.mrb[21].mxu1  ;;  %v1376_v53 = vsel %vm1375_vm2, %v10927_v43, 0.0  ;;  %v1390_v56 = vmul.f32 %v10927_v43, %v10927_v43 }
 0x329   :  { %v10924_v41 = vadd.f32 %v1343_v40, %v1326_v29  ;;  %v1415_v21 = vsel %vm1375_vm2, %v1390_v56, 0.0  ;;  %v1458_v56 = vld [vmem:[%s14143_s2 + $0x100] sm:$0xff] }
 0x32a   :  { %v1317_v31 = vpop.f32.mrb[22].mxu1 }
 0x32b   :  { %v1329_v32 = vadd.f32 %v1317_v31, %v10791_v28  ;;  %v8431_v33 = vpop.f32.mrb[23].mxu1  ;;  %v1335_v28 = vrot.slane %v1330_v37, %v10919_v38  ;;  %v1377_v48 = vsel %vm1375_vm2, %v10924_v41, 0.0  ;;  %v1393_v60 = vmul.f32 %v10924_v41, %v10924_v41 }
 0x32c   :  { %v1378_v57 = vadd.f32 %v1377_v48, %v1376_v53 }
 0x32d   :  { %v10929_v44 = vadd.f32 %v1343_v40, %v1329_v32  ;;  %v1416_v12 = vsel %vm1375_vm2, %v1393_v60, 0.0 }
 0x32e   :  { %v1417_v47 = vadd.f32 %v1416_v12, %v1415_v21 }
 0x32f   :  { %v1380_v54 = vsel %vm1379_vm3, %v10929_v44, 0.0  ;;  %v1396_v61 = vmul.f32 %v10929_v44, %v10929_v44 }
 0x330   :  { %v1381_v0 = vadd.f32 %v1380_v54, %v1378_v57  ;;  %v1459_v57 = vld [vmem:[%s14143_s2 + $0x108] sm:$0xff] }
 0x331   :  { %v1418_v24 = vsel %vm1379_vm3, %v1396_v61, 0.0 }
 0x332   :  { %v1382_v17 = vrot.slane %v1381_v0, 4  ;;  %v1419_v34 = vadd.f32 %v1418_v24, %v1417_v47  ;;  %v1763_v24 = vld [vmem:[%s14145_s30 + $0x38] sm:$0xff]  ;;  %v1762_v47 = vld [vmem:[%s14145_s30 + $0x30] sm:$0xff] }
 0x334   :  { %v1383_v33 = vadd.f32 %v1382_v17, %v1381_v0  ;;  %v1760_v17 = vld [vmem:[%s14145_s30 + $0x20] sm:$0xff] }
 0x336   :  { %v1384_v48 = vrot.slane %v1383_v33, 2 }
 0x338   :  { %v1385_v0 = vadd.f32 %v1384_v48, %v1383_v33 }
 0x341   :  { %v1224_v25 = vpop.f32.mrb[4].mxu0 }
 0x342   :  { %v1226_v42 = vpop.f32.mrb[5].mxu0  ;;  %v10936_v51 = vadd.f32 %v1335_v28, %v1224_v25 }
 0x343   :  { %v10944_v55 = vadd.f32 %v1339_v45, %v1226_v42 }
 0x344   :  { %v1388_v1 = vmul.f32 %v10936_v51, %v10936_v51 }
 0x345   :  { %v1230_v46 = vpop.f32.mrb[6].mxu0  ;;  %v1389_v4 = vmul.f32 %v10944_v55, %v10944_v55 }
 0x346   :  { %v10934_v49 = vadd.f32 %v1335_v28, %v1230_v46  ;;  %v1232_v50 = vpop.f32.mrb[7].mxu0 }
 0x347   :  { %v10938_v52 = vadd.f32 %v1339_v45, %v1232_v50  ;;  %v1420_v50 = vrot.slane %v1419_v34, 4 }
 0x348   :  { %v1391_v58 = vmul.f32 %v10934_v49, %v10934_v49  ;;  %v1356_v2 = vadd.f32 %v10934_v49, %v10936_v51 }
 0x349   :  { %v1236_v59 = vpop.f32.mrb[8].mxu0  ;;  %v1392_v62 = vmul.f32 %v10938_v52, %v10938_v52  ;;  %v1366_v5 = vadd.f32 %v10938_v52, %v10944_v55 }
 0x34a   :  { %v10956_v63 = vadd.f32 %v1335_v28, %v1236_v59  ;;  %v1238_v16 = vpop.f32.mrb[9].mxu0  ;;  %v1397_v8 = vadd.f32 %v1391_v58, %v1388_v1  ;;  %v1421_v1 = vadd.f32 %v1420_v50, %v1419_v34 }
 0x34b   :  { %v10962_v3 = vadd.f32 %v1339_v45, %v1238_v16  ;;  %v1406_v13 = vadd.f32 %v1392_v62, %v1389_v4  ;;  %v8948_v62 = vpack.c.bf16 %v1459_v57, %v1458_v56  ;;  %v1460_v4 = vld [vmem:[%s14143_s2 + $0x110] sm:$0xff]  ;;  %v1764_v56 = vld [vmem:[%s14145_s30 + $0x40] sm:$0xff]  ;;  %v1767_v57 = vld [vmem:[%s14145_s30 + $0x58] sm:$0xff] }
 0x34c   :  { %v1358_v6 = vsel %vm1357_vm4, %v10956_v63, 0.0  ;;  %v1394_v7 = vmul.f32 %v10956_v63, %v10956_v63 }
 0x34d   :  { %v1359_v9 = vadd.f32 %v1358_v6, %v1356_v2  ;;  %v1367_v10 = vsel %vm1357_vm4, %v10962_v3, 0.0  ;;  %v1395_v11 = vmul.f32 %v10962_v3, %v10962_v3 }
 0x34e   :  { %v1398_v14 = vsel %vm1357_vm4, %v1394_v7, 0.0  ;;  %v1368_v15 = vadd.f32 %v1367_v10, %v1366_v5  ;;  %v1461_v5 = vld [vmem:[%s14143_s2 + $0x118] sm:$0xff]  ;;  %v1386_v10 = vrot.slane %v1385_v0, 1  ;;  %s14148_s2 = sld [smem:[#allocation10_spill]] }
 0x34f   :  { %v1360_v18 = vrot.slane %v1359_v9, 4  ;;  %v1399_v19 = vadd.f32 %v1398_v14, %v1397_v8  ;;  %v1407_v20 = vsel %vm1357_vm4, %v1395_v11, 0.0  ;;  %v8951_v8 = vpack.c.bf16 %v1461_v5, %v1460_v4 }
 0x350   :  { %v1369_v26 = vrot.slane %v1368_v15, 4  ;;  %v1408_v27 = vadd.f32 %v1407_v20, %v1406_v13  ;;  %v1387_v11 = vadd.f32 %v1386_v10, %v1385_v0  ;;  %v1759_v20 = vld [vmem:[%s14145_s30 + $0x18] sm:$0xff]  ;;  %v7600_v0 = vld [vmem:[%s14146_s25 + $0x248] sm:$0xff]  ;;  %v7601_v10 = vld [vmem:[%s14146_s25 + $0x250] sm:$0xff] }
 0x351   :  { %v1361_v29 = vadd.f32 %v1360_v18, %v1359_v9  ;;  %v1400_v30 = vrot.slane %v1399_v19, 4  ;;  %v1422_v9 = vrot.slane %v1421_v1, 2 }
 0x352   :  { %v1370_v31 = vadd.f32 %v1369_v26, %v1368_v15  ;;  %v1409_v32 = vrot.slane %v1408_v27, 4  ;;  %v1757_v15 = vld [vmem:[%s14145_s30 + $0x8] sm:$0xff]  ;;  %v1766_v26 = vld [vmem:[%s14145_s30 + $0x50] sm:$0xff] }
 0x353   :  { %v1362_v35 = vrot.slane %v1361_v29, 2  ;;  %v1401_v37 = vadd.f32 %v1400_v30, %v1399_v19  ;;  %v1423_v12 = vadd.f32 %v1422_v9, %v1421_v1  ;;  %v8991_v18 = vpack.c.bf16 %v1760_v17, %v1757_v15  ;;  %v1756_v19 = vld [vmem:[%s14145_s30] sm:$0xff]  ;;  %v7602_v1 = vld [vmem:[%s14146_s25 + $0x258] sm:$0xff] }
 0x354   :  { %v1371_v40 = vrot.slane %v1370_v31, 2  ;;  %v1410_v25 = vadd.f32 %v1409_v32, %v1408_v27  ;;  %v8993_v21 = vpack.c.bf16 %v1759_v20, %v1756_v19  ;;  %v8995_v27 = vpack.c.bf16 %v1766_v26, %v1763_v24  ;;  %v2162_v32 = vld [vmem:[%s14146_s25 + $0x18] sm:$0xff]  ;;  %v7599_v9 = vld [vmem:[%s14146_s25 + $0x240] sm:$0xff]  ;;  %v2165_v19 = vld [vmem:[%s14146_s25 + $0x30] sm:$0xff] }
 0x355   :  { %v1363_v42 = vadd.f32 %v1362_v35, %v1361_v29  ;;  %v1402_v28 = vrot.slane %v1401_v37, 2  ;;  %v1424_v13 = vrot.slane %v1423_v12, 1  ;;  %9006 = vmatprep.subr.bf16.mxu0 %v8991_v18  ;;  %v1765_v29 = vld [vmem:[%s14145_s30 + $0x48] sm:$0xff]  ;;  %v9091_v5 = vpack.c.bf16 %v7602_v1, %v7600_v0  ;;  %v7603_v24 = vld [vmem:[%s14146_s25 + $0x260] sm:$0xff]  ;;  %v7605_v26 = vld [vmem:[%s14146_s25 + $0x270] sm:$0xff] }
 0x356   :  { %v1372_v45 = vadd.f32 %v1371_v40, %v1370_v31  ;;  %v1411_v46 = vrot.slane %v1410_v25, 2  ;;  %v8997_v30 = vpack.c.bf16 %v1765_v29, %v1762_v47  ;;  %v2160_v31 = vld [vmem:[%s14146_s25 + $0x8] sm:$0xff]  ;;  %v9093_v17 = vpack.c.bf16 %v7601_v10, %v7599_v9  ;;  %v2170_v29 = vld [vmem:[%s14146_s25 + $0x58] sm:$0xff]  ;;  %v7617_v9 = vld [vmem:[%s14146_s25 + $0x2d0] sm:$0xff] }
 0x357   :  { %v1364_v53 = vrot.slane %v1363_v42, 1  ;;  %v1403_v54 = vadd.f32 %v1402_v28, %v1401_v37  ;;  %v1425_v14 = vadd.f32 %v1424_v13, %v1423_v12  ;;  %v9019_v33 = vpack.c.bf16 %v2162_v32, %v2160_v31  ;;  %v1758_v28 = vld [vmem:[%s14145_s30 + $0x10] sm:$0xff]  ;;  %v2166_v12 = vld [vmem:[%s14146_s25 + $0x38] sm:$0xff]  ;;  %v7604_v13 = vld [vmem:[%s14146_s25 + $0x268] sm:$0xff] }
 0x358   :  { %v1373_v58 = vrot.slane %v1372_v45, 1  ;;  %v1412_v59 = vadd.f32 %v1411_v46, %v1410_v25  ;;  %v7610_v31 = vld [vmem:[%s14146_s25 + $0x298] sm:$0xff]  ;;  %v2180_v10 = vld [vmem:[%s14146_s25 + $0xa8] sm:$0xff] }
 0x359   :  { %v1404_v60 = vrot.slane %v1403_v54, 1  ;;  %v1365_v2 = vadd.f32 %v1364_v53, %v1363_v42  ;;  %v7618_v0 = vld [vmem:[%s14146_s25 + $0x2d8] sm:$0xff] }
 0x35a   :  { %v1374_v61 = vadd.f32 %v1373_v58, %v1372_v45  ;;  %v1413_v16 = vrot.slane %v1412_v59, 1  ;;  %v1761_v45 = vld [vmem:[%s14145_s30 + $0x28] sm:$0xff]  ;;  %v9003_v58 = vpack.c.bf16 %v1767_v57, %v1764_v56  ;;  %v2173_v56 = vld [vmem:[%s14146_s25 + $0x70] sm:$0xff] }
 0x35b   :  { %v1405_v7 = vadd.f32 %v1404_v60, %v1403_v54  ;;  %v9000_v53 = vpack.c.bf16 %v1761_v45, %v1758_v28  ;;  %v2172_v28 = vld [vmem:[%s14146_s25 + $0x68] sm:$0xff]  ;;  %v2174_v45 = vld [vmem:[%s14146_s25 + $0x78] sm:$0xff] }
 0x35c   :  { %1529 = vmatprep.mubr.f32.mxu1 %v1374_v61  ;;  %v1414_v6 = vadd.f32 %v1413_v16, %v1412_v59  ;;  %v9031_v57 = vpack.c.bf16 %v2174_v45, %v2172_v28  ;;  %v2188_v28 = vld [vmem:[%s14146_s25 + $0xe8] sm:$0xff]  ;;  %v2190_v45 = vld [vmem:[%s14146_s25 + $0xf8] sm:$0xff] }
 0x35d   :  { %1530 = vmatmul.mubr.f32.vlgmr.msra.gmra.mrb[24].mxu1 %v1365_v2 }
 0x35e   :  { %8949 = vmatpush3.bf16.msra.mxu1 %v8948_v62  ;;  %1674 = vmatprep.mubr.f32.mxu0 %v1414_v6 }
 0x35f   :  { %1675 = vmatmul.mubr.f32.vlgmr.msra.gmra.mrb[12].mxu0 %v1405_v7  ;;  %8950 = vmatprep.subr.bf16.mxu1 %v9717_v23  ;;  %v2159_v7 = vld [vmem:[%s14146_s25] sm:$0xff] }
 0x360   :  { %8440 = vmatprep.mubr.msk.f32.mxu1 %vm9716_vm0, %v9715_v39  ;;  %1979 = vmatprep.mubr.f32.mxu0 %v9715_v39 }
 0x361   :  { %9008 = vmatpush1.bf16.msra.mxu0 %v8993_v21 }
 0x362   :  { %8952 = vmatpush3.bf16.msra.mxu1 %v8951_v8  ;;  %9010 = vmatprep.subr.bf16.mxu0 %v8995_v27 }
 0x363   :  { %8985 = vmatprep.subr.bf16.mxu1 %v9717_v23 }
 0x365   :  { %8441 = vmatmul.mubr.msk.f32.vlgmr.msra.gmra.mrb[26].mxu1 %vm1375_vm2, %v1387_v11  ;;  %9012 = vmatpush1.bf16.msra.mxu0 %v8997_v30  ;;  %v2164_v11 = vld [vmem:[%s14146_s25 + $0x28] sm:$0xff] }
 0x366   :  { %8987 = vmatpush3.bf16.msra.mxu1 %v8948_v62  ;;  %8451 = vmatprep.mubr.msk.f32.mxu1 %vm9716_vm0, %v9715_v39  ;;  %v9023_v20 = vpack.c.bf16 %v2166_v12, %v2164_v11  ;;  %v2182_v11 = vld [vmem:[%s14146_s25 + $0xb8] sm:$0xff]  ;;  %v7620_v12 = vld [vmem:[%s14146_s25 + $0x2e8] sm:$0xff] }
 0x367   :  { %8988 = vmatprep.subr.bf16.mxu1 %v9717_v23  ;;  %9020 = vmatprep.subr.bf16.mxu0 %v9019_v33  ;;  %v9097_v33 = vpack.c.bf16 %v7605_v26, %v7603_v24  ;;  %v7621_v24 = vld [vmem:[%s14146_s25 + $0x2f0] sm:$0xff]  ;;  %v2184_v26 = vld [vmem:[%s14146_s25 + $0xc8] sm:$0xff] }
 0x36a   :  { %8990 = vmatpush3.bf16.msra.mxu1 %v8951_v8  ;;  %v2161_v8 = vld [vmem:[%s14146_s25 + $0x10] sm:$0xff] }
 0x36b   :  { %8992 = vmatprep.subr.bf16.mxu1 %v8991_v18  ;;  %v9021_v15 = vpack.c.bf16 %v2161_v8, %v2159_v7  ;;  %v2163_v18 = vld [vmem:[%s14146_s25 + $0x20] sm:$0xff] }
 0x36c   :  { %v9025_v32 = vpack.c.bf16 %v2165_v19, %v2163_v18  ;;  %v7615_v8 = vld [vmem:[%s14146_s25 + $0x2c0] sm:$0xff]  ;;  %v2181_v18 = vld [vmem:[%s14146_s25 + $0xb0] sm:$0xff]  ;;  %v9039_v19 = vpack.c.bf16 %v2182_v11, %v2180_v10  ;;  %v2196_v10 = vld [vmem:[%s14146_s25 + $0x128] sm:$0xff] }
 0x36d   :  { %8452 = vmatmul.mubr.msk.f32.vlgmr.msra.gmra.mrb[28].mxu1 %vm1375_vm2, %v1425_v14  ;;  %v7606_v14 = vld [vmem:[%s14146_s25 + $0x278] sm:$0xff] }
 0x36e   :  { %1835 = vmatprep.mubr.f32.mxu1 %v9715_v39  ;;  %8994 = vmatpush1.bf16.msra.mxu1 %v8993_v21  ;;  %v9095_v21 = vpack.c.bf16 %v7606_v14, %v7604_v13  ;;  %v7622_v13 = vld [vmem:[%s14146_s25 + $0x2f8] sm:$0xff] }
 0x36f   :  { %8996 = vmatprep.subr.bf16.mxu1 %v8995_v27  ;;  %v2168_v27 = vld [vmem:[%s14146_s25 + $0x48] sm:$0xff]  ;;  %v2198_v11 = vld [vmem:[%s14146_s25 + $0x138] sm:$0xff] }
 0x372   :  { %8998 = vmatpush1.bf16.msra.mxu1 %v8997_v30  ;;  %v7608_v30 = vld [vmem:[%s14146_s25 + $0x288] sm:$0xff] }
 0x373   :  { %8999 = vmatprep.subr.bf16.mxu1 %v9717_v23 }
 0x430   :  { %v8260_v34 = vpop.f32.mrb[24].mxu1 }
 0x431   :  { %v8261_v35 = vpop.f32.mrb[25].mxu1 }
 0x432   :  { %v8262_v37 = vadd.f32 %v8261_v35, %v8260_v34  ;;  %v8300_v40 = vpop.f32.mrb[12].mxu0  ;;  %v2167_v34 = vld [vmem:[%s14146_s25 + $0x40] sm:$0xff]  ;;  %v2169_v35 = vld [vmem:[%s14146_s25 + $0x50] sm:$0xff] }
 0x433   :  { %v8301_v25 = vpop.f32.mrb[13].mxu0 }
 0x434   :  { %v8302_v42 = vadd.f32 %v8301_v25, %v8300_v40  ;;  %v9099_v40 = vpack.c.bf16 %v7610_v31, %v7608_v30  ;;  %v7607_v25 = vld [vmem:[%s14146_s25 + $0x280] sm:$0xff] }
 0x438   :  { %v1601_v46 = vpop.f32.mrb[26].mxu1 }
 0x439   :  { %v1602_v48 = vadd.f32 %v8262_v37, %v1601_v46  ;;  %v8442_v50 = vpop.f32.mrb[27].mxu1  ;;  %v9027_v37 = vpack.c.bf16 %v2170_v29, %v2168_v27  ;;  %v7612_v46 = vld [vmem:[%s14146_s25 + $0x2a8] sm:$0xff]  ;;  %v2186_v27 = vld [vmem:[%s14146_s25 + $0xd8] sm:$0xff] }
 0x43a   :  { %v9029_v50 = vpack.c.bf16 %v2169_v35, %v2167_v34  ;;  %v7626_v29 = vld [vmem:[%s14146_s25 + $0x318] sm:$0xff]  ;;  %v2185_v35 = vld [vmem:[%s14146_s25 + $0xd0] sm:$0xff] }
 0x43b   :  { %v1606_v54 = vmul.f32 0.0061728396, %v1602_v48  ;;  %v7614_v48 = vld [vmem:[%s14146_s25 + $0x2b8] sm:$0xff] }
 0x43d   :  { %7592 = vmatmul.mubr.msk.f32.vlgmr.msra.gmra.mrb[30].mxu1 %vm1375_vm2, %v1606_v54  ;;  %v1751_v16 = vmul.f32 %v1606_v54, %v1606_v54 }
 0x43e   :  { %9001 = vmatpush3.bf16.msra.mxu1 %v9000_v53  ;;  %8462 = vmatprep.mubr.msk.f32.mxu1 %vm9716_vm0, %v9715_v39 }
 0x43f   :  { %9002 = vmatprep.subr.bf16.mxu1 %v9717_v23 }
 0x440   :  { %v1746_v59 = vpop.f32.mrb[28].mxu1 }
 0x441   :  { %v1747_v60 = vadd.f32 %v8302_v42, %v1746_v59  ;;  %v8453_v61 = vpop.f32.mrb[29].mxu1  ;;  %v7609_v42 = vld [vmem:[%s14146_s25 + $0x290] sm:$0xff]  ;;  %v7611_v59 = vld [vmem:[%s14146_s25 + $0x2a0] sm:$0xff] }
 0x442   :  { %9004 = vmatpush3.bf16.msra.mxu1 %v9003_v58  ;;  %v2176_v61 = vld [vmem:[%s14146_s25 + $0x88] sm:$0xff] }
 0x443   :  { %v1750_v62 = vmul.f32 0.0061728396, %v1747_v60  ;;  %9013 = vmatprep.subr.bf16.mxu1 %v9717_v23  ;;  %v7613_v60 = vld [vmem:[%s14146_s25 + $0x2b0] sm:$0xff] }
 0x445   :  { %v1752_v2 = vsub.f32 %v1750_v62, %v1751_v16  ;;  %8463 = vmatmul.mubr.msk.f32.vlgmr.msra.gmra.mrb[32].mxu1 %vm1375_vm2, %v1606_v54  ;;  %v2171_v54 = vld [vmem:[%s14146_s25 + $0x60] sm:$0xff]  ;;  %v2178_v62 = vld [vmem:[%s14146_s25 + $0x98] sm:$0xff]  ;;  %v7616_v16 = vld [vmem:[%s14146_s25 + $0x2c8] sm:$0xff] }
 0x446   :  { %9015 = vmatpush3.bf16.msra.mxu1 %v9000_v53  ;;  %8473 = vmatprep.mubr.msk.f32.mxu1 %vm9716_vm0, %v9715_v39  ;;  %v9101_v53 = vpack.c.bf16 %v7609_v42, %v7607_v25  ;;  %v9033_v1 = vpack.c.bf16 %v2173_v56, %v2171_v54  ;;  %v9107_v7 = vpack.c.bf16 %v7618_v0, %v7616_v16  ;;  %v2189_v54 = vld [vmem:[%s14146_s25 + $0xf0] sm:$0xff]  ;;  %v7632_v16 = vld [vmem:[%s14146_s25 + $0x348] sm:$0xff] }
 0x447   :  { %v1753_v4 = vmax.f32 %v1752_v2, 0.0  ;;  %9016 = vmatprep.subr.bf16.mxu1 %v9717_v23  ;;  %v9105_v2 = vpack.c.bf16 %v7613_v60, %v7611_v59  ;;  %v7629_v59 = vld [vmem:[%s14146_s25 + $0x330] sm:$0xff] }
 0x449   :  { %v1754_v6 = vadd.f32 1e-05, %v1753_v4  ;;  %v2175_v4 = vld [vmem:[%s14146_s25 + $0x80] sm:$0xff] }
 0x44a   :  { %9018 = vmatpush3.bf16.msra.mxu1 %v9003_v58  ;;  %v9103_v58 = vpack.c.bf16 %v7614_v48, %v7612_v46  ;;  %v7628_v46 = vld [vmem:[%s14146_s25 + $0x328] sm:$0xff]  ;;  %v9047_v48 = vpack.c.bf16 %v2190_v45, %v2188_v28  ;;  %v7646_v45 = vld [vmem:[%s14146_s25 + $0x3b8] sm:$0xff] }
 0x44b   :  { %9685 = vrsqrt.f32 %v1754_v6  ;;  %9092 = vmatprep.subr.bf16.mxu1 %v9091_v5  ;;  %v2177_v5 = vld [vmem:[%s14146_s25 + $0x90] sm:$0xff]  ;;  %v9035_v6 = vpack.c.bf16 %v2178_v62, %v2176_v61  ;;  %v2192_v61 = vld [vmem:[%s14146_s25 + $0x108] sm:$0xff]  ;;  %v2194_v62 = vld [vmem:[%s14146_s25 + $0x118] sm:$0xff] }
 0x44c   :  { %v9037_v14 = vpack.c.bf16 %v2177_v5, %v2175_v4  ;;  %v9051_v0 = vpack.c.bf16 %v2194_v62, %v2192_v61  ;;  %v2193_v4 = vld [vmem:[%s14146_s25 + $0x110] sm:$0xff]  ;;  %v7644_v28 = vld [vmem:[%s14146_s25 + $0x3a8] sm:$0xff] }
 0x44d   :  { %v7648_v62 = vld [vmem:[%s14146_s25 + $0x3c8] sm:$0xff] }
 0x455   :  { %v9686_v47 = vpop.eup %9685 }
 0x456   :  { %7594 = vmatmul.mubr.msk.f32.vlgmr.msra.gmra.mrb[14].mxu0 %vm1375_vm2, %v9686_v47  ;;  %8474 = vmatmul.mubr.msk.f32.vlgmr.msra.gmra.mrb[34].mxu1 %vm1375_vm2, %v9686_v47  ;;  %v7624_v47 = vld [vmem:[%s14146_s25 + $0x308] sm:$0xff] }
 0x457   :  { %9022 = vmatpush1.bf16.msra.mxu0 %v9021_v15  ;;  %9094 = vmatpush1.bf16.msra.mxu1 %v9093_v17  ;;  %v9109_v15 = vpack.c.bf16 %v7617_v9, %v7615_v8  ;;  %v2179_v17 = vld [vmem:[%s14146_s25 + $0xa0] sm:$0xff]  ;;  %v9115_v34 = vpack.c.bf16 %v7626_v29, %v7624_v47  ;;  %v7633_v8 = vld [vmem:[%s14146_s25 + $0x350] sm:$0xff]  ;;  %v7640_v47 = vld [vmem:[%s14146_s25 + $0x388] sm:$0xff] }
 0x458   :  { %9024 = vmatprep.subr.bf16.mxu0 %v9023_v20  ;;  %9096 = vmatprep.subr.bf16.mxu1 %v9095_v21  ;;  %v9111_v20 = vpack.c.bf16 %v7622_v13, %v7620_v12  ;;  %v7619_v21 = vld [vmem:[%s14146_s25 + $0x2e0] sm:$0xff]  ;;  %v9041_v30 = vpack.c.bf16 %v2181_v18, %v2179_v17  ;;  %v7636_v12 = vld [vmem:[%s14146_s25 + $0x368] sm:$0xff]  ;;  %v9055_v13 = vpack.c.bf16 %v2198_v11, %v2196_v10  ;;  %v2197_v17 = vld [vmem:[%s14146_s25 + $0x130] sm:$0xff] }
 0x459   :  { %v9113_v31 = vpack.c.bf16 %v7621_v24, %v7619_v21  ;;  %v7637_v21 = vld [vmem:[%s14146_s25 + $0x370] sm:$0xff]  ;;  %v7652_v10 = vld [vmem:[%s14146_s25 + $0x3e8] sm:$0xff] }
 0x45b   :  { %9026 = vmatpush1.bf16.msra.mxu0 %v9025_v32  ;;  %9098 = vmatpush1.bf16.msra.mxu1 %v9097_v33  ;;  %v2183_v32 = vld [vmem:[%s14146_s25 + $0xc0] sm:$0xff]  ;;  %v9043_v33 = vpack.c.bf16 %v2186_v27, %v2184_v26  ;;  %v2200_v26 = vld [vmem:[%s14146_s25 + $0x148] sm:$0xff]  ;;  %v2202_v27 = vld [vmem:[%s14146_s25 + $0x158] sm:$0xff] }
 0x45c   :  { %9028 = vmatprep.subr.bf16.mxu0 %v9027_v37  ;;  %9100 = vmatprep.subr.bf16.mxu1 %v9099_v40  ;;  %v7623_v37 = vld [vmem:[%s14146_s25 + $0x300] sm:$0xff]  ;;  %v7625_v40 = vld [vmem:[%s14146_s25 + $0x310] sm:$0xff]  ;;  %v9045_v25 = vpack.c.bf16 %v2185_v35, %v2183_v32  ;;  %v9059_v29 = vpack.c.bf16 %v2202_v27, %v2200_v26  ;;  %v7656_v27 = vld [vmem:[%s14146_s25 + $0x408] sm:$0xff] }
 0x45d   :  { %v9117_v42 = vpack.c.bf16 %v7625_v40, %v7623_v37  ;;  %v2201_v32 = vld [vmem:[%s14146_s25 + $0x150] sm:$0xff]  ;;  %v7639_v35 = vld [vmem:[%s14146_s25 + $0x380] sm:$0xff]  ;;  %v2204_v40 = vld [vmem:[%s14146_s25 + $0x168] sm:$0xff] }
 0x45e   :  { %v7641_v37 = vld [vmem:[%s14146_s25 + $0x390] sm:$0xff] }
 0x45f   :  { %9030 = vmatpush1.bf16.msra.mxu0 %v9029_v50  ;;  %9102 = vmatpush1.bf16.msra.mxu1 %v9101_v53  ;;  %v7630_v50 = vld [vmem:[%s14146_s25 + $0x338] sm:$0xff]  ;;  %v2187_v53 = vld [vmem:[%s14146_s25 + $0xe0] sm:$0xff] }
 0x460   :  { %9032 = vmatprep.subr.bf16.mxu0 %v9031_v57  ;;  %9104 = vmatprep.subr.bf16.mxu1 %v9103_v58  ;;  %v9119_v56 = vpack.c.bf16 %v7630_v50, %v7628_v46  ;;  %v9049_v57 = vpack.c.bf16 %v2189_v54, %v2187_v53  ;;  %v7627_v58 = vld [vmem:[%s14146_s25 + $0x320] sm:$0xff]  ;;  %v2205_v53 = vld [vmem:[%s14146_s25 + $0x170] sm:$0xff] }
 0x461   :  { %v9121_v60 = vpack.c.bf16 %v7629_v59, %v7627_v58  ;;  %v2203_v50 = vld [vmem:[%s14146_s25 + $0x160] sm:$0xff]  ;;  %v2208_v58 = vld [vmem:[%s14146_s25 + $0x188] sm:$0xff]  ;;  %v2210_v59 = vld [vmem:[%s14146_s25 + $0x198] sm:$0xff] }
 0x462   :  { %v7643_v54 = vld [vmem:[%s14146_s25 + $0x3a0] sm:$0xff]  ;;  %v9067_v61 = vpack.c.bf16 %v2210_v59, %v2208_v58  ;;  %v7666_v58 = vld [vmem:[%s14146_s25 + $0x458] sm:$0xff] }
 0x463   :  { %9034 = vmatpush1.bf16.msra.mxu0 %v9033_v1  ;;  %9106 = vmatpush1.bf16.msra.mxu1 %v9105_v2  ;;  %v7634_v1 = vld [vmem:[%s14146_s25 + $0x358] sm:$0xff]  ;;  %v2191_v2 = vld [vmem:[%s14146_s25 + $0x100] sm:$0xff] }
 0x464   :  { %9036 = vmatprep.subr.bf16.mxu0 %v9035_v6  ;;  %9108 = vmatprep.subr.bf16.mxu1 %v9107_v7  ;;  %v9123_v5 = vpack.c.bf16 %v7634_v1, %v7632_v16  ;;  %v9053_v6 = vpack.c.bf16 %v2193_v4, %v2191_v2  ;;  %v7631_v7 = vld [vmem:[%s14146_s25 + $0x340] sm:$0xff]  ;;  %v7650_v16 = vld [vmem:[%s14146_s25 + $0x3d8] sm:$0xff]  ;;  %v2209_v2 = vld [vmem:[%s14146_s25 + $0x190] sm:$0xff] }
 0x465   :  { %v9125_v9 = vpack.c.bf16 %v7633_v8, %v7631_v7  ;;  %v9139_v1 = vpack.c.bf16 %v7650_v16, %v7648_v62  ;;  %v7647_v4 = vld [vmem:[%s14146_s25 + $0x3c0] sm:$0xff]  ;;  %v2212_v8 = vld [vmem:[%s14146_s25 + $0x1a8] sm:$0xff] }
 0x467   :  { %9038 = vmatpush1.bf16.msra.mxu0 %v9037_v14  ;;  %9110 = vmatpush1.bf16.msra.mxu1 %v9109_v15  ;;  %v7638_v14 = vld [vmem:[%s14146_s25 + $0x378] sm:$0xff]  ;;  %v2195_v15 = vld [vmem:[%s14146_s25 + $0x120] sm:$0xff] }
 0x468   :  { %9040 = vmatprep.subr.bf16.mxu0 %v9039_v19  ;;  %9112 = vmatprep.subr.bf16.mxu1 %v9111_v20  ;;  %v9127_v18 = vpack.c.bf16 %v7638_v14, %v7636_v12  ;;  %v9057_v19 = vpack.c.bf16 %v2197_v17, %v2195_v15  ;;  %v7635_v20 = vld [vmem:[%s14146_s25 + $0x360] sm:$0xff]  ;;  %v7654_v12 = vld [vmem:[%s14146_s25 + $0x3f8] sm:$0xff]  ;;  %v2213_v14 = vld [vmem:[%s14146_s25 + $0x1b0] sm:$0xff] }
 0x469   :  { %v9129_v24 = vpack.c.bf16 %v7637_v21, %v7635_v20  ;;  %v9143_v15 = vpack.c.bf16 %v7654_v12, %v7652_v10  ;;  %v2216_v21 = vld [vmem:[%s14146_s25 + $0x1c8] sm:$0xff] }
 0x46b   :  { %9042 = vmatpush1.bf16.msra.mxu0 %v9041_v30  ;;  %9114 = vmatpush1.bf16.msra.mxu1 %v9113_v31  ;;  %v7642_v30 = vld [vmem:[%s14146_s25 + $0x398] sm:$0xff]  ;;  %v2199_v31 = vld [vmem:[%s14146_s25 + $0x140] sm:$0xff] }
 0x46c   :  { %9044 = vmatprep.subr.bf16.mxu0 %v9043_v33  ;;  %9116 = vmatprep.subr.bf16.mxu1 %v9115_v34  ;;  %v9131_v33 = vpack.c.bf16 %v7642_v30, %v7640_v47  ;;  %v9061_v34 = vpack.c.bf16 %v2201_v32, %v2199_v31  ;;  %v7658_v47 = vld [vmem:[%s14146_s25 + $0x418] sm:$0xff]  ;;  %v2217_v31 = vld [vmem:[%s14146_s25 + $0x1d0] sm:$0xff]  ;;  %v7655_v32 = vld [vmem:[%s14146_s25 + $0x400] sm:$0xff] }
 0x46d   :  { %v9147_v30 = vpack.c.bf16 %v7658_v47, %v7656_v27 }
 0x46f   :  { %9046 = vmatpush1.bf16.msra.mxu0 %v9045_v25  ;;  %9118 = vmatpush1.bf16.msra.mxu1 %v9117_v42  ;;  %v9133_v25 = vpack.c.bf16 %v7641_v37, %v7639_v35  ;;  %v2206_v42 = vld [vmem:[%s14146_s25 + $0x178] sm:$0xff]  ;;  %v2220_v37 = vld [vmem:[%s14146_s25 + $0x1e8] sm:$0xff] }
 0x470   :  { %9048 = vmatprep.subr.bf16.mxu0 %v9047_v48  ;;  %9120 = vmatprep.subr.bf16.mxu1 %v9119_v56  ;;  %v9063_v46 = vpack.c.bf16 %v2206_v42, %v2204_v40  ;;  %v9135_v48 = vpack.c.bf16 %v7646_v45, %v7644_v28  ;;  %v9065_v56 = vpack.c.bf16 %v2205_v53, %v2203_v50  ;;  %v2222_v40 = vld [vmem:[%s14146_s25 + $0x1f8] sm:$0xff]  ;;  %v2219_v45 = vld [vmem:[%s14146_s25 + $0x1e0] sm:$0xff] }
 0x471   :  { %v9079_v42 = vpack.c.bf16 %v2222_v40, %v2220_v37  ;;  %v7662_v28 = vld [vmem:[%s14146_s25 + $0x438] sm:$0xff]  ;;  %v7659_v53 = vld [vmem:[%s14146_s25 + $0x420] sm:$0xff] }
 0x473   :  { %9050 = vmatpush1.bf16.msra.mxu0 %v9049_v57  ;;  %9122 = vmatpush1.bf16.msra.mxu1 %v9121_v60  ;;  %v7645_v57 = vld [vmem:[%s14146_s25 + $0x3b0] sm:$0xff] }
 0x474   :  { %9052 = vmatprep.subr.bf16.mxu0 %v9051_v0  ;;  %9124 = vmatprep.subr.bf16.mxu1 %v9123_v5  ;;  %v9137_v60 = vpack.c.bf16 %v7645_v57, %v7643_v54  ;;  %v2207_v0 = vld [vmem:[%s14146_s25 + $0x180] sm:$0xff]  ;;  %v7649_v5 = vld [vmem:[%s14146_s25 + $0x3d0] sm:$0xff]  ;;  %v7664_v57 = vld [vmem:[%s14146_s25 + $0x448] sm:$0xff] }
 0x475   :  { %v9141_v7 = vpack.c.bf16 %v7649_v5, %v7647_v4  ;;  %v7661_v54 = vld [vmem:[%s14146_s25 + $0x430] sm:$0xff]  ;;  %v9155_v59 = vpack.c.bf16 %v7666_v58, %v7664_v57  ;;  %v2230_v57 = vld [vmem:[%s14146_s25 + $0x238] sm:$0xff] }
 0x477   :  { %9054 = vmatpush1.bf16.msra.mxu0 %v9053_v6  ;;  %9126 = vmatpush1.bf16.msra.mxu1 %v9125_v9  ;;  %v9069_v6 = vpack.c.bf16 %v2209_v2, %v2207_v0  ;;  %v2214_v9 = vld [vmem:[%s14146_s25 + $0x1b8] sm:$0xff] }
 0x478   :  { %9056 = vmatprep.subr.bf16.mxu0 %v9055_v13  ;;  %9128 = vmatprep.subr.bf16.mxu1 %v9127_v18  ;;  %v9071_v11 = vpack.c.bf16 %v2214_v9, %v2212_v8  ;;  %v2211_v13 = vld [vmem:[%s14146_s25 + $0x1a0] sm:$0xff] }
 0x479   :  { %v9073_v17 = vpack.c.bf16 %v2213_v14, %v2211_v13  ;;  %v7651_v18 = vld [vmem:[%s14146_s25 + $0x3e0] sm:$0xff] }
 0x47b   :  { %9058 = vmatpush1.bf16.msra.mxu0 %v9057_v19  ;;  %9130 = vmatpush1.bf16.msra.mxu1 %v9129_v24  ;;  %v7653_v19 = vld [vmem:[%s14146_s25 + $0x3f0] sm:$0xff]  ;;  %v2218_v24 = vld [vmem:[%s14146_s25 + $0x1d8] sm:$0xff] }
 0x47c   :  { %9060 = vmatprep.subr.bf16.mxu0 %v9059_v29  ;;  %9132 = vmatprep.subr.bf16.mxu1 %v9131_v33  ;;  %v9145_v20 = vpack.c.bf16 %v7653_v19, %v7651_v18  ;;  %v9075_v26 = vpack.c.bf16 %v2218_v24, %v2216_v21  ;;  %v2215_v29 = vld [vmem:[%s14146_s25 + $0x1c0] sm:$0xff] }
 0x47d   :  { %v9077_v33 = vpack.c.bf16 %v2217_v31, %v2215_v29 }
 0x47f   :  { %9062 = vmatpush1.bf16.msra.mxu0 %v9061_v34  ;;  %9134 = vmatpush1.bf16.msra.mxu1 %v9133_v25  ;;  %v7657_v34 = vld [vmem:[%s14146_s25 + $0x410] sm:$0xff]  ;;  %v7660_v25 = vld [vmem:[%s14146_s25 + $0x428] sm:$0xff] }
 0x480   :  { %9064 = vmatprep.subr.bf16.mxu0 %v9063_v46  ;;  %9136 = vmatprep.subr.bf16.mxu1 %v9135_v48  ;;  %v9149_v35 = vpack.c.bf16 %v7657_v34, %v7655_v32  ;;  %v2221_v46 = vld [vmem:[%s14146_s25 + $0x1f0] sm:$0xff]  ;;  %v9151_v48 = vpack.c.bf16 %v7662_v28, %v7660_v25 }
 0x481   :  { %v9081_v50 = vpack.c.bf16 %v2221_v46, %v2219_v45 }
 0x483   :  { %9066 = vmatpush1.bf16.msra.mxu0 %v9065_v56  ;;  %9138 = vmatpush1.bf16.msra.mxu1 %v9137_v60  ;;  %v9153_v56 = vpack.c.bf16 %v7661_v54, %v7659_v53  ;;  %v2224_v60 = vld [vmem:[%s14146_s25 + $0x208] sm:$0xff]  ;;  %v7670_v54 = vld [vmem:[%s14146_s25 + $0x478] sm:$0xff] }
 0x484   :  { %9068 = vmatprep.subr.bf16.mxu0 %v9067_v61  ;;  %9140 = vmatprep.subr.bf16.mxu1 %v9139_v1  ;;  %v2226_v61 = vld [vmem:[%s14146_s25 + $0x218] sm:$0xff]  ;;  %v7668_v53 = vld [vmem:[%s14146_s25 + $0x468] sm:$0xff] }
 0x485   :  { %v9083_v62 = vpack.c.bf16 %v2226_v61, %v2224_v60 }
 0x487   :  { %9070 = vmatpush1.bf16.msra.mxu0 %v9069_v6  ;;  %9142 = vmatpush1.bf16.msra.mxu1 %v9141_v7  ;;  %v2098_v6 = vld [vmem:[%s14147_s28] sm:$0x7] }
 0x488   :  { %9072 = vmatprep.subr.bf16.mxu0 %v9071_v11  ;;  %9144 = vmatprep.subr.bf16.mxu1 %v9143_v15  ;;  %v11456_v7 = vld [vmem:[%s14148_s2] sm:$0x7]  ;;  %v2103_v9 = vrot.slane %v2098_v6, %v10919_v38  ;;  %v2107_v10 = vrot.slane %v2098_v6, %v10921_v22  ;;  %v2111_v58 = vrot.slane %v2098_v6, %v10914_v36 }
 0x489   :  { %v2133_v11 = vrot.slane %v11456_v7, %v10921_v22  ;;  %v11465_v12 = vrot.slane %v11456_v7, %v10919_v38  ;;  %v9159_v6 = vpack.c.bf16 %v7670_v54, %v7668_v53 }
 0x48b   :  { %9074 = vmatpush1.bf16.msra.mxu0 %v9073_v17  ;;  %9146 = vmatpush1.bf16.msra.mxu1 %v9145_v20 }
 0x48c   :  { %9076 = vmatprep.subr.bf16.mxu0 %v9075_v26  ;;  %9148 = vmatprep.subr.bf16.mxu1 %v9147_v30 }
 0x48f   :  { %9078 = vmatpush1.bf16.msra.mxu0 %v9077_v33  ;;  %9150 = vmatpush1.bf16.msra.mxu1 %v9149_v35 }
 0x490   :  { %9080 = vmatprep.subr.bf16.mxu0 %v9079_v42  ;;  %9152 = vmatprep.subr.bf16.mxu1 %v9151_v48  ;;  %v7665_v42 = vld [vmem:[%s14146_s25 + $0x450] sm:$0xff]  ;;  %v2223_v48 = vld [vmem:[%s14146_s25 + $0x200] sm:$0xff] }
 0x493   :  { %9082 = vmatpush1.bf16.msra.mxu0 %v9081_v50  ;;  %9154 = vmatpush1.bf16.msra.mxu1 %v9153_v56  ;;  %v2225_v50 = vld [vmem:[%s14146_s25 + $0x210] sm:$0xff]  ;;  %v2228_v56 = vld [vmem:[%s14146_s25 + $0x228] sm:$0xff] }
 0x494   :  { %9156 = vmatprep.subr.bf16.mxu1 %v9155_v59  ;;  %9084 = vmatprep.subr.bf16.mxu0 %v9083_v62 }
 0x510   :  { %v1837_v16 = vpop.f32.mrb[30].mxu1 }
 0x511   :  { %v1839_v0 = vpop.f32.mrb[31].mxu1  ;;  %v2059_v4 = vrot.slane %v1837_v16, %v10919_v38  ;;  %v9085_v16 = vpack.c.bf16 %v2225_v50, %v2223_v48  ;;  %v7710_v48 = vld [vmem:[%s14146_s25 + $0x508] sm:$0xff]  ;;  %v7712_v50 = vld [vmem:[%s14146_s25 + $0x518] sm:$0xff] }
 0x512   :  { %v2063_v5 = vrot.slane %v1839_v0, %v10919_v38  ;;  %v9187_v54 = vpack.c.bf16 %v7712_v50, %v7710_v48  ;;  %v7741_v48 = vld [vmem:[%s14146_s25 + $0x600] sm:$0xff]  ;;  %v7743_v50 = vld [vmem:[%s14146_s25 + $0x610] sm:$0xff] }
 0x513   :  { %v2068_v13 = vsub.f32 %v10936_v51, %v2059_v4  ;;  %v2071_v14 = vsub.f32 %v10934_v49, %v2059_v4  ;;  %v2074_v15 = vsub.f32 %v10956_v63, %v2059_v4 }
 0x514   :  { %v2069_v17 = vsub.f32 %v10944_v55, %v2063_v5  ;;  %v2072_v20 = vsub.f32 %v10938_v52, %v2063_v5  ;;  %v2075_v51 = vsub.f32 %v10962_v3, %v2063_v5 }
 0x518   :  { %v1908_v1 = vpop.f32.mrb[32].mxu1 }
 0x519   :  { %v8464_v2 = vpop.f32.mrb[33].mxu1  ;;  %v2067_v8 = vrot.slane %v1908_v1, %v10919_v38  ;;  %v7667_v1 = vld [vmem:[%s14146_s25 + $0x460] sm:$0xff] }
 0x51a   :  { %v7669_v2 = vld [vmem:[%s14146_s25 + $0x470] sm:$0xff] }
 0x51b   :  { %v2070_v21 = vsub.f32 %v10927_v43, %v2067_v8  ;;  %v2073_v49 = vsub.f32 %v10924_v41, %v2067_v8  ;;  %v2076_v63 = vsub.f32 %v10929_v44, %v2067_v8  ;;  %v7663_v44 = vld [vmem:[%s14146_s25 + $0x440] sm:$0xff]  ;;  %v9087_v8 = vpack.c.bf16 %v2230_v57, %v2228_v56  ;;  %v7711_v57 = vld [vmem:[%s14146_s25 + $0x510] sm:$0xff] }
 0x51c   :  { %v9157_v60 = vpack.c.bf16 %v7665_v42, %v7663_v44  ;;  %v7709_v56 = vld [vmem:[%s14146_s25 + $0x500] sm:$0xff] }
 0x529   :  { %v1981_v18 = vpop.f32.mrb[14].mxu0  ;;  %v2052_v19 = vpop.f32.mrb[34].mxu1 }
 0x52a   :  { %v2080_v24 = vrot.slane %v1981_v18, %v10919_v38  ;;  %v2088_v26 = vrot.slane %v2052_v19, %v10919_v38  ;;  %v1983_v27 = vpop.f32.mrb[15].mxu0  ;;  %v8475_v47 = vpop.f32.mrb[35].mxu1 }
 0x52b   :  { %v2084_v55 = vrot.slane %v1983_v27, %v10919_v38  ;;  %v7695_v27 = vld [vmem:[%s14146_s25 + $0x490] sm:$0xff]  ;;  %v7698_v47 = vld [vmem:[%s14146_s25 + $0x4a8] sm:$0xff] }
 0x52c   :  { %v2089_v29 = vmul.f32 %v2080_v24, %v2068_v13  ;;  %v2092_v30 = vmul.f32 %v2080_v24, %v2071_v14  ;;  %v2095_v31 = vmul.f32 %v2080_v24, %v2074_v15  ;;  %v2091_v52 = vmul.f32 %v2088_v26, %v2070_v21  ;;  %v7694_v13 = vld [vmem:[%s14146_s25 + $0x488] sm:$0xff] }
 0x52d   :  { %v2094_v32 = vmul.f32 %v2088_v26, %v2073_v49  ;;  %v11479_v43 = vmul.f32 %v2088_v26, %v2076_v63  ;;  %v2090_v33 = vmul.f32 %v2084_v55, %v2069_v17  ;;  %v2093_v34 = vmul.f32 %v2084_v55, %v2072_v20 }
 0x52e   :  { %v2115_v35 = vmul.f32 %v2103_v9, %v2089_v29  ;;  %v2096_v37 = vmul.f32 %v2084_v55, %v2075_v51  ;;  %v2118_v41 = vmul.f32 %v2103_v9, %v2092_v30  ;;  %v2121_v0 = vmul.f32 %v2103_v9, %v2095_v31  ;;  %v2227_v9 = vld [vmem:[%s14146_s25 + $0x220] sm:$0xff]  ;;  %v7700_v51 = vld [vmem:[%s14146_s25 + $0x4b8] sm:$0xff] }
 0x52f   :  { %v2116_v40 = vmul.f32 %v2107_v10, %v2090_v33  ;;  %v2119_v25 = vmul.f32 %v2107_v10, %v2093_v34  ;;  %v2137_v14 = vrot.slane %v11456_v7, %v10914_v36  ;;  %v9161_v15 = vpack.c.bf16 %v7669_v2, %v7667_v1  ;;  %v7697_v31 = vld [vmem:[%s14146_s25 + $0x4a0] sm:$0xff]  ;;  %v7718_v1 = vld [vmem:[%s14146_s25 + $0x548] sm:$0xff]  ;;  %v7720_v2 = vld [vmem:[%s14146_s25 + $0x558] sm:$0xff] }
 0x530   :  { %v2141_v3 = vadd.f32 %v11465_v12, %v2115_v35  ;;  %v2122_v46 = vmul.f32 %v2107_v10, %v2096_v37  ;;  %v2144_v62 = vadd.f32 %v11465_v12, %v2118_v41  ;;  %v2229_v10 = vld [vmem:[%s14146_s25 + $0x230] sm:$0xff]  ;;  %v2117_v17 = vmul.f32 %v2111_v58, %v2091_v52  ;;  %v7708_v41 = vld [vmem:[%s14146_s25 + $0x4f8] sm:$0xff] }
 0x531   :  { %v2142_v28 = vadd.f32 %v2133_v11, %v2116_v40  ;;  %v2145_v45 = vadd.f32 %v2133_v11, %v2119_v25  ;;  %v2147_v19 = vadd.f32 %v11465_v12, %v2121_v0  ;;  %v9089_v20 = vpack.c.bf16 %v2229_v10, %v2227_v9  ;;  %v7693_v12 = vld [vmem:[%s14146_s25 + $0x480] sm:$0xff]  ;;  %v7699_v52 = vld [vmem:[%s14146_s25 + $0x4b0] sm:$0xff]  ;;  %v7722_v10 = vld [vmem:[%s14146_s25 + $0x568] sm:$0xff] }
 0x532   :  { %v11509_v61 = vmax.f32 %v2141_v3, 0.0  ;;  %v2148_v5 = vadd.f32 %v2133_v11, %v2122_v46  ;;  %v7696_v11 = vld [vmem:[%s14146_s25 + $0x498] sm:$0xff]  ;;  %v11540_v18 = vmax.f32 %v2144_v62, 0.0  ;;  %v2120_v36 = vmul.f32 %v2111_v58, %v2094_v32  ;;  %v7702_v32 = vld [vmem:[%s14146_s25 + $0x4c8] sm:$0xff]  ;;  %v7701_v40 = vld [vmem:[%s14146_s25 + $0x4c0] sm:$0xff] }
 0x533   :  { %v11507_v59 = vmax.f32 %v2142_v28, 0.0  ;;  %v11520_v4 = vmax.f32 %v2145_v45, 0.0  ;;  %v9171_v24 = vpack.c.bf16 %v7696_v11, %v7694_v13  ;;  %v2143_v7 = vadd.f32 %v2137_v14, %v2117_v17  ;;  %v7703_v25 = vld [vmem:[%s14146_s25 + $0x4d0] sm:$0xff]  ;;  %v7706_v3 = vld [vmem:[%s14146_s25 + $0x4e8] sm:$0xff]  ;;  %v7705_v45 = vld [vmem:[%s14146_s25 + $0x4e0] sm:$0xff] }
 0x534   :  { %v11543_v21 = vmax.f32 %v2148_v5, 0.0  ;;  %v11549_v26 = vmax.f32 %v2147_v19, 0.0  ;;  %v9173_v49 = vpack.c.bf16 %v7695_v27, %v7693_v12  ;;  %v2123_v63 = vmul.f32 %v2111_v58, %v11479_v43  ;;  %v7704_v43 = vld [vmem:[%s14146_s25 + $0x4d8] sm:$0xff]  ;;  %v7707_v46 = vld [vmem:[%s14146_s25 + $0x4f0] sm:$0xff]  ;;  %v7714_v58 = vld [vmem:[%s14146_s25 + $0x528] sm:$0xff] }
 0x535   :  { %2304 = vmatprep.mubr.f32.mxu0 %v11507_v59  ;;  %2548 = vmatprep.mubr.f32.mxu1 %v11507_v59  ;;  %v11568_v55 = vmax.f32 %v2143_v7, 0.0  ;;  %v9175_v29 = vpack.c.bf16 %v7700_v51, %v7698_v47  ;;  %v2146_v30 = vadd.f32 %v2137_v14, %v2120_v36  ;;  %v9177_v33 = vpack.c.bf16 %v7699_v52, %v7697_v31  ;;  %v7715_v0 = vld [vmem:[%s14146_s25 + $0x530] sm:$0xff]  ;;  %v7724_v13 = vld [vmem:[%s14146_s25 + $0x578] sm:$0xff]  ;;  %v7726_v19 = vld [vmem:[%s14146_s25 + $0x588] sm:$0xff] }
 0x536   :  { %2305 = vmatmul.mubr.f32.vlgmr.msra.gmra.mrb[16].mxu0 %v11509_v61  ;;  %2549 = vmatmul.mubr.f32.vlgmr.msra.gmra.mrb[36].mxu1 %v11509_v61  ;;  %v9179_v35 = vpack.c.bf16 %v7704_v43, %v7702_v32  ;;  %v2149_v37 = vadd.f32 %v2137_v14, %v2123_v63  ;;  %v9181_v44 = vpack.c.bf16 %v7703_v25, %v7701_v40  ;;  %v7719_v9 = vld [vmem:[%s14146_s25 + $0x550] sm:$0xff]  ;;  %v7725_v7 = vld [vmem:[%s14146_s25 + $0x580] sm:$0xff]  ;;  %v7730_v27 = vld [vmem:[%s14146_s25 + $0x5a8] sm:$0xff] }
 0x537   :  { %2310 = vmatprep.mubr.f32.mxu0 %v11520_v4  ;;  %2554 = vmatprep.mubr.f32.mxu1 %v11520_v4  ;;  %v11588_v34 = vmax.f32 %v2146_v30, 0.0  ;;  %v9183_v28 = vpack.c.bf16 %v7708_v41, %v7706_v3  ;;  %v9185_v53 = vpack.c.bf16 %v7707_v46, %v7705_v45  ;;  %v9199_v14 = vpack.c.bf16 %v7724_v13, %v7722_v10  ;;  %v7723_v17 = vld [vmem:[%s14146_s25 + $0x570] sm:$0xff]  ;;  %v7732_v47 = vld [vmem:[%s14146_s25 + $0x5b8] sm:$0xff]  ;;  %v7729_v63 = vld [vmem:[%s14146_s25 + $0x5a0] sm:$0xff] }
 0x538   :  { %9158 = vmatpush1.bf16.msra.mxu1 %v9157_v60  ;;  %9086 = vmatpush1.bf16.msra.mxu0 %v9085_v16  ;;  %v11608_v42 = vmax.f32 %v2149_v37, 0.0  ;;  %v9189_v60 = vpack.c.bf16 %v7711_v57, %v7709_v56  ;;  %v7713_v16 = vld [vmem:[%s14146_s25 + $0x520] sm:$0xff]  ;;  %v7727_v12 = vld [vmem:[%s14146_s25 + $0x590] sm:$0xff]  ;;  %v7734_v30 = vld [vmem:[%s14146_s25 + $0x5c8] sm:$0xff]  ;;  %v9221_v56 = vpack.c.bf16 %v7743_v50, %v7741_v48 }
 0x539   :  { %9160 = vmatprep.subr.bf16.mxu1 %v9159_v6  ;;  %9088 = vmatprep.subr.bf16.mxu0 %v9087_v8  ;;  %v9193_v5 = vpack.c.bf16 %v7715_v0, %v7713_v16  ;;  %v9195_v6 = vpack.c.bf16 %v7720_v2, %v7718_v1  ;;  %v7717_v8 = vld [vmem:[%s14146_s25 + $0x540] sm:$0xff]  ;;  %v9205_v51 = vpack.c.bf16 %v7727_v12, %v7725_v7  ;;  %v7736_v31 = vld [vmem:[%s14146_s25 + $0x5d8] sm:$0xff]  ;;  %v7739_v41 = vld [vmem:[%s14146_s25 + $0x5f0] sm:$0xff] }
 0x53a   :  { %2311 = vmatmul.mubr.f32.gmra.mrb[18].mxu0 %v11540_v18  ;;  %2555 = vmatmul.mubr.f32.gmra.mrb[38].mxu1 %v11540_v18  ;;  %v9197_v11 = vpack.c.bf16 %v7719_v9, %v7717_v8  ;;  %v9211_v32 = vpack.c.bf16 %v7736_v31, %v7734_v30  ;;  %v7733_v43 = vld [vmem:[%s14146_s25 + $0x5c0] sm:$0xff]  ;;  %v7740_v37 = vld [vmem:[%s14146_s25 + $0x5f8] sm:$0xff]  ;;  %v7751_v2 = vld [vmem:[%s14146_s25 + $0x650] sm:$0xff] }
 0x53b   :  { %2316 = vmatprep.mubr.f32.mxu0 %v11543_v21  ;;  %2560 = vmatprep.mubr.f32.mxu1 %v11543_v21  ;;  %v7737_v3 = vld [vmem:[%s14146_s25 + $0x5e0] sm:$0xff]  ;;  %v7755_v13 = vld [vmem:[%s14146_s25 + $0x670] sm:$0xff]  ;;  %v2409_v48 = vld [vmem:[%s14109_s9 + $0x18] sm:$0xff] }
 0x53c   :  { %9162 = vmatpush1.bf16.msra.mxu1 %v9161_v15  ;;  %9090 = vmatpush1.bf16.msra.mxu0 %v9089_v20  ;;  %v7721_v15 = vld [vmem:[%s14146_s25 + $0x560] sm:$0xff]  ;;  %v7728_v20 = vld [vmem:[%s14146_s25 + $0x598] sm:$0xff]  ;;  %v9217_v45 = vpack.c.bf16 %v7739_v41, %v7737_v3 }
 0x53d   :  { %9172 = vmatprep.subr.bf16.mxu1 %v9171_v24  ;;  %v9201_v24 = vpack.c.bf16 %v7723_v17, %v7721_v15  ;;  %v9203_v36 = vpack.c.bf16 %v7728_v20, %v7726_v19  ;;  %v7749_v1 = vld [vmem:[%s14146_s25 + $0x640] sm:$0xff]  ;;  %v7759_v20 = vld [vmem:[%s14146_s25 + $0x690] sm:$0xff]  ;;  %v7676_v3 = vld [vmem:[%s14109_s9 + $0x38] sm:$0xff] }
 0x53e   :  { %2317 = vmatmul.mubr.f32.gmra.mrb[20].mxu0 %v11549_v26  ;;  %2561 = vmatmul.mubr.f32.gmra.mrb[40].mxu1 %v11549_v26  ;;  %v9229_v8 = vpack.c.bf16 %v7751_v2, %v7749_v1  ;;  %v7753_v10 = vld [vmem:[%s14146_s25 + $0x660] sm:$0xff]  ;;  %v7771_v2 = vld [vmem:[%s14109_s9 + $0x68] sm:$0xff] }
 0x53f   :  { %2387 = vmatprep.mubr.f32.mxu0 %v9715_v39  ;;  %2631 = vmatprep.mubr.f32.mxu1 %v9715_v39  ;;  %v9233_v15 = vpack.c.bf16 %v7755_v13, %v7753_v10  ;;  %v7757_v19 = vld [vmem:[%s14146_s25 + $0x680] sm:$0xff]  ;;  %v3352_v13 = vld [vmem:[%s14113_s13 + $0x28] sm:$0xff] }
 0x540   :  { %v9237_v7 = vpack.c.bf16 %v7759_v20, %v7757_v19  ;;  %v7677_v41 = vld [vmem:[%s14109_s9 + $0x40] sm:$0xff]  ;;  %v3356_v20 = vld [vmem:[%s14113_s13 + $0x48] sm:$0xff] }
 0x541   :  { %v2410_v50 = vld [vmem:[%s14109_s9 + $0x20] sm:$0x3f] }
 0x542   :  { %7596 = vmatmul.mubr.msk.f32.vlgmr.msra.gmra.mrb[16].mxu0 %vm1375_vm2, %v11568_v55  ;;  %7671 = vmatmul.mubr.msk.f32.vlgmr.msra.gmra.mrb[36].mxu1 %vm1375_vm2, %v11568_v55  ;;  %v7770_v1 = vld [vmem:[%s14109_s9 + $0x60] sm:$0xff] }
 0x543   :  { %9174 = vmatpush1.bf16.msra.mxu1 %v9173_v49  ;;  %2393 = vmatprep.mubr.f32.mxu0 %v9715_v39  ;;  %v9207_v49 = vpack.c.bf16 %v7732_v47, %v7730_v27  ;;  %v7761_v27 = vld [vmem:[%s14146_s25 + $0x6a0] sm:$0xff]  ;;  %v7763_v47 = vld [vmem:[%s14146_s25 + $0x6b0] sm:$0xff] }
 0x544   :  { %2637 = vmatprep.mubr.f32.mxu1 %v9715_v39  ;;  %9176 = vmatprep.subr.bf16.mxu1 %v9175_v29  ;;  %v7731_v29 = vld [vmem:[%s14146_s25 + $0x5b0] sm:$0xff]  ;;  %v3351_v10 = vld [vmem:[%s14113_s13 + $0x20] sm:$0xff] }
 0x545   :  { %v9209_v52 = vpack.c.bf16 %v7731_v29, %v7729_v63  ;;  %v3355_v19 = vld [vmem:[%s14113_s13 + $0x40] sm:$0xff] }
 0x546   :  { %7597 = vmatmul.mubr.msk.f32.gmra.mrb[18].mxu0 %vm1375_vm2, %v11588_v34  ;;  %7672 = vmatmul.mubr.msk.f32.gmra.mrb[38].mxu1 %vm1375_vm2, %v11588_v34 }
 0x547   :  { %9178 = vmatpush1.bf16.msra.mxu1 %v9177_v33  ;;  %2399 = vmatprep.mubr.f32.mxu0 %v9715_v39  ;;  %v7735_v33 = vld [vmem:[%s14146_s25 + $0x5d0] sm:$0xff] }
 0x548   :  { %2643 = vmatprep.mubr.f32.mxu1 %v9715_v39  ;;  %9180 = vmatprep.subr.bf16.mxu1 %v9179_v35  ;;  %v7738_v35 = vld [vmem:[%s14146_s25 + $0x5e8] sm:$0xff]  ;;  %v9213_v40 = vpack.c.bf16 %v7735_v33, %v7733_v43 }
 0x549   :  { %v9215_v25 = vpack.c.bf16 %v7740_v37, %v7738_v35 }
 0x54a   :  { %7598 = vmatmul.mubr.msk.f32.gmra.mrb[20].mxu0 %vm1375_vm2, %v11608_v42  ;;  %7673 = vmatmul.mubr.msk.f32.gmra.mrb[40].mxu1 %vm1375_vm2, %v11608_v42 }
 0x54b   :  { %9182 = vmatpush1.bf16.msra.mxu1 %v9181_v44  ;;  %3026 = vmatprep.mubr.f32.mxu1 %v11507_v59  ;;  %v7716_v59 = vld [vmem:[%s14146_s25 + $0x538] sm:$0xff]  ;;  %v7742_v44 = vld [vmem:[%s14146_s25 + $0x608] sm:$0xff] }
 0x54c   :  { %9184 = vmatprep.subr.bf16.mxu1 %v9183_v28  ;;  %2742 = vmatprep.mubr.f32.mxu0 %v9715_v39  ;;  %v9191_v62 = vpack.c.bf16 %v7716_v59, %v7714_v58  ;;  %v7744_v28 = vld [vmem:[%s14146_s25 + $0x618] sm:$0xff]  ;;  %v7745_v58 = vld [vmem:[%s14146_s25 + $0x620] sm:$0xff]  ;;  %v7747_v59 = vld [vmem:[%s14146_s25 + $0x630] sm:$0xff] }
 0x54d   :  { %v9219_v46 = vpack.c.bf16 %v7744_v28, %v7742_v44  ;;  %v9225_v16 = vpack.c.bf16 %v7747_v59, %v7745_v58  ;;  %v7678_v44 = vld [vmem:[%s14109_s9 + $0x48] sm:$0x3f]  ;;  %v2406_v28 = vld [vmem:[%s14109_s9] sm:$0xff] }
 0x54f   :  { %9186 = vmatpush1.bf16.msra.mxu1 %v9185_v53  ;;  %v7746_v53 = vld [vmem:[%s14146_s25 + $0x628] sm:$0xff] }
 0x550   :  { %9188 = vmatprep.subr.bf16.mxu1 %v9187_v54  ;;  %v7748_v54 = vld [vmem:[%s14146_s25 + $0x638] sm:$0xff] }
 0x551   :  { %v9223_v57 = vpack.c.bf16 %v7748_v54, %v7746_v53 }
 0x553   :  { %9190 = vmatpush1.bf16.msra.mxu1 %v9189_v60  ;;  %v7750_v60 = vld [vmem:[%s14146_s25 + $0x648] sm:$0xff] }
 0x554   :  { %9192 = vmatprep.subr.bf16.mxu1 %v9191_v62  ;;  %v7752_v62 = vld [vmem:[%s14146_s25 + $0x658] sm:$0xff] }
 0x555   :  { %v9227_v0 = vpack.c.bf16 %v7752_v62, %v7750_v60 }
 0x557   :  { %9194 = vmatpush1.bf16.msra.mxu1 %v9193_v5  ;;  %v7754_v5 = vld [vmem:[%s14146_s25 + $0x668] sm:$0xff] }
 0x558   :  { %9196 = vmatprep.subr.bf16.mxu1 %v9195_v6  ;;  %v7756_v6 = vld [vmem:[%s14146_s25 + $0x678] sm:$0xff] }
 0x559   :  { %v9231_v9 = vpack.c.bf16 %v7756_v6, %v7754_v5  ;;  %v7772_v5 = vld [vmem:[%s14109_s9 + $0x70] sm:$0x3f] }
 0x55a   :  { %v3349_v6 = vld [vmem:[%s14113_s13 + $0x10] sm:$0xff] }
 0x55b   :  { %9198 = vmatpush1.bf16.msra.mxu1 %v9197_v11  ;;  %v7758_v11 = vld [vmem:[%s14146_s25 + $0x688] sm:$0xff] }
 0x55c   :  { %9200 = vmatprep.subr.bf16.mxu1 %v9199_v14  ;;  %v7760_v14 = vld [vmem:[%s14146_s25 + $0x698] sm:$0xff] }
 0x55d   :  { %v9235_v17 = vpack.c.bf16 %v7760_v14, %v7758_v11  ;;  %v9254_v11 = vpack.c.bf16 %v3352_v13, %v3351_v10  ;;  %v3353_v14 = vld [vmem:[%s14113_s13 + $0x30] sm:$0xff] }
 0x55f   :  { %9202 = vmatpush1.bf16.msra.mxu1 %v9201_v24  ;;  %v7762_v24 = vld [vmem:[%s14146_s25 + $0x6a8] sm:$0xff] }
 0x560   :  { %9204 = vmatprep.subr.bf16.mxu1 %v9203_v36  ;;  %v7764_v36 = vld [vmem:[%s14146_s25 + $0x6b8] sm:$0xff] }
 0x561   :  { %v9239_v12 = vpack.c.bf16 %v7764_v36, %v7762_v24  ;;  %v9260_v24 = vpack.c.bf16 %v3356_v20, %v3355_v19  ;;  %v3357_v36 = vld [vmem:[%s14113_s13 + $0x50] sm:$0xff] }
 0x563   :  { %9206 = vmatpush1.bf16.msra.mxu1 %v9205_v51  ;;  %v9241_v51 = vpack.c.bf16 %v7763_v47, %v7761_v27  ;;  %v3359_v27 = vld [vmem:[%s14113_s13 + $0x60] sm:$0xff]  ;;  %v3360_v47 = vld [vmem:[%s14113_s13 + $0x68] sm:$0xff] }
 0x564   :  { %9208 = vmatprep.subr.bf16.mxu1 %v9207_v49 }
 0x567   :  { %9210 = vmatpush1.bf16.msra.mxu1 %v9209_v52 }
 0x568   :  { %9212 = vmatprep.subr.bf16.mxu1 %v9211_v32 }
 0x56b   :  { %9214 = vmatpush1.bf16.msra.mxu1 %v9213_v40  ;;  %v7674_v40 = vld [vmem:[%s14109_s9 + $0x28] sm:$0xff] }
 0x56c   :  { %9216 = vmatprep.subr.bf16.mxu1 %v9215_v25  ;;  %v7675_v25 = vld [vmem:[%s14109_s9 + $0x30] sm:$0xff] }
 0x56f   :  { %9218 = vmatpush1.bf16.msra.mxu1 %v9217_v45  ;;  %v2407_v45 = vld [vmem:[%s14109_s9 + $0x8] sm:$0xff] }
 0x570   :  { %9220 = vmatprep.subr.bf16.mxu1 %v9219_v46  ;;  %v2408_v46 = vld [vmem:[%s14109_s9 + $0x10] sm:$0xff] }
 0x573   :  { %9222 = vmatpush1.bf16.msra.mxu1 %v9221_v56 }
 0x574   :  { %9224 = vmatprep.subr.bf16.mxu1 %v9223_v57 }
 0x577   :  { %9226 = vmatpush1.bf16.msra.mxu1 %v9225_v16  ;;  %v7768_v16 = vld [vmem:[%s14109_s9 + $0x50] sm:$0xff] }
 0x578   :  { %9228 = vmatprep.subr.bf16.mxu1 %v9227_v0  ;;  %v7769_v0 = vld [vmem:[%s14109_s9 + $0x58] sm:$0xff] }
 0x57b   :  { %9230 = vmatpush1.bf16.msra.mxu1 %v9229_v8  ;;  %v3350_v8 = vld [vmem:[%s14113_s13 + $0x18] sm:$0xff] }
 0x57c   :  { %9232 = vmatprep.subr.bf16.mxu1 %v9231_v9  ;;  %v9251_v9 = vpack.c.bf16 %v3350_v8, %v3349_v6 }
 0x57f   :  { %9234 = vmatpush1.bf16.msra.mxu1 %v9233_v15  ;;  %v3354_v15 = vld [vmem:[%s14113_s13 + $0x38] sm:$0xff] }
 0x580   :  { %9236 = vmatprep.subr.bf16.mxu1 %v9235_v17  ;;  %v9257_v17 = vpack.c.bf16 %v3354_v15, %v3353_v14 }
 0x582   :  { %3027 = vmatmul.mubr.f32.vlgmr.msra.gmra.mrb[42].mxu1 %v11509_v61  ;;  %v3347_v61 = vld [vmem:[%s14113_s13] sm:$0xff] }
 0x583   :  { %3032 = vmatprep.mubr.f32.mxu1 %v11520_v4  ;;  %9238 = vmatpush1.bf16.msra.mxu1 %v9237_v7  ;;  %v3348_v4 = vld [vmem:[%s14113_s13 + $0x8] sm:$0xff]  ;;  %v3358_v7 = vld [vmem:[%s14113_s13 + $0x58] sm:$0xff] }
 0x584   :  { %9240 = vmatprep.subr.bf16.mxu1 %v9239_v12  ;;  %v9263_v12 = vpack.c.bf16 %v3358_v7, %v3357_v36 }
 0x586   :  { %3033 = vmatmul.mubr.f32.gmra.mrb[44].mxu1 %v11540_v18  ;;  %v11811_v18 = vpack.c.bf16 %v3348_v4, %v3347_v61  ;;  %v3361_v61 = vld [vmem:[%s14113_s13 + $0x70] sm:$0xff]  ;;  %v3362_v4 = vld [vmem:[%s14113_s13 + $0x78] sm:$0xff] }
 0x587   :  { %3038 = vmatprep.mubr.f32.mxu1 %v11543_v21  ;;  %9242 = vmatpush1.bf16.msra.mxu1 %v9241_v51  ;;  %v9266_v51 = vpack.c.bf16 %v3360_v47, %v3359_v27 }
 0x588   :  { %9274 = vmatprep.subr.bf16.mxu1 %v9717_v23 }
 0x58a   :  { %3039 = vmatmul.mubr.f32.gmra.mrb[46].mxu1 %v11549_v26 }
 0x58b   :  { %3109 = vmatprep.mubr.f32.mxu1 %v9715_v39 }
 0x58e   :  { %7765 = vmatmul.mubr.msk.f32.vlgmr.msra.gmra.mrb[42].mxu1 %vm1375_vm2, %v11568_v55 }
 0x58f   :  { %3115 = vmatprep.mubr.f32.mxu1 %v9715_v39  ;;  %9276 = vmatpush1.bf16.msra.mxu1 %v11811_v18 }
 0x590   :  { %9277 = vmatprep.subr.bf16.mxu1 %v9717_v23 }
 0x592   :  { %7766 = vmatmul.mubr.msk.f32.gmra.mrb[44].mxu1 %vm1375_vm2, %v11588_v34 }
 0x593   :  { %3121 = vmatprep.mubr.f32.mxu1 %v9715_v39  ;;  %9279 = vmatpush1.bf16.msra.mxu1 %v9251_v9 }
 0x594   :  { %9280 = vmatprep.subr.bf16.mxu1 %v9717_v23 }
 0x596   :  { %7767 = vmatmul.mubr.msk.f32.gmra.mrb[46].mxu1 %vm1375_vm2, %v11608_v42  ;;  %vm7017_vm2 = vcmask 785408  }
 0x597   :  { %9282 = vmatpush1.bf16.msra.mxu1 %v9254_v11 }
 0x598   :  { %9283 = vmatprep.subr.bf16.mxu1 %v9717_v23 }
 0x59b   :  { %9285 = vmatpush1.bf16.msra.mxu1 %v9257_v17 }
 0x59c   :  { %9286 = vmatprep.subr.bf16.mxu1 %v9717_v23 }
 0x59f   :  { %9288 = vmatpush1.bf16.msra.mxu1 %v9260_v24 }
 0x5a0   :  { %9289 = vmatprep.subr.bf16.mxu1 %v9717_v23 }
 0x5a3   :  { %9291 = vmatpush1.bf16.msra.mxu1 %v9263_v12 }
 0x5a4   :  { %9292 = vmatprep.subr.bf16.mxu1 %v9717_v23 }
 0x5a7   :  { %9294 = vmatpush1.bf16.msra.mxu1 %v9266_v51 }
 0x5a8   :  { %9295 = vmatprep.subr.bf16.mxu1 %v9717_v23 }
 0x615   :  { %v2389_v21 = vpop.f32.mrb[16].mxu0  ;;  %v2633_v26 = vpop.f32.mrb[36].mxu1 }
 0x616   :  { %v2391_v55 = vpop.f32.mrb[17].mxu0  ;;  %v2635_v34 = vpop.f32.mrb[37].mxu1 }
 0x619   :  { %v2395_v49 = vpop.f32.mrb[18].mxu0  ;;  %v2639_v42 = vpop.f32.mrb[38].mxu1 }
 0x61a   :  { %v9169_v63 = vpack.c.bf16 %v2395_v49, %v2389_v21  ;;  %v9165_v29 = vpack.c.bf16 %v2639_v42, %v2633_v26  ;;  %v2397_v30 = vpop.f32.mrb[19].mxu0  ;;  %v2641_v31 = vpop.f32.mrb[39].mxu1  ;;  %v3363_v21 = vld [vmem:[%s14113_s13 + $0x80] sm:$0xff]  ;;  %v3364_v26 = vld [vmem:[%s14113_s13 + $0x88] sm:$0xff] }
 0x61b   :  { %v9167_v52 = vpack.c.bf16 %v2397_v30, %v2391_v55  ;;  %v9163_v32 = vpack.c.bf16 %v2641_v31, %v2635_v34  ;;  %v9272_v55 = vpack.c.bf16 %v3364_v26, %v3363_v21  ;;  %v3365_v34 = vld [vmem:[%s14113_s13 + $0x90] sm:$0xff]  ;;  %v3260_v42 = vld [vmem:[%s14110_s10] sm:$0x3] }
 0x61c   :  { %v3265_v31 = vrot.slane %v3260_v42, %v10919_v38 }
 0x61d   :  { %v2401_v43 = vpop.f32.mrb[20].mxu0  ;;  %v2645_v33 = vpop.f32.mrb[40].mxu1  ;;  %9164 = vmatprep.subr.bf16.mxu0 %v9163_v32 }
 0x61e   :  { %v2403_v35 = vpop.f32.mrb[21].mxu0  ;;  %v2647_v37 = vpop.f32.mrb[41].mxu1  ;;  %9166 = vmatpush1.bf16.msra.mxu0 %v9165_v29  ;;  %v3269_v29 = vrot.slane %v3260_v42, %v10921_v22 }
 0x61f   :  { %7679 = vmatprep.subr.msk.mxu0 %vm1357_vm4, %v2647_v37 }
 0x622   :  { %7680 = vmatpush1.msk.msra.mxu0 %vm1357_vm4, %v2645_v33 }
 0x623   :  { %9168 = vmatprep.subr.bf16.mxu0 %v9167_v52  ;;  %7681 = vmatmul.mubr.msk.f32.vlgmr.msra.gmra.mrb[22].mxu0 %vm2656_vm5, %v7674_v40 }
 0x624   :  { %9170 = vmatpush1.bf16.msra.mxu0 %v9169_v63  ;;  %2748 = vmatprep.mubr.f32.mxu0 %v9715_v39 }
 0x625   :  { %7686 = vmatprep.subr.msk.mxu0 %vm1357_vm4, %v2403_v35 }
 0x627   :  { %7682 = vmatmul.mubr.msk.f32.gmra.mrb[24].mxu0 %vm2656_vm5, %v7675_v25 }
 0x628   :  { %7687 = vmatpush1.msk.msra.mxu0 %vm1357_vm4, %v2401_v43  ;;  %2754 = vmatprep.mubr.f32.mxu0 %v9715_v39 }
 0x62b   :  { %7683 = vmatmul.mubr.msk.f32.gmra.mrb[26].mxu0 %vm2656_vm5, %v7676_v3 }
 0x62c   :  { %2760 = vmatprep.mubr.f32.mxu0 %v9715_v39 }
 0x62f   :  { %7684 = vmatmul.mubr.msk.f32.gmra.mrb[28].mxu0 %vm2656_vm5, %v7677_v41 }
 0x630   :  { %2766 = vmatprep.mubr.f32.mxu0 %v9715_v39 }
 0x633   :  { %7685 = vmatmul.mubr.msk.f32.gmra.mrb[30].mxu0 %vm2656_vm5, %v7678_v44 }
 0x634   :  { %2858 = vmatprep.mubr.f32.mxu0 %v9715_v39 }
 0x637   :  { %7688 = vmatmul.mubr.msk.f32.vlgmr.msra.gmra.mrb[22].mxu0 %vm2656_vm5, %v2406_v28 }
 0x638   :  { %2864 = vmatprep.mubr.f32.mxu0 %v9715_v39 }
 0x63b   :  { %7689 = vmatmul.mubr.msk.f32.gmra.mrb[24].mxu0 %vm2656_vm5, %v2407_v45 }
 0x63c   :  { %2870 = vmatprep.mubr.f32.mxu0 %v9715_v39 }
 0x63f   :  { %7690 = vmatmul.mubr.msk.f32.gmra.mrb[26].mxu0 %vm2656_vm5, %v2408_v46 }
 0x640   :  { %2876 = vmatprep.mubr.f32.mxu0 %v9715_v39 }
 0x643   :  { %7691 = vmatmul.mubr.msk.f32.gmra.mrb[28].mxu0 %vm2656_vm5, %v2409_v48 }
 0x644   :  { %2882 = vmatprep.mubr.f32.mxu0 %v9715_v39 }
 0x647   :  { %7692 = vmatmul.mubr.msk.f32.gmra.mrb[30].mxu0 %vm2656_vm5, %v2410_v50 }
 0x648   :  { %3219 = vmatprep.mubr.f32.mxu0 %v9715_v39 }
 0x661   :  { %v3111_v53 = vpop.f32.mrb[42].mxu1 }
 0x662   :  { %v3113_v54 = vpop.f32.mrb[43].mxu1 }
 0x665   :  { %v3117_v56 = vpop.f32.mrb[44].mxu1 }
 0x666   :  { %v9245_v57 = vpack.c.bf16 %v3117_v56, %v3111_v53  ;;  %v3119_v58 = vpop.f32.mrb[45].mxu1 }
 0x667   :  { %v9243_v59 = vpack.c.bf16 %v3119_v58, %v3113_v54 }
 0x669   :  { %v3123_v60 = vpop.f32.mrb[46].mxu1  ;;  %9244 = vmatprep.subr.bf16.mxu0 %v9243_v59 }
 0x66a   :  { %v3125_v62 = vpop.f32.mrb[47].mxu1  ;;  %9246 = vmatpush1.bf16.msra.mxu0 %v9245_v57 }
 0x66b   :  { %7773 = vmatprep.subr.msk.mxu0 %vm1357_vm4, %v3125_v62 }
 0x66e   :  { %7774 = vmatpush1.msk.msra.mxu0 %vm1357_vm4, %v3123_v60 }
 0x66f   :  { %7775 = vmatmul.mubr.msk.f32.vlgmr.msra.gmra.mrb[22].mxu0 %vm2656_vm5, %v7768_v16  ;;  %9247 = vmatprep.subr.bf16.mxu0 %v9717_v23 }
 0x670   :  { %3225 = vmatprep.mubr.f32.mxu0 %v9715_v39  ;;  %9249 = vmatpush1.bf16.msra.mxu0 %v11811_v18  ;;  %v9269_v18 = vpack.c.bf16 %v3362_v4, %v3361_v61 }
 0x671   :  { %9250 = vmatprep.subr.bf16.mxu0 %v9717_v23 }
 0x672   :  { %9297 = vmatpush1.bf16.msra.mxu1 %v9269_v18 }
 0x673   :  { %7776 = vmatmul.mubr.msk.f32.gmra.mrb[24].mxu0 %vm2656_vm5, %v7769_v0  ;;  %9298 = vmatprep.subr.bf16.mxu1 %v9717_v23 }
 0x674   :  { %3231 = vmatprep.mubr.f32.mxu0 %v9715_v39  ;;  %9252 = vmatpush1.bf16.msra.mxu0 %v9251_v9 }
 0x675   :  { %9253 = vmatprep.subr.bf16.mxu0 %v9717_v23 }
 0x676   :  { %9300 = vmatpush1.bf16.msra.mxu1 %v9272_v55 }
 0x677   :  { %7777 = vmatmul.mubr.msk.f32.gmra.mrb[26].mxu0 %vm2656_vm5, %v7770_v1  ;;  %3480 = vmatprep.subr.mxu1 %v9715_v39 }
 0x678   :  { %3237 = vmatprep.mubr.f32.mxu0 %v9715_v39  ;;  %9255 = vmatpush1.bf16.msra.mxu0 %v9254_v11 }
 0x679   :  { %9256 = vmatprep.subr.bf16.mxu0 %v9717_v23 }
 0x67a   :  { %3481 = vmatpush1.msra.mxu1 %v3365_v34 }
 0x67b   :  { %7778 = vmatmul.mubr.msk.f32.gmra.mrb[28].mxu0 %vm2656_vm5, %v7771_v2  ;;  %9328 = vmatprep.subr.bf16.mxu1 %v9717_v23 }
 0x67c   :  { %3243 = vmatprep.mubr.f32.mxu0 %v9715_v39  ;;  %9258 = vmatpush1.bf16.msra.mxu0 %v9257_v17 }
 0x67d   :  { %9259 = vmatprep.subr.bf16.mxu0 %v9717_v23 }
 0x67f   :  { %7779 = vmatmul.mubr.msk.f32.gmra.mrb[30].mxu0 %vm2656_vm5, %v7772_v5 }
 0x680   :  { %9261 = vmatpush1.bf16.msra.mxu0 %v9260_v24 }
 0x681   :  { %9262 = vmatprep.subr.bf16.mxu0 %v9717_v23 }
 0x684   :  { %9264 = vmatpush1.bf16.msra.mxu0 %v9263_v12 }
 0x685   :  { %9265 = vmatprep.subr.bf16.mxu0 %v9717_v23 }
 0x688   :  { %9267 = vmatpush1.bf16.msra.mxu0 %v9266_v51 }
 0x689   :  { %9268 = vmatprep.subr.bf16.mxu0 %v9717_v23 }
 0x68c   :  { %9270 = vmatpush1.bf16.msra.mxu0 %v9269_v18 }
 0x68d   :  { %9271 = vmatprep.subr.bf16.mxu0 %v9717_v23 }
 0x690   :  { %9273 = vmatpush1.bf16.msra.mxu0 %v9272_v55 }
 0x691   :  { %3405 = vmatprep.subr.mxu0 %v9715_v39 }
 0x694   :  { %3406 = vmatpush1.msra.mxu0 %v3365_v34 }
 0x742   :  { %v3221_v49 = vpop.f32.mrb[22].mxu0 }
 0x743   :  { %v3223_v63 = vpop.f32.mrb[23].mxu0  ;;  %v11977_v37 = vadd.f32 %v3265_v31, %v3221_v49 }
 0x744   :  { %v11973_v43 = vadd.f32 %v3269_v29, %v3223_v63 }
 0x745   :  { %v3311_v50 = vmul.f32 %v11977_v37, %v11977_v37 }
 0x746   :  { %v3227_v30 = vpop.f32.mrb[24].mxu0  ;;  %v3312_v44 = vmul.f32 %v11973_v43, %v11973_v43  ;;  %v3295_v53 = vsel %vm3294_vm6, %v11973_v43, 0.0 }
 0x747   :  { %v3229_v52 = vpop.f32.mrb[25].mxu0  ;;  %v11975_v33 = vadd.f32 %v3265_v31, %v3227_v30 }
 0x748   :  { %v11971_v32 = vadd.f32 %v3269_v29, %v3229_v52  ;;  %v3332_v16 = vsel %vm3294_vm6, %v3312_v44, 0.0 }
 0x749   :  { %v3313_v28 = vmul.f32 %v11975_v33, %v11975_v33  ;;  %v3282_v54 = vadd.f32 %v11975_v33, %v11977_v37 }
 0x74a   :  { %v3233_v35 = vpop.f32.mrb[26].mxu0  ;;  %v3314_v25 = vmul.f32 %v11971_v32, %v11971_v32  ;;  %v3296_v45 = vsel %vm3294_vm6, %v11971_v32, 0.0 }
 0x74b   :  { %v3235_v40 = vpop.f32.mrb[27].mxu0  ;;  %v11981_v3 = vadd.f32 %v3265_v31, %v3233_v35  ;;  %v3321_v0 = vadd.f32 %v3313_v28, %v3311_v50  ;;  %v3297_v1 = vadd.f32 %v3296_v45, %v3295_v53 }
 0x74c   :  { %v11983_v41 = vadd.f32 %v3269_v29, %v3235_v40  ;;  %v3333_v58 = vsel %vm3294_vm6, %v3314_v25, 0.0 }
 0x74d   :  { %v3315_v59 = vmul.f32 %v11981_v3, %v11981_v3  ;;  %v3283_v2 = vadd.f32 %v3282_v54, %v11981_v3  ;;  %v3334_v13 = vadd.f32 %v3333_v58, %v3332_v16 }
 0x74e   :  { %v3316_v46 = vmul.f32 %v11983_v41, %v11983_v41  ;;  %v3239_v48 = vpop.f32.mrb[28].mxu0  ;;  %v3298_v60 = vsel %vm3294_vm6, %v11983_v41, 0.0 }
 0x74f   :  { %v11999_v56 = vadd.f32 %v3265_v31, %v3239_v48  ;;  %v3241_v57 = vpop.f32.mrb[29].mxu0  ;;  %v3299_v11 = vadd.f32 %v3298_v60, %v3297_v1  ;;  %v3322_v17 = vadd.f32 %v3321_v0, %v3315_v59 }
 0x750   :  { %v12006_v62 = vadd.f32 %v3269_v29, %v3241_v57  ;;  %v3335_v5 = vsel %vm3294_vm6, %v3316_v46, 0.0 }
 0x751   :  { %v3317_v6 = vmul.f32 %v11999_v56, %v11999_v56  ;;  %v3284_v19 = vadd.f32 %v3283_v2, %v11999_v56  ;;  %v3336_v36 = vadd.f32 %v3335_v5, %v3334_v13  ;;  %v3521_v2 = vld [vmem:[%s14114_s14 + $0x8] sm:$0xff]  ;;  %v3520_v5 = vld [vmem:[%s14114_s14] sm:$0xff]  ;;  %v7792_v13 = vld [vmem:[%s14115_s15 + $0xb0] sm:$0xff] }
 0x752   :  { %v3300_v8 = vsel %vm3294_vm6, %v12006_v62, 0.0  ;;  %v3318_v9 = vmul.f32 %v12006_v62, %v12006_v62  ;;  %v3245_v10 = vpop.f32.mrb[30].mxu0  ;;  %3525 = vmatprep.subr.mxu0 %v3521_v2 }
 0x753   :  { %v12017_v14 = vadd.f32 %v3265_v31, %v3245_v10  ;;  %v3247_v15 = vpop.f32.mrb[31].mxu0  ;;  %v3301_v7 = vadd.f32 %v3300_v8, %v3299_v11  ;;  %v3323_v47 = vadd.f32 %v3322_v17, %v3317_v6  ;;  %v7789_v6 = vld [vmem:[%s14115_s15 + $0x98] sm:$0xff]  ;;  %v7790_v8 = vld [vmem:[%s14115_s15 + $0xa0] sm:$0xff]  ;;  %v7791_v10 = vld [vmem:[%s14115_s15 + $0xa8] sm:$0xff] }
 0x754   :  { %v3337_v20 = vsel %vm3294_vm6, %v3318_v9, 0.0  ;;  %v12021_v24 = vadd.f32 %v3269_v29, %v3247_v15  ;;  %v9329_v9 = vpack.c.bf16 %v7790_v8, %v7789_v6  ;;  %v9332_v11 = vpack.c.bf16 %v7792_v13, %v7791_v10  ;;  %v3772_v6 = vld [vmem:[%s14115_s15 + $0x60] sm:$0xff]  ;;  %v3773_v8 = vld [vmem:[%s14115_s15 + $0x68] sm:$0xff]  ;;  %v7804_v13 = vld [vmem:[%s14115_s15 + $0x110] sm:$0xff] }
 0x755   :  { %v3286_v12 = vsel %vm3285_vm7, %v12017_v14, 0.0  ;;  %v3319_v27 = vmul.f32 %v12017_v14, %v12017_v14  ;;  %v3338_v18 = vadd.f32 %v3337_v20, %v3336_v36  ;;  %v7803_v10 = vld [vmem:[%s14115_s15 + $0x108] sm:$0xff] }
 0x756   :  { %v3287_v51 = vadd.f32 %v3286_v12, %v3284_v19  ;;  %v3303_v61 = vsel %vm3302_vm8, %v12021_v24, 0.0  ;;  %v3320_v4 = vmul.f32 %v12021_v24, %v12021_v24 }
 0x757   :  { %v3324_v21 = vsel %vm3285_vm7, %v3319_v27, 0.0  ;;  %v3304_v26 = vadd.f32 %v3303_v61, %v3301_v7  ;;  %v3760_v61 = vld [vmem:[%s14115_s15] sm:$0xff] }
 0x758   :  { %v3288_v55 = vrot.slane %v3287_v51, 4  ;;  %v3325_v34 = vadd.f32 %v3324_v21, %v3323_v47  ;;  %v3339_v49 = vsel %vm3302_vm8, %v3320_v4, 0.0  ;;  %v3761_v4 = vld [vmem:[%s14115_s15 + $0x8] sm:$0xff]  ;;  %v3762_v21 = vld [vmem:[%s14115_s15 + $0x10] sm:$0xff] }
 0x759   :  { %v3305_v42 = vrot.slane %v3304_v26, 4  ;;  %v3340_v63 = vadd.f32 %v3339_v49, %v3338_v18  ;;  %v9302_v18 = vpack.c.bf16 %v3761_v4, %v3760_v61  ;;  %v7793_v49 = vld [vmem:[%s14115_s15 + $0xb8] sm:$0xff]  ;;  %v3778_v61 = vld [vmem:[%s14115_s15 + $0x90] sm:$0xff] }
 0x75a   :  { %v3289_v29 = vadd.f32 %v3288_v55, %v3287_v51  ;;  %v3326_v30 = vrot.slane %v3325_v34, 4 }
 0x75b   :  { %v3306_v31 = vadd.f32 %v3305_v42, %v3304_v26  ;;  %v3341_v52 = vrot.slane %v3340_v63, 4  ;;  %v3763_v26 = vld [vmem:[%s14115_s15 + $0x18] sm:$0xff]  ;;  %v7794_v42 = vld [vmem:[%s14115_s15 + $0xc0] sm:$0xff] }
 0x75c   :  { %v3290_v35 = vrot.slane %v3289_v29, 2  ;;  %v3327_v40 = vadd.f32 %v3326_v30, %v3325_v34  ;;  %v9305_v34 = vpack.c.bf16 %v3763_v26, %v3762_v21  ;;  %v3765_v30 = vld [vmem:[%s14115_s15 + $0x28] sm:$0xff]  ;;  %v3706_v26 = vld [vmem:[%s14111_s11] sm:$0x3] }
 0x75d   :  { %v3307_v25 = vrot.slane %v3306_v31, 2  ;;  %v3342_v44 = vadd.f32 %v3341_v52, %v3340_v63  ;;  %v9335_v63 = vpack.c.bf16 %v7794_v42, %v7793_v49  ;;  %v7795_v52 = vld [vmem:[%s14115_s15 + $0xc8] sm:$0xff]  ;;  %v12188_v49 = vrot.slane %v3706_v26, %v10921_v22 }
 0x75e   :  { %v3291_v28 = vadd.f32 %v3290_v35, %v3289_v29  ;;  %v3328_v45 = vrot.slane %v3327_v40, 2  ;;  %v3764_v29 = vld [vmem:[%s14115_s15 + $0x20] sm:$0xff]  ;;  %v7796_v35 = vld [vmem:[%s14115_s15 + $0xd0] sm:$0xff]  ;;  %v12191_v42 = vrot.slane %v3706_v26, %v10919_v38 }
 0x75f   :  { %v3308_v46 = vadd.f32 %v3307_v25, %v3306_v31  ;;  %v3343_v48 = vrot.slane %v3342_v44, 2  ;;  %v9308_v31 = vpack.c.bf16 %v3765_v30, %v3764_v29  ;;  %v9338_v25 = vpack.c.bf16 %v7796_v35, %v7795_v52 }
 0x760   :  { %v3292_v50 = vrot.slane %v3291_v28, 1  ;;  %v3329_v53 = vadd.f32 %v3328_v45, %v3327_v40  ;;  %v3766_v40 = vld [vmem:[%s14115_s15 + $0x30] sm:$0xff]  ;;  %v7798_v45 = vld [vmem:[%s14115_s15 + $0xe0] sm:$0xff] }
 0x761   :  { %v3309_v54 = vrot.slane %v3308_v46, 1  ;;  %v3344_v57 = vadd.f32 %v3343_v48, %v3342_v44  ;;  %v3767_v44 = vld [vmem:[%s14115_s15 + $0x38] sm:$0xff]  ;;  %v3768_v48 = vld [vmem:[%s14115_s15 + $0x40] sm:$0xff] }
 0x762   :  { %v3330_v58 = vrot.slane %v3329_v53, 1  ;;  %v3293_v16 = vadd.f32 %v3292_v50, %v3291_v28  ;;  %v7797_v28 = vld [vmem:[%s14115_s15 + $0xd8] sm:$0xff]  ;;  %v3769_v50 = vld [vmem:[%s14115_s15 + $0x48] sm:$0xff] }
 0x763   :  { %v3310_v59 = vadd.f32 %v3309_v54, %v3308_v46  ;;  %v3345_v60 = vrot.slane %v3344_v57, 1  ;;  %v9311_v46 = vpack.c.bf16 %v3767_v44, %v3766_v40  ;;  %v9314_v54 = vpack.c.bf16 %v3769_v50, %v3768_v48 }
 0x764   :  { %v3331_v1 = vadd.f32 %v3330_v58, %v3329_v53  ;;  %v9341_v53 = vpack.c.bf16 %v7798_v45, %v7797_v28  ;;  %v7800_v58 = vld [vmem:[%s14115_s15 + $0xf0] sm:$0xff] }
 0x765   :  { %7780 = vmatprep.mubr.msk.f32.mxu0 %vm3294_vm6, %v3310_v59  ;;  %v3346_v0 = vadd.f32 %v3345_v60, %v3344_v57  ;;  %v7799_v57 = vld [vmem:[%s14115_s15 + $0xe8] sm:$0xff]  ;;  %v3770_v59 = vld [vmem:[%s14115_s15 + $0x50] sm:$0xff]  ;;  %v3771_v60 = vld [vmem:[%s14115_s15 + $0x58] sm:$0xff] }
 0x766   :  { %3434 = vmatmul.mubr.f32.vlgmr.msra.gmra.mrb[32].mxu0 %v3293_v16  ;;  %v9344_v16 = vpack.c.bf16 %v7800_v58, %v7799_v57 }
 0x767   :  { %7781 = vmatprep.mubr.msk.f32.mxu1 %vm3294_vm6, %v3346_v0  ;;  %3589 = vmatprep.mubr.f32.mxu0 %v9715_v39  ;;  %v9317_v0 = vpack.c.bf16 %v3771_v60, %v3770_v59  ;;  %v7846_v59 = vld [vmem:[%s14115_s15 + $0x138] sm:$0xff] }
 0x768   :  { %3509 = vmatmul.mubr.f32.vlgmr.msra.gmra.mrb[48].mxu1 %v3331_v1  ;;  %3526 = vmatpush1.msra.mxu0 %v3520_v5  ;;  %v7801_v1 = vld [vmem:[%s14115_s15 + $0xf8] sm:$0xff] }
 0x769   :  { %3599 = vmatprep.subr.mxu0 %v3521_v2  ;;  %9330 = vmatpush1.bf16.msra.mxu1 %v9329_v9  ;;  %v7802_v2 = vld [vmem:[%s14115_s15 + $0x100] sm:$0xff]  ;;  %v9320_v9 = vpack.c.bf16 %v3773_v8, %v3772_v6 }
 0x76a   :  { %9331 = vmatprep.subr.bf16.mxu1 %v9717_v23 }
 0x76d   :  { %9333 = vmatpush1.bf16.msra.mxu1 %v9332_v11  ;;  %v3774_v11 = vld [vmem:[%s14115_s15 + $0x70] sm:$0xff] }
 0x76e   :  { %9334 = vmatprep.subr.bf16.mxu1 %v9717_v23 }
 0x771   :  { %9336 = vmatpush1.bf16.msra.mxu1 %v9335_v63 }
 0x772   :  { %9337 = vmatprep.subr.bf16.mxu1 %v9717_v23 }
 0x775   :  { %9339 = vmatpush1.bf16.msra.mxu1 %v9338_v25 }
 0x776   :  { %9340 = vmatprep.subr.bf16.mxu1 %v9717_v23 }
 0x779   :  { %9342 = vmatpush1.bf16.msra.mxu1 %v9341_v53 }
 0x77a   :  { %9343 = vmatprep.subr.bf16.mxu1 %v9717_v23 }
 0x77d   :  { %9345 = vmatpush1.bf16.msra.mxu1 %v9344_v16 }
 0x77e   :  { %9346 = vmatprep.subr.bf16.mxu1 %v9717_v23 }
 0x839   :  { %v3435_v15 = vpop.f32.mrb[32].mxu0 }
 0x83a   :  { %v3440_v17 = vmul.f32 0.0013850415, %v3435_v15  ;;  %v3437_v19 = vpop.f32.mrb[33].mxu0  ;;  %v9350_v15 = vpack.c.bf16 %v7804_v13, %v7803_v10 }
 0x83b   :  { %v3510_v20 = vpop.f32.mrb[48].mxu1  ;;  %v7805_v19 = vld [vmem:[%s14115_s15 + $0x118] sm:$0xff] }
 0x83c   :  { %v3515_v36 = vmul.f32 %v3440_v17, %v3440_v17  ;;  %v3514_v7 = vmul.f32 0.0013850415, %v3510_v20  ;;  %v3512_v12 = vpop.f32.mrb[49].mxu1  ;;  %7782 = vmatmul.mubr.msk.f32.vlgmr.msra.gmra.mrb[34].mxu0 %vm562_vm1, %v3440_v17  ;;  %v3775_v17 = vld [vmem:[%s14115_s15 + $0x78] sm:$0xff]  ;;  %v7806_v20 = vld [vmem:[%s14115_s15 + $0x120] sm:$0xff] }
 0x83d   :  { %3600 = vmatpush1.msra.mxu0 %v3520_v5  ;;  %3663 = vmatprep.mubr.f32.mxu0 %v9715_v39  ;;  %v9347_v5 = vpack.c.bf16 %v7802_v2, %v7801_v1  ;;  %v3777_v12 = vld [vmem:[%s14115_s15 + $0x88] sm:$0xff] }
 0x83e   :  { %v3516_v27 = vsub.f32 %v3514_v7, %v3515_v36  ;;  %9301 = vmatprep.subr.bf16.mxu0 %v9717_v23  ;;  %v9323_v36 = vpack.c.bf16 %v3775_v17, %v3774_v11  ;;  %v3776_v7 = vld [vmem:[%s14115_s15 + $0x80] sm:$0xff] }
 0x83f   :  { %9348 = vmatpush1.bf16.msra.mxu1 %v9347_v5  ;;  %v7847_v11 = vld [vmem:[%s14115_s15 + $0x140] sm:$0xff] }
 0x840   :  { %v3517_v47 = vmax.f32 %v3516_v27, 0.0  ;;  %9349 = vmatprep.subr.bf16.mxu1 %v9717_v23  ;;  %v9353_v27 = vpack.c.bf16 %v7806_v20, %v7805_v19 }
 0x842   :  { %v3518_v51 = vadd.f32 1e-05, %v3517_v47  ;;  %v9326_v47 = vpack.c.bf16 %v3777_v12, %v3776_v7 }
 0x843   :  { %9351 = vmatpush1.bf16.msra.mxu1 %v9350_v15  ;;  %v7848_v15 = vld [vmem:[%s14115_s15 + $0x148] sm:$0xff] }
 0x844   :  { %9687 = vrsqrt.f32 %v3518_v51  ;;  %9352 = vmatprep.subr.bf16.mxu1 %v9717_v23  ;;  %v7807_v51 = vld [vmem:[%s14115_s15 + $0x128] sm:$0xff] }
 0x847   :  { %9354 = vmatpush1.bf16.msra.mxu1 %v9353_v27  ;;  %v7849_v27 = vld [vmem:[%s14115_s15 + $0x150] sm:$0xff] }
 0x848   :  { %3950 = vmatprep.subr.mxu1 %v9715_v39 }
 0x84b   :  { %3951 = vmatpush1.msra.mxu1 %v7807_v51 }
 0x84c   :  { %9371 = vmatprep.subr.bf16.mxu1 %v9717_v23 }
 0x84e   :  { %v9688_v55 = vpop.eup %9687 }
 0x84f   :  { %7783 = vmatmul.mubr.msk.f32.vlgmr.msra.gmra.mrb[36].mxu0 %vm562_vm1, %v9688_v55  ;;  %vm5626_vm1 = vcmask 637952  }
 0x850   :  { %9303 = vmatpush1.bf16.msra.mxu0 %v9302_v18 }
 0x851   :  { %9304 = vmatprep.subr.bf16.mxu0 %v9717_v23 }
 0x854   :  { %9306 = vmatpush1.bf16.msra.mxu0 %v9305_v34  ;;  %v3728_v34 = vld [vmem:[%s14112_s12] sm:$0x3] }
 0x855   :  { %9307 = vmatprep.subr.bf16.mxu0 %v9717_v23  ;;  %v12195_v30 = vrot.slane %v3728_v34, %v10921_v22 }
 0x858   :  { %9309 = vmatpush1.bf16.msra.mxu0 %v9308_v31  ;;  %v12198_v31 = vrot.slane %v3728_v34, %v10919_v38  ;;  %v7851_v34 = vld [vmem:[%s14115_s15 + $0x160] sm:$0xff] }
 0x859   :  { %9310 = vmatprep.subr.bf16.mxu0 %v9717_v23 }
 0x85c   :  { %9312 = vmatpush1.bf16.msra.mxu0 %v9311_v46 }
 0x85d   :  { %9313 = vmatprep.subr.bf16.mxu0 %v9717_v23 }
 0x860   :  { %9315 = vmatpush1.bf16.msra.mxu0 %v9314_v54 }
 0x861   :  { %9316 = vmatprep.subr.bf16.mxu0 %v9717_v23 }
 0x864   :  { %9318 = vmatpush1.bf16.msra.mxu0 %v9317_v0 }
 0x865   :  { %9319 = vmatprep.subr.bf16.mxu0 %v9717_v23 }
 0x868   :  { %9321 = vmatpush1.bf16.msra.mxu0 %v9320_v9 }
 0x869   :  { %9322 = vmatprep.subr.bf16.mxu0 %v9717_v23 }
 0x86c   :  { %9324 = vmatpush1.bf16.msra.mxu0 %v9323_v36  ;;  %v9375_v36 = vpack.c.bf16 %v7848_v15, %v7847_v11 }
 0x86d   :  { %9325 = vmatprep.subr.bf16.mxu0 %v9717_v23 }
 0x870   :  { %9327 = vmatpush1.bf16.msra.mxu0 %v9326_v47  ;;  %v7850_v47 = vld [vmem:[%s14115_s15 + $0x158] sm:$0xff] }
 0x871   :  { %3830 = vmatprep.subr.mxu0 %v9715_v39 }
 0x874   :  { %3831 = vmatpush1.msra.mxu0 %v3778_v61 }
 0x90f   :  { %v3591_v4 = vpop.f32.mrb[34].mxu0 }
 0x910   :  { %v3593_v18 = vpop.f32.mrb[35].mxu0  ;;  %v3673_v21 = vrot.slane %v3591_v4, %v10919_v38 }
 0x911   :  { %v3677_v55 = vrot.slane %v3593_v18, %v10919_v38 }
 0x912   :  { %v3678_v63 = vsub.f32 %v11977_v37, %v3673_v21  ;;  %v3680_v52 = vsub.f32 %v11975_v33, %v3673_v21  ;;  %v3682_v44 = vsub.f32 %v11981_v3, %v3673_v21  ;;  %v3684_v28 = vsub.f32 %v11999_v56, %v3673_v21 }
 0x913   :  { %v3679_v35 = vsub.f32 %v11973_v43, %v3677_v55  ;;  %v3681_v37 = vsub.f32 %v11971_v32, %v3677_v55  ;;  %v3683_v45 = vsub.f32 %v11983_v41, %v3677_v55  ;;  %v3685_v22 = vsub.f32 %v12006_v62, %v3677_v55  ;;  %v7845_v62 = vld [vmem:[%s14115_s15 + $0x130] sm:$0xff] }
 0x914   :  { %v3687_v2 = vsub.f32 %v12021_v24, %v3677_v55  ;;  %v3686_v5 = vsub.f32 %v12017_v14, %v3673_v21  ;;  %v9372_v8 = vpack.c.bf16 %v7846_v59, %v7845_v62  ;;  %v9378_v21 = vpack.c.bf16 %v7850_v47, %v7849_v27  ;;  %v7815_v27 = vld [vmem:[%s14116_s16 + $0x60] sm:$0xff]  ;;  %v7816_v47 = vld [vmem:[%s14116_s16 + $0x68] sm:$0xff] }
 0x922   :  { %v3665_v29 = vpop.f32.mrb[36].mxu0 }
 0x923   :  { %v3691_v40 = vrot.slane %v3665_v29, %v10919_v38  ;;  %v3667_v25 = vpop.f32.mrb[37].mxu0 }
 0x924   :  { %v3695_v46 = vrot.slane %v3667_v25, %v10919_v38 }
 0x925   :  { %v3696_v48 = vmul.f32 %v3691_v40, %v3678_v63  ;;  %v3698_v50 = vmul.f32 %v3691_v40, %v3680_v52  ;;  %v3700_v33 = vmul.f32 %v3691_v40, %v3682_v44  ;;  %v3702_v53 = vmul.f32 %v3691_v40, %v3684_v28 }
 0x926   :  { %v3697_v43 = vmul.f32 %v3695_v46, %v3679_v35  ;;  %v3699_v54 = vmul.f32 %v3695_v46, %v3681_v37  ;;  %v3701_v57 = vmul.f32 %v3695_v46, %v3683_v45  ;;  %v3703_v58 = vmul.f32 %v3695_v46, %v3685_v22  ;;  %v7855_v37 = vld [vmem:[%s14115_s15 + $0x180] sm:$0xff]  ;;  %v7856_v45 = vld [vmem:[%s14115_s15 + $0x188] sm:$0xff] }
 0x927   :  { %v3718_v3 = vmul.f32 %v12191_v42, %v3696_v48  ;;  %v3720_v60 = vmul.f32 %v12191_v42, %v3698_v50  ;;  %v3722_v9 = vmul.f32 %v12191_v42, %v3700_v33  ;;  %v3705_v24 = vmul.f32 %v3695_v46, %v3687_v2  ;;  %v7857_v46 = vld [vmem:[%s14115_s15 + $0x190] sm:$0xff]  ;;  %v7858_v48 = vld [vmem:[%s14115_s15 + $0x198] sm:$0xff]  ;;  %v7859_v33 = vld [vmem:[%s14115_s15 + $0x1a0] sm:$0xff] }
 0x928   :  { %v3719_v56 = vmul.f32 %v12188_v49, %v3697_v43  ;;  %v3721_v32 = vmul.f32 %v12188_v49, %v3699_v54  ;;  %v3723_v1 = vmul.f32 %v12188_v49, %v3701_v57  ;;  %v3704_v17 = vmul.f32 %v3691_v40, %v3686_v5  ;;  %v7861_v54 = vld [vmem:[%s14115_s15 + $0x1b0] sm:$0xff]  ;;  %v7862_v57 = vld [vmem:[%s14115_s15 + $0x1b8] sm:$0xff] }
 0x929   :  { %v3740_v41 = vadd.f32 %v12198_v31, %v3718_v3  ;;  %v3742_v13 = vadd.f32 %v12198_v31, %v3720_v60  ;;  %v3725_v20 = vmul.f32 %v12188_v49, %v3703_v58  ;;  %v3744_v12 = vadd.f32 %v12198_v31, %v3722_v9  ;;  %v7863_v3 = vld [vmem:[%s14115_s15 + $0x1c0] sm:$0xff] }
 0x92a   :  { %v3741_v16 = vadd.f32 %v12195_v30, %v3719_v56  ;;  %v3743_v0 = vadd.f32 %v12195_v30, %v3721_v32  ;;  %v3745_v19 = vadd.f32 %v12195_v30, %v3723_v1  ;;  %v3724_v51 = vmul.f32 %v12191_v42, %v3702_v53  ;;  %v7860_v53 = vld [vmem:[%s14115_s15 + $0x1a8] sm:$0xff]  ;;  %v7813_v56 = vld [vmem:[%s14116_s16 + $0x50] sm:$0xff] }
 0x92b   :  { %v12228_v10 = vmax.f32 %v3740_v41, 0.0  ;;  %v12252_v7 = vmax.f32 %v3742_v13, 0.0  ;;  %v3747_v4 = vadd.f32 %v12195_v30, %v3725_v20  ;;  %v3727_v18 = vmul.f32 %v12188_v49, %v3705_v24  ;;  %v7852_v49 = vld [vmem:[%s14115_s15 + $0x168] sm:$0xff] }
 0x92c   :  { %v12225_v6 = vmax.f32 %v3741_v16, 0.0  ;;  %v12241_v14 = vmax.f32 %v3743_v0, 0.0  ;;  %v12262_v61 = vmax.f32 %v3745_v19, 0.0  ;;  %v3754_v26 = vmax.f32 %v3744_v12, 0.0  ;;  %v7814_v12 = vld [vmem:[%s14116_s16 + $0x58] sm:$0xff] }
 0x92d   :  { %v3746_v55 = vadd.f32 %v12198_v31, %v3724_v51  ;;  %v3726_v63 = vmul.f32 %v12191_v42, %v3704_v17  ;;  %v3757_v29 = vmax.f32 %v3747_v4, 0.0  ;;  %v3749_v52 = vadd.f32 %v12195_v30, %v3727_v18  ;;  %v7853_v42 = vld [vmem:[%s14115_s15 + $0x170] sm:$0xff]  ;;  %v7854_v30 = vld [vmem:[%s14115_s15 + $0x178] sm:$0xff]  ;;  %v7819_v4 = vld [vmem:[%s14116_s16 + $0x80] sm:$0xff] }
 0x92e   :  { %7784 = vmatprep.mubr.msk.f32.mxu0 %vm3294_vm6, %v12225_v6  ;;  %7808 = vmatprep.mubr.msk.f32.mxu1 %vm3294_vm6, %v12225_v6  ;;  %v9381_v35 = vpack.c.bf16 %v7852_v49, %v7851_v34  ;;  %v9384_v28 = vpack.c.bf16 %v7854_v30, %v7853_v42  ;;  %v9387_v22 = vpack.c.bf16 %v7856_v45, %v7855_v37  ;;  %v7817_v51 = vld [vmem:[%s14116_s16 + $0x70] sm:$0xff]  ;;  %v7820_v18 = vld [vmem:[%s14116_s16 + $0x88] sm:$0xff]  ;;  %v3888_v42 = vld [vmem:[%s14116_s16 + $0x20] sm:$0xff] }
 0x92f   :  { %3859 = vmatmul.mubr.f32.vlgmr.msra.gmra.mrb[38].mxu0 %v12228_v10  ;;  %3979 = vmatmul.mubr.f32.vlgmr.msra.gmra.mrb[50].mxu1 %v12228_v10  ;;  %v3756_v40 = vmax.f32 %v3746_v55, 0.0  ;;  %v3748_v25 = vadd.f32 %v12198_v31, %v3726_v63  ;;  %v3759_v44 = vmax.f32 %v3749_v52, 0.0  ;;  %v9390_v50 = vpack.c.bf16 %v7858_v48, %v7857_v46  ;;  %v3884_v55 = vld [vmem:[%s14116_s16] sm:$0xff]  ;;  %v3885_v49 = vld [vmem:[%s14116_s16 + $0x8] sm:$0xff]  ;;  %v3891_v45 = vld [vmem:[%s14116_s16 + $0x38] sm:$0xff] }
 0x930   :  { %9373 = vmatpush1.bf16.msra.mxu1 %v9372_v8  ;;  %7785 = vmatprep.mubr.msk.f32.mxu0 %vm3294_vm6, %v12241_v14  ;;  %v9393_v43 = vpack.c.bf16 %v7860_v53, %v7859_v33  ;;  %v9396_v58 = vpack.c.bf16 %v7862_v57, %v7861_v54  ;;  %v3892_v48 = vld [vmem:[%s14116_s16 + $0x40] sm:$0xff]  ;;  %v3893_v33 = vld [vmem:[%s14116_s16 + $0x48] sm:$0x3f]  ;;  %v7871_v57 = vld [vmem:[%s14116_s16 + $0xb0] sm:$0xff] }
 0x931   :  { %7809 = vmatprep.mubr.msk.f32.mxu1 %vm3294_vm6, %v12241_v14  ;;  %9374 = vmatprep.subr.bf16.mxu1 %v9717_v23  ;;  %v3758_v31 = vmax.f32 %v3748_v25, 0.0  ;;  %v7870_v54 = vld [vmem:[%s14116_s16 + $0xa8] sm:$0xff] }
 0x933   :  { %3864 = vmatmul.mubr.f32.gmra.mrb[40].mxu0 %v12252_v7  ;;  %3984 = vmatmul.mubr.f32.gmra.mrb[52].mxu1 %v12252_v7 }
 0x934   :  { %9376 = vmatpush1.bf16.msra.mxu1 %v9375_v36  ;;  %7786 = vmatprep.mubr.msk.f32.mxu0 %vm3294_vm6, %v12262_v61 }
 0x935   :  { %7810 = vmatprep.mubr.msk.f32.mxu1 %vm3294_vm6, %v12262_v61  ;;  %9377 = vmatprep.subr.bf16.mxu1 %v9717_v23 }
 0x937   :  { %3869 = vmatmul.mubr.f32.gmra.mrb[42].mxu0 %v3754_v26  ;;  %3989 = vmatmul.mubr.f32.gmra.mrb[54].mxu1 %v3754_v26 }
 0x938   :  { %9379 = vmatpush1.bf16.msra.mxu1 %v9378_v21  ;;  %7787 = vmatprep.mubr.msk.f32.mxu0 %vm3294_vm6, %v3757_v29  ;;  %v7821_v21 = vld [vmem:[%s14116_s16 + $0x90] sm:$0xff] }
 0x939   :  { %7811 = vmatprep.mubr.msk.f32.mxu1 %vm3294_vm6, %v3757_v29  ;;  %9380 = vmatprep.subr.bf16.mxu1 %v9717_v23 }
 0x93b   :  { %3874 = vmatmul.mubr.f32.gmra.mrb[44].mxu0 %v3756_v40  ;;  %3994 = vmatmul.mubr.f32.gmra.mrb[56].mxu1 %v3756_v40 }
 0x93c   :  { %9382 = vmatpush1.bf16.msra.mxu1 %v9381_v35  ;;  %7788 = vmatprep.mubr.msk.f32.mxu0 %vm3294_vm6, %v3759_v44  ;;  %v3887_v35 = vld [vmem:[%s14116_s16 + $0x18] sm:$0xff] }
 0x93d   :  { %7812 = vmatprep.mubr.msk.f32.mxu1 %vm3294_vm6, %v3759_v44  ;;  %9383 = vmatprep.subr.bf16.mxu1 %v9717_v23 }
 0x93f   :  { %3879 = vmatmul.mubr.f32.gmra.mrb[46].mxu0 %v3758_v31  ;;  %3999 = vmatmul.mubr.f32.gmra.mrb[58].mxu1 %v3758_v31 }
 0x940   :  { %9385 = vmatpush1.bf16.msra.mxu1 %v9384_v28  ;;  %7864 = vmatprep.mubr.msk.f32.mxu1 %vm3294_vm6, %v12225_v6 }
 0x941   :  { %9386 = vmatprep.subr.bf16.mxu1 %v9717_v23  ;;  %8486 = vmatprep.mubr.msk.f32.mxu0 %vm4015_vm9, %v7813_v56  ;;  %v7874_v56 = vld [vmem:[%s14116_s16 + $0xc8] sm:$0xff] }
 0x944   :  { %9388 = vmatpush1.bf16.msra.mxu1 %v9387_v22 }
 0x945   :  { %9389 = vmatprep.subr.bf16.mxu1 %v9717_v23 }
 0x948   :  { %9391 = vmatpush1.bf16.msra.mxu1 %v9390_v50 }
 0x949   :  { %9392 = vmatprep.subr.bf16.mxu1 %v9717_v23 }
 0x94c   :  { %9394 = vmatpush1.bf16.msra.mxu1 %v9393_v43  ;;  %v7869_v43 = vld [vmem:[%s14116_s16 + $0xa0] sm:$0xff] }
 0x94d   :  { %9395 = vmatprep.subr.bf16.mxu1 %v9717_v23 }
 0x950   :  { %9397 = vmatpush1.bf16.msra.mxu1 %v9396_v58  ;;  %v7872_v58 = vld [vmem:[%s14116_s16 + $0xb8] sm:$0xff] }
 0x951   :  { %4368 = vmatprep.subr.mxu1 %v9715_v39 }
 0x954   :  { %4369 = vmatpush1.msra.mxu1 %v7863_v3  ;;  %v7873_v3 = vld [vmem:[%s14116_s16 + $0xc0] sm:$0xff] }
 0x955   :  { %4397 = vmatmul.mubr.f32.vlgmr.msra.gmra.mrb[60].mxu1 %v12228_v10  ;;  %9406 = vmatprep.subr.bf16.mxu1 %v9717_v23 }
 0x956   :  { %7865 = vmatprep.mubr.msk.f32.mxu1 %vm3294_vm6, %v12241_v14 }
 0x959   :  { %4402 = vmatmul.mubr.f32.gmra.mrb[62].mxu1 %v12252_v7 }
 0x95a   :  { %7866 = vmatprep.mubr.msk.f32.mxu1 %vm3294_vm6, %v12262_v61  ;;  %v7818_v61 = vld [vmem:[%s14116_s16 + $0x78] sm:$0xff] }
 0x95d   :  { %4407 = vmatmul.mubr.f32.gmra.mrb[64].mxu1 %v3754_v26  ;;  %v7822_v26 = vld [vmem:[%s14116_s16 + $0x98] sm:$0x3f] }
 0x95e   :  { %7867 = vmatprep.mubr.msk.f32.mxu1 %vm3294_vm6, %v3757_v29  ;;  %v3886_v29 = vld [vmem:[%s14116_s16 + $0x10] sm:$0xff] }
 0x961   :  { %4412 = vmatmul.mubr.f32.gmra.mrb[66].mxu1 %v3756_v40 }
 0x962   :  { %7868 = vmatprep.mubr.msk.f32.mxu1 %vm3294_vm6, %v3759_v44  ;;  %v3889_v44 = vld [vmem:[%s14116_s16 + $0x28] sm:$0xff] }
 0x965   :  { %4417 = vmatmul.mubr.f32.gmra.mrb[68].mxu1 %v3758_v31  ;;  %v3890_v31 = vld [vmem:[%s14116_s16 + $0x30] sm:$0xff] }
 0x966   :  { %8581 = vmatprep.mubr.msk.f32.mxu1 %vm9716_vm0, %v9715_v39 }
 0xa02   :  { %v3860_v32 = vpop.f32.mrb[38].mxu0  ;;  %v3980_v41 = vpop.f32.mrb[50].mxu1 }
 0xa03   :  { %v3862_v62 = vpop.f32.mrb[39].mxu0  ;;  %v3982_v59 = vpop.f32.mrb[51].mxu1 }
 0xa04   :  { %v7877_v62 = vld [vmem:[%s14116_s16 + $0xe0] sm:$0xff]  ;;  %v7878_v59 = vld [vmem:[%s14116_s16 + $0xe8] sm:$0x3f] }
 0xa06   :  { %v3865_v60 = vpop.f32.mrb[40].mxu0  ;;  %v3985_v16 = vpop.f32.mrb[52].mxu1 }
 0xa07   :  { %v9363_v0 = vpack.c.bf16 %v3865_v60, %v3860_v32  ;;  %v9355_v1 = vpack.c.bf16 %v3985_v16, %v3980_v41  ;;  %v3867_v2 = vpop.f32.mrb[41].mxu0  ;;  %v3987_v5 = vpop.f32.mrb[53].mxu1  ;;  %v7875_v32 = vld [vmem:[%s14116_s16 + $0xd0] sm:$0xff]  ;;  %v7876_v41 = vld [vmem:[%s14116_s16 + $0xd8] sm:$0xff]  ;;  %v4670_v60 = vld [vmem:[%s14120_s20] sm:$0xff] }
 0xa08   :  { %v4671_v16 = vld [vmem:[%s14120_s20 + $0x8] sm:$0xff]  ;;  %v4673_v2 = vld [vmem:[%s14120_s20 + $0x18] sm:$0xff] }
 0xa09   :  { %9356 = vmatprep.subr.bf16.mxu0 %v9355_v1 }
 0xa0a   :  { %v3870_v6 = vpop.f32.mrb[42].mxu0  ;;  %v3990_v8 = vpop.f32.mrb[54].mxu1  ;;  %9358 = vmatpush3.bf16.msra.mxu0 %v9355_v1  ;;  %v4672_v1 = vld [vmem:[%s14120_s20 + $0x10] sm:$0xff] }
 0xa0b   :  { %v3872_v9 = vpop.f32.mrb[43].mxu0  ;;  %v3992_v10 = vpop.f32.mrb[55].mxu1  ;;  %v9410_v5 = vpack.c.bf16 %v4673_v2, %v4672_v1 }
 0xa0c   :  { %v4676_v10 = vld [vmem:[%s14120_s20 + $0x30] sm:$0xff] }
 0xa0e   :  { %v3875_v13 = vpop.f32.mrb[44].mxu0  ;;  %v3995_v11 = vpop.f32.mrb[56].mxu1 }
 0xa0f   :  { %v9367_v15 = vpack.c.bf16 %v3875_v13, %v3870_v6  ;;  %v9359_v24 = vpack.c.bf16 %v3995_v11, %v3990_v8  ;;  %v3877_v17 = vpop.f32.mrb[45].mxu0  ;;  %v3997_v14 = vpop.f32.mrb[57].mxu1  ;;  %v4674_v6 = vld [vmem:[%s14120_s20 + $0x20] sm:$0xff]  ;;  %v4675_v8 = vld [vmem:[%s14120_s20 + $0x28] sm:$0xff]  ;;  %v4677_v13 = vld [vmem:[%s14120_s20 + $0x38] sm:$0xff] }
 0xa10   :  { %v9413_v9 = vpack.c.bf16 %v4675_v8, %v4674_v6  ;;  %v9416_v11 = vpack.c.bf16 %v4677_v13, %v4676_v10  ;;  %v4680_v14 = vld [vmem:[%s14120_s20 + $0x50] sm:$0xff] }
 0xa11   :  { %9360 = vmatprep.subr.bf16.mxu0 %v9359_v24 }
 0xa12   :  { %v3880_v19 = vpop.f32.mrb[46].mxu0  ;;  %v4000_v20 = vpop.f32.mrb[58].mxu1  ;;  %9362 = vmatpush3.bf16.msra.mxu0 %v9359_v24  ;;  %v4679_v24 = vld [vmem:[%s14120_s20 + $0x48] sm:$0xff] }
 0xa13   :  { %v3882_v36 = vpop.f32.mrb[47].mxu0  ;;  %v4002_v7 = vpop.f32.mrb[59].mxu1  ;;  %8484 = vmatprep.subr.msk.mxu0 %vm3285_vm7, %v4000_v20 }
 0xa14   :  { %v4682_v36 = vld [vmem:[%s14120_s20 + $0x60] sm:$0xff]  ;;  %v4683_v7 = vld [vmem:[%s14120_s20 + $0x68] sm:$0xff] }
 0xa16   :  { %8485 = vmatpush3.msk.msra.mxu0 %vm3285_vm7, %v4000_v20 }
 0xa17   :  { %8487 = vmatmul.mubr.msk.f32.vlgmr.msra.gmra.mrb[48].mxu0 %vm4015_vm9, %v7814_v12  ;;  %9364 = vmatprep.subr.bf16.mxu0 %v9363_v0  ;;  %v9425_v12 = vpack.c.bf16 %v4683_v7, %v4682_v36 }
 0xa18   :  { %9366 = vmatpush3.bf16.msra.mxu0 %v9363_v0  ;;  %8489 = vmatprep.mubr.msk.f32.mxu0 %vm4015_vm9, %v7815_v27  ;;  %v9407_v0 = vpack.c.bf16 %v4671_v16, %v4670_v60  ;;  %v4684_v27 = vld [vmem:[%s14120_s20 + $0x70] sm:$0x1f] }
 0xa19   :  { %9368 = vmatprep.subr.bf16.mxu0 %v9367_v15 }
 0xa1a   :  { %9408 = vmatpush3.bf16.msra.mxu1 %v9407_v0 }
 0xa1b   :  { %8490 = vmatmul.mubr.msk.f32.gmra.mrb[50].mxu0 %vm4015_vm9, %v7816_v47  ;;  %9409 = vmatprep.subr.bf16.mxu1 %v9717_v23 }
 0xa1c   :  { %9370 = vmatpush3.bf16.msra.mxu0 %v9367_v15  ;;  %8492 = vmatprep.mubr.msk.f32.mxu0 %vm4015_vm9, %v7817_v51  ;;  %v4678_v15 = vld [vmem:[%s14120_s20 + $0x40] sm:$0xff] }
 0xa1d   :  { %8509 = vmatprep.subr.msk.mxu0 %vm3285_vm7, %v3880_v19  ;;  %v9419_v17 = vpack.c.bf16 %v4679_v24, %v4678_v15 }
 0xa1e   :  { %9411 = vmatpush3.bf16.msra.mxu1 %v9410_v5 }
 0xa1f   :  { %8493 = vmatmul.mubr.msk.f32.gmra.mrb[52].mxu0 %vm4015_vm9, %v7818_v61  ;;  %9412 = vmatprep.subr.bf16.mxu1 %v9717_v23 }
 0xa20   :  { %8510 = vmatpush3.msk.msra.mxu0 %vm3285_vm7, %v3880_v19  ;;  %8495 = vmatprep.mubr.msk.f32.mxu0 %vm4015_vm9, %v7819_v4  ;;  %v4681_v19 = vld [vmem:[%s14120_s20 + $0x58] sm:$0xff] }
 0xa21   :  { %v9422_v20 = vpack.c.bf16 %v4681_v19, %v4680_v14 }
 0xa22   :  { %9414 = vmatpush3.bf16.msra.mxu1 %v9413_v9 }
 0xa23   :  { %8496 = vmatmul.mubr.msk.f32.gmra.mrb[54].mxu0 %vm4015_vm9, %v7820_v18  ;;  %9415 = vmatprep.subr.bf16.mxu1 %v9717_v23 }
 0xa24   :  { %8498 = vmatprep.mubr.msk.f32.mxu0 %vm4015_vm9, %v7821_v21 }
 0xa26   :  { %9417 = vmatpush3.bf16.msra.mxu1 %v9416_v11 }
 0xa27   :  { %8499 = vmatmul.mubr.msk.f32.gmra.mrb[56].mxu0 %vm4015_vm9, %v7822_v26  ;;  %9418 = vmatprep.subr.bf16.mxu1 %v9717_v23 }
 0xa28   :  { %v4398_v34 = vpop.f32.mrb[60].mxu1  ;;  %8511 = vmatprep.mubr.msk.f32.mxu0 %vm4015_vm9, %v3884_v55 }
 0xa29   :  { %v4400_v63 = vpop.f32.mrb[61].mxu1 }
 0xa2a   :  { %9420 = vmatpush3.bf16.msra.mxu1 %v9419_v17 }
 0xa2b   :  { %8512 = vmatmul.mubr.msk.f32.vlgmr.msra.gmra.mrb[48].mxu0 %vm4015_vm9, %v3885_v49  ;;  %9421 = vmatprep.subr.bf16.mxu1 %v9717_v23 }
 0xa2c   :  { %v4403_v52 = vpop.f32.mrb[62].mxu1  ;;  %8514 = vmatprep.mubr.msk.f32.mxu0 %vm4015_vm9, %v3886_v29 }
 0xa2d   :  { %v9398_v40 = vpack.c.bf16 %v4403_v52, %v4398_v34  ;;  %v4405_v25 = vpop.f32.mrb[63].mxu1 }
 0xa2e   :  { %9423 = vmatpush3.bf16.msra.mxu1 %v9422_v20 }
 0xa2f   :  { %9399 = vmatprep.subr.bf16.mxu0 %v9398_v40  ;;  %8515 = vmatmul.mubr.msk.f32.gmra.mrb[50].mxu0 %vm4015_vm9, %v3887_v35 }
 0xa30   :  { %v4408_v30 = vpop.f32.mrb[64].mxu1  ;;  %9401 = vmatpush3.bf16.msra.mxu0 %v9398_v40  ;;  %8517 = vmatprep.mubr.msk.f32.mxu0 %vm4015_vm9, %v3888_v42 }
 0xa31   :  { %v4410_v28 = vpop.f32.mrb[65].mxu1  ;;  %9424 = vmatprep.subr.bf16.mxu1 %v9717_v23 }
 0xa32   :  { %9426 = vmatpush3.bf16.msra.mxu1 %v9425_v12 }
 0xa33   :  { %8518 = vmatmul.mubr.msk.f32.gmra.mrb[52].mxu0 %vm4015_vm9, %v3889_v44  ;;  %8579 = vmatprep.subr.mxu1 %v9715_v39 }
 0xa34   :  { %v4413_v37 = vpop.f32.mrb[66].mxu1  ;;  %8520 = vmatprep.mubr.msk.f32.mxu0 %vm4015_vm9, %v3890_v31 }
 0xa35   :  { %v9402_v22 = vpack.c.bf16 %v4413_v37, %v4408_v30  ;;  %v4415_v46 = vpop.f32.mrb[67].mxu1 }
 0xa36   :  { %8580 = vmatpush3.msk.msra.mxu1 %vm4688_vm10, %v4684_v27 }
 0xa37   :  { %9403 = vmatprep.subr.bf16.mxu0 %v9402_v22  ;;  %8521 = vmatmul.mubr.msk.f32.gmra.mrb[54].mxu0 %vm4015_vm9, %v3891_v45 }
 0xa38   :  { %v4418_v50 = vpop.f32.mrb[68].mxu1  ;;  %9405 = vmatpush3.bf16.msra.mxu0 %v9402_v22  ;;  %8523 = vmatprep.mubr.msk.f32.mxu0 %vm4015_vm9, %v3892_v48 }
 0xa39   :  { %v4420_v53 = vpop.f32.mrb[69].mxu1  ;;  %8534 = vmatprep.subr.msk.mxu0 %vm3285_vm7, %v4418_v50  ;;  %8617 = vmatprep.subr.mxu1 %v9715_v39 }
 0xa3b   :  { %8524 = vmatmul.mubr.msk.f32.gmra.mrb[56].mxu0 %vm4015_vm9, %v3893_v33 }
 0xa3c   :  { %8535 = vmatpush3.msk.msra.mxu0 %vm3285_vm7, %v4418_v50  ;;  %8536 = vmatprep.mubr.msk.f32.mxu0 %vm4015_vm9, %v7869_v43 }
 0xa3d   :  { %9427 = vmatprep.subr.bf16.mxu0 %v9717_v23 }
 0xa3f   :  { %8537 = vmatmul.mubr.msk.f32.vlgmr.msra.gmra.mrb[48].mxu0 %vm4015_vm9, %v7870_v54 }
 0xa40   :  { %8539 = vmatprep.mubr.msk.f32.mxu0 %vm4015_vm9, %v7871_v57  ;;  %9429 = vmatpush3.bf16.msra.mxu0 %v9407_v0 }
 0xa41   :  { %9430 = vmatprep.subr.bf16.mxu0 %v9717_v23 }
 0xa43   :  { %8540 = vmatmul.mubr.msk.f32.gmra.mrb[50].mxu0 %vm4015_vm9, %v7872_v58 }
 0xa44   :  { %8542 = vmatprep.mubr.msk.f32.mxu0 %vm4015_vm9, %v7873_v3  ;;  %9432 = vmatpush3.bf16.msra.mxu0 %v9410_v5 }
 0xa45   :  { %9433 = vmatprep.subr.bf16.mxu0 %v9717_v23 }
 0xa47   :  { %8543 = vmatmul.mubr.msk.f32.gmra.mrb[52].mxu0 %vm4015_vm9, %v7874_v56 }
 0xa48   :  { %8545 = vmatprep.mubr.msk.f32.mxu0 %vm4015_vm9, %v7875_v32  ;;  %9435 = vmatpush3.bf16.msra.mxu0 %v9413_v9 }
 0xa49   :  { %9436 = vmatprep.subr.bf16.mxu0 %v9717_v23 }
 0xa4b   :  { %8546 = vmatmul.mubr.msk.f32.gmra.mrb[54].mxu0 %vm4015_vm9, %v7876_v41 }
 0xa4c   :  { %8548 = vmatprep.mubr.msk.f32.mxu0 %vm4015_vm9, %v7877_v62  ;;  %9438 = vmatpush3.bf16.msra.mxu0 %v9416_v11 }
 0xa4d   :  { %9439 = vmatprep.subr.bf16.mxu0 %v9717_v23 }
 0xa4f   :  { %8549 = vmatmul.mubr.msk.f32.gmra.mrb[56].mxu0 %vm4015_vm9, %v7878_v59 }
 0xa50   :  { %8614 = vmatprep.mubr.msk.f32.mxu0 %vm9716_vm0, %v9715_v39  ;;  %9441 = vmatpush3.bf16.msra.mxu0 %v9419_v17 }
 0xa51   :  { %9442 = vmatprep.subr.bf16.mxu0 %v9717_v23 }
 0xa54   :  { %9444 = vmatpush3.bf16.msra.mxu0 %v9422_v20 }
 0xa55   :  { %9445 = vmatprep.subr.bf16.mxu0 %v9717_v23  ;;  %v7890_v23 = vld [vmem:[%s14117_s17] ss:$0 sm:$0xff] }
 0xa58   :  { %9447 = vmatpush3.bf16.msra.mxu0 %v9425_v12 }
 0xa59   :  { %8612 = vmatprep.subr.mxu0 %v9715_v39 }
 0xa5c   :  { %8613 = vmatpush3.msk.msra.mxu0 %vm4688_vm10, %v4684_v27 }
 0xb12   :  { %v8538_v47 = vpop.f32.mrb[48].mxu0 }
 0xb13   :  { %v12534_v51 = vadd.f32 %v8538_v47, %v7890_v23  ;;  %v4532_v61 = vpop.f32.mrb[49].mxu0 }
 0xb14   :  { %v12536_v4 = vadd.f32 %v7890_v23, %v4532_v61 }
 0xb15   :  { %v4636_v18 = vmul.f32 %v12534_v51, %v12534_v51  ;;  %v4610_v21 = vsel %vm4608_vm11, %v12534_v51, 0.0 }
 0xb16   :  { %v4609_v26 = vsel %vm4608_vm11, %v12536_v4, 0.0  ;;  %v4635_v55 = vmul.f32 %v12536_v4, %v12536_v4  ;;  %v8541_v34 = vpop.f32.mrb[50].mxu0 }
 0xb17   :  { %v12546_v49 = vadd.f32 %v8541_v34, %v7890_v23  ;;  %v4542_v63 = vpop.f32.mrb[51].mxu0  ;;  %v4646_v29 = vsel %vm4608_vm11, %v4636_v18, 0.0  ;;  %v4611_v40 = vadd.f32 %v4610_v21, %v4609_v26 }
 0xb18   :  { %v4645_v52 = vsel %vm4608_vm11, %v4635_v55, 0.0  ;;  %v12550_v35 = vadd.f32 %v7890_v23, %v4542_v63 }
 0xb19   :  { %v4638_v25 = vmul.f32 %v12546_v49, %v12546_v49  ;;  %v4647_v28 = vadd.f32 %v4646_v29, %v4645_v52  ;;  %v4614_v22 = vsel %vm4608_vm11, %v12546_v49, 0.0 }
 0xb1a   :  { %v4612_v42 = vsel %vm4608_vm11, %v12550_v35, 0.0  ;;  %v4637_v30 = vmul.f32 %v12550_v35, %v12550_v35  ;;  %v8544_v44 = vpop.f32.mrb[52].mxu0 }
 0xb1b   :  { %v4613_v31 = vadd.f32 %v4612_v42, %v4611_v40  ;;  %v12558_v37 = vadd.f32 %v8544_v44, %v7890_v23  ;;  %v4552_v45 = vpop.f32.mrb[53].mxu0  ;;  %v4650_v53 = vsel %vm4608_vm11, %v4638_v25, 0.0 }
 0xb1c   :  { %v4648_v46 = vsel %vm4608_vm11, %v4637_v30, 0.0  ;;  %v12563_v48 = vadd.f32 %v7890_v23, %v4552_v45 }
 0xb1d   :  { %v4649_v50 = vadd.f32 %v4648_v46, %v4647_v28  ;;  %v4615_v33 = vadd.f32 %v4614_v22, %v4613_v31  ;;  %v4640_v43 = vmul.f32 %v12558_v37, %v12558_v37  ;;  %v4618_v62 = vsel %vm4608_vm11, %v12558_v37, 0.0  ;;  %v4843_v22 = vld [vmem:[%s14121_s21] sm:$0x7]  ;;  %v5058_v46 = vld [vmem:[%s14122_s22 + $0x8] sm:$0xff] }
 0xb1e   :  { %v4616_v54 = vsel %vm4608_vm11, %v12563_v48, 0.0  ;;  %v4639_v57 = vmul.f32 %v12563_v48, %v12563_v48  ;;  %v8547_v58 = vpop.f32.mrb[54].mxu0 }
 0xb1f   :  { %v4617_v3 = vadd.f32 %v4616_v54, %v4615_v33  ;;  %v4651_v56 = vadd.f32 %v4650_v53, %v4649_v50  ;;  %v12572_v32 = vadd.f32 %v8547_v58, %v7890_v23  ;;  %v4562_v41 = vpop.f32.mrb[55].mxu0  ;;  %v4654_v1 = vsel %vm4608_vm11, %v4640_v43, 0.0  ;;  %v5064_v50 = vld [vmem:[%s14122_s22 + $0x38] sm:$0xff]  ;;  %v5057_v53 = vld [vmem:[%s14122_s22] sm:$0xff]  ;;  %v5063_v43 = vld [vmem:[%s14122_s22 + $0x30] sm:$0xff] }
 0xb20   :  { %v4652_v59 = vsel %vm4608_vm11, %v4639_v57, 0.0  ;;  %v12577_v60 = vadd.f32 %v7890_v23, %v4562_v41  ;;  %v9448_v33 = vpack.c.bf16 %v5064_v50, %v5058_v46  ;;  %v9450_v54 = vpack.c.bf16 %v5063_v43, %v5057_v53  ;;  %v5060_v57 = vld [vmem:[%s14122_s22 + $0x18] sm:$0xff]  ;;  %v5066_v58 = vld [vmem:[%s14122_s22 + $0x48] sm:$0xff]  ;;  %v5093_v46 = vld [vmem:[%s14122_s22 + $0x120] sm:$0xff] }
 0xb21   :  { %v4653_v16 = vadd.f32 %v4652_v59, %v4651_v56  ;;  %v4619_v0 = vadd.f32 %v4618_v62, %v4617_v3  ;;  %v4642_v2 = vmul.f32 %v12572_v32, %v12572_v32  ;;  %v4622_v15 = vsel %vm4608_vm11, %v12572_v32, 0.0  ;;  %v5095_v53 = vld [vmem:[%s14122_s22 + $0x130] sm:$0xff]  ;;  %v5101_v43 = vld [vmem:[%s14122_s22 + $0x160] sm:$0xff] }
 0xb22   :  { %v4620_v5 = vsel %vm4608_vm11, %v12577_v60, 0.0  ;;  %v4641_v6 = vmul.f32 %v12577_v60, %v12577_v60  ;;  %v8550_v8 = vpop.f32.mrb[56].mxu0  ;;  %9449 = vmatprep.subr.bf16.mxu0 %v9448_v33  ;;  %v9476_v62 = vpack.c.bf16 %v5066_v58, %v5060_v57  ;;  %v5099_v33 = vld [vmem:[%s14122_s22 + $0x150] sm:$0xff]  ;;  %v5106_v57 = vld [vmem:[%s14122_s22 + $0x188] sm:$0xff]  ;;  %v5112_v58 = vld [vmem:[%s14122_s22 + $0x1b8] sm:$0xff] }
 0xb23   :  { %v4621_v9 = vadd.f32 %v4620_v5, %v4619_v0  ;;  %v4655_v10 = vadd.f32 %v4654_v1, %v4653_v16  ;;  %v12586_v13 = vadd.f32 %v8550_v8, %v7890_v23  ;;  %v4572_v11 = vpop.f32.mrb[57].mxu0  ;;  %v4658_v20 = vsel %vm4608_vm11, %v4642_v2, 0.0  ;;  %v5059_v8 = vld [vmem:[%s14122_s22 + $0x10] sm:$0xff] }
 0xb24   :  { %v4656_v24 = vsel %vm4608_vm11, %v4641_v6, 0.0  ;;  %v12591_v17 = vadd.f32 %v7890_v23, %v4572_v11 }
 0xb25   :  { %v4657_v14 = vadd.f32 %v4656_v24, %v4655_v10  ;;  %v4623_v19 = vadd.f32 %v4622_v15, %v4621_v9  ;;  %v4644_v36 = vmul.f32 %v12586_v13, %v12586_v13  ;;  %v4627_v61 = vsel %vm4626_vm12, %v12586_v13, 0.0  ;;  %v5065_v9 = vld [vmem:[%s14122_s22 + $0x40] sm:$0xff]  ;;  %v5070_v15 = vld [vmem:[%s14122_s22 + $0x68] sm:$0xff]  ;;  %v5076_v24 = vld [vmem:[%s14122_s22 + $0x98] sm:$0xff] }
 0xb26   :  { %v4624_v7 = vsel %vm4608_vm11, %v12591_v17, 0.0  ;;  %v4643_v12 = vmul.f32 %v12591_v17, %v12591_v17  ;;  %v9478_v10 = vpack.c.bf16 %v5065_v9, %v5059_v8  ;;  %v5120_v8 = vld [vmem:[%s14122_s22 + $0x1f8] sm:$0xff]  ;;  %v5126_v9 = vld [vmem:[%s14122_s22 + $0x228] sm:$0xff] }
 0xb27   :  { %v4625_v27 = vadd.f32 %v4624_v7, %v4623_v19  ;;  %v4659_v47 = vadd.f32 %v4658_v20, %v4657_v14  ;;  %v4662_v26 = vsel %vm4626_vm12, %v4644_v36, 0.0  ;;  %v5072_v14 = vld [vmem:[%s14122_s22 + $0x78] sm:$0xff]  ;;  %v9452_v19 = vpack.c.bf16 %v5076_v24, %v5070_v15  ;;  %v5078_v20 = vld [vmem:[%s14122_s22 + $0xa8] sm:$0xff]  ;;  %v5069_v36 = vld [vmem:[%s14122_s22 + $0x60] sm:$0xff] }
 0xb28   :  { %v4660_v23 = vsel %vm4608_vm11, %v4643_v12, 0.0  ;;  %v5075_v7 = vld [vmem:[%s14122_s22 + $0x90] sm:$0xff]  ;;  %v9480_v12 = vpack.c.bf16 %v5078_v20, %v5072_v14  ;;  %v9496_v24 = vpack.c.bf16 %v5126_v9, %v5120_v8  ;;  %v5117_v14 = vld [vmem:[%s14122_s22 + $0x1e0] sm:$0xff] }
 0xb29   :  { %v4628_v18 = vadd.f32 %v4627_v61, %v4625_v27  ;;  %v4661_v21 = vadd.f32 %v4660_v23, %v4659_v47  ;;  %v9454_v27 = vpack.c.bf16 %v5075_v7, %v5069_v36  ;;  %v5071_v47 = vld [vmem:[%s14122_s22 + $0x70] sm:$0xff]  ;;  %v5077_v61 = vld [vmem:[%s14122_s22 + $0xa0] sm:$0xff]  ;;  %v5082_v23 = vld [vmem:[%s14122_s22 + $0xc8] sm:$0xff] }
 0xb2a   :  { %v5119_v20 = vld [vmem:[%s14122_s22 + $0x1f0] sm:$0xff]  ;;  %v5125_v7 = vld [vmem:[%s14122_s22 + $0x220] sm:$0xff] }
 0xb2b   :  { %v4629_v55 = vrot.slane %v4628_v18, 4  ;;  %v4663_v34 = vadd.f32 %v4662_v26, %v4661_v21  ;;  %v5088_v21 = vld [vmem:[%s14122_s22 + $0xf8] sm:$0xff] }
 0xb2c   :  { %v5084_v26 = vld [vmem:[%s14122_s22 + $0xd8] sm:$0xff] }
 0xb2d   :  { %v4630_v63 = vadd.f32 %v4629_v55, %v4628_v18  ;;  %v4664_v29 = vrot.slane %v4663_v34, 4  ;;  %v9482_v18 = vpack.c.bf16 %v5077_v61, %v5071_v47  ;;  %v5090_v55 = vld [vmem:[%s14122_s22 + $0x108] sm:$0xff]  ;;  %v9498_v47 = vpack.c.bf16 %v5125_v7, %v5119_v20 }
 0xb2f   :  { %v4631_v52 = vrot.slane %v4630_v63, 2  ;;  %v4665_v40 = vadd.f32 %v4664_v29, %v4663_v34  ;;  %v9456_v34 = vpack.c.bf16 %v5088_v21, %v5082_v23  ;;  %v5081_v29 = vld [vmem:[%s14122_s22 + $0xc0] sm:$0xff]  ;;  %v5132_v23 = vld [vmem:[%s14122_s22 + $0x258] sm:$0xff] }
 0xb30   :  { %v5129_v21 = vld [vmem:[%s14122_s22 + $0x240] sm:$0xff] }
 0xb31   :  { %v4632_v25 = vadd.f32 %v4631_v52, %v4630_v63  ;;  %v4666_v42 = vrot.slane %v4665_v40, 2  ;;  %v9484_v63 = vpack.c.bf16 %v5090_v55, %v5084_v26  ;;  %v5087_v52 = vld [vmem:[%s14122_s22 + $0xf0] sm:$0xff] }
 0xb32   :  { %v5135_v55 = vld [vmem:[%s14122_s22 + $0x270] sm:$0xff] }
 0xb33   :  { %v4633_v30 = vrot.slane %v4632_v25, 1  ;;  %v4667_v44 = vadd.f32 %v4666_v42, %v4665_v40  ;;  %v5083_v40 = vld [vmem:[%s14122_s22 + $0xd0] sm:$0xff]  ;;  %v5089_v42 = vld [vmem:[%s14122_s22 + $0x100] sm:$0xff] }
 0xb35   :  { %v4634_v28 = vadd.f32 %v4633_v30, %v4632_v25  ;;  %v4668_v31 = vrot.slane %v4667_v44, 1  ;;  %v9458_v25 = vpack.c.bf16 %v5087_v52, %v5081_v29  ;;  %v5094_v30 = vld [vmem:[%s14122_s22 + $0x128] sm:$0xff]  ;;  %v9474_v29 = vpack.c.bf16 %v5135_v55, %v5129_v21 }
 0xb37   :  { %v4669_v45 = vadd.f32 %v4668_v31, %v4667_v44  ;;  %8582 = vmatmul.mubr.msk.f32.vlgmr.msra.gmra.mrb[70].mxu1 %vm4608_vm11, %v4634_v28  ;;  %v5100_v44 = vld [vmem:[%s14122_s22 + $0x158] sm:$0xff]  ;;  %v9486_v28 = vpack.c.bf16 %v5089_v42, %v5083_v40  ;;  %v5142_v40 = vld [vmem:[%s14122_s22 + $0x2a8] sm:$0x1f]  ;;  %v5141_v42 = vld [vmem:[%s14122_s22 + $0x2a0] sm:$0x1f] }
 0xb38   :  { %8619 = vmatprep.mubr.msk.f32.mxu1 %vm9716_vm0, %v9715_v39  ;;  %8618 = vmatpush3.msk.msra.mxu1 %vm4848_vm13, %v4843_v22  ;;  %v9460_v31 = vpack.c.bf16 %v5100_v44, %v5094_v30  ;;  %v5143_v30 = vld [vmem:[%s14122_s22 + $0x2b0] sm:$0x1f]  ;;  %v5062_v44 = vld [vmem:[%s14122_s22 + $0x28] sm:$0xff] }
 0xb39   :  { %8615 = vmatmul.mubr.msk.f32.vlgmr.msra.gmra.mrb[58].mxu0 %vm4608_vm11, %v4669_v45  ;;  %8622 = vmatprep.subr.mxu1 %v9715_v39  ;;  %v5096_v45 = vld [vmem:[%s14122_s22 + $0x138] sm:$0xff] }
 0xb3a   :  { %5259 = vmatprep.mubr.f32.mxu0 %v9715_v39  ;;  %9451 = vmatpush1.bf16.msra.mxu0 %v9450_v54  ;;  %v9462_v54 = vpack.c.bf16 %v5099_v33, %v5093_v46 }
 0xb3b   :  { %9453 = vmatprep.subr.bf16.mxu0 %v9452_v19  ;;  %v5123_v19 = vld [vmem:[%s14122_s22 + $0x210] sm:$0xff] }
 0xb3c   :  { %v9470_v36 = vpack.c.bf16 %v5123_v19, %v5117_v14  ;;  %v5079_v14 = vld [vmem:[%s14122_s22 + $0xb0] sm:$0xff] }
 0xb3e   :  { %9455 = vmatpush1.bf16.msra.mxu0 %v9454_v27  ;;  %v5136_v27 = vld [vmem:[%s14122_s22 + $0x278] sm:$0xff] }
 0xb3f   :  { %9457 = vmatprep.subr.bf16.mxu0 %v9456_v34  ;;  %v5131_v34 = vld [vmem:[%s14122_s22 + $0x250] sm:$0xff] }
 0xb42   :  { %9459 = vmatpush1.bf16.msra.mxu0 %v9458_v25  ;;  %v5144_v25 = vld [vmem:[%s14122_s22 + $0x2b8] sm:$0x1f] }
 0xb43   :  { %9461 = vmatprep.subr.bf16.mxu0 %v9460_v31 }
 0xb46   :  { %9463 = vmatpush1.bf16.msra.mxu0 %v9462_v54 }
 0xc0a   :  { %v4758_v3 = vpop.f32.mrb[70].mxu1 }
 0xc0b   :  { %v4763_v56 = vmul.f32 0.0003287311, %v4758_v3  ;;  %v8583_v41 = vpop.f32.mrb[71].mxu1  ;;  %v5108_v3 = vld [vmem:[%s14122_s22 + $0x198] sm:$0xff] }
 0xc0c   :  { %v4833_v59 = vpop.f32.mrb[58].mxu0  ;;  %v9464_v41 = vpack.c.bf16 %v5112_v58, %v5106_v57 }
 0xc0d   :  { %v4838_v16 = vmul.f32 %v4763_v56, %v4763_v56  ;;  %v4837_v0 = vmul.f32 0.0003287311, %v4833_v59  ;;  %v8616_v1 = vpop.f32.mrb[59].mxu0  ;;  %8620 = vmatmul.mubr.msk.f32.vlgmr.msra.gmra.mrb[72].mxu1 %vm4844_vm14, %v4763_v56  ;;  %v9490_v56 = vpack.c.bf16 %v5101_v43, %v5095_v53  ;;  %v5105_v59 = vld [vmem:[%s14122_s22 + $0x180] sm:$0xff] }
 0xc0e   :  { %8623 = vmatpush3.msk.msra.mxu1 %vm4848_vm13, %v4843_v22  ;;  %8624 = vmatprep.mubr.msk.f32.mxu1 %vm9716_vm0, %v9715_v39  ;;  %v5102_v22 = vld [vmem:[%s14122_s22 + $0x168] sm:$0xff]  ;;  %v5107_v1 = vld [vmem:[%s14122_s22 + $0x190] sm:$0xff]  ;;  %vm13093_vm0 = vmpackc.low %vm3285_vm7, %vm9718_vm15 }
 0xc0f   :  { %v4839_v2 = vsub.f32 %v4837_v0, %v4838_v16  ;;  %9477 = vmatprep.subr.bf16.mxu1 %v9476_v62  ;;  %v9488_v50 = vpack.c.bf16 %v5102_v22, %v5096_v45  ;;  %v5114_v62 = vld [vmem:[%s14122_s22 + $0x1c8] sm:$0xff]  ;;  %v5111_v16 = vld [vmem:[%s14122_s22 + $0x1b0] sm:$0xff]  ;;  %9465 = vmatprep.subr.bf16.mxu0 %v9464_v41 }
 0xc10   :  { %v9492_v0 = vpack.c.bf16 %v5114_v62, %v5108_v3  ;;  %v12817_v3 = vld [vmem:[%s14118_s18] ss:$0 sm:$0xff] }
 0xc11   :  { %v4840_v5 = vmax.f32 %v4839_v2, 0.0  ;;  %v5113_v2 = vld [vmem:[%s14122_s22 + $0x1c0] sm:$0xff] }
 0xc13   :  { %v4841_v6 = vadd.f32 1e-05, %v4840_v5  ;;  %v5118_v5 = vld [vmem:[%s14122_s22 + $0x1e8] sm:$0xff] }
 0xc15   :  { %9689 = vrsqrt.f32 %v4841_v6  ;;  %v5124_v6 = vld [vmem:[%s14122_s22 + $0x218] sm:$0xff] }
 0xc16   :  { %v9468_v15 = vpack.c.bf16 %v5124_v6, %v5118_v5  ;;  %v5080_v5 = vld [vmem:[%s14122_s22 + $0xb8] sm:$0xff] }
 0xc1f   :  { %v9690_v11 = vpop.eup %9689 }
 0xc20   :  { %8625 = vmatmul.mubr.msk.f32.vlgmr.msra.gmra.mrb[74].mxu1 %vm4844_vm14, %v9690_v11  ;;  %v9494_v11 = vpack.c.bf16 %v5113_v2, %v5107_v1  ;;  %v5074_v2 = vld [vmem:[%s14122_s22 + $0x88] sm:$0xff] }
 0xc21   :  { %9479 = vmatpush1.bf16.msra.mxu1 %v9478_v10  ;;  %5384 = vmatprep.mubr.f32.mxu1 %v9715_v39  ;;  %v9466_v10 = vpack.c.bf16 %v5111_v16, %v5105_v59 }
 0xc22   :  { %9481 = vmatprep.subr.bf16.mxu1 %v9480_v12  ;;  %v5130_v12 = vld [vmem:[%s14122_s22 + $0x248] sm:$0xff] }
 0xc23   :  { %9467 = vmatpush1.bf16.msra.mxu0 %v9466_v10  ;;  %v9472_v61 = vpack.c.bf16 %v5136_v27, %v5130_v12 }
 0xc24   :  { %9469 = vmatprep.subr.bf16.mxu0 %v9468_v15  ;;  %v9508_v15 = vpack.c.bf16 %v5080_v5, %v5074_v2 }
 0xc25   :  { %9483 = vmatpush1.bf16.msra.mxu1 %v9482_v18  ;;  %v5138_v18 = vld [vmem:[%s14122_s22 + $0x288] sm:$0xff] }
 0xc26   :  { %9485 = vmatprep.subr.bf16.mxu1 %v9484_v63  ;;  %v9500_v26 = vpack.c.bf16 %v5138_v18, %v5132_v23  ;;  %v5137_v63 = vld [vmem:[%s14122_s22 + $0x280] sm:$0xff]  ;;  %v5098_v23 = vld [vmem:[%s14122_s22 + $0x148] sm:$0xff]  ;;  %v5104_v18 = vld [vmem:[%s14122_s22 + $0x178] sm:$0xff] }
 0xc27   :  { %9471 = vmatpush1.bf16.msra.mxu0 %v9470_v36  ;;  %v9502_v52 = vpack.c.bf16 %v5137_v63, %v5131_v34  ;;  %v9516_v34 = vpack.c.bf16 %v5104_v18, %v5098_v23  ;;  %v5097_v63 = vld [vmem:[%s14122_s22 + $0x140] sm:$0xff] }
 0xc28   :  { %9473 = vmatprep.subr.bf16.mxu0 %v9472_v61  ;;  %v5091_v61 = vld [vmem:[%s14122_s22 + $0x110] sm:$0xff] }
 0xc29   :  { %9487 = vmatpush1.bf16.msra.mxu1 %v9486_v28  ;;  %v5068_v28 = vld [vmem:[%s14122_s22 + $0x58] sm:$0xff] }
 0xc2a   :  { %9489 = vmatprep.subr.bf16.mxu1 %v9488_v50  ;;  %v9504_v31 = vpack.c.bf16 %v5068_v28, %v5062_v44  ;;  %v5109_v28 = vld [vmem:[%s14122_s22 + $0x1a0] sm:$0xff] }
 0xc2b   :  { %9475 = vmatpush1.bf16.msra.mxu0 %v9474_v29  ;;  %v5103_v29 = vld [vmem:[%s14122_s22 + $0x170] sm:$0xff] }
 0xc2c   :  { %7901 = vmatprep.subr.msk.mxu0 %vm4688_vm10, %v5142_v40  ;;  %v5116_v40 = vld [vmem:[%s14122_s22 + $0x1d8] sm:$0xff] }
 0xc2d   :  { %9491 = vmatpush1.bf16.msra.mxu1 %v9490_v56 }
 0xc2e   :  { %9493 = vmatprep.subr.bf16.mxu1 %v9492_v0 }
 0xc2f   :  { %7902 = vmatpush1.msk.msra.mxu0 %vm4688_vm10, %v5141_v42 }
 0xc30   :  { %9505 = vmatprep.subr.bf16.mxu0 %v9504_v31  ;;  %v5115_v31 = vld [vmem:[%s14122_s22 + $0x1d0] sm:$0xff] }
 0xc31   :  { %9495 = vmatpush1.bf16.msra.mxu1 %v9494_v11 }
 0xc32   :  { %9497 = vmatprep.subr.bf16.mxu1 %v9496_v24  ;;  %v5073_v24 = vld [vmem:[%s14122_s22 + $0x80] sm:$0xff] }
 0xc33   :  { %v9510_v12 = vpack.c.bf16 %v5079_v14, %v5073_v24 }
 0xc35   :  { %9499 = vmatpush1.bf16.msra.mxu1 %v9498_v47  ;;  %v5085_v47 = vld [vmem:[%s14122_s22 + $0xe0] sm:$0xff] }
 0xc36   :  { %9501 = vmatprep.subr.bf16.mxu1 %v9500_v26  ;;  %v9514_v55 = vpack.c.bf16 %v5091_v61, %v5085_v47 }
 0xc39   :  { %9503 = vmatpush1.bf16.msra.mxu1 %v9502_v52  ;;  %v5110_v52 = vld [vmem:[%s14122_s22 + $0x1a8] sm:$0xff] }
 0xc3a   :  { %7913 = vmatprep.subr.msk.mxu1 %vm4688_vm10, %v5144_v25  ;;  %v9520_v44 = vpack.c.bf16 %v5116_v40, %v5110_v52 }
 0xc3d   :  { %7914 = vmatpush1.msk.msra.mxu1 %vm4688_vm10, %v5143_v30  ;;  %v9518_v30 = vpack.c.bf16 %v5103_v29, %v5097_v63 }
 0xce0   :  { %v4918_v45 = vpop.f32.mrb[72].mxu1 }
 0xce1   :  { %v8621_v22 = vpop.f32.mrb[73].mxu1  ;;  %v4998_v46 = vrot.slane %v4918_v45, %v10919_v38  ;;  %v5122_v45 = vld [vmem:[%s14122_s22 + $0x208] sm:$0xff] }
 0xce2   :  { %v5128_v22 = vld [vmem:[%s14122_s22 + $0x238] sm:$0xff] }
 0xce3   :  { %v4999_v33 = vsub.f32 %v12536_v4, %v4998_v46  ;;  %v5000_v54 = vsub.f32 %v12534_v51, %v4998_v46  ;;  %v5001_v57 = vsub.f32 %v12550_v35, %v4998_v46  ;;  %v5002_v58 = vsub.f32 %v12546_v49, %v4998_v46  ;;  %v5061_v49 = vld [vmem:[%s14122_s22 + $0x20] sm:$0xff]  ;;  %v5067_v35 = vld [vmem:[%s14122_s22 + $0x50] sm:$0xff] }
 0xce4   :  { %v5003_v56 = vsub.f32 %v12563_v48, %v4998_v46  ;;  %v5004_v41 = vsub.f32 %v12558_v37, %v4998_v46  ;;  %v5005_v4 = vsub.f32 %v12577_v60, %v4998_v46  ;;  %v12832_v37 = vld [vmem:[%s14119_s19] ss:$0 sm:$0xff]  ;;  %v9506_v6 = vpack.c.bf16 %v5067_v35, %v5061_v49 }
 0xce5   :  { %v5007_v10 = vsub.f32 %v12591_v17, %v4998_v46  ;;  %v5008_v11 = vsub.f32 %v12586_v13, %v4998_v46  ;;  %v5086_v17 = vld [vmem:[%s14122_s22 + $0xe8] sm:$0xff]  ;;  %v5092_v13 = vld [vmem:[%s14122_s22 + $0x118] sm:$0xff] }
 0xce6   :  { %v9512_v27 = vpack.c.bf16 %v5092_v13, %v5086_v17 }
 0xcf3   :  { %v4991_v50 = vpop.f32.mrb[74].mxu1 }
 0xcf4   :  { %v5012_v53 = vrot.slane %v4991_v50, %v10919_v38  ;;  %v8626_v43 = vpop.f32.mrb[75].mxu1  ;;  %v5006_v38 = vsub.f32 %v12572_v32, %v4998_v46 }
 0xcf5   :  { %v5121_v43 = vld [vmem:[%s14122_s22 + $0x200] sm:$0xff] }
 0xcf6   :  { %v5013_v62 = vmul.f32 %v5012_v53, %v4999_v33  ;;  %v5014_v59 = vmul.f32 %v5012_v53, %v5000_v54  ;;  %v5015_v51 = vmul.f32 %v5012_v53, %v5001_v57  ;;  %v5016_v16 = vmul.f32 %v5012_v53, %v5002_v58  ;;  %v5127_v54 = vld [vmem:[%s14122_s22 + $0x230] sm:$0xff]  ;;  %v5134_v57 = vld [vmem:[%s14122_s22 + $0x268] sm:$0xff]  ;;  %v5140_v58 = vld [vmem:[%s14122_s22 + $0x298] sm:$0xff] }
 0xcf7   :  { %v5017_v48 = vmul.f32 %v5012_v53, %v5003_v56  ;;  %v12834_v60 = vmul.f32 %v5012_v53, %v5004_v41  ;;  %v12836_v32 = vmul.f32 %v5012_v53, %v5005_v4  ;;  %v12838_v0 = vmul.f32 %v5012_v53, %v5006_v38 }
 0xcf8   :  { %v5030_v1 = vmul.f32 %v12817_v3, %v5013_v62  ;;  %v5031_v9 = vmul.f32 %v12817_v3, %v5014_v59  ;;  %v12869_v19 = vmul.f32 %v5012_v53, %v5007_v10  ;;  %v12871_v20 = vmul.f32 %v5012_v53, %v5008_v11  ;;  %v5133_v62 = vld [vmem:[%s14122_s22 + $0x260] sm:$0xff]  ;;  %v5139_v59 = vld [vmem:[%s14122_s22 + $0x290] sm:$0xff] }
 0xcf9   :  { %v5032_v7 = vmul.f32 %v12817_v3, %v5015_v51  ;;  %v5033_v26 = vmul.f32 %v12817_v3, %v5016_v16  ;;  %v5034_v42 = vmul.f32 %v12817_v3, %v5017_v48  ;;  %v5035_v50 = vmul.f32 %v12817_v3, %v12834_v60  ;;  %v5146_v16 = vld [vmem:[%s14122_s22 + $0x2c8] sm:$0x1f] }
 0xcfa   :  { %v12848_v8 = vadd.f32 %v12832_v37, %v5030_v1  ;;  %v12876_v36 = vadd.f32 %v12832_v37, %v5031_v9  ;;  %v9522_v33 = vpack.c.bf16 %v5115_v31, %v5109_v28  ;;  %v9524_v53 = vpack.c.bf16 %v5128_v22, %v5122_v45 }
 0xcfb   :  { %v12898_v21 = vadd.f32 %v12832_v37, %v5032_v7  ;;  %v12920_v25 = vadd.f32 %v12832_v37, %v5033_v26  ;;  %v12942_v46 = vadd.f32 %v12832_v37, %v5034_v42  ;;  %v5052_v56 = vadd.f32 %v12832_v37, %v5035_v50 }
 0xcfc   :  { %7903 = vmatmul.mubr.msk.f32.vlgmr.msra.gmra.mrb[60].mxu0 %vm4608_vm11, %v12848_v8  ;;  %7915 = vmatmul.mubr.msk.f32.vlgmr.msra.gmra.mrb[76].mxu1 %vm4608_vm11, %v12848_v8  ;;  %v5036_v41 = vmul.f32 %v12817_v3, %v12836_v32  ;;  %v9526_v4 = vpack.c.bf16 %v5127_v54, %v5121_v43  ;;  %v9528_v38 = vpack.c.bf16 %v5140_v58, %v5134_v57  ;;  %v5145_v32 = vld [vmem:[%s14122_s22 + $0x2c0] sm:$0x1f] }
 0xcfd   :  { %5265 = vmatprep.mubr.f32.mxu0 %v9715_v39  ;;  %5390 = vmatprep.mubr.f32.mxu1 %v9715_v39  ;;  %v5037_v49 = vmul.f32 %v12817_v3, %v12838_v0  ;;  %v9530_v35 = vpack.c.bf16 %v5139_v59, %v5133_v62  ;;  %v5038_v60 = vmul.f32 %v12817_v3, %v12869_v19 }
 0xcfe   :  { %9507 = vmatpush1.bf16.msra.mxu0 %v9506_v6  ;;  %v5053_v51 = vadd.f32 %v12832_v37, %v5036_v41  ;;  %v5039_v1 = vmul.f32 %v12817_v3, %v12871_v20 }
 0xcff   :  { %9509 = vmatprep.subr.bf16.mxu0 %v9508_v15  ;;  %v5054_v48 = vadd.f32 %v12832_v37, %v5037_v49  ;;  %v5055_v0 = vadd.f32 %v12832_v37, %v5038_v60  ;;  %v13378_v60 = vld [vmem:[%s14123_s23 + $0x70] sm:$0xff] }
 0xd00   :  { %7904 = vmatmul.mubr.msk.f32.gmra.mrb[62].mxu0 %vm4608_vm11, %v12876_v36  ;;  %7916 = vmatmul.mubr.msk.f32.gmra.mrb[78].mxu1 %vm4608_vm11, %v12876_v36  ;;  %v5056_v2 = vadd.f32 %v12832_v37, %v5039_v1 }
 0xd01   :  { %5271 = vmatprep.mubr.f32.mxu0 %v9715_v39  ;;  %5396 = vmatprep.mubr.f32.mxu1 %v9715_v39 }
 0xd02   :  { %9511 = vmatpush1.bf16.msra.mxu0 %v9510_v12 }
 0xd03   :  { %9513 = vmatprep.subr.bf16.mxu0 %v9512_v27 }
 0xd04   :  { %7905 = vmatmul.mubr.msk.f32.gmra.mrb[64].mxu0 %vm4608_vm11, %v12898_v21  ;;  %7917 = vmatmul.mubr.msk.f32.gmra.mrb[80].mxu1 %vm4608_vm11, %v12898_v21 }
 0xd05   :  { %5277 = vmatprep.mubr.f32.mxu0 %v9715_v39  ;;  %5402 = vmatprep.mubr.f32.mxu1 %v9715_v39 }
 0xd06   :  { %9515 = vmatpush1.bf16.msra.mxu0 %v9514_v55 }
 0xd07   :  { %9517 = vmatprep.subr.bf16.mxu0 %v9516_v34 }
 0xd08   :  { %7906 = vmatmul.mubr.msk.f32.gmra.mrb[66].mxu0 %vm4608_vm11, %v12920_v25  ;;  %7918 = vmatmul.mubr.msk.f32.gmra.mrb[82].mxu1 %vm4608_vm11, %v12920_v25 }
 0xd09   :  { %5283 = vmatprep.mubr.f32.mxu0 %v9715_v39  ;;  %5408 = vmatprep.mubr.f32.mxu1 %v9715_v39 }
 0xd0a   :  { %9519 = vmatpush1.bf16.msra.mxu0 %v9518_v30 }
 0xd0b   :  { %9521 = vmatprep.subr.bf16.mxu0 %v9520_v44 }
 0xd0c   :  { %7907 = vmatmul.mubr.msk.f32.gmra.mrb[68].mxu0 %vm4608_vm11, %v12942_v46  ;;  %7919 = vmatmul.mubr.msk.f32.gmra.mrb[84].mxu1 %vm4608_vm11, %v12942_v46 }
 0xd0d   :  { %5289 = vmatprep.mubr.f32.mxu0 %v9715_v39  ;;  %5414 = vmatprep.mubr.f32.mxu1 %v9715_v39 }
 0xd0e   :  { %9523 = vmatpush1.bf16.msra.mxu0 %v9522_v33 }
 0xd0f   :  { %9525 = vmatprep.subr.bf16.mxu0 %v9524_v53 }
 0xd10   :  { %7908 = vmatmul.mubr.msk.f32.gmra.mrb[70].mxu0 %vm4608_vm11, %v5052_v56  ;;  %7920 = vmatmul.mubr.msk.f32.gmra.mrb[86].mxu1 %vm4608_vm11, %v5052_v56 }
 0xd11   :  { %5295 = vmatprep.mubr.f32.mxu0 %v9715_v39  ;;  %5420 = vmatprep.mubr.f32.mxu1 %v9715_v39 }
 0xd12   :  { %9527 = vmatpush1.bf16.msra.mxu0 %v9526_v4 }
 0xd13   :  { %9529 = vmatprep.subr.bf16.mxu0 %v9528_v38 }
 0xd14   :  { %7909 = vmatmul.mubr.msk.f32.gmra.mrb[72].mxu0 %vm4608_vm11, %v5053_v51  ;;  %7921 = vmatmul.mubr.msk.f32.gmra.mrb[88].mxu1 %vm4608_vm11, %v5053_v51 }
 0xd15   :  { %5301 = vmatprep.mubr.f32.mxu0 %v9715_v39  ;;  %5426 = vmatprep.mubr.f32.mxu1 %v9715_v39 }
 0xd16   :  { %9531 = vmatpush1.bf16.msra.mxu0 %v9530_v35 }
 0xd17   :  { %7925 = vmatprep.subr.msk.mxu0 %vm4688_vm10, %v5146_v16 }
 0xd18   :  { %7910 = vmatmul.mubr.msk.f32.gmra.mrb[74].mxu0 %vm4608_vm11, %v5054_v48  ;;  %7922 = vmatmul.mubr.msk.f32.gmra.mrb[90].mxu1 %vm4608_vm11, %v5054_v48 }
 0xd19   :  { %5307 = vmatprep.mubr.f32.mxu0 %v9715_v39  ;;  %5432 = vmatprep.mubr.f32.mxu1 %v9715_v39 }
 0xd1a   :  { %7926 = vmatpush1.msk.msra.mxu0 %vm4688_vm10, %v5145_v32 }
 0xd1c   :  { %7911 = vmatmul.mubr.msk.f32.gmra.mrb[76].mxu0 %vm4608_vm11, %v5055_v0  ;;  %7923 = vmatmul.mubr.msk.f32.gmra.mrb[92].mxu1 %vm4608_vm11, %v5055_v0 }
 0xd1d   :  { %5313 = vmatprep.mubr.f32.mxu0 %v9715_v39  ;;  %5438 = vmatprep.mubr.f32.mxu1 %v9715_v39 }
 0xd20   :  { %7912 = vmatmul.mubr.msk.f32.gmra.mrb[78].mxu0 %vm4608_vm11, %v5056_v2  ;;  %7924 = vmatmul.mubr.msk.f32.gmra.mrb[94].mxu1 %vm4608_vm11, %v5056_v2 }
 0xd21   :  { %5509 = vmatprep.mubr.f32.mxu0 %v9715_v39  ;;  %6015 = vmatprep.mubr.f32.mxu1 %v9715_v39 }
 0xd24   :  { %7927 = vmatmul.mubr.msk.f32.vlgmr.msra.gmra.mrb[80].mxu0 %vm4608_vm11, %v12848_v8 }
 0xd25   :  { %5515 = vmatprep.mubr.f32.mxu0 %v9715_v39 }
 0xd28   :  { %7928 = vmatmul.mubr.msk.f32.gmra.mrb[82].mxu0 %vm4608_vm11, %v12876_v36 }
 0xd29   :  { %5521 = vmatprep.mubr.f32.mxu0 %v9715_v39 }
 0xd2c   :  { %7929 = vmatmul.mubr.msk.f32.gmra.mrb[84].mxu0 %vm4608_vm11, %v12898_v21 }
 0xd2d   :  { %5527 = vmatprep.mubr.f32.mxu0 %v9715_v39 }
 0xd30   :  { %7930 = vmatmul.mubr.msk.f32.gmra.mrb[86].mxu0 %vm4608_vm11, %v12920_v25 }
 0xd31   :  { %5533 = vmatprep.mubr.f32.mxu0 %v9715_v39 }
 0xd34   :  { %7931 = vmatmul.mubr.msk.f32.gmra.mrb[88].mxu0 %vm4608_vm11, %v12942_v46 }
 0xd35   :  { %5539 = vmatprep.mubr.f32.mxu0 %v9715_v39 }
 0xd38   :  { %7932 = vmatmul.mubr.msk.f32.gmra.mrb[90].mxu0 %vm4608_vm11, %v5052_v56 }
 0xd39   :  { %5545 = vmatprep.mubr.f32.mxu0 %v9715_v39 }
 0xd3c   :  { %7933 = vmatmul.mubr.msk.f32.gmra.mrb[92].mxu0 %vm4608_vm11, %v5053_v51 }
 0xd3d   :  { %5551 = vmatprep.mubr.f32.mxu0 %v9715_v39 }
 0xd40   :  { %7934 = vmatmul.mubr.msk.f32.gmra.mrb[94].mxu0 %vm4608_vm11, %v5054_v48 }
 0xd41   :  { %5557 = vmatprep.mubr.f32.mxu0 %v9715_v39 }
 0xd44   :  { %7935 = vmatmul.mubr.msk.f32.gmra.mrb[96].mxu0 %vm4608_vm11, %v5055_v0 }
 0xd45   :  { %5563 = vmatprep.mubr.f32.mxu0 %v9715_v39 }
 0xd48   :  { %7936 = vmatmul.mubr.msk.f32.gmra.mrb[98].mxu0 %vm4608_vm11, %v5056_v2 }
 0xd49   :  { %5877 = vmatprep.mubr.f32.mxu0 %v9715_v39 }
 0xdcf   :  { %v5261_v3 = vpop.f32.mrb[60].mxu0  ;;  %v13036_v37 = vpop.f32.mrb[76].mxu1 }
 0xdd0   :  { %v5263_v5 = vpop.f32.mrb[61].mxu0  ;;  %v13038_v6 = vpop.f32.mrb[77].mxu1 }
 0xdd3   :  { %v5267_v8 = vpop.f32.mrb[62].mxu0  ;;  %v13040_v9 = vpop.f32.mrb[78].mxu1 }
 0xdd4   :  { %v9534_v10 = vpack.c.bf16 %v5267_v8, %v5261_v3  ;;  %v9556_v11 = vpack.c.bf16 %v13040_v9, %v13036_v37  ;;  %v5269_v15 = vpop.f32.mrb[63].mxu0  ;;  %v13044_v24 = vpop.f32.mrb[79].mxu1  ;;  %v13109_v3 = vld [vmem:[%s14123_s23] sm:$0xff]  ;;  %v13141_v37 = vld [vmem:[%s14123_s23 + $0x8] sm:$0xff] }
 0xdd5   :  { %v9532_v14 = vpack.c.bf16 %v5269_v15, %v5263_v5  ;;  %v9554_v17 = vpack.c.bf16 %v13044_v24, %v13038_v6  ;;  %v13114_v5 = vld [vmem:[%s14123_s23 + $0xb8] sm:$0xff]  ;;  %v13130_v6 = vld [vmem:[%s14123_s23 + $0xc0] sm:$0xff] }
 0xdd7   :  { %v5273_v13 = vpop.f32.mrb[64].mxu0  ;;  %v13048_v19 = vpop.f32.mrb[80].mxu1  ;;  %9533 = vmatprep.subr.bf16.mxu0 %v9532_v14  ;;  %9598 = vmatprep.subr.bf16.mxu1 %v9532_v14 }
 0xdd8   :  { %v5275_v20 = vpop.f32.mrb[65].mxu0  ;;  %v13050_v36 = vpop.f32.mrb[81].mxu1  ;;  %9535 = vmatpush1.bf16.msra.mxu0 %v9534_v10  ;;  %9603 = vmatpush1.bf16.msra.mxu1 %v9534_v10 }
 0xddb   :  { %v5279_v7 = vpop.f32.mrb[66].mxu0  ;;  %v13052_v12 = vpop.f32.mrb[82].mxu1 }
 0xddc   :  { %v9538_v27 = vpack.c.bf16 %v5279_v7, %v5273_v13  ;;  %v9560_v47 = vpack.c.bf16 %v13052_v12, %v13048_v19  ;;  %v5281_v61 = vpop.f32.mrb[67].mxu0  ;;  %v13056_v23 = vpop.f32.mrb[83].mxu1  ;;  %v13163_v13 = vld [vmem:[%s14123_s23 + $0x10] sm:$0xff] }
 0xddd   :  { %v9536_v18 = vpack.c.bf16 %v5281_v61, %v5275_v20  ;;  %v9558_v21 = vpack.c.bf16 %v13056_v23, %v13050_v36  ;;  %v13172_v36 = vld [vmem:[%s14123_s23 + $0xd0] sm:$0xff]  ;;  %v13189_v61 = vld [vmem:[%s14123_s23 + $0x18] sm:$0xff] }
 0xddf   :  { %v5285_v26 = vpop.f32.mrb[68].mxu0  ;;  %v13060_v55 = vpop.f32.mrb[84].mxu1  ;;  %9537 = vmatprep.subr.bf16.mxu0 %v9536_v18  ;;  %9599 = vmatprep.subr.bf16.mxu1 %v9536_v18 }
 0xde0   :  { %v5287_v34 = vpop.f32.mrb[69].mxu0  ;;  %v13062_v63 = vpop.f32.mrb[85].mxu1  ;;  %9539 = vmatpush1.bf16.msra.mxu0 %v9538_v27  ;;  %9604 = vmatpush1.bf16.msra.mxu1 %v9538_v27 }
 0xde3   :  { %v5291_v29 = vpop.f32.mrb[70].mxu0  ;;  %v13064_v52 = vpop.f32.mrb[86].mxu1 }
 0xde4   :  { %v9542_v40 = vpack.c.bf16 %v5291_v29, %v5285_v26  ;;  %v9564_v25 = vpack.c.bf16 %v13064_v52, %v13060_v55  ;;  %v5293_v42 = vpop.f32.mrb[71].mxu0  ;;  %v13068_v30 = vpop.f32.mrb[87].mxu1  ;;  %v13208_v26 = vld [vmem:[%s14123_s23 + $0xe0] sm:$0xff]  ;;  %v13222_v52 = vld [vmem:[%s14123_s23 + $0xe8] sm:$0xff] }
 0xde5   :  { %v9540_v44 = vpack.c.bf16 %v5293_v42, %v5287_v34  ;;  %v9562_v28 = vpack.c.bf16 %v13068_v30, %v13062_v63  ;;  %v13214_v34 = vld [vmem:[%s14123_s23 + $0x20] sm:$0xff] }
 0xde7   :  { %v5297_v31 = vpop.f32.mrb[72].mxu0  ;;  %v13072_v45 = vpop.f32.mrb[88].mxu1  ;;  %9541 = vmatprep.subr.bf16.mxu0 %v9540_v44  ;;  %9600 = vmatprep.subr.bf16.mxu1 %v9540_v44  ;;  %v13238_v44 = vld [vmem:[%s14123_s23 + $0xf0] sm:$0xff] }
 0xde8   :  { %v5299_v22 = vpop.f32.mrb[73].mxu0  ;;  %v13074_v46 = vpop.f32.mrb[89].mxu1  ;;  %9543 = vmatpush1.bf16.msra.mxu0 %v9542_v40  ;;  %9605 = vmatpush1.bf16.msra.mxu1 %v9542_v40  ;;  %v13230_v40 = vld [vmem:[%s14123_s23 + $0x28] sm:$0xff] }
 0xdeb   :  { %v5303_v50 = vpop.f32.mrb[74].mxu0  ;;  %v13076_v33 = vpop.f32.mrb[90].mxu1 }
 0xdec   :  { %v9546_v53 = vpack.c.bf16 %v5303_v50, %v5297_v31  ;;  %v9568_v43 = vpack.c.bf16 %v13076_v33, %v13072_v45  ;;  %v5305_v54 = vpop.f32.mrb[75].mxu0  ;;  %v13080_v57 = vpop.f32.mrb[91].mxu1  ;;  %v13246_v31 = vld [vmem:[%s14123_s23 + $0x30] sm:$0xff]  ;;  %v13262_v50 = vld [vmem:[%s14123_s23 + $0x38] sm:$0xff] }
 0xded   :  { %v9544_v58 = vpack.c.bf16 %v5305_v54, %v5299_v22  ;;  %v9566_v56 = vpack.c.bf16 %v13080_v57, %v13074_v46  ;;  %v13254_v46 = vld [vmem:[%s14123_s23 + $0xf8] sm:$0xff]  ;;  %v13270_v54 = vld [vmem:[%s14123_s23 + $0x100] sm:$0xff] }
 0xdef   :  { %v5309_v41 = vpop.f32.mrb[76].mxu0  ;;  %v13084_v4 = vpop.f32.mrb[92].mxu1  ;;  %9545 = vmatprep.subr.bf16.mxu0 %v9544_v58  ;;  %9601 = vmatprep.subr.bf16.mxu1 %v9544_v58  ;;  %v13278_v58 = vld [vmem:[%s14123_s23 + $0x40] sm:$0xff] }
 0xdf0   :  { %v5311_v38 = vpop.f32.mrb[77].mxu0  ;;  %v13086_v62 = vpop.f32.mrb[93].mxu1  ;;  %9547 = vmatpush1.bf16.msra.mxu0 %v9546_v53  ;;  %9606 = vmatpush1.bf16.msra.mxu1 %v9546_v53 }
 0xdf3   :  { %v5315_v59 = vpop.f32.mrb[78].mxu0  ;;  %v13088_v51 = vpop.f32.mrb[94].mxu1 }
 0xdf4   :  { %v9551_v49 = vpack.c.bf16 %v5315_v59, %v5309_v41  ;;  %v9573_v35 = vpack.c.bf16 %v13088_v51, %v13084_v4  ;;  %v5317_v16 = vpop.f32.mrb[79].mxu0  ;;  %v5442_v48 = vpop.f32.mrb[95].mxu1  ;;  %v13298_v41 = vld [vmem:[%s14123_s23 + $0x48] sm:$0xff]  ;;  %v13306_v4 = vld [vmem:[%s14123_s23 + $0x110] sm:$0xff]  ;;  %v13330_v59 = vld [vmem:[%s14123_s23 + $0x58] sm:$0xff] }
 0xdf5   :  { %v9548_v32 = vpack.c.bf16 %v5317_v16, %v5311_v38  ;;  %v9570_v0 = vpack.c.bf16 %v5442_v48, %v13086_v62  ;;  %v13314_v38 = vld [vmem:[%s14123_s23 + $0x50] sm:$0xff]  ;;  %v13322_v62 = vld [vmem:[%s14123_s23 + $0x118] sm:$0xff]  ;;  %v13338_v51 = vld [vmem:[%s14123_s23 + $0x120] sm:$0xff] }
 0xdf6   :  { %v13362_v16 = vld [vmem:[%s14123_s23 + $0x68] sm:$0xff]  ;;  %v13370_v48 = vld [vmem:[%s14123_s23 + $0x130] sm:$0xff] }
 0xdf7   :  { %v5511_v1 = vpop.f32.mrb[80].mxu0  ;;  %9550 = vmatprep.subr.msk.bf16.mxu0 %vm13093_vm0, %v9548_v32  ;;  %9602 = vmatprep.subr.msk.bf16.mxu1 %vm13093_vm0, %v9548_v32  ;;  %v13386_v32 = vld [vmem:[%s14123_s23 + $0x138] sm:$0xff] }
 0xdf8   :  { %v5513_v2 = vpop.f32.mrb[81].mxu0  ;;  %9553 = vmatpush1.bf16.msk.msra.mxu0 %vm13093_vm0, %v9551_v49  ;;  %9607 = vmatpush1.bf16.msk.msra.mxu1 %vm13093_vm0, %v9551_v49  ;;  %v13346_v49 = vld [vmem:[%s14123_s23 + $0x60] sm:$0xff] }
 0xdf9   :  { %9555 = vmatprep.subr.bf16.mxu0 %v9554_v17 }
 0xdfb   :  { %v5517_v8 = vpop.f32.mrb[82].mxu0  ;;  %7939 = vmatmul.mubr.msk.f32.vlgmr.msra.gmra.mrb[100].mxu0 %vm5626_vm1, %v13109_v3  ;;  %7962 = vmatmul.mubr.msk.f32.vlgmr.msra.gmra.mrb[96].mxu1 %vm5626_vm1, %v13114_v5 }
 0xdfc   :  { %v9578_v10 = vpack.c.bf16 %v5517_v8, %v5511_v1  ;;  %v5519_v15 = vpop.f32.mrb[83].mxu0  ;;  %9557 = vmatpush1.bf16.msra.mxu0 %v9556_v11  ;;  %6021 = vmatprep.mubr.f32.mxu1 %v9715_v39  ;;  %v13149_v11 = vld [vmem:[%s14123_s23 + $0xc8] sm:$0xff]  ;;  %v13402_v1 = vld [vmem:[%s14123_s23 + $0x140] sm:$0xff] }
 0xdfd   :  { %v9576_v24 = vpack.c.bf16 %v5519_v15, %v5513_v2  ;;  %9559 = vmatprep.subr.bf16.mxu0 %v9558_v21  ;;  %5883 = vmatprep.mubr.f32.mxu0 %v9715_v39  ;;  %v13410_v2 = vld [vmem:[%s14123_s23 + $0x80] sm:$0xff]  ;;  %v13418_v8 = vld [vmem:[%s14123_s23 + $0x148] sm:$0xff]  ;;  %v13434_v15 = vld [vmem:[%s14123_s23 + $0x150] sm:$0xff] }
 0xdff   :  { %v5523_v14 = vpop.f32.mrb[84].mxu0  ;;  %9577 = vmatprep.subr.bf16.mxu1 %v9576_v24  ;;  %7963 = vmatmul.mubr.msk.f32.gmra.mrb[98].mxu1 %vm5626_vm1, %v13130_v6  ;;  %v13442_v24 = vld [vmem:[%s14123_s23 + $0x90] sm:$0xff] }
 0xe00   :  { %v5525_v9 = vpop.f32.mrb[85].mxu0  ;;  %9561 = vmatpush1.bf16.msra.mxu0 %v9560_v47  ;;  %9579 = vmatpush1.bf16.msra.mxu1 %v9578_v10  ;;  %v13184_v47 = vld [vmem:[%s14123_s23 + $0xd8] sm:$0xff]  ;;  %v13426_v10 = vld [vmem:[%s14123_s23 + $0x88] sm:$0xff] }
 0xe01   :  { %9563 = vmatprep.subr.bf16.mxu0 %v9562_v28  ;;  %6027 = vmatprep.mubr.f32.mxu1 %v9715_v39 }
 0xe02   :  { %7940 = vmatmul.mubr.msk.f32.gmra.mrb[102].mxu0 %vm5626_vm1, %v13141_v37 }
 0xe03   :  { %v5529_v17 = vpop.f32.mrb[86].mxu0  ;;  %7964 = vmatmul.mubr.msk.f32.gmra.mrb[100].mxu1 %vm5626_vm1, %v13149_v11  ;;  %5889 = vmatprep.mubr.f32.mxu0 %v9715_v39 }
 0xe04   :  { %v9582_v19 = vpack.c.bf16 %v5529_v17, %v5523_v14  ;;  %v5531_v20 = vpop.f32.mrb[87].mxu0  ;;  %9565 = vmatpush1.bf16.msra.mxu0 %v9564_v25  ;;  %6033 = vmatprep.mubr.f32.mxu1 %v9715_v39  ;;  %v13450_v14 = vld [vmem:[%s14123_s23 + $0x158] sm:$0xff]  ;;  %v13466_v17 = vld [vmem:[%s14123_s23 + $0x160] sm:$0xff] }
 0xe05   :  { %v9580_v7 = vpack.c.bf16 %v5531_v20, %v5525_v9  ;;  %9567 = vmatprep.subr.bf16.mxu0 %v9566_v56  ;;  %v13290_v56 = vld [vmem:[%s14123_s23 + $0x108] sm:$0xff]  ;;  %v13458_v9 = vld [vmem:[%s14123_s23 + $0x98] sm:$0xff] }
 0xe06   :  { %7941 = vmatmul.mubr.msk.f32.gmra.mrb[104].mxu0 %vm5626_vm1, %v13163_v13  ;;  %v13482_v20 = vld [vmem:[%s14123_s23 + $0x168] sm:$0xff] }
 0xe07   :  { %v5535_v12 = vpop.f32.mrb[88].mxu0  ;;  %9581 = vmatprep.subr.bf16.mxu1 %v9580_v7  ;;  %7965 = vmatmul.mubr.msk.f32.gmra.mrb[102].mxu1 %vm5626_vm1, %v13172_v36  ;;  %v13490_v7 = vld [vmem:[%s14123_s23 + $0xa8] sm:$0xff] }
 0xe08   :  { %v5537_v27 = vpop.f32.mrb[89].mxu0  ;;  %9569 = vmatpush1.bf16.msra.mxu0 %v9568_v43  ;;  %9583 = vmatpush1.bf16.msra.mxu1 %v9582_v19  ;;  %v13474_v19 = vld [vmem:[%s14123_s23 + $0xa0] sm:$0xff] }
 0xe09   :  { %9572 = vmatprep.subr.msk.bf16.mxu0 %vm13093_vm0, %v9570_v0  ;;  %6039 = vmatprep.mubr.f32.mxu1 %v9715_v39  ;;  %v13394_v0 = vld [vmem:[%s14123_s23 + $0x78] sm:$0xff] }
 0xe0a   :  { %5895 = vmatprep.mubr.f32.mxu0 %v9715_v39 }
 0xe0b   :  { %v5541_v23 = vpop.f32.mrb[90].mxu0  ;;  %7966 = vmatmul.mubr.msk.f32.gmra.mrb[104].mxu1 %vm5626_vm1, %v13184_v47  ;;  %7942 = vmatmul.mubr.msk.f32.gmra.mrb[106].mxu0 %vm5626_vm1, %v13189_v61 }
 0xe0c   :  { %v9586_v18 = vpack.c.bf16 %v5541_v23, %v5535_v12  ;;  %v5543_v21 = vpop.f32.mrb[91].mxu0  ;;  %9575 = vmatpush1.bf16.msk.msra.mxu0 %vm13093_vm0, %v9573_v35  ;;  %6045 = vmatprep.mubr.f32.mxu1 %v9715_v39  ;;  %v13354_v35 = vld [vmem:[%s14123_s23 + $0x128] sm:$0xff]  ;;  %v13498_v12 = vld [vmem:[%s14123_s23 + $0x170] sm:$0xff]  ;;  %v13514_v23 = vld [vmem:[%s14123_s23 + $0x178] sm:$0xff] }
 0xe0d   :  { %v9584_v55 = vpack.c.bf16 %v5543_v21, %v5537_v27  ;;  %5901 = vmatprep.mubr.f32.mxu0 %v9715_v39  ;;  %v13506_v27 = vld [vmem:[%s14123_s23 + $0xb0] sm:$0xff]  ;;  %v13536_v21 = vld [vmem:[%s14123_s23 + $0x188] sm:$0xff] }
 0xe0f   :  { %v5547_v63 = vpop.f32.mrb[92].mxu0  ;;  %9585 = vmatprep.subr.bf16.mxu1 %v9584_v55  ;;  %7967 = vmatmul.mubr.msk.f32.gmra.mrb[106].mxu1 %vm5626_vm1, %v13208_v26  ;;  %v13547_v55 = vld [vmem:[%s14123_s23 + $0x190] sm:$0xff] }
 0xe10   :  { %v5549_v29 = vpop.f32.mrb[93].mxu0  ;;  %9587 = vmatpush1.bf16.msra.mxu1 %v9586_v18  ;;  %6051 = vmatprep.mubr.f32.mxu1 %v9715_v39  ;;  %v13525_v18 = vld [vmem:[%s14123_s23 + $0x180] sm:$0xff] }
 0xe11   :  { %7943 = vmatmul.mubr.msk.f32.gmra.mrb[108].mxu0 %vm5626_vm1, %v13214_v34 }
 0xe12   :  { %5907 = vmatprep.mubr.f32.mxu0 %v9715_v39 }
 0xe13   :  { %v5553_v25 = vpop.f32.mrb[94].mxu0  ;;  %7968 = vmatmul.mubr.msk.f32.gmra.mrb[108].mxu1 %vm5626_vm1, %v13222_v52 }
 0xe14   :  { %v9590_v42 = vpack.c.bf16 %v5553_v25, %v5547_v63  ;;  %v5555_v30 = vpop.f32.mrb[95].mxu0  ;;  %6057 = vmatprep.mubr.f32.mxu1 %v9715_v39  ;;  %v13558_v63 = vld [vmem:[%s14123_s23 + $0x198] sm:$0xff]  ;;  %v13580_v25 = vld [vmem:[%s14123_s23 + $0x1a8] sm:$0xff] }
 0xe15   :  { %v9588_v28 = vpack.c.bf16 %v5555_v30, %v5549_v29  ;;  %7944 = vmatmul.mubr.msk.f32.gmra.mrb[110].mxu0 %vm5626_vm1, %v13230_v40  ;;  %v13569_v29 = vld [vmem:[%s14123_s23 + $0x1a0] sm:$0xff]  ;;  %v13602_v30 = vld [vmem:[%s14123_s23 + $0x1b8] sm:$0xff] }
 0xe16   :  { %5913 = vmatprep.mubr.f32.mxu0 %v9715_v39 }
 0xe17   :  { %v5559_v45 = vpop.f32.mrb[96].mxu0  ;;  %9589 = vmatprep.subr.bf16.mxu1 %v9588_v28  ;;  %7969 = vmatmul.mubr.msk.f32.gmra.mrb[110].mxu1 %vm5626_vm1, %v13238_v44 }
 0xe18   :  { %v5561_v22 = vpop.f32.mrb[97].mxu0  ;;  %9591 = vmatpush1.bf16.msra.mxu1 %v9590_v42  ;;  %6063 = vmatprep.mubr.f32.mxu1 %v9715_v39  ;;  %v13591_v42 = vld [vmem:[%s14123_s23 + $0x1b0] sm:$0xff]  ;;  %s9719_s23 = smov [#allocation2]  }
 0xe19   :  { %7945 = vmatmul.mubr.msk.f32.gmra.mrb[112].mxu0 %vm5626_vm1, %v13246_v31  ;;  %s7363_s16 = sshll.u32 %s9719_s23, 4  ;;  %s7364_s16 = int_to_ptr.vmem [resolvable:$true] %s7363_s16 }
 0xe1a   :  { %5919 = vmatprep.mubr.f32.mxu0 %v9715_v39  ;;  %s9691_s26 = scalar_lea.vmem %s7364_s16, 43008  ;;  %p9696_p1 = scmp.lt.s32.totalorder %s7364_s16, %s7364_s16 }
 0xe1b   :  { %v5565_v33 = vpop.f32.mrb[98].mxu0  ;;  %7970 = vmatmul.mubr.msk.f32.gmra.mrb[112].mxu1 %vm5626_vm1, %v13254_v46  ;;  %p9692_p0 = scmp.ne.s32.totalorder %s7364_s16, %s9691_s26  ;;  %p9697_p2 = scmp.lt.s32.totalorder %s9691_s26, %s9691_s26 }
 0xe1c   :  { %v9595_v53 = vpack.c.bf16 %v5565_v33, %v5559_v45  ;;  %v5567_v43 = vpop.f32.mrb[99].mxu0  ;;  %6069 = vmatprep.mubr.f32.mxu1 %v9715_v39 }
 0xe1d   :  { %v9592_v57 = vpack.c.bf16 %v5567_v43, %v5561_v22  ;;  %7946 = vmatmul.mubr.msk.f32.gmra.mrb[114].mxu0 %vm5626_vm1, %v13262_v50  ;;  %p9698_p3 = por %p9697_p2, %p9696_p1 }
 0xe1e   :  { %5925 = vmatprep.mubr.f32.mxu0 %v9715_v39 }
 0xe1f   :  { %9594 = vmatprep.subr.msk.bf16.mxu1 %vm13093_vm0, %v9592_v57  ;;  %7971 = vmatmul.mubr.msk.f32.gmra.mrb[114].mxu1 %vm5626_vm1, %v13270_v54  ;;  %p9699_p4 = pnand %p9698_p3, %p9692_p0 }
 0xe20   :  { %9597 = vmatpush1.bf16.msk.msra.mxu1 %vm13093_vm0, %v9595_v53  ;;  %6075 = vmatprep.mubr.f32.mxu1 %v9715_v39 }
 0xe21   :  { %7947 = vmatmul.mubr.msk.f32.gmra.mrb[116].mxu0 %vm5626_vm1, %v13278_v58 }
 0xe22   :  { %5931 = vmatprep.mubr.f32.mxu0 %v9715_v39 }
 0xe23   :  { %7972 = vmatmul.mubr.msk.f32.gmra.mrb[116].mxu1 %vm5626_vm1, %v13290_v56 }
 0xe24   :  { %6081 = vmatprep.mubr.f32.mxu1 %v9715_v39 }
 0xe25   :  { %7948 = vmatmul.mubr.msk.f32.gmra.mrb[118].mxu0 %vm5626_vm1, %v13298_v41 }
 0xe26   :  { %5937 = vmatprep.mubr.f32.mxu0 %v9715_v39 }
 0xe27   :  { %7973 = vmatmul.mubr.msk.f32.gmra.mrb[118].mxu1 %vm5626_vm1, %v13306_v4 }
 0xe28   :  { %6087 = vmatprep.mubr.f32.mxu1 %v9715_v39 }
 0xe29   :  { %7949 = vmatmul.mubr.msk.f32.gmra.mrb[120].mxu0 %vm5626_vm1, %v13314_v38 }
 0xe2a   :  { %5943 = vmatprep.mubr.f32.mxu0 %v9715_v39 }
 0xe2b   :  { %7974 = vmatmul.mubr.msk.f32.gmra.mrb[120].mxu1 %vm5626_vm1, %v13322_v62 }
 0xe2c   :  { %6093 = vmatprep.mubr.f32.mxu1 %v9715_v39 }
 0xe2d   :  { %7950 = vmatmul.mubr.msk.f32.gmra.mrb[122].mxu0 %vm5626_vm1, %v13330_v59 }
 0xe2e   :  { %5949 = vmatprep.mubr.f32.mxu0 %v9715_v39 }
 0xe2f   :  { %7975 = vmatmul.mubr.msk.f32.gmra.mrb[122].mxu1 %vm5626_vm1, %v13338_v51 }
 0xe30   :  { %6099 = vmatprep.mubr.f32.mxu1 %v9715_v39 }
 0xe31   :  { %7951 = vmatmul.mubr.msk.f32.gmra.mrb[124].mxu0 %vm5626_vm1, %v13346_v49 }
 0xe32   :  { %5955 = vmatprep.mubr.f32.mxu0 %v9715_v39 }
 0xe33   :  { %7976 = vmatmul.mubr.msk.f32.gmra.mrb[124].mxu1 %vm5626_vm1, %v13354_v35 }
 0xe34   :  { %6105 = vmatprep.mubr.f32.mxu1 %v9715_v39 }
 0xe35   :  { %7952 = vmatmul.mubr.msk.f32.gmra.mrb[126].mxu0 %vm5626_vm1, %v13362_v16 }
 0xe36   :  { %5961 = vmatprep.mubr.f32.mxu0 %v9715_v39 }
 0xe37   :  { %7977 = vmatmul.mubr.msk.f32.gmra.mrb[126].mxu1 %vm5626_vm1, %v13370_v48 }
 0xe38   :  { %6111 = vmatprep.mubr.f32.mxu1 %v9715_v39 }
 0xe39   :  { %7953 = vmatmul.mubr.msk.f32.gmra.mrb[128].mxu0 %vm5626_vm1, %v13378_v60 }
 0xe3a   :  { %5967 = vmatprep.mubr.f32.mxu0 %v9715_v39 }
 0xe3b   :  { %7978 = vmatmul.mubr.msk.f32.gmra.mrb[128].mxu1 %vm5626_vm1, %v13386_v32 }
 0xe3c   :  { %6117 = vmatprep.mubr.f32.mxu1 %v9715_v39 }
 0xe3d   :  { %7954 = vmatmul.mubr.msk.f32.gmra.mrb[130].mxu0 %vm5626_vm1, %v13394_v0 }
 0xe3e   :  { %5973 = vmatprep.mubr.f32.mxu0 %v9715_v39 }
 0xe3f   :  { %7979 = vmatmul.mubr.msk.f32.gmra.mrb[130].mxu1 %vm5626_vm1, %v13402_v1 }
 0xe40   :  { %6123 = vmatprep.mubr.f32.mxu1 %v9715_v39 }
 0xe41   :  { %7955 = vmatmul.mubr.msk.f32.gmra.mrb[132].mxu0 %vm5626_vm1, %v13410_v2 }
 0xe42   :  { %5979 = vmatprep.mubr.f32.mxu0 %v9715_v39 }
 0xe43   :  { %7980 = vmatmul.mubr.msk.f32.gmra.mrb[132].mxu1 %vm5626_vm1, %v13418_v8 }
 0xe44   :  { %6129 = vmatprep.mubr.f32.mxu1 %v9715_v39 }
 0xe45   :  { %7956 = vmatmul.mubr.msk.f32.gmra.mrb[134].mxu0 %vm5626_vm1, %v13426_v10 }
 0xe46   :  { %5985 = vmatprep.mubr.f32.mxu0 %v9715_v39 }
 0xe47   :  { %7981 = vmatmul.mubr.msk.f32.gmra.mrb[134].mxu1 %vm5626_vm1, %v13434_v15 }
 0xe48   :  { %6135 = vmatprep.mubr.f32.mxu1 %v9715_v39 }
 0xe49   :  { %7957 = vmatmul.mubr.msk.f32.gmra.mrb[136].mxu0 %vm5626_vm1, %v13442_v24 }
 0xe4a   :  { %5991 = vmatprep.mubr.f32.mxu0 %v9715_v39 }
 0xe4b   :  { %7982 = vmatmul.mubr.msk.f32.gmra.mrb[136].mxu1 %vm5626_vm1, %v13450_v14 }
 0xe4c   :  { %6141 = vmatprep.mubr.f32.mxu1 %v9715_v39 }
 0xe4d   :  { %7958 = vmatmul.mubr.msk.f32.gmra.mrb[138].mxu0 %vm5626_vm1, %v13458_v9 }
 0xe4e   :  { %5997 = vmatprep.mubr.f32.mxu0 %v9715_v39 }
 0xe4f   :  { %7983 = vmatmul.mubr.msk.f32.gmra.mrb[138].mxu1 %vm5626_vm1, %v13466_v17 }
 0xe50   :  { %6147 = vmatprep.mubr.f32.mxu1 %v9715_v39 }
 0xe51   :  { %7959 = vmatmul.mubr.msk.f32.gmra.mrb[140].mxu0 %vm5626_vm1, %v13474_v19 }
 0xe52   :  { %6003 = vmatprep.mubr.f32.mxu0 %v9715_v39 }
 0xe53   :  { %7984 = vmatmul.mubr.msk.f32.gmra.mrb[140].mxu1 %vm5626_vm1, %v13482_v20 }
 0xe54   :  { %6153 = vmatprep.mubr.f32.mxu1 %v9715_v39 }
 0xe55   :  { %7960 = vmatmul.mubr.msk.f32.gmra.mrb[142].mxu0 %vm5626_vm1, %v13490_v7 }
 0xe56   :  { %6009 = vmatprep.mubr.f32.mxu0 %v9715_v39 }
 0xe57   :  { %7985 = vmatmul.mubr.msk.f32.gmra.mrb[142].mxu1 %vm5626_vm1, %v13498_v12 }
 0xe58   :  { %6159 = vmatprep.mubr.f32.mxu1 %v9715_v39 }
 0xe59   :  { %7961 = vmatmul.mubr.msk.f32.gmra.mrb[144].mxu0 %vm5626_vm1, %v13506_v27 }
 0xe5a   :  { %6278 = vmatprep.mubr.f32.mxu0 %v9715_v39 }
 0xe5b   :  { %7986 = vmatmul.mubr.msk.f32.gmra.mrb[144].mxu1 %vm5626_vm1, %v13514_v23 }
 0xe5c   :  { %6165 = vmatprep.mubr.f32.mxu1 %v9715_v39 }
 0xe5d   :  { %7997 = vmatmul.mubr.msk.f32.vlgmr.msra.gmra.mrb[146].mxu0 %vm5626_vm1, %v13109_v3 }
 0xe5e   :  { %6284 = vmatprep.mubr.f32.mxu0 %v9715_v39 }
 0xe5f   :  { %7987 = vmatmul.mubr.msk.f32.gmra.mrb[146].mxu1 %vm5626_vm1, %v13525_v18 }
 0xe60   :  { %6171 = vmatprep.mubr.f32.mxu1 %v9715_v39 }
 0xe61   :  { %7998 = vmatmul.mubr.msk.f32.gmra.mrb[148].mxu0 %vm5626_vm1, %v13141_v37 }
 0xe62   :  { %6290 = vmatprep.mubr.f32.mxu0 %v9715_v39 }
 0xe63   :  { %7988 = vmatmul.mubr.msk.f32.gmra.mrb[148].mxu1 %vm5626_vm1, %v13536_v21 }
 0xe64   :  { %6177 = vmatprep.mubr.f32.mxu1 %v9715_v39 }
 0xe65   :  { %7999 = vmatmul.mubr.msk.f32.gmra.mrb[150].mxu0 %vm5626_vm1, %v13163_v13 }
 0xe66   :  { %6296 = vmatprep.mubr.f32.mxu0 %v9715_v39 }
 0xe67   :  { %7989 = vmatmul.mubr.msk.f32.gmra.mrb[150].mxu1 %vm5626_vm1, %v13547_v55 }
 0xe68   :  { %6183 = vmatprep.mubr.f32.mxu1 %v9715_v39 }
 0xe69   :  { %8000 = vmatmul.mubr.msk.f32.gmra.mrb[152].mxu0 %vm5626_vm1, %v13189_v61 }
 0xe6a   :  { %6302 = vmatprep.mubr.f32.mxu0 %v9715_v39 }
 0xe6b   :  { %7990 = vmatmul.mubr.msk.f32.gmra.mrb[152].mxu1 %vm5626_vm1, %v13558_v63 }
 0xe6c   :  { %6189 = vmatprep.mubr.f32.mxu1 %v9715_v39 }
 0xe6d   :  { %8001 = vmatmul.mubr.msk.f32.gmra.mrb[154].mxu0 %vm5626_vm1, %v13214_v34 }
 0xe6e   :  { %6308 = vmatprep.mubr.f32.mxu0 %v9715_v39 }
 0xe6f   :  { %7991 = vmatmul.mubr.msk.f32.gmra.mrb[154].mxu1 %vm5626_vm1, %v13569_v29 }
 0xe70   :  { %6195 = vmatprep.mubr.f32.mxu1 %v9715_v39 }
 0xe71   :  { %8002 = vmatmul.mubr.msk.f32.gmra.mrb[156].mxu0 %vm5626_vm1, %v13230_v40 }
 0xe72   :  { %6314 = vmatprep.mubr.f32.mxu0 %v9715_v39 }
 0xe73   :  { %7992 = vmatmul.mubr.msk.f32.gmra.mrb[156].mxu1 %vm5626_vm1, %v13580_v25 }
 0xe74   :  { %6201 = vmatprep.mubr.f32.mxu1 %v9715_v39 }
 0xe75   :  { %8003 = vmatmul.mubr.msk.f32.gmra.mrb[158].mxu0 %vm5626_vm1, %v13246_v31 }
 0xe76   :  { %6320 = vmatprep.mubr.f32.mxu0 %v9715_v39 }
 0xe77   :  { %7993 = vmatmul.mubr.msk.f32.gmra.mrb[158].mxu1 %vm5626_vm1, %v13591_v42 }
 0xe78   :  { %6207 = vmatprep.mubr.f32.mxu1 %v9715_v39 }
 0xe79   :  { %8004 = vmatmul.mubr.msk.f32.gmra.mrb[160].mxu0 %vm5626_vm1, %v13262_v50 }
 0xe7a   :  { %6326 = vmatprep.mubr.f32.mxu0 %v9715_v39 }
 0xe7b   :  { %7994 = vmatmul.mubr.msk.f32.gmra.mrb[160].mxu1 %vm5626_vm1, %v13602_v30 }
 0xe7c   :  { %6679 = vmatprep.mubr.f32.mxu1 %v9715_v39 }
 0xe7d   :  { %8005 = vmatmul.mubr.msk.f32.gmra.mrb[162].mxu0 %vm5626_vm1, %v13278_v58 }
 0xe7e   :  { %6332 = vmatprep.mubr.f32.mxu0 %v9715_v39 }
 0xe7f   :  { %8055 = vmatmul.mubr.msk.f32.vlgmr.msra.gmra.mrb[162].mxu1 %vm5626_vm1, %v13109_v3 }
 0xe80   :  { %6685 = vmatprep.mubr.f32.mxu1 %v9715_v39 }
 0xe81   :  { %8006 = vmatmul.mubr.msk.f32.gmra.mrb[164].mxu0 %vm5626_vm1, %v13298_v41 }
 0xe82   :  { %6338 = vmatprep.mubr.f32.mxu0 %v9715_v39 }
 0xe83   :  { %8056 = vmatmul.mubr.msk.f32.gmra.mrb[164].mxu1 %vm5626_vm1, %v13141_v37 }
 0xe84   :  { %6691 = vmatprep.mubr.f32.mxu1 %v9715_v39 }
 0xe85   :  { %8007 = vmatmul.mubr.msk.f32.gmra.mrb[166].mxu0 %vm5626_vm1, %v13314_v38 }
 0xe86   :  { %6344 = vmatprep.mubr.f32.mxu0 %v9715_v39 }
 0xe87   :  { %8057 = vmatmul.mubr.msk.f32.gmra.mrb[166].mxu1 %vm5626_vm1, %v13163_v13 }
 0xe88   :  { %6697 = vmatprep.mubr.f32.mxu1 %v9715_v39 }
 0xe89   :  { %8008 = vmatmul.mubr.msk.f32.gmra.mrb[168].mxu0 %vm5626_vm1, %v13330_v59 }
 0xe8a   :  { %6350 = vmatprep.mubr.f32.mxu0 %v9715_v39 }
 0xe8b   :  { %8058 = vmatmul.mubr.msk.f32.gmra.mrb[168].mxu1 %vm5626_vm1, %v13189_v61 }
 0xe8c   :  { %6703 = vmatprep.mubr.f32.mxu1 %v9715_v39 }
 0xe8d   :  { %8009 = vmatmul.mubr.msk.f32.gmra.mrb[170].mxu0 %vm5626_vm1, %v13346_v49 }
 0xe8e   :  { %6356 = vmatprep.mubr.f32.mxu0 %v9715_v39 }
 0xe8f   :  { %8059 = vmatmul.mubr.msk.f32.gmra.mrb[170].mxu1 %vm5626_vm1, %v13214_v34 }
 0xe90   :  { %6709 = vmatprep.mubr.f32.mxu1 %v9715_v39 }
 0xe91   :  { %8010 = vmatmul.mubr.msk.f32.gmra.mrb[172].mxu0 %vm5626_vm1, %v13362_v16 }
 0xe92   :  { %6362 = vmatprep.mubr.f32.mxu0 %v9715_v39 }
 0xe93   :  { %8060 = vmatmul.mubr.msk.f32.gmra.mrb[172].mxu1 %vm5626_vm1, %v13230_v40 }
 0xe94   :  { %6715 = vmatprep.mubr.f32.mxu1 %v9715_v39 }
 0xe95   :  { %8011 = vmatmul.mubr.msk.f32.gmra.mrb[174].mxu0 %vm5626_vm1, %v13378_v60 }
 0xe96   :  { %6368 = vmatprep.mubr.f32.mxu0 %v9715_v39 }
 0xe97   :  { %8061 = vmatmul.mubr.msk.f32.gmra.mrb[174].mxu1 %vm5626_vm1, %v13246_v31 }
 0xe98   :  { %6721 = vmatprep.mubr.f32.mxu1 %v9715_v39 }
 0xe99   :  { %8012 = vmatmul.mubr.msk.f32.gmra.mrb[176].mxu0 %vm5626_vm1, %v13394_v0 }
 0xe9a   :  { %6374 = vmatprep.mubr.f32.mxu0 %v9715_v39 }
 0xe9b   :  { %8062 = vmatmul.mubr.msk.f32.gmra.mrb[176].mxu1 %vm5626_vm1, %v13262_v50 }
 0xe9c   :  { %6727 = vmatprep.mubr.f32.mxu1 %v9715_v39 }
 0xe9d   :  { %8013 = vmatmul.mubr.msk.f32.gmra.mrb[178].mxu0 %vm5626_vm1, %v13410_v2 }
 0xe9e   :  { %6380 = vmatprep.mubr.f32.mxu0 %v9715_v39 }
 0xe9f   :  { %8063 = vmatmul.mubr.msk.f32.gmra.mrb[178].mxu1 %vm5626_vm1, %v13278_v58 }
 0xea0   :  { %6733 = vmatprep.mubr.f32.mxu1 %v9715_v39 }
 0xea1   :  { %8014 = vmatmul.mubr.msk.f32.gmra.mrb[180].mxu0 %vm5626_vm1, %v13426_v10 }
 0xea2   :  { %6386 = vmatprep.mubr.f32.mxu0 %v9715_v39 }
 0xea3   :  { %8064 = vmatmul.mubr.msk.f32.gmra.mrb[180].mxu1 %vm5626_vm1, %v13298_v41 }
 0xea4   :  { %6739 = vmatprep.mubr.f32.mxu1 %v9715_v39 }
 0xea5   :  { %8015 = vmatmul.mubr.msk.f32.gmra.mrb[182].mxu0 %vm5626_vm1, %v13442_v24 }
 0xea6   :  { %6392 = vmatprep.mubr.f32.mxu0 %v9715_v39 }
 0xea7   :  { %8065 = vmatmul.mubr.msk.f32.gmra.mrb[182].mxu1 %vm5626_vm1, %v13314_v38 }
 0xea8   :  { %6745 = vmatprep.mubr.f32.mxu1 %v9715_v39 }
 0xea9   :  { %8016 = vmatmul.mubr.msk.f32.gmra.mrb[184].mxu0 %vm5626_vm1, %v13458_v9 }
 0xeaa   :  { %6398 = vmatprep.mubr.f32.mxu0 %v9715_v39 }
 0xeab   :  { %8066 = vmatmul.mubr.msk.f32.gmra.mrb[184].mxu1 %vm5626_vm1, %v13330_v59 }
 0xeac   :  { %6751 = vmatprep.mubr.f32.mxu1 %v9715_v39 }
 0xead   :  { %8017 = vmatmul.mubr.msk.f32.gmra.mrb[186].mxu0 %vm5626_vm1, %v13474_v19 }
 0xeae   :  { %6404 = vmatprep.mubr.f32.mxu0 %v9715_v39 }
 0xeaf   :  { %8067 = vmatmul.mubr.msk.f32.gmra.mrb[186].mxu1 %vm5626_vm1, %v13346_v49 }
 0xeb0   :  { %6757 = vmatprep.mubr.f32.mxu1 %v9715_v39 }
 0xeb1   :  { %8018 = vmatmul.mubr.msk.f32.gmra.mrb[188].mxu0 %vm5626_vm1, %v13490_v7 }
 0xeb2   :  { %6410 = vmatprep.mubr.f32.mxu0 %v9715_v39 }
 0xeb3   :  { %8068 = vmatmul.mubr.msk.f32.gmra.mrb[188].mxu1 %vm5626_vm1, %v13362_v16 }
 0xeb4   :  { %6763 = vmatprep.mubr.f32.mxu1 %v9715_v39 }
 0xeb5   :  { %8019 = vmatmul.mubr.msk.f32.gmra.mrb[190].mxu0 %vm5626_vm1, %v13506_v27 }
 0xeb6   :  { %6416 = vmatprep.mubr.f32.mxu0 %v9715_v39 }
 0xeb7   :  { %8069 = vmatmul.mubr.msk.f32.gmra.mrb[190].mxu1 %vm5626_vm1, %v13378_v60 }
 0xeb8   :  { %6769 = vmatprep.mubr.f32.mxu1 %v9715_v39 }
 0xeb9   :  { %8020 = vmatmul.mubr.msk.f32.gmra.mrb[192].mxu0 %vm5626_vm1, %v13114_v5 }
 0xeba   :  { %6422 = vmatprep.mubr.f32.mxu0 %v9715_v39 }
 0xebb   :  { %8070 = vmatmul.mubr.msk.f32.gmra.mrb[192].mxu1 %vm5626_vm1, %v13394_v0 }
 0xebc   :  { %6775 = vmatprep.mubr.f32.mxu1 %v9715_v39 }
 0xebd   :  { %8021 = vmatmul.mubr.msk.f32.gmra.mrb[194].mxu0 %vm5626_vm1, %v13130_v6 }
 0xebe   :  { %6428 = vmatprep.mubr.f32.mxu0 %v9715_v39 }
 0xebf   :  { %8071 = vmatmul.mubr.msk.f32.gmra.mrb[194].mxu1 %vm5626_vm1, %v13410_v2 }
 0xec0   :  { %6781 = vmatprep.mubr.f32.mxu1 %v9715_v39 }
 0xec1   :  { %8022 = vmatmul.mubr.msk.f32.gmra.mrb[196].mxu0 %vm5626_vm1, %v13149_v11 }
 0xec2   :  { %6434 = vmatprep.mubr.f32.mxu0 %v9715_v39 }
 0xec3   :  { %8072 = vmatmul.mubr.msk.f32.gmra.mrb[196].mxu1 %vm5626_vm1, %v13426_v10 }
 0xec4   :  { %6787 = vmatprep.mubr.f32.mxu1 %v9715_v39 }
 0xec5   :  { %8023 = vmatmul.mubr.msk.f32.gmra.mrb[198].mxu0 %vm5626_vm1, %v13172_v36 }
 0xec6   :  { %6440 = vmatprep.mubr.f32.mxu0 %v9715_v39 }
 0xec7   :  { %8073 = vmatmul.mubr.msk.f32.gmra.mrb[198].mxu1 %vm5626_vm1, %v13442_v24 }
 0xec8   :  { %6793 = vmatprep.mubr.f32.mxu1 %v9715_v39 }
 0xec9   :  { %8024 = vmatmul.mubr.msk.f32.gmra.mrb[200].mxu0 %vm5626_vm1, %v13184_v47 }
 0xeca   :  { %6446 = vmatprep.mubr.f32.mxu0 %v9715_v39 }
 0xecb   :  { %8074 = vmatmul.mubr.msk.f32.gmra.mrb[200].mxu1 %vm5626_vm1, %v13458_v9 }
 0xecc   :  { %6799 = vmatprep.mubr.f32.mxu1 %v9715_v39 }
 0xecd   :  { %8025 = vmatmul.mubr.msk.f32.gmra.mrb[202].mxu0 %vm5626_vm1, %v13208_v26 }
 0xece   :  { %v6017_v3 = vpop.f32.mrb[96].mxu1  ;;  %6452 = vmatprep.mubr.f32.mxu0 %v9715_v39  ;;  %v5879_v37 = vpop.f32.mrb[100].mxu0 }
 0xecf   :  { %7063 = vst [vmem:[#allocation2 + $0x170] sm:$0xff] %v6017_v3  ;;  %v6019_v13 = vpop.f32.mrb[97].mxu1  ;;  %8075 = vmatmul.mubr.msk.f32.gmra.mrb[202].mxu1 %vm5626_vm1, %v13474_v19  ;;  %7016 = vst [vmem:[#allocation2] sm:$0xff] %v5879_v37  ;;  %v5881_v61 = vpop.f32.mrb[101].mxu0 }
 0xed0   :  { %7064 = vst.msk [vmem:[#allocation2 + $0x178] sm:$0xff] %vm7017_vm2, %v6019_v13  ;;  %6805 = vmatprep.mubr.f32.mxu1 %v9715_v39  ;;  %7018 = vst.msk [vmem:[#allocation2 + $0x8] sm:$0xff] %vm7017_vm2, %v5881_v61 }
 0xed1   :  { %8026 = vmatmul.mubr.msk.f32.gmra.mrb[204].mxu0 %vm5626_vm1, %v13222_v52 }
 0xed2   :  { %v6023_v34 = vpop.f32.mrb[98].mxu1  ;;  %6458 = vmatprep.mubr.f32.mxu0 %v9715_v39 }
 0xed3   :  { %7065 = vst [vmem:[#allocation2 + $0x180] sm:$0xff] %v6023_v34  ;;  %v6025_v40 = vpop.f32.mrb[99].mxu1  ;;  %8076 = vmatmul.mubr.msk.f32.gmra.mrb[204].mxu1 %vm5626_vm1, %v13490_v7 }
 0xed4   :  { %7066 = vst.msk [vmem:[#allocation2 + $0x188] sm:$0xff] %vm7017_vm2, %v6025_v40  ;;  %6811 = vmatprep.mubr.f32.mxu1 %v9715_v39 }
 0xed5   :  { %8027 = vmatmul.mubr.msk.f32.gmra.mrb[206].mxu0 %vm5626_vm1, %v13238_v44  ;;  %v5885_v28 = vpop.f32.mrb[102].mxu0 }
 0xed6   :  { %v6029_v31 = vpop.f32.mrb[100].mxu1  ;;  %7019 = vst [vmem:[#allocation2 + $0x10] sm:$0xff] %v5885_v28  ;;  %6464 = vmatprep.mubr.f32.mxu0 %v9715_v39  ;;  %v5887_v45 = vpop.f32.mrb[103].mxu0 }
 0xed7   :  { %7067 = vst [vmem:[#allocation2 + $0x190] sm:$0xff] %v6029_v31  ;;  %v6031_v22 = vpop.f32.mrb[101].mxu1  ;;  %8077 = vmatmul.mubr.msk.f32.gmra.mrb[206].mxu1 %vm5626_vm1, %v13506_v27  ;;  %7020 = vst.msk [vmem:[#allocation2 + $0x18] sm:$0xff] %vm7017_vm2, %v5887_v45 }
 0xed8   :  { %7068 = vst.msk [vmem:[#allocation2 + $0x198] sm:$0xff] %vm7017_vm2, %v6031_v22  ;;  %6817 = vmatprep.mubr.f32.mxu1 %v9715_v39 }
 0xed9   :  { %8028 = vmatmul.mubr.msk.f32.gmra.mrb[208].mxu0 %vm5626_vm1, %v13254_v46  ;;  %v5891_v50 = vpop.f32.mrb[104].mxu0 }
 0xeda   :  { %v6035_v33 = vpop.f32.mrb[102].mxu1  ;;  %7021 = vst [vmem:[#allocation2 + $0x20] sm:$0xff] %v5891_v50  ;;  %6470 = vmatprep.mubr.f32.mxu0 %v9715_v39  ;;  %v5893_v53 = vpop.f32.mrb[105].mxu0 }
 0xedb   :  { %7069 = vst [vmem:[#allocation2 + $0x1a0] sm:$0xff] %v6035_v33  ;;  %v6037_v43 = vpop.f32.mrb[103].mxu1  ;;  %8078 = vmatmul.mubr.msk.f32.gmra.mrb[208].mxu1 %vm5626_vm1, %v13114_v5  ;;  %7022 = vst.msk [vmem:[#allocation2 + $0x28] sm:$0xff] %vm7017_vm2, %v5893_v53 }
 0xedc   :  { %7070 = vst.msk [vmem:[#allocation2 + $0x1a8] sm:$0xff] %vm7017_vm2, %v6037_v43  ;;  %6823 = vmatprep.mubr.f32.mxu1 %v9715_v39 }
 0xedd   :  { %8029 = vmatmul.mubr.msk.f32.gmra.mrb[210].mxu0 %vm5626_vm1, %v13270_v54 }
 0xede   :  { %v6041_v57 = vpop.f32.mrb[104].mxu1  ;;  %v5897_v58 = vpop.f32.mrb[106].mxu0  ;;  %6476 = vmatprep.mubr.f32.mxu0 %v9715_v39 }
 0xedf   :  { %7071 = vst [vmem:[#allocation2 + $0x1b0] sm:$0xff] %v6041_v57  ;;  %v6043_v41 = vpop.f32.mrb[105].mxu1  ;;  %8079 = vmatmul.mubr.msk.f32.gmra.mrb[210].mxu1 %vm5626_vm1, %v13130_v6  ;;  %7023 = vst [vmem:[#allocation2 + $0x30] sm:$0xff] %v5897_v58  ;;  %v5899_v5 = vpop.f32.mrb[107].mxu0 }
 0xee0   :  { %7072 = vst.msk [vmem:[#allocation2 + $0x1b8] sm:$0xff] %vm7017_vm2, %v6043_v41  ;;  %6829 = vmatprep.mubr.f32.mxu1 %v9715_v39  ;;  %7024 = vst.msk [vmem:[#allocation2 + $0x38] sm:$0xff] %vm7017_vm2, %v5899_v5 }
 0xee1   :  { %8030 = vmatmul.mubr.msk.f32.gmra.mrb[212].mxu0 %vm5626_vm1, %v13290_v56 }
 0xee2   :  { %v6047_v38 = vpop.f32.mrb[106].mxu1  ;;  %6482 = vmatprep.mubr.f32.mxu0 %v9715_v39 }
 0xee3   :  { %7188 = vst [vmem:[#allocation2 + $0x540] sm:$0xff] %v6047_v38  ;;  %v6049_v59 = vpop.f32.mrb[107].mxu1  ;;  %8080 = vmatmul.mubr.msk.f32.gmra.mrb[212].mxu1 %vm5626_vm1, %v13149_v11 }
 0xee4   :  { %7189 = vst.msk [vmem:[#allocation2 + $0x548] sm:$0xff] %vm7017_vm2, %v6049_v59  ;;  %6835 = vmatprep.mubr.f32.mxu1 %v9715_v39  ;;  %v5903_v6 = vpop.f32.mrb[108].mxu0 }
 0xee5   :  { %7025 = vst [vmem:[#allocation2 + $0x40] sm:$0xff] %v5903_v6  ;;  %v5905_v49 = vpop.f32.mrb[109].mxu0  ;;  %8031 = vmatmul.mubr.msk.f32.gmra.mrb[214].mxu0 %vm5626_vm1, %v13306_v4 }
 0xee6   :  { %v6053_v16 = vpop.f32.mrb[108].mxu1  ;;  %7026 = vst.msk [vmem:[#allocation2 + $0x48] sm:$0xff] %vm7017_vm2, %v5905_v49  ;;  %6488 = vmatprep.mubr.f32.mxu0 %v9715_v39 }
 0xee7   :  { %7190 = vst [vmem:[#allocation2 + $0x550] sm:$0xff] %v6053_v16  ;;  %v6055_v60 = vpop.f32.mrb[109].mxu1  ;;  %8081 = vmatmul.mubr.msk.f32.gmra.mrb[214].mxu1 %vm5626_vm1, %v13172_v36 }
 0xee8   :  { %7191 = vst.msk [vmem:[#allocation2 + $0x558] sm:$0xff] %vm7017_vm2, %v6055_v60  ;;  %6841 = vmatprep.mubr.f32.mxu1 %v9715_v39  ;;  %v5909_v11 = vpop.f32.mrb[110].mxu0 }
 0xee9   :  { %7027 = vst [vmem:[#allocation2 + $0x50] sm:$0xff] %v5909_v11  ;;  %v5911_v0 = vpop.f32.mrb[111].mxu0  ;;  %8032 = vmatmul.mubr.msk.f32.gmra.mrb[216].mxu0 %vm5626_vm1, %v13322_v62 }
 0xeea   :  { %v6059_v2 = vpop.f32.mrb[110].mxu1  ;;  %7028 = vst.msk [vmem:[#allocation2 + $0x58] sm:$0xff] %vm7017_vm2, %v5911_v0  ;;  %6494 = vmatprep.mubr.f32.mxu0 %v9715_v39 }
 0xeeb   :  { %7192 = vst [vmem:[#allocation2 + $0x560] sm:$0xff] %v6059_v2  ;;  %v6061_v10 = vpop.f32.mrb[111].mxu1  ;;  %8082 = vmatmul.mubr.msk.f32.gmra.mrb[216].mxu1 %vm5626_vm1, %v13184_v47 }
 0xeec   :  { %7193 = vst.msk [vmem:[#allocation2 + $0x568] sm:$0xff] %vm7017_vm2, %v6061_v10  ;;  %6847 = vmatprep.mubr.f32.mxu1 %v9715_v39  ;;  %v5915_v36 = vpop.f32.mrb[112].mxu0 }
 0xeed   :  { %7029 = vst [vmem:[#allocation2 + $0x60] sm:$0xff] %v5915_v36  ;;  %v5917_v24 = vpop.f32.mrb[113].mxu0  ;;  %8033 = vmatmul.mubr.msk.f32.gmra.mrb[218].mxu0 %vm5626_vm1, %v13338_v51 }
 0xeee   :  { %v6065_v9 = vpop.f32.mrb[112].mxu1  ;;  %7030 = vst.msk [vmem:[#allocation2 + $0x68] sm:$0xff] %vm7017_vm2, %v5917_v24  ;;  %6500 = vmatprep.mubr.f32.mxu0 %v9715_v39 }
 0xeef   :  { %7194 = vst [vmem:[#allocation2 + $0x570] sm:$0xff] %v6065_v9  ;;  %v6067_v19 = vpop.f32.mrb[113].mxu1  ;;  %8083 = vmatmul.mubr.msk.f32.gmra.mrb[218].mxu1 %vm5626_vm1, %v13208_v26 }
 0xef0   :  { %7195 = vst.msk [vmem:[#allocation2 + $0x578] sm:$0xff] %vm7017_vm2, %v6067_v19  ;;  %6853 = vmatprep.mubr.f32.mxu1 %v9715_v39  ;;  %v5921_v47 = vpop.f32.mrb[114].mxu0 }
 0xef1   :  { %7031 = vst [vmem:[#allocation2 + $0x70] sm:$0xff] %v5921_v47  ;;  %v5923_v7 = vpop.f32.mrb[115].mxu0  ;;  %8034 = vmatmul.mubr.msk.f32.gmra.mrb[220].mxu0 %vm5626_vm1, %v13354_v35 }
 0xef2   :  { %v6071_v27 = vpop.f32.mrb[114].mxu1  ;;  %7032 = vst.msk [vmem:[#allocation2 + $0x78] sm:$0xff] %vm7017_vm2, %v5923_v7  ;;  %6506 = vmatprep.mubr.f32.mxu0 %v9715_v39 }
 0xef3   :  { %7196 = vst [vmem:[#allocation2 + $0x580] sm:$0xff] %v6071_v27  ;;  %v6073_v3 = vpop.f32.mrb[115].mxu1  ;;  %8084 = vmatmul.mubr.msk.f32.gmra.mrb[220].mxu1 %vm5626_vm1, %v13222_v52 }
 0xef4   :  { %7197 = vst.msk [vmem:[#allocation2 + $0x588] sm:$0xff] %vm7017_vm2, %v6073_v3  ;;  %6859 = vmatprep.mubr.f32.mxu1 %v9715_v39  ;;  %v5927_v26 = vpop.f32.mrb[116].mxu0 }
 0xef5   :  { %7033 = vst [vmem:[#allocation2 + $0x80] sm:$0xff] %v5927_v26  ;;  %v5929_v37 = vpop.f32.mrb[117].mxu0  ;;  %8035 = vmatmul.mubr.msk.f32.gmra.mrb[222].mxu0 %vm5626_vm1, %v13370_v48 }
 0xef6   :  { %v6077_v13 = vpop.f32.mrb[116].mxu1  ;;  %7034 = vst.msk [vmem:[#allocation2 + $0x88] sm:$0xff] %vm7017_vm2, %v5929_v37  ;;  %6512 = vmatprep.mubr.f32.mxu0 %v9715_v39 }
 0xef7   :  { %7198 = vst [vmem:[#allocation2 + $0x590] sm:$0xff] %v6077_v13  ;;  %v6079_v61 = vpop.f32.mrb[117].mxu1  ;;  %8085 = vmatmul.mubr.msk.f32.gmra.mrb[222].mxu1 %vm5626_vm1, %v13238_v44 }
 0xef8   :  { %7199 = vst.msk [vmem:[#allocation2 + $0x598] sm:$0xff] %vm7017_vm2, %v6079_v61  ;;  %6865 = vmatprep.mubr.f32.mxu1 %v9715_v39  ;;  %v5933_v52 = vpop.f32.mrb[118].mxu0 }
 0xef9   :  { %7035 = vst [vmem:[#allocation2 + $0x90] sm:$0xff] %v5933_v52  ;;  %v5935_v34 = vpop.f32.mrb[119].mxu0  ;;  %8036 = vmatmul.mubr.msk.f32.gmra.mrb[224].mxu0 %vm5626_vm1, %v13386_v32 }
 0xefa   :  { %v6083_v40 = vpop.f32.mrb[118].mxu1  ;;  %7036 = vst.msk [vmem:[#allocation2 + $0x98] sm:$0xff] %vm7017_vm2, %v5935_v34  ;;  %6518 = vmatprep.mubr.f32.mxu0 %v9715_v39 }
 0xefb   :  { %7200 = vst [vmem:[#allocation2 + $0x5a0] sm:$0xff] %v6083_v40  ;;  %v6085_v28 = vpop.f32.mrb[119].mxu1  ;;  %8086 = vmatmul.mubr.msk.f32.gmra.mrb[224].mxu1 %vm5626_vm1, %v13254_v46 }
 0xefc   :  { %7201 = vst.msk [vmem:[#allocation2 + $0x5a8] sm:$0xff] %vm7017_vm2, %v6085_v28  ;;  %6871 = vmatprep.mubr.f32.mxu1 %v9715_v39  ;;  %v5939_v44 = vpop.f32.mrb[120].mxu0 }
 0xefd   :  { %7037 = vst [vmem:[#allocation2 + $0xa0] sm:$0xff] %v5939_v44  ;;  %v5941_v31 = vpop.f32.mrb[121].mxu0  ;;  %8037 = vmatmul.mubr.msk.f32.gmra.mrb[226].mxu0 %vm5626_vm1, %v13402_v1 }
 0xefe   :  { %v6089_v45 = vpop.f32.mrb[120].mxu1  ;;  %7038 = vst.msk [vmem:[#allocation2 + $0xa8] sm:$0xff] %vm7017_vm2, %v5941_v31  ;;  %6524 = vmatprep.mubr.f32.mxu0 %v9715_v39 }
 0xeff   :  { %7202 = vst [vmem:[#allocation2 + $0x5b0] sm:$0xff] %v6089_v45  ;;  %v6091_v22 = vpop.f32.mrb[121].mxu1  ;;  %8087 = vmatmul.mubr.msk.f32.gmra.mrb[226].mxu1 %vm5626_vm1, %v13270_v54 }
 0xf00   :  { %7203 = vst.msk [vmem:[#allocation2 + $0x5b8] sm:$0xff] %vm7017_vm2, %v6091_v22  ;;  %6877 = vmatprep.mubr.f32.mxu1 %v9715_v39  ;;  %v5945_v46 = vpop.f32.mrb[122].mxu0 }
 0xf01   :  { %7039 = vst [vmem:[#allocation2 + $0xb0] sm:$0xff] %v5945_v46  ;;  %v5947_v50 = vpop.f32.mrb[123].mxu0  ;;  %8038 = vmatmul.mubr.msk.f32.gmra.mrb[228].mxu0 %vm5626_vm1, %v13418_v8 }
 0xf02   :  { %v6095_v33 = vpop.f32.mrb[122].mxu1  ;;  %7040 = vst.msk [vmem:[#allocation2 + $0xb8] sm:$0xff] %vm7017_vm2, %v5947_v50  ;;  %6530 = vmatprep.mubr.f32.mxu0 %v9715_v39 }
 0xf03   :  { %7204 = vst [vmem:[#allocation2 + $0x5c0] sm:$0xff] %v6095_v33  ;;  %v6097_v53 = vpop.f32.mrb[123].mxu1  ;;  %8088 = vmatmul.mubr.msk.f32.gmra.mrb[228].mxu1 %vm5626_vm1, %v13290_v56 }
 0xf04   :  { %7205 = vst.msk [vmem:[#allocation2 + $0x5c8] sm:$0xff] %vm7017_vm2, %v6097_v53  ;;  %6883 = vmatprep.mubr.f32.mxu1 %v9715_v39  ;;  %v5951_v54 = vpop.f32.mrb[124].mxu0 }
 0xf05   :  { %7041 = vst [vmem:[#allocation2 + $0xc0] sm:$0xff] %v5951_v54  ;;  %v5953_v43 = vpop.f32.mrb[125].mxu0  ;;  %8039 = vmatmul.mubr.msk.f32.gmra.mrb[230].mxu0 %vm5626_vm1, %v13434_v15 }
 0xf06   :  { %v6101_v57 = vpop.f32.mrb[124].mxu1  ;;  %7042 = vst.msk [vmem:[#allocation2 + $0xc8] sm:$0xff] %vm7017_vm2, %v5953_v43  ;;  %6536 = vmatprep.mubr.f32.mxu0 %v9715_v39 }
 0xf07   :  { %7206 = vst [vmem:[#allocation2 + $0x5d0] sm:$0xff] %v6101_v57  ;;  %v6103_v58 = vpop.f32.mrb[125].mxu1  ;;  %8089 = vmatmul.mubr.msk.f32.gmra.mrb[230].mxu1 %vm5626_vm1, %v13306_v4 }
 0xf08   :  { %7207 = vst.msk [vmem:[#allocation2 + $0x5d8] sm:$0xff] %vm7017_vm2, %v6103_v58  ;;  %6889 = vmatprep.mubr.f32.mxu1 %v9715_v39  ;;  %v5957_v56 = vpop.f32.mrb[126].mxu0 }
 0xf09   :  { %7043 = vst [vmem:[#allocation2 + $0xd0] sm:$0xff] %v5957_v56  ;;  %v5959_v41 = vpop.f32.mrb[127].mxu0  ;;  %8040 = vmatmul.mubr.msk.f32.gmra.mrb[232].mxu0 %vm5626_vm1, %v13450_v14 }
 0xf0a   :  { %v6107_v5 = vpop.f32.mrb[126].mxu1  ;;  %7044 = vst.msk [vmem:[#allocation2 + $0xd8] sm:$0xff] %vm7017_vm2, %v5959_v41  ;;  %6542 = vmatprep.mubr.f32.mxu0 %v9715_v39 }
 0xf0b   :  { %7208 = vst [vmem:[#allocation2 + $0x5e0] sm:$0xff] %v6107_v5  ;;  %v6109_v38 = vpop.f32.mrb[127].mxu1  ;;  %8090 = vmatmul.mubr.msk.f32.gmra.mrb[232].mxu1 %vm5626_vm1, %v13322_v62 }
 0xf0c   :  { %7209 = vst.msk [vmem:[#allocation2 + $0x5e8] sm:$0xff] %vm7017_vm2, %v6109_v38  ;;  %6895 = vmatprep.mubr.f32.mxu1 %v9715_v39  ;;  %v5963_v4 = vpop.f32.mrb[128].mxu0 }
 0xf0d   :  { %7045 = vst [vmem:[#allocation2 + $0xe0] sm:$0xff] %v5963_v4  ;;  %v5965_v59 = vpop.f32.mrb[129].mxu0  ;;  %8041 = vmatmul.mubr.msk.f32.gmra.mrb[234].mxu0 %vm5626_vm1, %v13466_v17 }
 0xf0e   :  { %v6113_v6 = vpop.f32.mrb[128].mxu1  ;;  %7046 = vst.msk [vmem:[#allocation2 + $0xe8] sm:$0xff] %vm7017_vm2, %v5965_v59  ;;  %6548 = vmatprep.mubr.f32.mxu0 %v9715_v39 }
 0xf0f   :  { %7210 = vst [vmem:[#allocation2 + $0x5f0] sm:$0xff] %v6113_v6  ;;  %v6115_v49 = vpop.f32.mrb[129].mxu1  ;;  %8091 = vmatmul.mubr.msk.f32.gmra.mrb[234].mxu1 %vm5626_vm1, %v13338_v51 }
 0xf10   :  { %7211 = vst.msk [vmem:[#allocation2 + $0x5f8] sm:$0xff] %vm7017_vm2, %v6115_v49  ;;  %6901 = vmatprep.mubr.f32.mxu1 %v9715_v39  ;;  %v5969_v62 = vpop.f32.mrb[130].mxu0 }
 0xf11   :  { %7047 = vst [vmem:[#allocation2 + $0xf0] sm:$0xff] %v5969_v62  ;;  %v5971_v16 = vpop.f32.mrb[131].mxu0  ;;  %8042 = vmatmul.mubr.msk.f32.gmra.mrb[236].mxu0 %vm5626_vm1, %v13482_v20 }
 0xf12   :  { %v6119_v60 = vpop.f32.mrb[130].mxu1  ;;  %7048 = vst.msk [vmem:[#allocation2 + $0xf8] sm:$0xff] %vm7017_vm2, %v5971_v16  ;;  %6554 = vmatprep.mubr.f32.mxu0 %v9715_v39 }
 0xf13   :  { %7212 = vst [vmem:[#allocation2 + $0x600] sm:$0xff] %v6119_v60  ;;  %v6121_v11 = vpop.f32.mrb[131].mxu1  ;;  %8092 = vmatmul.mubr.msk.f32.gmra.mrb[236].mxu1 %vm5626_vm1, %v13354_v35 }
 0xf14   :  { %7213 = vst.msk [vmem:[#allocation2 + $0x608] sm:$0xff] %vm7017_vm2, %v6121_v11  ;;  %6907 = vmatprep.mubr.f32.mxu1 %v9715_v39  ;;  %v5975_v51 = vpop.f32.mrb[132].mxu0 }
 0xf15   :  { %7049 = vst [vmem:[#allocation2 + $0x100] sm:$0xff] %v5975_v51  ;;  %v5977_v0 = vpop.f32.mrb[133].mxu0  ;;  %8043 = vmatmul.mubr.msk.f32.gmra.mrb[238].mxu0 %vm5626_vm1, %v13498_v12 }
 0xf16   :  { %v6125_v2 = vpop.f32.mrb[132].mxu1  ;;  %7050 = vst.msk [vmem:[#allocation2 + $0x108] sm:$0xff] %vm7017_vm2, %v5977_v0  ;;  %6560 = vmatprep.mubr.f32.mxu0 %v9715_v39 }
 0xf17   :  { %7214 = vst [vmem:[#allocation2 + $0x610] sm:$0xff] %v6125_v2  ;;  %v6127_v10 = vpop.f32.mrb[133].mxu1  ;;  %8093 = vmatmul.mubr.msk.f32.gmra.mrb[238].mxu1 %vm5626_vm1, %v13370_v48 }
 0xf18   :  { %7215 = vst.msk [vmem:[#allocation2 + $0x618] sm:$0xff] %vm7017_vm2, %v6127_v10  ;;  %6913 = vmatprep.mubr.f32.mxu1 %v9715_v39  ;;  %v5981_v35 = vpop.f32.mrb[134].mxu0 }
 0xf19   :  { %7051 = vst [vmem:[#allocation2 + $0x110] sm:$0xff] %v5981_v35  ;;  %v5983_v36 = vpop.f32.mrb[135].mxu0  ;;  %8044 = vmatmul.mubr.msk.f32.gmra.mrb[240].mxu0 %vm5626_vm1, %v13514_v23 }
 0xf1a   :  { %v6131_v24 = vpop.f32.mrb[134].mxu1  ;;  %7052 = vst.msk [vmem:[#allocation2 + $0x118] sm:$0xff] %vm7017_vm2, %v5983_v36  ;;  %6566 = vmatprep.mubr.f32.mxu0 %v9715_v39 }
 0xf1b   :  { %7216 = vst [vmem:[#allocation2 + $0x620] sm:$0xff] %v6131_v24  ;;  %v6133_v9 = vpop.f32.mrb[135].mxu1  ;;  %8094 = vmatmul.mubr.msk.f32.gmra.mrb[240].mxu1 %vm5626_vm1, %v13386_v32 }
 0xf1c   :  { %7217 = vst.msk [vmem:[#allocation2 + $0x628] sm:$0xff] %vm7017_vm2, %v6133_v9  ;;  %6919 = vmatprep.mubr.f32.mxu1 %v9715_v39  ;;  %v5987_v48 = vpop.f32.mrb[136].mxu0 }
 0xf1d   :  { %7053 = vst [vmem:[#allocation2 + $0x120] sm:$0xff] %v5987_v48  ;;  %v5989_v19 = vpop.f32.mrb[137].mxu0  ;;  %8045 = vmatmul.mubr.msk.f32.gmra.mrb[242].mxu0 %vm5626_vm1, %v13525_v18 }
 0xf1e   :  { %v6137_v47 = vpop.f32.mrb[136].mxu1  ;;  %7054 = vst.msk [vmem:[#allocation2 + $0x128] sm:$0xff] %vm7017_vm2, %v5989_v19  ;;  %6572 = vmatprep.mubr.f32.mxu0 %v9715_v39 }
 0xf1f   :  { %7218 = vst [vmem:[#allocation2 + $0x630] sm:$0xff] %v6137_v47  ;;  %v6139_v7 = vpop.f32.mrb[137].mxu1  ;;  %8095 = vmatmul.mubr.msk.f32.gmra.mrb[242].mxu1 %vm5626_vm1, %v13402_v1 }
 0xf20   :  { %7219 = vst.msk [vmem:[#allocation2 + $0x638] sm:$0xff] %vm7017_vm2, %v6139_v7  ;;  %6925 = vmatprep.mubr.f32.mxu1 %v9715_v39  ;;  %v5993_v32 = vpop.f32.mrb[138].mxu0 }
 0xf21   :  { %7055 = vst [vmem:[#allocation2 + $0x130] sm:$0xff] %v5993_v32  ;;  %v5995_v27 = vpop.f32.mrb[139].mxu0  ;;  %8046 = vmatmul.mubr.msk.f32.gmra.mrb[244].mxu0 %vm5626_vm1, %v13536_v21 }
 0xf22   :  { %v6143_v3 = vpop.f32.mrb[138].mxu1  ;;  %7056 = vst.msk [vmem:[#allocation2 + $0x138] sm:$0xff] %vm7017_vm2, %v5995_v27  ;;  %6578 = vmatprep.mubr.f32.mxu0 %v9715_v39 }
 0xf23   :  { %7220 = vst [vmem:[#allocation2 + $0x640] sm:$0xff] %v6143_v3  ;;  %v6145_v26 = vpop.f32.mrb[139].mxu1  ;;  %8096 = vmatmul.mubr.msk.f32.gmra.mrb[244].mxu1 %vm5626_vm1, %v13418_v8 }
 0xf24   :  { %7221 = vst.msk [vmem:[#allocation2 + $0x648] sm:$0xff] %vm7017_vm2, %v6145_v26  ;;  %6931 = vmatprep.mubr.f32.mxu1 %v9715_v39  ;;  %v5999_v1 = vpop.f32.mrb[140].mxu0 }
 0xf25   :  { %7057 = vst [vmem:[#allocation2 + $0x140] sm:$0xff] %v5999_v1  ;;  %v6001_v37 = vpop.f32.mrb[141].mxu0  ;;  %8047 = vmatmul.mubr.msk.f32.gmra.mrb[246].mxu0 %vm5626_vm1, %v13547_v55 }
 0xf26   :  { %v6149_v13 = vpop.f32.mrb[140].mxu1  ;;  %7058 = vst.msk [vmem:[#allocation2 + $0x148] sm:$0xff] %vm7017_vm2, %v6001_v37  ;;  %6584 = vmatprep.mubr.f32.mxu0 %v9715_v39 }
 0xf27   :  { %7222 = vst [vmem:[#allocation2 + $0x650] sm:$0xff] %v6149_v13  ;;  %v6151_v61 = vpop.f32.mrb[141].mxu1  ;;  %8097 = vmatmul.mubr.msk.f32.gmra.mrb[246].mxu1 %vm5626_vm1, %v13434_v15 }
 0xf28   :  { %7223 = vst.msk [vmem:[#allocation2 + $0x658] sm:$0xff] %vm7017_vm2, %v6151_v61  ;;  %6937 = vmatprep.mubr.f32.mxu1 %v9715_v39  ;;  %v6005_v8 = vpop.f32.mrb[142].mxu0 }
 0xf29   :  { %7059 = vst [vmem:[#allocation2 + $0x150] sm:$0xff] %v6005_v8  ;;  %v6007_v52 = vpop.f32.mrb[143].mxu0  ;;  %8048 = vmatmul.mubr.msk.f32.gmra.mrb[248].mxu0 %vm5626_vm1, %v13558_v63 }
 0xf2a   :  { %v6155_v34 = vpop.f32.mrb[142].mxu1  ;;  %7060 = vst.msk [vmem:[#allocation2 + $0x158] sm:$0xff] %vm7017_vm2, %v6007_v52  ;;  %6590 = vmatprep.mubr.f32.mxu0 %v9715_v39 }
 0xf2b   :  { %7224 = vst [vmem:[#allocation2 + $0x660] sm:$0xff] %v6155_v34  ;;  %v6157_v40 = vpop.f32.mrb[143].mxu1  ;;  %8098 = vmatmul.mubr.msk.f32.gmra.mrb[248].mxu1 %vm5626_vm1, %v13450_v14 }
 0xf2c   :  { %7225 = vst.msk [vmem:[#allocation2 + $0x668] sm:$0xff] %vm7017_vm2, %v6157_v40  ;;  %6943 = vmatprep.mubr.f32.mxu1 %v9715_v39  ;;  %v6011_v15 = vpop.f32.mrb[144].mxu0 }
 0xf2d   :  { %7061 = vst [vmem:[#allocation2 + $0x160] sm:$0xff] %v6011_v15  ;;  %v6013_v28 = vpop.f32.mrb[145].mxu0  ;;  %8049 = vmatmul.mubr.msk.f32.gmra.mrb[250].mxu0 %vm5626_vm1, %v13569_v29 }
 0xf2e   :  { %v6161_v44 = vpop.f32.mrb[144].mxu1  ;;  %7062 = vst.msk [vmem:[#allocation2 + $0x168] sm:$0xff] %vm7017_vm2, %v6013_v28  ;;  %6596 = vmatprep.mubr.f32.mxu0 %v9715_v39 }
 0xf2f   :  { %7226 = vst [vmem:[#allocation2 + $0x670] sm:$0xff] %v6161_v44  ;;  %v6163_v31 = vpop.f32.mrb[145].mxu1  ;;  %8099 = vmatmul.mubr.msk.f32.gmra.mrb[250].mxu1 %vm5626_vm1, %v13466_v17 }
 0xf30   :  { %7227 = vst.msk [vmem:[#allocation2 + $0x678] sm:$0xff] %vm7017_vm2, %v6163_v31  ;;  %6949 = vmatprep.mubr.f32.mxu1 %v9715_v39  ;;  %v6280_v14 = vpop.f32.mrb[146].mxu0 }
 0xf31   :  { %7074 = vst [vmem:[#allocation2 + $0x1c0] sm:$0xff] %v6280_v14  ;;  %v6282_v45 = vpop.f32.mrb[147].mxu0  ;;  %8050 = vmatmul.mubr.msk.f32.gmra.mrb[252].mxu0 %vm5626_vm1, %v13580_v25 }
 0xf32   :  { %v6167_v22 = vpop.f32.mrb[146].mxu1  ;;  %7075 = vst.msk [vmem:[#allocation2 + $0x1c8] sm:$0xff] %vm7017_vm2, %v6282_v45  ;;  %6602 = vmatprep.mubr.f32.mxu0 %v9715_v39 }
 0xf33   :  { %7228 = vst [vmem:[#allocation2 + $0x680] sm:$0xff] %v6167_v22  ;;  %v6169_v46 = vpop.f32.mrb[147].mxu1  ;;  %8100 = vmatmul.mubr.msk.f32.gmra.mrb[252].mxu1 %vm5626_vm1, %v13482_v20 }
 0xf34   :  { %7229 = vst.msk [vmem:[#allocation2 + $0x688] sm:$0xff] %vm7017_vm2, %v6169_v46  ;;  %6955 = vmatprep.mubr.f32.mxu1 %v9715_v39  ;;  %v6286_v17 = vpop.f32.mrb[148].mxu0 }
 0xf35   :  { %7076 = vst [vmem:[#allocation2 + $0x1d0] sm:$0xff] %v6286_v17  ;;  %v6288_v50 = vpop.f32.mrb[149].mxu0  ;;  %8051 = vmatmul.mubr.msk.f32.gmra.mrb[254].mxu0 %vm5626_vm1, %v13591_v42 }
 0xf36   :  { %v6173_v33 = vpop.f32.mrb[148].mxu1  ;;  %7077 = vst.msk [vmem:[#allocation2 + $0x1d8] sm:$0xff] %vm7017_vm2, %v6288_v50  ;;  %6608 = vmatprep.mubr.f32.mxu0 %v9715_v39 }
 0xf37   :  { %7230 = vst [vmem:[#allocation2 + $0x690] sm:$0xff] %v6173_v33  ;;  %v6175_v53 = vpop.f32.mrb[149].mxu1  ;;  %8101 = vmatmul.mubr.msk.f32.gmra.mrb[254].mxu1 %vm5626_vm1, %v13498_v12 }
 0xf38   :  { %7231 = vst.msk [vmem:[#allocation2 + $0x698] sm:$0xff] %vm7017_vm2, %v6175_v53  ;;  %6961 = vmatprep.mubr.f32.mxu1 %v9715_v39  ;;  %v6292_v20 = vpop.f32.mrb[150].mxu0 }
 0xf39   :  { %7078 = vst [vmem:[#allocation2 + $0x1e0] sm:$0xff] %v6292_v20  ;;  %v6294_v54 = vpop.f32.mrb[151].mxu0  ;;  %8052 = vmatmul.mubr.msk.f32.gmra.mrb[0].mxu0 %vm5626_vm1, %v13602_v30 }
 0xf3a   :  { %v6179_v43 = vpop.f32.mrb[150].mxu1  ;;  %7079 = vst.msk [vmem:[#allocation2 + $0x1e8] sm:$0xff] %vm7017_vm2, %v6294_v54 }
 0xf3b   :  { %7232 = vst [vmem:[#allocation2 + $0x6a0] sm:$0xff] %v6179_v43  ;;  %v6181_v57 = vpop.f32.mrb[151].mxu1  ;;  %8102 = vmatmul.mubr.msk.f32.gmra.mrb[0].mxu1 %vm5626_vm1, %v13514_v23 }
 0xf3c   :  { %7233 = vst.msk [vmem:[#allocation2 + $0x6a8] sm:$0xff] %vm7017_vm2, %v6181_v57  ;;  %6967 = vmatprep.mubr.f32.mxu1 %v9715_v39  ;;  %v6298_v12 = vpop.f32.mrb[152].mxu0 }
 0xf3d   :  { %7080 = vst [vmem:[#allocation2 + $0x1f0] sm:$0xff] %v6298_v12  ;;  %v6300_v58 = vpop.f32.mrb[153].mxu0 }
 0xf3e   :  { %v6185_v56 = vpop.f32.mrb[152].mxu1  ;;  %7081 = vst.msk [vmem:[#allocation2 + $0x1f8] sm:$0xff] %vm7017_vm2, %v6300_v58 }
 0xf3f   :  { %7234 = vst [vmem:[#allocation2 + $0x6b0] sm:$0xff] %v6185_v56  ;;  %v6187_v41 = vpop.f32.mrb[153].mxu1  ;;  %8103 = vmatmul.mubr.msk.f32.gmra.mrb[2].mxu1 %vm5626_vm1, %v13525_v18 }
 0xf40   :  { %7235 = vst.msk [vmem:[#allocation2 + $0x6b8] sm:$0xff] %vm7017_vm2, %v6187_v41  ;;  %6973 = vmatprep.mubr.f32.mxu1 %v9715_v39  ;;  %v6304_v23 = vpop.f32.mrb[154].mxu0 }
 0xf41   :  { %7082 = vst [vmem:[#allocation2 + $0x200] sm:$0xff] %v6304_v23  ;;  %v6306_v5 = vpop.f32.mrb[155].mxu0 }
 0xf42   :  { %v6191_v38 = vpop.f32.mrb[154].mxu1  ;;  %7083 = vst.msk [vmem:[#allocation2 + $0x208] sm:$0xff] %vm7017_vm2, %v6306_v5 }
 0xf43   :  { %7236 = vst [vmem:[#allocation2 + $0x6c0] sm:$0xff] %v6191_v38  ;;  %v6193_v4 = vpop.f32.mrb[155].mxu1  ;;  %8104 = vmatmul.mubr.msk.f32.gmra.mrb[4].mxu1 %vm5626_vm1, %v13536_v21 }
 0xf44   :  { %7237 = vst.msk [vmem:[#allocation2 + $0x6c8] sm:$0xff] %vm7017_vm2, %v6193_v4  ;;  %6979 = vmatprep.mubr.f32.mxu1 %v9715_v39  ;;  %v6310_v18 = vpop.f32.mrb[156].mxu0 }
 0xf45   :  { %7084 = vst [vmem:[#allocation2 + $0x210] sm:$0xff] %v6310_v18  ;;  %v6312_v59 = vpop.f32.mrb[157].mxu0 }
 0xf46   :  { %v6197_v6 = vpop.f32.mrb[156].mxu1  ;;  %7085 = vst.msk [vmem:[#allocation2 + $0x218] sm:$0xff] %vm7017_vm2, %v6312_v59 }
 0xf47   :  { %7238 = vst [vmem:[#allocation2 + $0x6d0] sm:$0xff] %v6197_v6  ;;  %v6199_v49 = vpop.f32.mrb[157].mxu1  ;;  %8105 = vmatmul.mubr.msk.f32.gmra.mrb[6].mxu1 %vm5626_vm1, %v13547_v55 }
 0xf48   :  { %7239 = vst.msk [vmem:[#allocation2 + $0x6d8] sm:$0xff] %vm7017_vm2, %v6199_v49  ;;  %6985 = vmatprep.mubr.f32.mxu1 %v9715_v39  ;;  %v6316_v21 = vpop.f32.mrb[158].mxu0 }
 0xf49   :  { %7086 = vst [vmem:[#allocation2 + $0x220] sm:$0xff] %v6316_v21  ;;  %v6318_v62 = vpop.f32.mrb[159].mxu0 }
 0xf4a   :  { %v6203_v16 = vpop.f32.mrb[158].mxu1  ;;  %7087 = vst.msk [vmem:[#allocation2 + $0x228] sm:$0xff] %vm7017_vm2, %v6318_v62 }
 0xf4b   :  { %7240 = vst [vmem:[#allocation2 + $0x6e0] sm:$0xff] %v6203_v16  ;;  %v6205_v60 = vpop.f32.mrb[159].mxu1  ;;  %8106 = vmatmul.mubr.msk.f32.gmra.mrb[8].mxu1 %vm5626_vm1, %v13558_v63 }
 0xf4c   :  { %7241 = vst.msk [vmem:[#allocation2 + $0x6e8] sm:$0xff] %vm7017_vm2, %v6205_v60  ;;  %6991 = vmatprep.mubr.f32.mxu1 %v9715_v39  ;;  %v6322_v55 = vpop.f32.mrb[160].mxu0 }
 0xf4d   :  { %7088 = vst [vmem:[#allocation2 + $0x230] sm:$0xff] %v6322_v55  ;;  %v6324_v11 = vpop.f32.mrb[161].mxu0 }
 0xf4e   :  { %v6209_v51 = vpop.f32.mrb[160].mxu1  ;;  %7089 = vst.msk [vmem:[#allocation2 + $0x238] sm:$0xff] %vm7017_vm2, %v6324_v11 }
 0xf4f   :  { %7242 = vst [vmem:[#allocation2 + $0x6f0] sm:$0xff] %v6209_v51  ;;  %v6211_v0 = vpop.f32.mrb[161].mxu1  ;;  %8107 = vmatmul.mubr.msk.f32.gmra.mrb[10].mxu1 %vm5626_vm1, %v13569_v29 }
 0xf50   :  { %7243 = vst.msk [vmem:[#allocation2 + $0x6f8] sm:$0xff] %vm7017_vm2, %v6211_v0  ;;  %6997 = vmatprep.mubr.f32.mxu1 %v9715_v39  ;;  %v6328_v63 = vpop.f32.mrb[162].mxu0 }
 0xf51   :  { %7090 = vst [vmem:[#allocation2 + $0x240] sm:$0xff] %v6328_v63  ;;  %v6330_v2 = vpop.f32.mrb[163].mxu0 }
 0xf52   :  { %v6681_v10 = vpop.f32.mrb[162].mxu1  ;;  %7091 = vst.msk [vmem:[#allocation2 + $0x248] sm:$0xff] %vm7017_vm2, %v6330_v2 }
 0xf53   :  { %7131 = vst [vmem:[#allocation2 + $0x380] sm:$0xff] %v6681_v10  ;;  %v6683_v35 = vpop.f32.mrb[163].mxu1  ;;  %8108 = vmatmul.mubr.msk.f32.gmra.mrb[12].mxu1 %vm5626_vm1, %v13580_v25 }
 0xf54   :  { %7132 = vst.msk [vmem:[#allocation2 + $0x388] sm:$0xff] %vm7017_vm2, %v6683_v35  ;;  %7003 = vmatprep.mubr.f32.mxu1 %v9715_v39  ;;  %v6334_v29 = vpop.f32.mrb[164].mxu0 }
 0xf55   :  { %7092 = vst [vmem:[#allocation2 + $0x250] sm:$0xff] %v6334_v29  ;;  %v6336_v36 = vpop.f32.mrb[165].mxu0 }
 0xf56   :  { %v6687_v24 = vpop.f32.mrb[164].mxu1  ;;  %7093 = vst.msk [vmem:[#allocation2 + $0x258] sm:$0xff] %vm7017_vm2, %v6336_v36 }
 0xf57   :  { %7133 = vst [vmem:[#allocation2 + $0x390] sm:$0xff] %v6687_v24  ;;  %v6689_v9 = vpop.f32.mrb[165].mxu1  ;;  %8109 = vmatmul.mubr.msk.f32.gmra.mrb[14].mxu1 %vm5626_vm1, %v13591_v42 }
 0xf58   :  { %7134 = vst.msk [vmem:[#allocation2 + $0x398] sm:$0xff] %vm7017_vm2, %v6689_v9  ;;  %7009 = vmatprep.mubr.f32.mxu1 %v9715_v39  ;;  %v6340_v25 = vpop.f32.mrb[166].mxu0 }
 0xf59   :  { %7094 = vst [vmem:[#allocation2 + $0x260] sm:$0xff] %v6340_v25  ;;  %v6342_v48 = vpop.f32.mrb[167].mxu0 }
 0xf5a   :  { %v6693_v19 = vpop.f32.mrb[166].mxu1  ;;  %7095 = vst.msk [vmem:[#allocation2 + $0x268] sm:$0xff] %vm7017_vm2, %v6342_v48 }
 0xf5b   :  { %7135 = vst [vmem:[#allocation2 + $0x3a0] sm:$0xff] %v6693_v19  ;;  %v6695_v47 = vpop.f32.mrb[167].mxu1  ;;  %8110 = vmatmul.mubr.msk.f32.gmra.mrb[16].mxu1 %vm5626_vm1, %v13602_v30 }
 0xf5c   :  { %7136 = vst.msk [vmem:[#allocation2 + $0x3a8] sm:$0xff] %vm7017_vm2, %v6695_v47  ;;  %v6346_v7 = vpop.f32.mrb[168].mxu0 }
 0xf5d   :  { %7096 = vst [vmem:[#allocation2 + $0x270] sm:$0xff] %v6346_v7  ;;  %v6348_v42 = vpop.f32.mrb[169].mxu0 }
 0xf5e   :  { %v6699_v32 = vpop.f32.mrb[168].mxu1  ;;  %7097 = vst.msk [vmem:[#allocation2 + $0x278] sm:$0xff] %vm7017_vm2, %v6348_v42 }
 0xf5f   :  { %7137 = vst [vmem:[#allocation2 + $0x3b0] sm:$0xff] %v6699_v32  ;;  %v6701_v39 = vpop.f32.mrb[169].mxu1 }
 0xf60   :  { %7138 = vst.msk [vmem:[#allocation2 + $0x3b8] sm:$0xff] %vm7017_vm2, %v6701_v39  ;;  %v6352_v27 = vpop.f32.mrb[170].mxu0 }
 0xf61   :  { %7098 = vst [vmem:[#allocation2 + $0x280] sm:$0xff] %v6352_v27  ;;  %v6354_v3 = vpop.f32.mrb[171].mxu0 }
 0xf62   :  { %v6705_v26 = vpop.f32.mrb[170].mxu1  ;;  %7099 = vst.msk [vmem:[#allocation2 + $0x288] sm:$0xff] %vm7017_vm2, %v6354_v3 }
 0xf63   :  { %7139 = vst [vmem:[#allocation2 + $0x3c0] sm:$0xff] %v6705_v26  ;;  %v6707_v30 = vpop.f32.mrb[171].mxu1 }
 0xf64   :  { %7140 = vst.msk [vmem:[#allocation2 + $0x3c8] sm:$0xff] %vm7017_vm2, %v6707_v30  ;;  %v6358_v1 = vpop.f32.mrb[172].mxu0 }
 0xf65   :  { %7100 = vst [vmem:[#allocation2 + $0x290] sm:$0xff] %v6358_v1  ;;  %v6360_v37 = vpop.f32.mrb[173].mxu0 }
 0xf66   :  { %v6711_v13 = vpop.f32.mrb[172].mxu1  ;;  %7101 = vst.msk [vmem:[#allocation2 + $0x298] sm:$0xff] %vm7017_vm2, %v6360_v37 }
 0xf67   :  { %7141 = vst [vmem:[#allocation2 + $0x3d0] sm:$0xff] %v6711_v13  ;;  %v6713_v61 = vpop.f32.mrb[173].mxu1 }
 0xf68   :  { %7142 = vst.msk [vmem:[#allocation2 + $0x3d8] sm:$0xff] %vm7017_vm2, %v6713_v61  ;;  %v6364_v8 = vpop.f32.mrb[174].mxu0 }
 0xf69   :  { %7102 = vst [vmem:[#allocation2 + $0x2a0] sm:$0xff] %v6364_v8  ;;  %v6366_v52 = vpop.f32.mrb[175].mxu0 }
 0xf6a   :  { %v6717_v34 = vpop.f32.mrb[174].mxu1  ;;  %7103 = vst.msk [vmem:[#allocation2 + $0x2a8] sm:$0xff] %vm7017_vm2, %v6366_v52 }
 0xf6b   :  { %7143 = vst [vmem:[#allocation2 + $0x3e0] sm:$0xff] %v6717_v34  ;;  %v6719_v40 = vpop.f32.mrb[175].mxu1 }
 0xf6c   :  { %7144 = vst.msk [vmem:[#allocation2 + $0x3e8] sm:$0xff] %vm7017_vm2, %v6719_v40  ;;  %v6370_v15 = vpop.f32.mrb[176].mxu0 }
 0xf6d   :  { %7104 = vst [vmem:[#allocation2 + $0x2b0] sm:$0xff] %v6370_v15  ;;  %v6372_v28 = vpop.f32.mrb[177].mxu0 }
 0xf6e   :  { %v6723_v44 = vpop.f32.mrb[176].mxu1  ;;  %7105 = vst.msk [vmem:[#allocation2 + $0x2b8] sm:$0xff] %vm7017_vm2, %v6372_v28 }
 0xf6f   :  { %7145 = vst [vmem:[#allocation2 + $0x3f0] sm:$0xff] %v6723_v44  ;;  %v6725_v31 = vpop.f32.mrb[177].mxu1 }
 0xf70   :  { %7146 = vst.msk [vmem:[#allocation2 + $0x3f8] sm:$0xff] %vm7017_vm2, %v6725_v31  ;;  %v6376_v14 = vpop.f32.mrb[178].mxu0 }
 0xf71   :  { %7106 = vst [vmem:[#allocation2 + $0x2c0] sm:$0xff] %v6376_v14  ;;  %v6378_v45 = vpop.f32.mrb[179].mxu0 }
 0xf72   :  { %v6729_v22 = vpop.f32.mrb[178].mxu1  ;;  %7107 = vst.msk [vmem:[#allocation2 + $0x2c8] sm:$0xff] %vm7017_vm2, %v6378_v45 }
 0xf73   :  { %7147 = vst [vmem:[#allocation2 + $0x400] sm:$0xff] %v6729_v22  ;;  %v6731_v46 = vpop.f32.mrb[179].mxu1 }
 0xf74   :  { %7148 = vst.msk [vmem:[#allocation2 + $0x408] sm:$0xff] %vm7017_vm2, %v6731_v46  ;;  %v6382_v17 = vpop.f32.mrb[180].mxu0 }
 0xf75   :  { %7108 = vst [vmem:[#allocation2 + $0x2d0] sm:$0xff] %v6382_v17  ;;  %v6384_v50 = vpop.f32.mrb[181].mxu0 }
 0xf76   :  { %v6735_v33 = vpop.f32.mrb[180].mxu1  ;;  %7109 = vst.msk [vmem:[#allocation2 + $0x2d8] sm:$0xff] %vm7017_vm2, %v6384_v50 }
 0xf77   :  { %7149 = vst [vmem:[#allocation2 + $0x410] sm:$0xff] %v6735_v33  ;;  %v6737_v53 = vpop.f32.mrb[181].mxu1 }
 0xf78   :  { %7150 = vst.msk [vmem:[#allocation2 + $0x418] sm:$0xff] %vm7017_vm2, %v6737_v53  ;;  %v6388_v20 = vpop.f32.mrb[182].mxu0 }
 0xf79   :  { %7110 = vst [vmem:[#allocation2 + $0x2e0] sm:$0xff] %v6388_v20  ;;  %v6390_v54 = vpop.f32.mrb[183].mxu0 }
 0xf7a   :  { %v6741_v43 = vpop.f32.mrb[182].mxu1  ;;  %7111 = vst.msk [vmem:[#allocation2 + $0x2e8] sm:$0xff] %vm7017_vm2, %v6390_v54 }
 0xf7b   :  { %7151 = vst [vmem:[#allocation2 + $0x420] sm:$0xff] %v6741_v43  ;;  %v6743_v57 = vpop.f32.mrb[183].mxu1 }
 0xf7c   :  { %7152 = vst.msk [vmem:[#allocation2 + $0x428] sm:$0xff] %vm7017_vm2, %v6743_v57  ;;  %v6394_v12 = vpop.f32.mrb[184].mxu0 }
 0xf7d   :  { %7112 = vst [vmem:[#allocation2 + $0x2f0] sm:$0xff] %v6394_v12  ;;  %v6396_v58 = vpop.f32.mrb[185].mxu0 }
 0xf7e   :  { %v6747_v56 = vpop.f32.mrb[184].mxu1  ;;  %7113 = vst.msk [vmem:[#allocation2 + $0x2f8] sm:$0xff] %vm7017_vm2, %v6396_v58 }
 0xf7f   :  { %7153 = vst [vmem:[#allocation2 + $0x430] sm:$0xff] %v6747_v56  ;;  %v6749_v41 = vpop.f32.mrb[185].mxu1 }
 0xf80   :  { %7154 = vst.msk [vmem:[#allocation2 + $0x438] sm:$0xff] %vm7017_vm2, %v6749_v41  ;;  %v6400_v23 = vpop.f32.mrb[186].mxu0 }
 0xf81   :  { %7114 = vst [vmem:[#allocation2 + $0x300] sm:$0xff] %v6400_v23  ;;  %v6402_v5 = vpop.f32.mrb[187].mxu0 }
 0xf82   :  { %v6753_v38 = vpop.f32.mrb[186].mxu1  ;;  %7115 = vst.msk [vmem:[#allocation2 + $0x308] sm:$0xff] %vm7017_vm2, %v6402_v5 }
 0xf83   :  { %7155 = vst [vmem:[#allocation2 + $0x440] sm:$0xff] %v6753_v38  ;;  %v6755_v4 = vpop.f32.mrb[187].mxu1 }
 0xf84   :  { %7156 = vst.msk [vmem:[#allocation2 + $0x448] sm:$0xff] %vm7017_vm2, %v6755_v4  ;;  %v6406_v18 = vpop.f32.mrb[188].mxu0 }
 0xf85   :  { %7116 = vst [vmem:[#allocation2 + $0x310] sm:$0xff] %v6406_v18  ;;  %v6408_v59 = vpop.f32.mrb[189].mxu0 }
 0xf86   :  { %v6759_v6 = vpop.f32.mrb[188].mxu1  ;;  %7117 = vst.msk [vmem:[#allocation2 + $0x318] sm:$0xff] %vm7017_vm2, %v6408_v59 }
 0xf87   :  { %7157 = vst [vmem:[#allocation2 + $0x450] sm:$0xff] %v6759_v6  ;;  %v6761_v49 = vpop.f32.mrb[189].mxu1 }
 0xf88   :  { %7158 = vst.msk [vmem:[#allocation2 + $0x458] sm:$0xff] %vm7017_vm2, %v6761_v49  ;;  %v6412_v21 = vpop.f32.mrb[190].mxu0 }
 0xf89   :  { %7118 = vst [vmem:[#allocation2 + $0x320] sm:$0xff] %v6412_v21  ;;  %v6414_v62 = vpop.f32.mrb[191].mxu0 }
 0xf8a   :  { %v6765_v16 = vpop.f32.mrb[190].mxu1  ;;  %7119 = vst.msk [vmem:[#allocation2 + $0x328] sm:$0xff] %vm7017_vm2, %v6414_v62 }
 0xf8b   :  { %7159 = vst [vmem:[#allocation2 + $0x460] sm:$0xff] %v6765_v16  ;;  %v6767_v60 = vpop.f32.mrb[191].mxu1 }
 0xf8c   :  { %7160 = vst.msk [vmem:[#allocation2 + $0x468] sm:$0xff] %vm7017_vm2, %v6767_v60  ;;  %v6418_v55 = vpop.f32.mrb[192].mxu0 }
 0xf8d   :  { %7120 = vst [vmem:[#allocation2 + $0x330] sm:$0xff] %v6418_v55  ;;  %v6420_v11 = vpop.f32.mrb[193].mxu0 }
 0xf8e   :  { %v6771_v51 = vpop.f32.mrb[192].mxu1  ;;  %7121 = vst.msk [vmem:[#allocation2 + $0x338] sm:$0xff] %vm7017_vm2, %v6420_v11 }
 0xf8f   :  { %7161 = vst [vmem:[#allocation2 + $0x470] sm:$0xff] %v6771_v51  ;;  %v6773_v0 = vpop.f32.mrb[193].mxu1 }
 0xf90   :  { %7162 = vst.msk [vmem:[#allocation2 + $0x478] sm:$0xff] %vm7017_vm2, %v6773_v0  ;;  %v6424_v63 = vpop.f32.mrb[194].mxu0 }
 0xf91   :  { %7122 = vst [vmem:[#allocation2 + $0x340] sm:$0xff] %v6424_v63  ;;  %v6426_v2 = vpop.f32.mrb[195].mxu0 }
 0xf92   :  { %v6777_v10 = vpop.f32.mrb[194].mxu1  ;;  %7123 = vst.msk [vmem:[#allocation2 + $0x348] sm:$0xff] %vm7017_vm2, %v6426_v2 }
 0xf93   :  { %7163 = vst [vmem:[#allocation2 + $0x480] sm:$0xff] %v6777_v10  ;;  %v6779_v35 = vpop.f32.mrb[195].mxu1 }
 0xf94   :  { %7164 = vst.msk [vmem:[#allocation2 + $0x488] sm:$0xff] %vm7017_vm2, %v6779_v35  ;;  %v6430_v29 = vpop.f32.mrb[196].mxu0 }
 0xf95   :  { %7124 = vst [vmem:[#allocation2 + $0x350] sm:$0xff] %v6430_v29  ;;  %v6432_v36 = vpop.f32.mrb[197].mxu0 }
 0xf96   :  { %v6783_v24 = vpop.f32.mrb[196].mxu1  ;;  %7125 = vst.msk [vmem:[#allocation2 + $0x358] sm:$0xff] %vm7017_vm2, %v6432_v36 }
 0xf97   :  { %7165 = vst [vmem:[#allocation2 + $0x490] sm:$0xff] %v6783_v24  ;;  %v6785_v9 = vpop.f32.mrb[197].mxu1 }
 0xf98   :  { %7166 = vst.msk [vmem:[#allocation2 + $0x498] sm:$0xff] %vm7017_vm2, %v6785_v9  ;;  %v6436_v25 = vpop.f32.mrb[198].mxu0 }
 0xf99   :  { %7126 = vst [vmem:[#allocation2 + $0x360] sm:$0xff] %v6436_v25  ;;  %v6438_v48 = vpop.f32.mrb[199].mxu0 }
 0xf9a   :  { %v6789_v19 = vpop.f32.mrb[198].mxu1  ;;  %7127 = vst.msk [vmem:[#allocation2 + $0x368] sm:$0xff] %vm7017_vm2, %v6438_v48 }
 0xf9b   :  { %7167 = vst [vmem:[#allocation2 + $0x4a0] sm:$0xff] %v6789_v19  ;;  %v6791_v47 = vpop.f32.mrb[199].mxu1 }
 0xf9c   :  { %7168 = vst.msk [vmem:[#allocation2 + $0x4a8] sm:$0xff] %vm7017_vm2, %v6791_v47  ;;  %v6442_v7 = vpop.f32.mrb[200].mxu0 }
 0xf9d   :  { %7128 = vst [vmem:[#allocation2 + $0x370] sm:$0xff] %v6442_v7  ;;  %v6444_v42 = vpop.f32.mrb[201].mxu0 }
 0xf9e   :  { %v6795_v32 = vpop.f32.mrb[200].mxu1  ;;  %7129 = vst.msk [vmem:[#allocation2 + $0x378] sm:$0xff] %vm7017_vm2, %v6444_v42 }
 0xf9f   :  { %7169 = vst [vmem:[#allocation2 + $0x4b0] sm:$0xff] %v6795_v32  ;;  %v6797_v39 = vpop.f32.mrb[201].mxu1 }
 0xfa0   :  { %7170 = vst.msk [vmem:[#allocation2 + $0x4b8] sm:$0xff] %vm7017_vm2, %v6797_v39  ;;  %v6448_v27 = vpop.f32.mrb[202].mxu0 }
 0xfa1   :  { %7245 = vst [vmem:[#allocation2 + $0x700] sm:$0xff] %v6448_v27  ;;  %v6450_v3 = vpop.f32.mrb[203].mxu0 }
 0xfa2   :  { %v6801_v26 = vpop.f32.mrb[202].mxu1  ;;  %7246 = vst.msk [vmem:[#allocation2 + $0x708] sm:$0xff] %vm7017_vm2, %v6450_v3 }
 0xfa3   :  { %7171 = vst [vmem:[#allocation2 + $0x4c0] sm:$0xff] %v6801_v26  ;;  %v6803_v30 = vpop.f32.mrb[203].mxu1 }
 0xfa4   :  { %7172 = vst.msk [vmem:[#allocation2 + $0x4c8] sm:$0xff] %vm7017_vm2, %v6803_v30  ;;  %v6454_v1 = vpop.f32.mrb[204].mxu0 }
 0xfa5   :  { %7247 = vst [vmem:[#allocation2 + $0x710] sm:$0xff] %v6454_v1  ;;  %v6456_v37 = vpop.f32.mrb[205].mxu0 }
 0xfa6   :  { %v6807_v13 = vpop.f32.mrb[204].mxu1  ;;  %7248 = vst.msk [vmem:[#allocation2 + $0x718] sm:$0xff] %vm7017_vm2, %v6456_v37 }
 0xfa7   :  { %7173 = vst [vmem:[#allocation2 + $0x4d0] sm:$0xff] %v6807_v13  ;;  %v6809_v61 = vpop.f32.mrb[205].mxu1 }
 0xfa8   :  { %7174 = vst.msk [vmem:[#allocation2 + $0x4d8] sm:$0xff] %vm7017_vm2, %v6809_v61  ;;  %v6460_v8 = vpop.f32.mrb[206].mxu0 }
 0xfa9   :  { %7249 = vst [vmem:[#allocation2 + $0x720] sm:$0xff] %v6460_v8  ;;  %v6462_v52 = vpop.f32.mrb[207].mxu0 }
 0xfaa   :  { %v6813_v34 = vpop.f32.mrb[206].mxu1  ;;  %7250 = vst.msk [vmem:[#allocation2 + $0x728] sm:$0xff] %vm7017_vm2, %v6462_v52 }
 0xfab   :  { %7175 = vst [vmem:[#allocation2 + $0x4e0] sm:$0xff] %v6813_v34  ;;  %v6815_v40 = vpop.f32.mrb[207].mxu1 }
 0xfac   :  { %7176 = vst.msk [vmem:[#allocation2 + $0x4e8] sm:$0xff] %vm7017_vm2, %v6815_v40  ;;  %v6466_v15 = vpop.f32.mrb[208].mxu0 }
 0xfad   :  { %7251 = vst [vmem:[#allocation2 + $0x730] sm:$0xff] %v6466_v15  ;;  %v6468_v28 = vpop.f32.mrb[209].mxu0 }
 0xfae   :  { %v6819_v44 = vpop.f32.mrb[208].mxu1  ;;  %7252 = vst.msk [vmem:[#allocation2 + $0x738] sm:$0xff] %vm7017_vm2, %v6468_v28 }
 0xfaf   :  { %7177 = vst [vmem:[#allocation2 + $0x4f0] sm:$0xff] %v6819_v44  ;;  %v6821_v31 = vpop.f32.mrb[209].mxu1 }
 0xfb0   :  { %7178 = vst.msk [vmem:[#allocation2 + $0x4f8] sm:$0xff] %vm7017_vm2, %v6821_v31  ;;  %v6472_v14 = vpop.f32.mrb[210].mxu0 }
 0xfb1   :  { %7253 = vst [vmem:[#allocation2 + $0x740] sm:$0xff] %v6472_v14  ;;  %v6474_v45 = vpop.f32.mrb[211].mxu0 }
 0xfb2   :  { %v6825_v22 = vpop.f32.mrb[210].mxu1  ;;  %7254 = vst.msk [vmem:[#allocation2 + $0x748] sm:$0xff] %vm7017_vm2, %v6474_v45 }
 0xfb3   :  { %7179 = vst [vmem:[#allocation2 + $0x500] sm:$0xff] %v6825_v22  ;;  %v6827_v46 = vpop.f32.mrb[211].mxu1 }
 0xfb4   :  { %7180 = vst.msk [vmem:[#allocation2 + $0x508] sm:$0xff] %vm7017_vm2, %v6827_v46  ;;  %v6478_v17 = vpop.f32.mrb[212].mxu0 }
 0xfb5   :  { %7255 = vst [vmem:[#allocation2 + $0x750] sm:$0xff] %v6478_v17  ;;  %v6480_v50 = vpop.f32.mrb[213].mxu0 }
 0xfb6   :  { %v6831_v33 = vpop.f32.mrb[212].mxu1  ;;  %7256 = vst.msk [vmem:[#allocation2 + $0x758] sm:$0xff] %vm7017_vm2, %v6480_v50 }
 0xfb7   :  { %7181 = vst [vmem:[#allocation2 + $0x510] sm:$0xff] %v6831_v33  ;;  %v6833_v53 = vpop.f32.mrb[213].mxu1 }
 0xfb8   :  { %7182 = vst.msk [vmem:[#allocation2 + $0x518] sm:$0xff] %vm7017_vm2, %v6833_v53  ;;  %v6484_v20 = vpop.f32.mrb[214].mxu0 }
 0xfb9   :  { %7257 = vst [vmem:[#allocation2 + $0x760] sm:$0xff] %v6484_v20  ;;  %v6486_v54 = vpop.f32.mrb[215].mxu0 }
 0xfba   :  { %v6837_v43 = vpop.f32.mrb[214].mxu1  ;;  %7258 = vst.msk [vmem:[#allocation2 + $0x768] sm:$0xff] %vm7017_vm2, %v6486_v54 }
 0xfbb   :  { %7183 = vst [vmem:[#allocation2 + $0x520] sm:$0xff] %v6837_v43  ;;  %v6839_v57 = vpop.f32.mrb[215].mxu1 }
 0xfbc   :  { %7184 = vst.msk [vmem:[#allocation2 + $0x528] sm:$0xff] %vm7017_vm2, %v6839_v57  ;;  %v6490_v12 = vpop.f32.mrb[216].mxu0 }
 0xfbd   :  { %7259 = vst [vmem:[#allocation2 + $0x770] sm:$0xff] %v6490_v12  ;;  %v6492_v58 = vpop.f32.mrb[217].mxu0 }
 0xfbe   :  { %v6843_v56 = vpop.f32.mrb[216].mxu1  ;;  %7260 = vst.msk [vmem:[#allocation2 + $0x778] sm:$0xff] %vm7017_vm2, %v6492_v58 }
 0xfbf   :  { %7185 = vst [vmem:[#allocation2 + $0x530] sm:$0xff] %v6843_v56  ;;  %v6845_v41 = vpop.f32.mrb[217].mxu1 }
 0xfc0   :  { %7186 = vst.msk [vmem:[#allocation2 + $0x538] sm:$0xff] %vm7017_vm2, %v6845_v41  ;;  %v6496_v23 = vpop.f32.mrb[218].mxu0 }
 0xfc1   :  { %7261 = vst [vmem:[#allocation2 + $0x780] sm:$0xff] %v6496_v23  ;;  %v6498_v5 = vpop.f32.mrb[219].mxu0 }
 0xfc2   :  { %v6849_v38 = vpop.f32.mrb[218].mxu1  ;;  %7262 = vst.msk [vmem:[#allocation2 + $0x788] sm:$0xff] %vm7017_vm2, %v6498_v5 }
 0xfc3   :  { %7302 = vst [vmem:[#allocation2 + $0x8c0] sm:$0xff] %v6849_v38  ;;  %v6851_v4 = vpop.f32.mrb[219].mxu1 }
 0xfc4   :  { %7303 = vst.msk [vmem:[#allocation2 + $0x8c8] sm:$0xff] %vm7017_vm2, %v6851_v4  ;;  %v6502_v18 = vpop.f32.mrb[220].mxu0 }
 0xfc5   :  { %7263 = vst [vmem:[#allocation2 + $0x790] sm:$0xff] %v6502_v18  ;;  %v6504_v59 = vpop.f32.mrb[221].mxu0 }
 0xfc6   :  { %v6855_v6 = vpop.f32.mrb[220].mxu1  ;;  %7264 = vst.msk [vmem:[#allocation2 + $0x798] sm:$0xff] %vm7017_vm2, %v6504_v59 }
 0xfc7   :  { %7304 = vst [vmem:[#allocation2 + $0x8d0] sm:$0xff] %v6855_v6  ;;  %v6857_v49 = vpop.f32.mrb[221].mxu1 }
 0xfc8   :  { %7305 = vst.msk [vmem:[#allocation2 + $0x8d8] sm:$0xff] %vm7017_vm2, %v6857_v49  ;;  %v6508_v21 = vpop.f32.mrb[222].mxu0 }
 0xfc9   :  { %7265 = vst [vmem:[#allocation2 + $0x7a0] sm:$0xff] %v6508_v21  ;;  %v6510_v62 = vpop.f32.mrb[223].mxu0 }
 0xfca   :  { %v6861_v16 = vpop.f32.mrb[222].mxu1  ;;  %7266 = vst.msk [vmem:[#allocation2 + $0x7a8] sm:$0xff] %vm7017_vm2, %v6510_v62 }
 0xfcb   :  { %7306 = vst [vmem:[#allocation2 + $0x8e0] sm:$0xff] %v6861_v16  ;;  %v6863_v60 = vpop.f32.mrb[223].mxu1 }
 0xfcc   :  { %7307 = vst.msk [vmem:[#allocation2 + $0x8e8] sm:$0xff] %vm7017_vm2, %v6863_v60  ;;  %v6514_v55 = vpop.f32.mrb[224].mxu0 }
 0xfcd   :  { %7267 = vst [vmem:[#allocation2 + $0x7b0] sm:$0xff] %v6514_v55  ;;  %v6516_v11 = vpop.f32.mrb[225].mxu0 }
 0xfce   :  { %v6867_v51 = vpop.f32.mrb[224].mxu1  ;;  %7268 = vst.msk [vmem:[#allocation2 + $0x7b8] sm:$0xff] %vm7017_vm2, %v6516_v11 }
 0xfcf   :  { %7308 = vst [vmem:[#allocation2 + $0x8f0] sm:$0xff] %v6867_v51  ;;  %v6869_v0 = vpop.f32.mrb[225].mxu1 }
 0xfd0   :  { %7309 = vst.msk [vmem:[#allocation2 + $0x8f8] sm:$0xff] %vm7017_vm2, %v6869_v0  ;;  %v6520_v63 = vpop.f32.mrb[226].mxu0 }
 0xfd1   :  { %7269 = vst [vmem:[#allocation2 + $0x7c0] sm:$0xff] %v6520_v63  ;;  %v6522_v2 = vpop.f32.mrb[227].mxu0 }
 0xfd2   :  { %v6873_v10 = vpop.f32.mrb[226].mxu1  ;;  %7270 = vst.msk [vmem:[#allocation2 + $0x7c8] sm:$0xff] %vm7017_vm2, %v6522_v2 }
 0xfd3   :  { %7310 = vst [vmem:[#allocation2 + $0x900] sm:$0xff] %v6873_v10  ;;  %v6875_v35 = vpop.f32.mrb[227].mxu1 }
 0xfd4   :  { %7311 = vst.msk [vmem:[#allocation2 + $0x908] sm:$0xff] %vm7017_vm2, %v6875_v35  ;;  %v6526_v29 = vpop.f32.mrb[228].mxu0 }
 0xfd5   :  { %7271 = vst [vmem:[#allocation2 + $0x7d0] sm:$0xff] %v6526_v29  ;;  %v6528_v36 = vpop.f32.mrb[229].mxu0 }
 0xfd6   :  { %v6879_v24 = vpop.f32.mrb[228].mxu1  ;;  %7272 = vst.msk [vmem:[#allocation2 + $0x7d8] sm:$0xff] %vm7017_vm2, %v6528_v36 }
 0xfd7   :  { %7312 = vst [vmem:[#allocation2 + $0x910] sm:$0xff] %v6879_v24  ;;  %v6881_v9 = vpop.f32.mrb[229].mxu1 }
 0xfd8   :  { %7313 = vst.msk [vmem:[#allocation2 + $0x918] sm:$0xff] %vm7017_vm2, %v6881_v9  ;;  %v6532_v25 = vpop.f32.mrb[230].mxu0 }
 0xfd9   :  { %7273 = vst [vmem:[#allocation2 + $0x7e0] sm:$0xff] %v6532_v25  ;;  %v6534_v48 = vpop.f32.mrb[231].mxu0 }
 0xfda   :  { %v6885_v19 = vpop.f32.mrb[230].mxu1  ;;  %7274 = vst.msk [vmem:[#allocation2 + $0x7e8] sm:$0xff] %vm7017_vm2, %v6534_v48 }
 0xfdb   :  { %7314 = vst [vmem:[#allocation2 + $0x920] sm:$0xff] %v6885_v19  ;;  %v6887_v47 = vpop.f32.mrb[231].mxu1 }
 0xfdc   :  { %7315 = vst.msk [vmem:[#allocation2 + $0x928] sm:$0xff] %vm7017_vm2, %v6887_v47  ;;  %v6538_v7 = vpop.f32.mrb[232].mxu0 }
 0xfdd   :  { %7275 = vst [vmem:[#allocation2 + $0x7f0] sm:$0xff] %v6538_v7  ;;  %v6540_v42 = vpop.f32.mrb[233].mxu0 }
 0xfde   :  { %v6891_v32 = vpop.f32.mrb[232].mxu1  ;;  %7276 = vst.msk [vmem:[#allocation2 + $0x7f8] sm:$0xff] %vm7017_vm2, %v6540_v42 }
 0xfdf   :  { %7316 = vst [vmem:[#allocation2 + $0x930] sm:$0xff] %v6891_v32  ;;  %v6893_v39 = vpop.f32.mrb[233].mxu1 }
 0xfe0   :  { %7317 = vst.msk [vmem:[#allocation2 + $0x938] sm:$0xff] %vm7017_vm2, %v6893_v39  ;;  %v6544_v27 = vpop.f32.mrb[234].mxu0 }
 0xfe1   :  { %7277 = vst [vmem:[#allocation2 + $0x800] sm:$0xff] %v6544_v27  ;;  %v6546_v3 = vpop.f32.mrb[235].mxu0 }
 0xfe2   :  { %v6897_v26 = vpop.f32.mrb[234].mxu1  ;;  %7278 = vst.msk [vmem:[#allocation2 + $0x808] sm:$0xff] %vm7017_vm2, %v6546_v3 }
 0xfe3   :  { %7318 = vst [vmem:[#allocation2 + $0x940] sm:$0xff] %v6897_v26  ;;  %v6899_v30 = vpop.f32.mrb[235].mxu1 }
 0xfe4   :  { %7319 = vst.msk [vmem:[#allocation2 + $0x948] sm:$0xff] %vm7017_vm2, %v6899_v30  ;;  %v6550_v1 = vpop.f32.mrb[236].mxu0 }
 0xfe5   :  { %7279 = vst [vmem:[#allocation2 + $0x810] sm:$0xff] %v6550_v1  ;;  %v6552_v37 = vpop.f32.mrb[237].mxu0 }
 0xfe6   :  { %v6903_v13 = vpop.f32.mrb[236].mxu1  ;;  %7280 = vst.msk [vmem:[#allocation2 + $0x818] sm:$0xff] %vm7017_vm2, %v6552_v37 }
 0xfe7   :  { %7320 = vst [vmem:[#allocation2 + $0x950] sm:$0xff] %v6903_v13  ;;  %v6905_v61 = vpop.f32.mrb[237].mxu1 }
 0xfe8   :  { %7321 = vst.msk [vmem:[#allocation2 + $0x958] sm:$0xff] %vm7017_vm2, %v6905_v61  ;;  %v6556_v8 = vpop.f32.mrb[238].mxu0 }
 0xfe9   :  { %7281 = vst [vmem:[#allocation2 + $0x820] sm:$0xff] %v6556_v8  ;;  %v6558_v52 = vpop.f32.mrb[239].mxu0 }
 0xfea   :  { %v6909_v34 = vpop.f32.mrb[238].mxu1  ;;  %7282 = vst.msk [vmem:[#allocation2 + $0x828] sm:$0xff] %vm7017_vm2, %v6558_v52 }
 0xfeb   :  { %7322 = vst [vmem:[#allocation2 + $0x960] sm:$0xff] %v6909_v34  ;;  %v6911_v40 = vpop.f32.mrb[239].mxu1 }
 0xfec   :  { %7323 = vst.msk [vmem:[#allocation2 + $0x968] sm:$0xff] %vm7017_vm2, %v6911_v40  ;;  %v6562_v15 = vpop.f32.mrb[240].mxu0 }
 0xfed   :  { %7283 = vst [vmem:[#allocation2 + $0x830] sm:$0xff] %v6562_v15  ;;  %v6564_v28 = vpop.f32.mrb[241].mxu0 }
 0xfee   :  { %v6915_v44 = vpop.f32.mrb[240].mxu1  ;;  %7284 = vst.msk [vmem:[#allocation2 + $0x838] sm:$0xff] %vm7017_vm2, %v6564_v28 }
 0xfef   :  { %7324 = vst [vmem:[#allocation2 + $0x970] sm:$0xff] %v6915_v44  ;;  %v6917_v31 = vpop.f32.mrb[241].mxu1 }
 0xff0   :  { %7325 = vst.msk [vmem:[#allocation2 + $0x978] sm:$0xff] %vm7017_vm2, %v6917_v31  ;;  %v6568_v14 = vpop.f32.mrb[242].mxu0 }
 0xff1   :  { %7285 = vst [vmem:[#allocation2 + $0x840] sm:$0xff] %v6568_v14  ;;  %v6570_v45 = vpop.f32.mrb[243].mxu0 }
 0xff2   :  { %v6921_v22 = vpop.f32.mrb[242].mxu1  ;;  %7286 = vst.msk [vmem:[#allocation2 + $0x848] sm:$0xff] %vm7017_vm2, %v6570_v45 }
 0xff3   :  { %7326 = vst [vmem:[#allocation2 + $0x980] sm:$0xff] %v6921_v22  ;;  %v6923_v46 = vpop.f32.mrb[243].mxu1 }
 0xff4   :  { %7327 = vst.msk [vmem:[#allocation2 + $0x988] sm:$0xff] %vm7017_vm2, %v6923_v46  ;;  %v6574_v17 = vpop.f32.mrb[244].mxu0 }
 0xff5   :  { %7287 = vst [vmem:[#allocation2 + $0x850] sm:$0xff] %v6574_v17  ;;  %v6576_v50 = vpop.f32.mrb[245].mxu0 }
 0xff6   :  { %v6927_v33 = vpop.f32.mrb[244].mxu1  ;;  %7288 = vst.msk [vmem:[#allocation2 + $0x858] sm:$0xff] %vm7017_vm2, %v6576_v50 }
 0xff7   :  { %7328 = vst [vmem:[#allocation2 + $0x990] sm:$0xff] %v6927_v33  ;;  %v6929_v53 = vpop.f32.mrb[245].mxu1 }
 0xff8   :  { %7329 = vst.msk [vmem:[#allocation2 + $0x998] sm:$0xff] %vm7017_vm2, %v6929_v53  ;;  %v6580_v20 = vpop.f32.mrb[246].mxu0 }
 0xff9   :  { %7289 = vst [vmem:[#allocation2 + $0x860] sm:$0xff] %v6580_v20  ;;  %v6582_v54 = vpop.f32.mrb[247].mxu0 }
 0xffa   :  { %v6933_v43 = vpop.f32.mrb[246].mxu1  ;;  %7290 = vst.msk [vmem:[#allocation2 + $0x868] sm:$0xff] %vm7017_vm2, %v6582_v54 }
 0xffb   :  { %7330 = vst [vmem:[#allocation2 + $0x9a0] sm:$0xff] %v6933_v43  ;;  %v6935_v57 = vpop.f32.mrb[247].mxu1 }
 0xffc   :  { %7331 = vst.msk [vmem:[#allocation2 + $0x9a8] sm:$0xff] %vm7017_vm2, %v6935_v57  ;;  %v6586_v12 = vpop.f32.mrb[248].mxu0 }
 0xffd   :  { %7291 = vst [vmem:[#allocation2 + $0x870] sm:$0xff] %v6586_v12  ;;  %v6588_v58 = vpop.f32.mrb[249].mxu0 }
 0xffe   :  { %v6939_v56 = vpop.f32.mrb[248].mxu1  ;;  %7292 = vst.msk [vmem:[#allocation2 + $0x878] sm:$0xff] %vm7017_vm2, %v6588_v58 }
 0xfff   :  { %7332 = vst [vmem:[#allocation2 + $0x9b0] sm:$0xff] %v6939_v56  ;;  %v6941_v41 = vpop.f32.mrb[249].mxu1 }
0x1000   :  { %7333 = vst.msk [vmem:[#allocation2 + $0x9b8] sm:$0xff] %vm7017_vm2, %v6941_v41  ;;  %v6592_v23 = vpop.f32.mrb[250].mxu0 }
0x1001   :  { %7293 = vst [vmem:[#allocation2 + $0x880] sm:$0xff] %v6592_v23  ;;  %v6594_v5 = vpop.f32.mrb[251].mxu0 }
0x1002   :  { %v6945_v38 = vpop.f32.mrb[250].mxu1  ;;  %7294 = vst.msk [vmem:[#allocation2 + $0x888] sm:$0xff] %vm7017_vm2, %v6594_v5 }
0x1003   :  { %7334 = vst [vmem:[#allocation2 + $0x9c0] sm:$0xff] %v6945_v38  ;;  %v6947_v4 = vpop.f32.mrb[251].mxu1 }
0x1004   :  { %7335 = vst.msk [vmem:[#allocation2 + $0x9c8] sm:$0xff] %vm7017_vm2, %v6947_v4  ;;  %v6598_v18 = vpop.f32.mrb[252].mxu0 }
0x1005   :  { %7295 = vst [vmem:[#allocation2 + $0x890] sm:$0xff] %v6598_v18  ;;  %v6600_v59 = vpop.f32.mrb[253].mxu0 }
0x1006   :  { %v6951_v6 = vpop.f32.mrb[252].mxu1  ;;  %7296 = vst.msk [vmem:[#allocation2 + $0x898] sm:$0xff] %vm7017_vm2, %v6600_v59 }
0x1007   :  { %7336 = vst [vmem:[#allocation2 + $0x9d0] sm:$0xff] %v6951_v6  ;;  %v6953_v49 = vpop.f32.mrb[253].mxu1 }
0x1008   :  { %7337 = vst.msk [vmem:[#allocation2 + $0x9d8] sm:$0xff] %vm7017_vm2, %v6953_v49  ;;  %v6604_v21 = vpop.f32.mrb[254].mxu0 }
0x1009   :  { %7297 = vst [vmem:[#allocation2 + $0x8a0] sm:$0xff] %v6604_v21  ;;  %v6606_v62 = vpop.f32.mrb[255].mxu0 }
0x100a   :  { %v6957_v16 = vpop.f32.mrb[254].mxu1  ;;  %7298 = vst.msk [vmem:[#allocation2 + $0x8a8] sm:$0xff] %vm7017_vm2, %v6606_v62 }
0x100b   :  { %7338 = vst [vmem:[#allocation2 + $0x9e0] sm:$0xff] %v6957_v16  ;;  %v6959_v60 = vpop.f32.mrb[255].mxu1 }
0x100c   :  { %7339 = vst.msk [vmem:[#allocation2 + $0x9e8] sm:$0xff] %vm7017_vm2, %v6959_v60  ;;  %v6610_v55 = vpop.f32.mrb[0].mxu0 }
0x100d   :  { %7299 = vst [vmem:[#allocation2 + $0x8b0] sm:$0xff] %v6610_v55  ;;  %v6612_v11 = vpop.f32.mrb[1].mxu0 }
0x100e   :  { %v6963_v51 = vpop.f32.mrb[0].mxu1  ;;  %7300 = vst.msk [vmem:[#allocation2 + $0x8b8] sm:$0xff] %vm7017_vm2, %v6612_v11 }
0x100f   :  { %7340 = vst [vmem:[#allocation2 + $0x9f0] sm:$0xff] %v6963_v51  ;;  %v6965_v0 = vpop.f32.mrb[1].mxu1 }
0x1010   :  { %7341 = vst.msk [vmem:[#allocation2 + $0x9f8] sm:$0xff] %vm7017_vm2, %v6965_v0 }
0x1012   :  { %v6969_v63 = vpop.f32.mrb[2].mxu1 }
0x1013   :  { %7342 = vst [vmem:[#allocation2 + $0xa00] sm:$0xff] %v6969_v63  ;;  %v6971_v2 = vpop.f32.mrb[3].mxu1 }
0x1014   :  { %7343 = vst.msk [vmem:[#allocation2 + $0xa08] sm:$0xff] %vm7017_vm2, %v6971_v2 }
0x1016   :  { %v6975_v10 = vpop.f32.mrb[4].mxu1 }
0x1017   :  { %7344 = vst [vmem:[#allocation2 + $0xa10] sm:$0xff] %v6975_v10  ;;  %v6977_v35 = vpop.f32.mrb[5].mxu1 }
0x1018   :  { %7345 = vst.msk [vmem:[#allocation2 + $0xa18] sm:$0xff] %vm7017_vm2, %v6977_v35 }
0x101a   :  { %v6981_v29 = vpop.f32.mrb[6].mxu1 }
0x101b   :  { %7346 = vst [vmem:[#allocation2 + $0xa20] sm:$0xff] %v6981_v29  ;;  %v6983_v36 = vpop.f32.mrb[7].mxu1 }
0x101c   :  { %7347 = vst.msk [vmem:[#allocation2 + $0xa28] sm:$0xff] %vm7017_vm2, %v6983_v36 }
0x101e   :  { %v6987_v24 = vpop.f32.mrb[8].mxu1 }
0x101f   :  { %7348 = vst [vmem:[#allocation2 + $0xa30] sm:$0xff] %v6987_v24  ;;  %v6989_v9 = vpop.f32.mrb[9].mxu1 }
0x1020   :  { %7349 = vst.msk [vmem:[#allocation2 + $0xa38] sm:$0xff] %vm7017_vm2, %v6989_v9 }
0x1022   :  { %v6993_v25 = vpop.f32.mrb[10].mxu1 }
0x1023   :  { %7350 = vst [vmem:[#allocation2 + $0xa40] sm:$0xff] %v6993_v25  ;;  %v6995_v48 = vpop.f32.mrb[11].mxu1 }
0x1024   :  { %7351 = vst.msk [vmem:[#allocation2 + $0xa48] sm:$0xff] %vm7017_vm2, %v6995_v48 }
0x1026   :  { %v6999_v19 = vpop.f32.mrb[12].mxu1 }
0x1027   :  { %7352 = vst [vmem:[#allocation2 + $0xa50] sm:$0xff] %v6999_v19  ;;  %v7001_v47 = vpop.f32.mrb[13].mxu1 }
0x1028   :  { %7353 = vst.msk [vmem:[#allocation2 + $0xa58] sm:$0xff] %vm7017_vm2, %v7001_v47 }
0x102a   :  { %v7005_v7 = vpop.f32.mrb[14].mxu1 }
0x102b   :  { %7354 = vst [vmem:[#allocation2 + $0xa60] sm:$0xff] %v7005_v7  ;;  %v7007_v42 = vpop.f32.mrb[15].mxu1 }
0x102c   :  { %7355 = vst.msk [vmem:[#allocation2 + $0xa68] sm:$0xff] %vm7017_vm2, %v7007_v42 }
0x102e   :  { %v7011_v32 = vpop.f32.mrb[16].mxu1 }
0x102f   :  { %7356 = vst [vmem:[#allocation2 + $0xa70] sm:$0xff] %v7011_v32  ;;  %v7013_v39 = vpop.f32.mrb[17].mxu1 }
0x1030   :  { %7357 = vst.msk [vmem:[#allocation2 + $0xa78] sm:$0xff] %vm7017_vm2, %v7013_v39 }
0x1031   :  { %9702 = shalt.err (!%p9699_p4)
}
0x1032   :  { %s9703_s22 = scalar_lea.hbm %s14124_s24, 43008 }
0x1033   :  { %p9704_p5 = scmp.ne.s32.totalorder %s14124_s24, %s9703_s22  ;;  %p9707_p6 = scmp.lt.u32.totalorder %s9703_s22, %s14124_s24 }
0x1035   :  { %p9709_p7 = pnand %p9707_p6, %p9704_p5 }
0x1037   :  { %9712 = shalt.err (!%p9709_p7)
}
0x1038   :  { %s9720_s28 = smov 256   ;;  %s9721_s29 = smov 16  }
0x1039   :  { %7369 = dma.vmem_to_hbm [thread:$0]  %s7364_s16, 43008, %s14124_s24, [#allocation3], %s9720_s28, %s9720_s28, %s9721_s29  }
0x103a   :  { %9713 = dma.done.wait [#allocation3], 43008  }
0x103b   :  { %9714 = vsyncadd [#allocation3], 4294924288 }
0x103c   :  { %7373 = vsyncpa [#allocation3], 1 }

</bundles_post_ra>
